<compile_context>
chip_gen: v5e
topology: v5e:2x2
jax: 0.10.0
libtpu: 0.0.40
codegen_flags: <defaults>
</compile_context>

<pallas_src>
import functools

import jax
import jax.numpy as jnp
from jax import lax
from jax.experimental import pallas as pl
from jax.experimental.pallas import tpu as pltpu

# ----------------------------- model hyper-params ---------------------------
KH, KW = 20, 5          # conv kernel (height, width)
SH, SW = 8, 2           # conv stride
C_OUT = 32              # conv out channels
HIDDEN = 128            # LSTM hidden size
DNN = 64                # dnn1 out features
UNROLL_T_MAX = 16       # static-unroll threshold for the time loop


def _device_is_v5e():
    try:
        kind = jax.devices()[0].device_kind.lower()
    except Exception:
        return False
    return ("v5e" in kind) or ("v5 lite" in kind) or ("v5litepod" in kind)


# v5e's MXU is 4x128^2: split the layer-1 K=256 dot there; keep fused on
# v6e/v7x where the 2x256^2 MXU does it in one pass.
SPLIT_L1 = _device_is_v5e()


# ------------------------------- Pallas kernel ------------------------------
def fused_forward_kernel(p_ref,                     # (T*BB, F*K) im2col patches
                         wcblk_ref, bcblk_ref,      # (F*K, F*C), (1, F*C)
                         wih0_ref, b0_ref,          # (F*C, 4H), (1, 4H)
                         whh0_ref,                  # (H, 4H)
                         w1_ref, b1_ref,            # (2H, 4H)=[Wih1;Whh1], (1,4H)
                         whead_ref, bhead_ref,      # (H, C_PAD), (1, C_PAD)
                         out_ref,                   # (BB, C_PAD)
                         gin0_ref,                  # VMEM scratch (T*BB, 4H)
                         *, n_time, bb, split_l1):
    H = HIDDEN

    # ---- conv as im2col matmul with block-diag weight (lane-dense 128 out) --
    conv = jnp.maximum(
        jnp.dot(p_ref[...], wcblk_ref[...], preferred_element_type=jnp.float32)
        + bcblk_ref[...], 0.0)                                    # (T*BB, F*C)

    # ---- hoisted layer-0 input projection (one tall matmul, bias folded) ----
    gin0_ref[...] = (jnp.dot(conv, wih0_ref[...],
                             preferred_element_type=jnp.float32)
                     + b0_ref[...])                               # (T*BB, 4H)

    # loop-invariant weight loads / bias broadcast hoisted out of the loop
    whh0 = whh0_ref[...]
    b1b = jnp.broadcast_to(b1_ref[...], (bb, 4 * H))
    # TODO(synk): keeping whh0/w1 resident in MXU weight registers across the
    # time loop (pltpu.matmul_push_rhs / matmul_acc_lhs / matmul_pop) would
    # drop the per-step RHS push; kept on jnp.dot for lowering robustness.

    if split_l1:
        # v5e: two K=128 dots, no per-step concat copy on the serial path.
        wih1 = w1_ref[0:H, :]
        whh1 = w1_ref[H:2 * H, :]

        def layer1_gates(h0, h1):
            return (jnp.dot(h0, wih1, preferred_element_type=jnp.float32)
                    + jnp.dot(h1, whh1, preferred_element_type=jnp.float32)
                    + b1b)
    else:
        # v6e/v7x: one fused K=256 MXU pass.
        w1 = w1_ref[...]

        def layer1_gates(h0, h1):
            return (jnp.dot(jnp.concatenate([h0, h1], axis=1), w1,
                            preferred_element_type=jnp.float32) + b1b)

    def gate_update(g, c_prev):
        # TODO(synk): gate transcendentals kept in f32 for parity with the f32
        # reference; bf16 gate activations would ~halve EUP cost on v6e/v7x.
        i = jax.nn.sigmoid(g[:, 0 * H:1 * H])
        f = jax.nn.sigmoid(g[:, 1 * H:2 * H])
        gg = jnp.tanh(g[:, 2 * H:3 * H])
        o = jax.nn.sigmoid(g[:, 3 * H:4 * H])
        c_new = f * c_prev + i * gg
        return o * jnp.tanh(c_new), c_new

    def step(row_start, carry):
        h0, c0, h1, c1, hsum = carry
        # layer 0: only the recurrent matmul is on the serial path
        g0 = (gin0_ref[pl.ds(row_start, bb), :]
              + jnp.dot(h0, whh0, preferred_element_type=jnp.float32))
        h0, c0 = gate_update(g0, c0)
        # TODO(synk): LSTM inter-layer dropout(p=0.2) omitted (eval identity)
        h1, c1 = gate_update(layer1_gates(h0, h1), c1)
        return h0, c0, h1, c1, hsum + h1

    zeros = jnp.zeros((bb, H), jnp.float32)
    carry = (zeros, zeros, zeros, zeros, zeros)

    if n_time <= UNROLL_T_MAX:
        # small T: static unroll keeps LSTM state in vregs across the loop
        for t in range(n_time):
            carry = step(t * bb, carry)
    else:
        # long sequences: bound code size / vreg live ranges
        def body(t, c):
            return step(pl.multiple_of(t * bb, 8), c)
        carry = lax.fori_loop(0, n_time, body, carry, unroll=2)

    hsum = carry[4]
    h_mean = hsum * (1.0 / n_time)
    # TODO(synk): Dropout(0.5) omitted (eval-mode identity)
    # fused dnn1 + output head (no nonlinearity between them in the module);
    # class dim padded to 128 lanes -> one full-lane matmul, unmasked stores.
    out_ref[...] = (jnp.dot(h_mean, whead_ref[...],
                            preferred_element_type=jnp.float32)
                    + bhead_ref[...])


# ------------------------------ host-side wrapper ---------------------------
def init_params(key, image_height, image_width, num_classes):
    t_out = (image_height - KH) // SH + 1
    f_out = (image_width - KW) // SW + 1
    lstm_in = C_OUT * f_out

    keys = jax.random.split(key, 14)

    def unif(k, shape, fan_in):
        bound = 1.0 / jnp.sqrt(fan_in)
        return jax.random.uniform(k, shape, jnp.float32, -bound, bound)

    conv_w = unif(keys[0], (KH * KW, C_OUT), KH * KW)   # (K, C) im2col layout
    conv_b = unif(keys[1], (1, C_OUT), KH * KW)
    wih1 = unif(keys[6], (HIDDEN, 4 * HIDDEN), HIDDEN)
    whh1 = unif(keys[7], (HIDDEN, 4 * HIDDEN), HIDDEN)

    params = {
        "conv_w": conv_w,
        "conv_b": conv_b,
        # block-diagonal conv weight (F*K, F*C): conv output comes out
        # lane-dense and already in the LSTM input order (f, c).
        # (75% zeros is fine at F=4; reconsider for much wider inputs.)
        "conv_w_blk": jnp.kron(jnp.eye(f_out, dtype=jnp.float32), conv_w),
        "conv_b_blk": jnp.tile(conv_b, (1, f_out)),
        # LSTM layer 0 (weights stored transposed: (in, 4H))
        "wih0": unif(keys[2], (lstm_in, 4 * HIDDEN), HIDDEN),
        "whh0": unif(keys[3], (HIDDEN, 4 * HIDDEN), HIDDEN),
        "b0": unif(keys[4], (1, 4 * HIDDEN), HIDDEN)
              + unif(keys[5], (1, 4 * HIDDEN), HIDDEN),          # b_ih + b_hh
        # LSTM layer 1, fused [Wih1; Whh1]
        "w1cat": jnp.concatenate([wih1, whh1], axis=0),
        "b1": unif(keys[8], (1, 4 * HIDDEN), HIDDEN)
              + unif(keys[9], (1, 4 * HIDDEN), HIDDEN),
        # dnn1 / output (stored transposed for right-multiplication)
        "w_dnn": unif(keys[10], (HIDDEN, DNN), HIDDEN),
        "b_dnn": unif(keys[11], (1, DNN), HIDDEN),
        "w_out": unif(keys[12], (DNN, num_classes), DNN),
        "b_out": unif(keys[13], (1, num_classes), DNN),
    }

    # fused dnn1+output head (no nonlinearity between them in the module;
    # dropout is eval identity), zero-padded to a 128-lane class dim.
    c_pad = -(-num_classes // 128) * 128
    w_head = params["w_dnn"] @ params["w_out"]                    # (H, C)
    b_head = params["b_dnn"] @ params["w_out"] + params["b_out"]  # (1, C)
    params["w_head"] = jnp.pad(w_head, ((0, 0), (0, c_pad - num_classes)))
    params["b_head"] = jnp.pad(b_head, ((0, 0), (0, c_pad - num_classes)))
    return params, t_out, f_out


def _vmem_bytes_estimate(T, BB, FK, FC, c_pad):
    f32 = 4
    weights = (FK * FC + FC                        # conv block-diag W, b
               + FC * 4 * HIDDEN + 4 * HIDDEN      # wih0, b0
               + HIDDEN * 4 * HIDDEN               # whh0
               + 2 * HIDDEN * 4 * HIDDEN + 4 * HIDDEN  # w1cat, b1
               + HIDDEN * c_pad + c_pad) * f32     # fused head
    per_block = (2 * T * BB * FK                   # double-buffered patch blk
                 + T * BB * 4 * HIDDEN             # gin0 scratch
                 + 2 * BB * c_pad) * f32           # double-buffered out blk
    return weights + per_block


@functools.partial(jax.jit, static_argnames=("num_classes",))
def speech_res_forward(x, params, num_classes):
    B = x.shape[0]
    # im2col in one XLA op: (B, KH*KW, T, F); feature order = (kh, kw)
    patches = lax.conv_general_dilated_patches(
        x, filter_shape=(KH, KW), window_strides=(SH, SW), padding="VALID",
        precision=lax.Precision.HIGHEST)
    _, K, T, F = patches.shape
    FK, FC = F * K, F * C_OUT
    C_PAD = -(-num_classes // 128) * 128

    # batch blocking: up to 128 padded rows per grid step; "parallel" batch
    # grid gives the 2nd TensorCore (v7x megacore) work once there is >1 block
    # and keeps the gin0 scratch sized per block instead of per full batch.
    BB = min(-(-B // 8) * 8, 128)
    b_pad = -(-B // BB) * BB
    nblk = b_pad // BB

    # batch-block-major im2col slab: flat row = blk*T*BB + t*BB + b_in_block
    # TODO(synk): at serving batch these pad/transpose HBM passes could be
    # folded into the kernel's BlockSpec index_maps over a (T, B, F, K) array.
    p = jnp.transpose(patches, (2, 0, 3, 1))                     # (T, B, F, K)
    p = jnp.pad(p, ((0, 0), (0, b_pad - B), (0, 0), (0, 0)))     # (T, Bp, F, K)
    p = p.reshape(T, nblk, BB, FK).transpose(1, 0, 2, 3).reshape(
        nblk * T * BB, FK)

    kernel = functools.partial(fused_forward_kernel, n_time=T, bb=BB,
                               split_l1=SPLIT_L1)

    # raise the scoped-VMEM limit only when the per-block budget needs it
    est = _vmem_bytes_estimate(T, BB, FK, FC, C_PAD)
    vmem_limit = None if est <= (28 << 20) else int(est * 1.5)

    out = pl.pallas_call(
        kernel,
        out_shape=jax.ShapeDtypeStruct((b_pad, C_PAD), jnp.float32),
        grid_spec=pltpu.PrefetchScalarGridSpec(
            num_scalar_prefetch=0,
            grid=(nblk,),
            in_specs=[
                pl.BlockSpec((T * BB, FK), lambda i: (i, 0)),        # patches
                pl.BlockSpec((FK, FC), lambda i: (0, 0)),            # conv Wblk
                pl.BlockSpec((1, FC), lambda i: (0, 0)),             # conv bblk
                pl.BlockSpec((FC, 4 * HIDDEN), lambda i: (0, 0)),    # wih0
                pl.BlockSpec((1, 4 * HIDDEN), lambda i: (0, 0)),     # b0
                pl.BlockSpec((HIDDEN, 4 * HIDDEN), lambda i: (0, 0)),    # whh0
                pl.BlockSpec((2 * HIDDEN, 4 * HIDDEN), lambda i: (0, 0)),  # w1
                pl.BlockSpec((1, 4 * HIDDEN), lambda i: (0, 0)),     # b1
                pl.BlockSpec((HIDDEN, C_PAD), lambda i: (0, 0)),     # w_head
                pl.BlockSpec((1, C_PAD), lambda i: (0, 0)),          # b_head
            ],
            out_specs=pl.BlockSpec((BB, C_PAD), lambda i: (i, 0)),
            scratch_shapes=[pltpu.VMEM((T * BB, 4 * HIDDEN), jnp.float32)],
        ),
        compiler_params=pltpu.CompilerParams(
            dimension_semantics=("parallel",),
            vmem_limit_bytes=vmem_limit),
    )(p,
      params["conv_w_blk"], params["conv_b_blk"],
      params["wih0"], params["b0"], params["whh0"],
      params["w1cat"], params["b1"],
      params["w_head"], params["b_head"])
    return out[:B, :num_classes]


# ----------------------------- pure-JAX reference ---------------------------
def reference_forward(x, params, num_classes):
    B = x.shape[0]
    # real strided conv (validates im2col + block-diag weight layout)
    w4d = params["conv_w"].T.reshape(C_OUT, 1, KH, KW)          # OIHW
    conv = lax.conv_general_dilated(
        x, w4d, window_strides=(SH, SW), padding="VALID",
        dimension_numbers=("NCHW", "OIHW", "NCHW"),
        precision=lax.Precision.HIGHEST)
    conv = jnp.maximum(conv + params["conv_b"].reshape(1, C_OUT, 1, 1), 0.0)
    feat = jnp.transpose(conv, (0, 2, 3, 1))                     # (B, T, F, C)
    T = feat.shape[1]
    x_seq = jnp.transpose(feat.reshape(B, T, -1), (1, 0, 2))     # (T, B, D)

    def cell(x_t, h, c, wih, whh, b):
        g = x_t @ wih + h @ whh + b
        Hh = HIDDEN
        i = jax.nn.sigmoid(g[:, :Hh])
        f = jax.nn.sigmoid(g[:, Hh:2 * Hh])
        gg = jnp.tanh(g[:, 2 * Hh:3 * Hh])
        o = jax.nn.sigmoid(g[:, 3 * Hh:])
        c = f * c + i * gg
        return o * jnp.tanh(c), c

    wih1, whh1 = params["w1cat"][:HIDDEN], params["w1cat"][HIDDEN:]
    h0 = c0 = h1 = c1 = jnp.zeros((B, HIDDEN), jnp.float32)
    hs = []
    for t in range(T):
        h0, c0 = cell(x_seq[t], h0, c0, params["wih0"], params["whh0"],
                      params["b0"])
        h1, c1 = cell(h0, h1, c1, wih1, whh1, params["b1"])
        hs.append(h1)
    h_mean = jnp.mean(jnp.stack(hs, 0), axis=0)
    z = h_mean @ params["w_dnn"] + params["b_dnn"]
    return z @ params["w_out"] + params["b_out"]


# ------------------------------------ main -----------------------------------
if __name__ == "__main__":
    B = 2
    IMAGE_H, IMAGE_W = 60, 11        # -> T=6 time steps, F=4 -> lstm_input=128
    NUM_CLASSES = 12

    key = jax.random.PRNGKey(0)
    k_param, k_x = jax.random.split(key)
    params, t_out, f_out = init_params(k_param, IMAGE_H, IMAGE_W, NUM_CLASSES)

    x = jax.random.normal(k_x, (B, 1, IMAGE_H, IMAGE_W), jnp.float32)

    out = speech_res_forward(x, params, NUM_CLASSES)
    out = jax.block_until_ready(out)

    ref = reference_forward(x, params, NUM_CLASSES)
    assert out.shape == (B, NUM_CLASSES)
    assert jnp.allclose(out, ref, rtol=1e-3, atol=1e-3), (out, ref)

    print("KERNEL_OK")
</pallas_src>

<mosaic_0001>
module attributes {stable_mosaic.version = 11 : i64} {
  func.func @fused_forward_kernel(%arg0: i32, %arg1: memref<48x400xf32, #tpu.memory_space<vmem>>, %arg2: memref<400x128xf32, #tpu.memory_space<vmem>>, %arg3: memref<1x128xf32, #tpu.memory_space<vmem>>, %arg4: memref<128x512xf32, #tpu.memory_space<vmem>>, %arg5: memref<1x512xf32, #tpu.memory_space<vmem>>, %arg6: memref<128x512xf32, #tpu.memory_space<vmem>>, %arg7: memref<256x512xf32, #tpu.memory_space<vmem>>, %arg8: memref<1x512xf32, #tpu.memory_space<vmem>>, %arg9: memref<128x128xf32, #tpu.memory_space<vmem>>, %arg10: memref<1x128xf32, #tpu.memory_space<vmem>>, %arg11: memref<8x128xf32, #tpu.memory_space<vmem>>, %arg12: memref<48x512xf32, #tpu.memory_space<vmem>>) attributes {dimension_semantics = [#tpu.dimension_semantics<parallel>], iteration_bounds = array<i64: 1>, scalar_prefetch = 0 : i64, scratch_operands = 1 : i64, tpu.core_type = #tpu.core_type<tc>, window_params = [{transform_indices = @transform_0, window_bounds = array<i64: 48, 400>}, {pipeline_mode = #tpu.pipeline_mode<synchronous>, transform_indices = @transform_1, window_bounds = array<i64: 400, 128>}, {pipeline_mode = #tpu.pipeline_mode<synchronous>, transform_indices = @transform_2, window_bounds = array<i64: 1, 128>}, {pipeline_mode = #tpu.pipeline_mode<synchronous>, transform_indices = @transform_3, window_bounds = array<i64: 128, 512>}, {pipeline_mode = #tpu.pipeline_mode<synchronous>, transform_indices = @transform_4, window_bounds = array<i64: 1, 512>}, {pipeline_mode = #tpu.pipeline_mode<synchronous>, transform_indices = @transform_5, window_bounds = array<i64: 128, 512>}, {pipeline_mode = #tpu.pipeline_mode<synchronous>, transform_indices = @transform_6, window_bounds = array<i64: 256, 512>}, {pipeline_mode = #tpu.pipeline_mode<synchronous>, transform_indices = @transform_7, window_bounds = array<i64: 1, 512>}, {pipeline_mode = #tpu.pipeline_mode<synchronous>, transform_indices = @transform_8, window_bounds = array<i64: 128, 128>}, {pipeline_mode = #tpu.pipeline_mode<synchronous>, transform_indices = @transform_9, window_bounds = array<i64: 1, 128>}, {transform_indices = @transform_10, window_bounds = array<i64: 8, 128>}]} {
    %c0 = arith.constant 0 : index
    %c0_0 = arith.constant 0 : index
    %0 = vector.load %arg1[%c0, %c0_0] : memref<48x400xf32, #tpu.memory_space<vmem>>, vector<48x400xf32>
    %c0_1 = arith.constant 0 : index
    %c0_2 = arith.constant 0 : index
    %1 = vector.load %arg2[%c0_1, %c0_2] : memref<400x128xf32, #tpu.memory_space<vmem>>, vector<400x128xf32>
    %cst = arith.constant dense<0.000000e+00> : vector<48x128xf32>
    %2 = tpu.matmul %0, %1, %cst {dimension_numbers = #tpu.dot_dimension_numbers<[1], [0], [0], [1], [0, 0, 1, 1], [], []>} : vector<48x400xf32>, vector<400x128xf32>, vector<48x128xf32> -> vector<48x128xf32>
    %c0_3 = arith.constant 0 : index
    %c0_4 = arith.constant 0 : index
    %3 = vector.load %arg3[%c0_3, %c0_4] : memref<1x128xf32, #tpu.memory_space<vmem>>, vector<1x128xf32>
    %4 = vector.broadcast %3 : vector<1x128xf32> to vector<48x128xf32>
    %5 = arith.addf %2, %4 : vector<48x128xf32>
    %cst_5 = arith.constant 0.000000e+00 : f32
    %6 = vector.broadcast %cst_5 : f32 to vector<48x128xf32>
    %7 = arith.maximumf %5, %6 : vector<48x128xf32>
    %c0_6 = arith.constant 0 : index
    %c0_7 = arith.constant 0 : index
    %8 = vector.load %arg4[%c0_6, %c0_7] : memref<128x512xf32, #tpu.memory_space<vmem>>, vector<128x512xf32>
    %cst_8 = arith.constant dense<0.000000e+00> : vector<48x512xf32>
    %9 = tpu.matmul %7, %8, %cst_8 {dimension_numbers = #tpu.dot_dimension_numbers<[1], [0], [0], [1], [0, 0, 1, 1], [], []>} : vector<48x128xf32>, vector<128x512xf32>, vector<48x512xf32> -> vector<48x512xf32>
    %c0_9 = arith.constant 0 : index
    %c0_10 = arith.constant 0 : index
    %10 = vector.load %arg5[%c0_9, %c0_10] : memref<1x512xf32, #tpu.memory_space<vmem>>, vector<1x512xf32>
    %11 = vector.broadcast %10 : vector<1x512xf32> to vector<48x512xf32>
    %12 = arith.addf %9, %11 : vector<48x512xf32>
    %c0_11 = arith.constant 0 : index
    %c0_12 = arith.constant 0 : index
    %13 = vector.load %arg12[%c0_11, %c0_12] : memref<48x512xf32, #tpu.memory_space<vmem>>, vector<48x512xf32>
    tpu.vector_store %arg12[%c0_11, %c0_12], %12 {strides = array<i32>} : memref<48x512xf32, #tpu.memory_space<vmem>>, vector<48x512xf32>,
    %c0_13 = arith.constant 0 : index
    %c0_14 = arith.constant 0 : index
    %14 = vector.load %arg6[%c0_13, %c0_14] : memref<128x512xf32, #tpu.memory_space<vmem>>, vector<128x512xf32>
    %c0_15 = arith.constant 0 : index
    %c0_16 = arith.constant 0 : index
    %15 = vector.load %arg8[%c0_15, %c0_16] : memref<1x512xf32, #tpu.memory_space<vmem>>, vector<1x512xf32>
    %16 = vector.shape_cast %15 : vector<1x512xf32> to vector<1x512xf32>
    %17 = vector.broadcast %16 : vector<1x512xf32> to vector<8x512xf32>
    %c0_17 = arith.constant 0 : index
    %c0_18 = arith.constant 0 : index
    %18 = vector.load %arg7[%c0_17, %c0_18] : memref<256x512xf32, #tpu.memory_space<vmem>>, vector<256x512xf32>
    %cst_19 = arith.constant 0.000000e+00 : f32
    %19 = vector.broadcast %cst_19 : f32 to vector<8x128xf32>
    %c0_20 = arith.constant 0 : index
    %c0_21 = arith.constant 0 : index
    %20 = vector.load %arg12[%c0_20, %c0_21] : memref<48x512xf32, #tpu.memory_space<vmem>>, vector<8x512xf32>
    %cst_22 = arith.constant dense<0.000000e+00> : vector<8x512xf32>
    %21 = tpu.matmul %19, %14, %cst_22 {dimension_numbers = #tpu.dot_dimension_numbers<[1], [0], [0], [1], [0, 0, 1, 1], [], []>} : vector<8x128xf32>, vector<128x512xf32>, vector<8x512xf32> -> vector<8x512xf32>
    %22 = arith.addf %20, %21 : vector<8x512xf32>
    %23 = vector.extract_strided_slice %22 {offsets = [0, 0], sizes = [8, 128], strides = [1, 1]} : vector<8x512xf32> to vector<8x128xf32>
    %24 = arith.negf %23 : vector<8x128xf32>
    %25 = math.exp %24 : vector<8x128xf32>
    %cst_23 = arith.constant 1.000000e+00 : f32
    %26 = vector.broadcast %cst_23 : f32 to vector<8x128xf32>
    %27 = arith.addf %26, %25 : vector<8x128xf32>
    %28 = arith.divf %26, %27 : vector<8x128xf32>
    %29 = vector.extract_strided_slice %22 {offsets = [0, 128], sizes = [8, 128], strides = [1, 1]} : vector<8x512xf32> to vector<8x128xf32>
    %30 = arith.negf %29 : vector<8x128xf32>
    %31 = math.exp %30 : vector<8x128xf32>
    %cst_24 = arith.constant 1.000000e+00 : f32
    %32 = vector.broadcast %cst_24 : f32 to vector<8x128xf32>
    %33 = arith.addf %32, %31 : vector<8x128xf32>
    %34 = arith.divf %32, %33 : vector<8x128xf32>
    %35 = vector.extract_strided_slice %22 {offsets = [0, 256], sizes = [8, 128], strides = [1, 1]} : vector<8x512xf32> to vector<8x128xf32>
    %36 = math.tanh %35 : vector<8x128xf32>
    %37 = vector.extract_strided_slice %22 {offsets = [0, 384], sizes = [8, 128], strides = [1, 1]} : vector<8x512xf32> to vector<8x128xf32>
    %38 = arith.negf %37 : vector<8x128xf32>
    %39 = math.exp %38 : vector<8x128xf32>
    %cst_25 = arith.constant 1.000000e+00 : f32
    %40 = vector.broadcast %cst_25 : f32 to vector<8x128xf32>
    %41 = arith.addf %40, %39 : vector<8x128xf32>
    %42 = arith.divf %40, %41 : vector<8x128xf32>
    %43 = arith.mulf %34, %19 : vector<8x128xf32>
    %44 = arith.mulf %28, %36 : vector<8x128xf32>
    %45 = arith.addf %43, %44 : vector<8x128xf32>
    %46 = math.tanh %45 : vector<8x128xf32>
    %47 = arith.mulf %42, %46 : vector<8x128xf32>
    %48 = tpu.concatenate %47, %19 in 1 : vector<8x128xf32>, vector<8x128xf32> -> vector<8x256xf32>
    %cst_26 = arith.constant dense<0.000000e+00> : vector<8x512xf32>
    %49 = tpu.matmul %48, %18, %cst_26 {dimension_numbers = #tpu.dot_dimension_numbers<[1], [0], [0], [1], [0, 0, 1, 1], [], []>} : vector<8x256xf32>, vector<256x512xf32>, vector<8x512xf32> -> vector<8x512xf32>
    %50 = arith.addf %49, %17 : vector<8x512xf32>
    %51 = vector.extract_strided_slice %50 {offsets = [0, 0], sizes = [8, 128], strides = [1, 1]} : vector<8x512xf32> to vector<8x128xf32>
    %52 = arith.negf %51 : vector<8x128xf32>
    %53 = math.exp %52 : vector<8x128xf32>
    %cst_27 = arith.constant 1.000000e+00 : f32
    %54 = vector.broadcast %cst_27 : f32 to vector<8x128xf32>
    %55 = arith.addf %54, %53 : vector<8x128xf32>
    %56 = arith.divf %54, %55 : vector<8x128xf32>
    %57 = vector.extract_strided_slice %50 {offsets = [0, 128], sizes = [8, 128], strides = [1, 1]} : vector<8x512xf32> to vector<8x128xf32>
    %58 = arith.negf %57 : vector<8x128xf32>
    %59 = math.exp %58 : vector<8x128xf32>
    %cst_28 = arith.constant 1.000000e+00 : f32
    %60 = vector.broadcast %cst_28 : f32 to vector<8x128xf32>
    %61 = arith.addf %60, %59 : vector<8x128xf32>
    %62 = arith.divf %60, %61 : vector<8x128xf32>
    %63 = vector.extract_strided_slice %50 {offsets = [0, 256], sizes = [8, 128], strides = [1, 1]} : vector<8x512xf32> to vector<8x128xf32>
    %64 = math.tanh %63 : vector<8x128xf32>
    %65 = vector.extract_strided_slice %50 {offsets = [0, 384], sizes = [8, 128], strides = [1, 1]} : vector<8x512xf32> to vector<8x128xf32>
    %66 = arith.negf %65 : vector<8x128xf32>
    %67 = math.exp %66 : vector<8x128xf32>
    %cst_29 = arith.constant 1.000000e+00 : f32
    %68 = vector.broadcast %cst_29 : f32 to vector<8x128xf32>
    %69 = arith.addf %68, %67 : vector<8x128xf32>
    %70 = arith.divf %68, %69 : vector<8x128xf32>
    %71 = arith.mulf %62, %19 : vector<8x128xf32>
    %72 = arith.mulf %56, %64 : vector<8x128xf32>
    %73 = arith.addf %71, %72 : vector<8x128xf32>
    %74 = math.tanh %73 : vector<8x128xf32>
    %75 = arith.mulf %70, %74 : vector<8x128xf32>
    %76 = arith.addf %19, %75 : vector<8x128xf32>
    %c8 = arith.constant 8 : index
    %c0_30 = arith.constant 0 : index
    %77 = vector.load %arg12[%c8, %c0_30] : memref<48x512xf32, #tpu.memory_space<vmem>>, vector<8x512xf32>
    %cst_31 = arith.constant dense<0.000000e+00> : vector<8x512xf32>
    %78 = tpu.matmul %47, %14, %cst_31 {dimension_numbers = #tpu.dot_dimension_numbers<[1], [0], [0], [1], [0, 0, 1, 1], [], []>} : vector<8x128xf32>, vector<128x512xf32>, vector<8x512xf32> -> vector<8x512xf32>
    %79 = arith.addf %77, %78 : vector<8x512xf32>
    %80 = vector.extract_strided_slice %79 {offsets = [0, 0], sizes = [8, 128], strides = [1, 1]} : vector<8x512xf32> to vector<8x128xf32>
    %81 = arith.negf %80 : vector<8x128xf32>
    %82 = math.exp %81 : vector<8x128xf32>
    %cst_32 = arith.constant 1.000000e+00 : f32
    %83 = vector.broadcast %cst_32 : f32 to vector<8x128xf32>
    %84 = arith.addf %83, %82 : vector<8x128xf32>
    %85 = arith.divf %83, %84 : vector<8x128xf32>
    %86 = vector.extract_strided_slice %79 {offsets = [0, 128], sizes = [8, 128], strides = [1, 1]} : vector<8x512xf32> to vector<8x128xf32>
    %87 = arith.negf %86 : vector<8x128xf32>
    %88 = math.exp %87 : vector<8x128xf32>
    %cst_33 = arith.constant 1.000000e+00 : f32
    %89 = vector.broadcast %cst_33 : f32 to vector<8x128xf32>
    %90 = arith.addf %89, %88 : vector<8x128xf32>
    %91 = arith.divf %89, %90 : vector<8x128xf32>
    %92 = vector.extract_strided_slice %79 {offsets = [0, 256], sizes = [8, 128], strides = [1, 1]} : vector<8x512xf32> to vector<8x128xf32>
    %93 = math.tanh %92 : vector<8x128xf32>
    %94 = vector.extract_strided_slice %79 {offsets = [0, 384], sizes = [8, 128], strides = [1, 1]} : vector<8x512xf32> to vector<8x128xf32>
    %95 = arith.negf %94 : vector<8x128xf32>
    %96 = math.exp %95 : vector<8x128xf32>
    %cst_34 = arith.constant 1.000000e+00 : f32
    %97 = vector.broadcast %cst_34 : f32 to vector<8x128xf32>
    %98 = arith.addf %97, %96 : vector<8x128xf32>
    %99 = arith.divf %97, %98 : vector<8x128xf32>
    %100 = arith.mulf %91, %45 : vector<8x128xf32>
    %101 = arith.mulf %85, %93 : vector<8x128xf32>
    %102 = arith.addf %100, %101 : vector<8x128xf32>
    %103 = math.tanh %102 : vector<8x128xf32>
    %104 = arith.mulf %99, %103 : vector<8x128xf32>
    %105 = tpu.concatenate %104, %75 in 1 : vector<8x128xf32>, vector<8x128xf32> -> vector<8x256xf32>
    %cst_35 = arith.constant dense<0.000000e+00> : vector<8x512xf32>
    %106 = tpu.matmul %105, %18, %cst_35 {dimension_numbers = #tpu.dot_dimension_numbers<[1], [0], [0], [1], [0, 0, 1, 1], [], []>} : vector<8x256xf32>, vector<256x512xf32>, vector<8x512xf32> -> vector<8x512xf32>
    %107 = arith.addf %106, %17 : vector<8x512xf32>
    %108 = vector.extract_strided_slice %107 {offsets = [0, 0], sizes = [8, 128], strides = [1, 1]} : vector<8x512xf32> to vector<8x128xf32>
    %109 = arith.negf %108 : vector<8x128xf32>
    %110 = math.exp %109 : vector<8x128xf32>
    %cst_36 = arith.constant 1.000000e+00 : f32
    %111 = vector.broadcast %cst_36 : f32 to vector<8x128xf32>
    %112 = arith.addf %111, %110 : vector<8x128xf32>
    %113 = arith.divf %111, %112 : vector<8x128xf32>
    %114 = vector.extract_strided_slice %107 {offsets = [0, 128], sizes = [8, 128], strides = [1, 1]} : vector<8x512xf32> to vector<8x128xf32>
    %115 = arith.negf %114 : vector<8x128xf32>
    %116 = math.exp %115 : vector<8x128xf32>
    %cst_37 = arith.constant 1.000000e+00 : f32
    %117 = vector.broadcast %cst_37 : f32 to vector<8x128xf32>
    %118 = arith.addf %117, %116 : vector<8x128xf32>
    %119 = arith.divf %117, %118 : vector<8x128xf32>
    %120 = vector.extract_strided_slice %107 {offsets = [0, 256], sizes = [8, 128], strides = [1, 1]} : vector<8x512xf32> to vector<8x128xf32>
    %121 = math.tanh %120 : vector<8x128xf32>
    %122 = vector.extract_strided_slice %107 {offsets = [0, 384], sizes = [8, 128], strides = [1, 1]} : vector<8x512xf32> to vector<8x128xf32>
    %123 = arith.negf %122 : vector<8x128xf32>
    %124 = math.exp %123 : vector<8x128xf32>
    %cst_38 = arith.constant 1.000000e+00 : f32
    %125 = vector.broadcast %cst_38 : f32 to vector<8x128xf32>
    %126 = arith.addf %125, %124 : vector<8x128xf32>
    %127 = arith.divf %125, %126 : vector<8x128xf32>
    %128 = arith.mulf %119, %73 : vector<8x128xf32>
    %129 = arith.mulf %113, %121 : vector<8x128xf32>
    %130 = arith.addf %128, %129 : vector<8x128xf32>
    %131 = math.tanh %130 : vector<8x128xf32>
    %132 = arith.mulf %127, %131 : vector<8x128xf32>
    %133 = arith.addf %76, %132 : vector<8x128xf32>
    %c16 = arith.constant 16 : index
    %c0_39 = arith.constant 0 : index
    %134 = vector.load %arg12[%c16, %c0_39] : memref<48x512xf32, #tpu.memory_space<vmem>>, vector<8x512xf32>
    %cst_40 = arith.constant dense<0.000000e+00> : vector<8x512xf32>
    %135 = tpu.matmul %104, %14, %cst_40 {dimension_numbers = #tpu.dot_dimension_numbers<[1], [0], [0], [1], [0, 0, 1, 1], [], []>} : vector<8x128xf32>, vector<128x512xf32>, vector<8x512xf32> -> vector<8x512xf32>
    %136 = arith.addf %134, %135 : vector<8x512xf32>
    %137 = vector.extract_strided_slice %136 {offsets = [0, 0], sizes = [8, 128], strides = [1, 1]} : vector<8x512xf32> to vector<8x128xf32>
    %138 = arith.negf %137 : vector<8x128xf32>
    %139 = math.exp %138 : vector<8x128xf32>
    %cst_41 = arith.constant 1.000000e+00 : f32
    %140 = vector.broadcast %cst_41 : f32 to vector<8x128xf32>
    %141 = arith.addf %140, %139 : vector<8x128xf32>
    %142 = arith.divf %140, %141 : vector<8x128xf32>
    %143 = vector.extract_strided_slice %136 {offsets = [0, 128], sizes = [8, 128], strides = [1, 1]} : vector<8x512xf32> to vector<8x128xf32>
    %144 = arith.negf %143 : vector<8x128xf32>
    %145 = math.exp %144 : vector<8x128xf32>
    %cst_42 = arith.constant 1.000000e+00 : f32
    %146 = vector.broadcast %cst_42 : f32 to vector<8x128xf32>
    %147 = arith.addf %146, %145 : vector<8x128xf32>
    %148 = arith.divf %146, %147 : vector<8x128xf32>
    %149 = vector.extract_strided_slice %136 {offsets = [0, 256], sizes = [8, 128], strides = [1, 1]} : vector<8x512xf32> to vector<8x128xf32>
    %150 = math.tanh %149 : vector<8x128xf32>
    %151 = vector.extract_strided_slice %136 {offsets = [0, 384], sizes = [8, 128], strides = [1, 1]} : vector<8x512xf32> to vector<8x128xf32>
    %152 = arith.negf %151 : vector<8x128xf32>
    %153 = math.exp %152 : vector<8x128xf32>
    %cst_43 = arith.constant 1.000000e+00 : f32
    %154 = vector.broadcast %cst_43 : f32 to vector<8x128xf32>
    %155 = arith.addf %154, %153 : vector<8x128xf32>
    %156 = arith.divf %154, %155 : vector<8x128xf32>
    %157 = arith.mulf %148, %102 : vector<8x128xf32>
    %158 = arith.mulf %142, %150 : vector<8x128xf32>
    %159 = arith.addf %157, %158 : vector<8x128xf32>
    %160 = math.tanh %159 : vector<8x128xf32>
    %161 = arith.mulf %156, %160 : vector<8x128xf32>
    %162 = tpu.concatenate %161, %132 in 1 : vector<8x128xf32>, vector<8x128xf32> -> vector<8x256xf32>
    %cst_44 = arith.constant dense<0.000000e+00> : vector<8x512xf32>
    %163 = tpu.matmul %162, %18, %cst_44 {dimension_numbers = #tpu.dot_dimension_numbers<[1], [0], [0], [1], [0, 0, 1, 1], [], []>} : vector<8x256xf32>, vector<256x512xf32>, vector<8x512xf32> -> vector<8x512xf32>
    %164 = arith.addf %163, %17 : vector<8x512xf32>
    %165 = vector.extract_strided_slice %164 {offsets = [0, 0], sizes = [8, 128], strides = [1, 1]} : vector<8x512xf32> to vector<8x128xf32>
    %166 = arith.negf %165 : vector<8x128xf32>
    %167 = math.exp %166 : vector<8x128xf32>
    %cst_45 = arith.constant 1.000000e+00 : f32
    %168 = vector.broadcast %cst_45 : f32 to vector<8x128xf32>
    %169 = arith.addf %168, %167 : vector<8x128xf32>
    %170 = arith.divf %168, %169 : vector<8x128xf32>
    %171 = vector.extract_strided_slice %164 {offsets = [0, 128], sizes = [8, 128], strides = [1, 1]} : vector<8x512xf32> to vector<8x128xf32>
    %172 = arith.negf %171 : vector<8x128xf32>
    %173 = math.exp %172 : vector<8x128xf32>
    %cst_46 = arith.constant 1.000000e+00 : f32
    %174 = vector.broadcast %cst_46 : f32 to vector<8x128xf32>
    %175 = arith.addf %174, %173 : vector<8x128xf32>
    %176 = arith.divf %174, %175 : vector<8x128xf32>
    %177 = vector.extract_strided_slice %164 {offsets = [0, 256], sizes = [8, 128], strides = [1, 1]} : vector<8x512xf32> to vector<8x128xf32>
    %178 = math.tanh %177 : vector<8x128xf32>
    %179 = vector.extract_strided_slice %164 {offsets = [0, 384], sizes = [8, 128], strides = [1, 1]} : vector<8x512xf32> to vector<8x128xf32>
    %180 = arith.negf %179 : vector<8x128xf32>
    %181 = math.exp %180 : vector<8x128xf32>
    %cst_47 = arith.constant 1.000000e+00 : f32
    %182 = vector.broadcast %cst_47 : f32 to vector<8x128xf32>
    %183 = arith.addf %182, %181 : vector<8x128xf32>
    %184 = arith.divf %182, %183 : vector<8x128xf32>
    %185 = arith.mulf %176, %130 : vector<8x128xf32>
    %186 = arith.mulf %170, %178 : vector<8x128xf32>
    %187 = arith.addf %185, %186 : vector<8x128xf32>
    %188 = math.tanh %187 : vector<8x128xf32>
    %189 = arith.mulf %184, %188 : vector<8x128xf32>
    %190 = arith.addf %133, %189 : vector<8x128xf32>
    %c24 = arith.constant 24 : index
    %c0_48 = arith.constant 0 : index
    %191 = vector.load %arg12[%c24, %c0_48] : memref<48x512xf32, #tpu.memory_space<vmem>>, vector<8x512xf32>
    %cst_49 = arith.constant dense<0.000000e+00> : vector<8x512xf32>
    %192 = tpu.matmul %161, %14, %cst_49 {dimension_numbers = #tpu.dot_dimension_numbers<[1], [0], [0], [1], [0, 0, 1, 1], [], []>} : vector<8x128xf32>, vector<128x512xf32>, vector<8x512xf32> -> vector<8x512xf32>
    %193 = arith.addf %191, %192 : vector<8x512xf32>
    %194 = vector.extract_strided_slice %193 {offsets = [0, 0], sizes = [8, 128], strides = [1, 1]} : vector<8x512xf32> to vector<8x128xf32>
    %195 = arith.negf %194 : vector<8x128xf32>
    %196 = math.exp %195 : vector<8x128xf32>
    %cst_50 = arith.constant 1.000000e+00 : f32
    %197 = vector.broadcast %cst_50 : f32 to vector<8x128xf32>
    %198 = arith.addf %197, %196 : vector<8x128xf32>
    %199 = arith.divf %197, %198 : vector<8x128xf32>
    %200 = vector.extract_strided_slice %193 {offsets = [0, 128], sizes = [8, 128], strides = [1, 1]} : vector<8x512xf32> to vector<8x128xf32>
    %201 = arith.negf %200 : vector<8x128xf32>
    %202 = math.exp %201 : vector<8x128xf32>
    %cst_51 = arith.constant 1.000000e+00 : f32
    %203 = vector.broadcast %cst_51 : f32 to vector<8x128xf32>
    %204 = arith.addf %203, %202 : vector<8x128xf32>
    %205 = arith.divf %203, %204 : vector<8x128xf32>
    %206 = vector.extract_strided_slice %193 {offsets = [0, 256], sizes = [8, 128], strides = [1, 1]} : vector<8x512xf32> to vector<8x128xf32>
    %207 = math.tanh %206 : vector<8x128xf32>
    %208 = vector.extract_strided_slice %193 {offsets = [0, 384], sizes = [8, 128], strides = [1, 1]} : vector<8x512xf32> to vector<8x128xf32>
    %209 = arith.negf %208 : vector<8x128xf32>
    %210 = math.exp %209 : vector<8x128xf32>
    %cst_52 = arith.constant 1.000000e+00 : f32
    %211 = vector.broadcast %cst_52 : f32 to vector<8x128xf32>
    %212 = arith.addf %211, %210 : vector<8x128xf32>
    %213 = arith.divf %211, %212 : vector<8x128xf32>
    %214 = arith.mulf %205, %159 : vector<8x128xf32>
    %215 = arith.mulf %199, %207 : vector<8x128xf32>
    %216 = arith.addf %214, %215 : vector<8x128xf32>
    %217 = math.tanh %216 : vector<8x128xf32>
    %218 = arith.mulf %213, %217 : vector<8x128xf32>
    %219 = tpu.concatenate %218, %189 in 1 : vector<8x128xf32>, vector<8x128xf32> -> vector<8x256xf32>
    %cst_53 = arith.constant dense<0.000000e+00> : vector<8x512xf32>
    %220 = tpu.matmul %219, %18, %cst_53 {dimension_numbers = #tpu.dot_dimension_numbers<[1], [0], [0], [1], [0, 0, 1, 1], [], []>} : vector<8x256xf32>, vector<256x512xf32>, vector<8x512xf32> -> vector<8x512xf32>
    %221 = arith.addf %220, %17 : vector<8x512xf32>
    %222 = vector.extract_strided_slice %221 {offsets = [0, 0], sizes = [8, 128], strides = [1, 1]} : vector<8x512xf32> to vector<8x128xf32>
    %223 = arith.negf %222 : vector<8x128xf32>
    %224 = math.exp %223 : vector<8x128xf32>
    %cst_54 = arith.constant 1.000000e+00 : f32
    %225 = vector.broadcast %cst_54 : f32 to vector<8x128xf32>
    %226 = arith.addf %225, %224 : vector<8x128xf32>
    %227 = arith.divf %225, %226 : vector<8x128xf32>
    %228 = vector.extract_strided_slice %221 {offsets = [0, 128], sizes = [8, 128], strides = [1, 1]} : vector<8x512xf32> to vector<8x128xf32>
    %229 = arith.negf %228 : vector<8x128xf32>
    %230 = math.exp %229 : vector<8x128xf32>
    %cst_55 = arith.constant 1.000000e+00 : f32
    %231 = vector.broadcast %cst_55 : f32 to vector<8x128xf32>
    %232 = arith.addf %231, %230 : vector<8x128xf32>
    %233 = arith.divf %231, %232 : vector<8x128xf32>
    %234 = vector.extract_strided_slice %221 {offsets = [0, 256], sizes = [8, 128], strides = [1, 1]} : vector<8x512xf32> to vector<8x128xf32>
    %235 = math.tanh %234 : vector<8x128xf32>
    %236 = vector.extract_strided_slice %221 {offsets = [0, 384], sizes = [8, 128], strides = [1, 1]} : vector<8x512xf32> to vector<8x128xf32>
    %237 = arith.negf %236 : vector<8x128xf32>
    %238 = math.exp %237 : vector<8x128xf32>
    %cst_56 = arith.constant 1.000000e+00 : f32
    %239 = vector.broadcast %cst_56 : f32 to vector<8x128xf32>
    %240 = arith.addf %239, %238 : vector<8x128xf32>
    %241 = arith.divf %239, %240 : vector<8x128xf32>
    %242 = arith.mulf %233, %187 : vector<8x128xf32>
    %243 = arith.mulf %227, %235 : vector<8x128xf32>
    %244 = arith.addf %242, %243 : vector<8x128xf32>
    %245 = math.tanh %244 : vector<8x128xf32>
    %246 = arith.mulf %241, %245 : vector<8x128xf32>
    %247 = arith.addf %190, %246 : vector<8x128xf32>
    %c32 = arith.constant 32 : index
    %c0_57 = arith.constant 0 : index
    %248 = vector.load %arg12[%c32, %c0_57] : memref<48x512xf32, #tpu.memory_space<vmem>>, vector<8x512xf32>
    %cst_58 = arith.constant dense<0.000000e+00> : vector<8x512xf32>
    %249 = tpu.matmul %218, %14, %cst_58 {dimension_numbers = #tpu.dot_dimension_numbers<[1], [0], [0], [1], [0, 0, 1, 1], [], []>} : vector<8x128xf32>, vector<128x512xf32>, vector<8x512xf32> -> vector<8x512xf32>
    %250 = arith.addf %248, %249 : vector<8x512xf32>
    %251 = vector.extract_strided_slice %250 {offsets = [0, 0], sizes = [8, 128], strides = [1, 1]} : vector<8x512xf32> to vector<8x128xf32>
    %252 = arith.negf %251 : vector<8x128xf32>
    %253 = math.exp %252 : vector<8x128xf32>
    %cst_59 = arith.constant 1.000000e+00 : f32
    %254 = vector.broadcast %cst_59 : f32 to vector<8x128xf32>
    %255 = arith.addf %254, %253 : vector<8x128xf32>
    %256 = arith.divf %254, %255 : vector<8x128xf32>
    %257 = vector.extract_strided_slice %250 {offsets = [0, 128], sizes = [8, 128], strides = [1, 1]} : vector<8x512xf32> to vector<8x128xf32>
    %258 = arith.negf %257 : vector<8x128xf32>
    %259 = math.exp %258 : vector<8x128xf32>
    %cst_60 = arith.constant 1.000000e+00 : f32
    %260 = vector.broadcast %cst_60 : f32 to vector<8x128xf32>
    %261 = arith.addf %260, %259 : vector<8x128xf32>
    %262 = arith.divf %260, %261 : vector<8x128xf32>
    %263 = vector.extract_strided_slice %250 {offsets = [0, 256], sizes = [8, 128], strides = [1, 1]} : vector<8x512xf32> to vector<8x128xf32>
    %264 = math.tanh %263 : vector<8x128xf32>
    %265 = vector.extract_strided_slice %250 {offsets = [0, 384], sizes = [8, 128], strides = [1, 1]} : vector<8x512xf32> to vector<8x128xf32>
    %266 = arith.negf %265 : vector<8x128xf32>
    %267 = math.exp %266 : vector<8x128xf32>
    %cst_61 = arith.constant 1.000000e+00 : f32
    %268 = vector.broadcast %cst_61 : f32 to vector<8x128xf32>
    %269 = arith.addf %268, %267 : vector<8x128xf32>
    %270 = arith.divf %268, %269 : vector<8x128xf32>
    %271 = arith.mulf %262, %216 : vector<8x128xf32>
    %272 = arith.mulf %256, %264 : vector<8x128xf32>
    %273 = arith.addf %271, %272 : vector<8x128xf32>
    %274 = math.tanh %273 : vector<8x128xf32>
    %275 = arith.mulf %270, %274 : vector<8x128xf32>
    %276 = tpu.concatenate %275, %246 in 1 : vector<8x128xf32>, vector<8x128xf32> -> vector<8x256xf32>
    %cst_62 = arith.constant dense<0.000000e+00> : vector<8x512xf32>
    %277 = tpu.matmul %276, %18, %cst_62 {dimension_numbers = #tpu.dot_dimension_numbers<[1], [0], [0], [1], [0, 0, 1, 1], [], []>} : vector<8x256xf32>, vector<256x512xf32>, vector<8x512xf32> -> vector<8x512xf32>
    %278 = arith.addf %277, %17 : vector<8x512xf32>
    %279 = vector.extract_strided_slice %278 {offsets = [0, 0], sizes = [8, 128], strides = [1, 1]} : vector<8x512xf32> to vector<8x128xf32>
    %280 = arith.negf %279 : vector<8x128xf32>
    %281 = math.exp %280 : vector<8x128xf32>
    %cst_63 = arith.constant 1.000000e+00 : f32
    %282 = vector.broadcast %cst_63 : f32 to vector<8x128xf32>
    %283 = arith.addf %282, %281 : vector<8x128xf32>
    %284 = arith.divf %282, %283 : vector<8x128xf32>
    %285 = vector.extract_strided_slice %278 {offsets = [0, 128], sizes = [8, 128], strides = [1, 1]} : vector<8x512xf32> to vector<8x128xf32>
    %286 = arith.negf %285 : vector<8x128xf32>
    %287 = math.exp %286 : vector<8x128xf32>
    %cst_64 = arith.constant 1.000000e+00 : f32
    %288 = vector.broadcast %cst_64 : f32 to vector<8x128xf32>
    %289 = arith.addf %288, %287 : vector<8x128xf32>
    %290 = arith.divf %288, %289 : vector<8x128xf32>
    %291 = vector.extract_strided_slice %278 {offsets = [0, 256], sizes = [8, 128], strides = [1, 1]} : vector<8x512xf32> to vector<8x128xf32>
    %292 = math.tanh %291 : vector<8x128xf32>
    %293 = vector.extract_strided_slice %278 {offsets = [0, 384], sizes = [8, 128], strides = [1, 1]} : vector<8x512xf32> to vector<8x128xf32>
    %294 = arith.negf %293 : vector<8x128xf32>
    %295 = math.exp %294 : vector<8x128xf32>
    %cst_65 = arith.constant 1.000000e+00 : f32
    %296 = vector.broadcast %cst_65 : f32 to vector<8x128xf32>
    %297 = arith.addf %296, %295 : vector<8x128xf32>
    %298 = arith.divf %296, %297 : vector<8x128xf32>
    %299 = arith.mulf %290, %244 : vector<8x128xf32>
    %300 = arith.mulf %284, %292 : vector<8x128xf32>
    %301 = arith.addf %299, %300 : vector<8x128xf32>
    %302 = math.tanh %301 : vector<8x128xf32>
    %303 = arith.mulf %298, %302 : vector<8x128xf32>
    %304 = arith.addf %247, %303 : vector<8x128xf32>
    %c40 = arith.constant 40 : index
    %c0_66 = arith.constant 0 : index
    %305 = vector.load %arg12[%c40, %c0_66] : memref<48x512xf32, #tpu.memory_space<vmem>>, vector<8x512xf32>
    %cst_67 = arith.constant dense<0.000000e+00> : vector<8x512xf32>
    %306 = tpu.matmul %275, %14, %cst_67 {dimension_numbers = #tpu.dot_dimension_numbers<[1], [0], [0], [1], [0, 0, 1, 1], [], []>} : vector<8x128xf32>, vector<128x512xf32>, vector<8x512xf32> -> vector<8x512xf32>
    %307 = arith.addf %305, %306 : vector<8x512xf32>
    %308 = vector.extract_strided_slice %307 {offsets = [0, 0], sizes = [8, 128], strides = [1, 1]} : vector<8x512xf32> to vector<8x128xf32>
    %309 = arith.negf %308 : vector<8x128xf32>
    %310 = math.exp %309 : vector<8x128xf32>
    %cst_68 = arith.constant 1.000000e+00 : f32
    %311 = vector.broadcast %cst_68 : f32 to vector<8x128xf32>
    %312 = arith.addf %311, %310 : vector<8x128xf32>
    %313 = arith.divf %311, %312 : vector<8x128xf32>
    %314 = vector.extract_strided_slice %307 {offsets = [0, 128], sizes = [8, 128], strides = [1, 1]} : vector<8x512xf32> to vector<8x128xf32>
    %315 = arith.negf %314 : vector<8x128xf32>
    %316 = math.exp %315 : vector<8x128xf32>
    %cst_69 = arith.constant 1.000000e+00 : f32
    %317 = vector.broadcast %cst_69 : f32 to vector<8x128xf32>
    %318 = arith.addf %317, %316 : vector<8x128xf32>
    %319 = arith.divf %317, %318 : vector<8x128xf32>
    %320 = vector.extract_strided_slice %307 {offsets = [0, 256], sizes = [8, 128], strides = [1, 1]} : vector<8x512xf32> to vector<8x128xf32>
    %321 = math.tanh %320 : vector<8x128xf32>
    %322 = vector.extract_strided_slice %307 {offsets = [0, 384], sizes = [8, 128], strides = [1, 1]} : vector<8x512xf32> to vector<8x128xf32>
    %323 = arith.negf %322 : vector<8x128xf32>
    %324 = math.exp %323 : vector<8x128xf32>
    %cst_70 = arith.constant 1.000000e+00 : f32
    %325 = vector.broadcast %cst_70 : f32 to vector<8x128xf32>
    %326 = arith.addf %325, %324 : vector<8x128xf32>
    %327 = arith.divf %325, %326 : vector<8x128xf32>
    %328 = arith.mulf %319, %273 : vector<8x128xf32>
    %329 = arith.mulf %313, %321 : vector<8x128xf32>
    %330 = arith.addf %328, %329 : vector<8x128xf32>
    %331 = math.tanh %330 : vector<8x128xf32>
    %332 = arith.mulf %327, %331 : vector<8x128xf32>
    %333 = tpu.concatenate %332, %303 in 1 : vector<8x128xf32>, vector<8x128xf32> -> vector<8x256xf32>
    %cst_71 = arith.constant dense<0.000000e+00> : vector<8x512xf32>
    %334 = tpu.matmul %333, %18, %cst_71 {dimension_numbers = #tpu.dot_dimension_numbers<[1], [0], [0], [1], [0, 0, 1, 1], [], []>} : vector<8x256xf32>, vector<256x512xf32>, vector<8x512xf32> -> vector<8x512xf32>
    %335 = arith.addf %334, %17 : vector<8x512xf32>
    %336 = vector.extract_strided_slice %335 {offsets = [0, 0], sizes = [8, 128], strides = [1, 1]} : vector<8x512xf32> to vector<8x128xf32>
    %337 = arith.negf %336 : vector<8x128xf32>
    %338 = math.exp %337 : vector<8x128xf32>
    %cst_72 = arith.constant 1.000000e+00 : f32
    %339 = vector.broadcast %cst_72 : f32 to vector<8x128xf32>
    %340 = arith.addf %339, %338 : vector<8x128xf32>
    %341 = arith.divf %339, %340 : vector<8x128xf32>
    %342 = vector.extract_strided_slice %335 {offsets = [0, 128], sizes = [8, 128], strides = [1, 1]} : vector<8x512xf32> to vector<8x128xf32>
    %343 = arith.negf %342 : vector<8x128xf32>
    %344 = math.exp %343 : vector<8x128xf32>
    %cst_73 = arith.constant 1.000000e+00 : f32
    %345 = vector.broadcast %cst_73 : f32 to vector<8x128xf32>
    %346 = arith.addf %345, %344 : vector<8x128xf32>
    %347 = arith.divf %345, %346 : vector<8x128xf32>
    %348 = vector.extract_strided_slice %335 {offsets = [0, 256], sizes = [8, 128], strides = [1, 1]} : vector<8x512xf32> to vector<8x128xf32>
    %349 = math.tanh %348 : vector<8x128xf32>
    %350 = vector.extract_strided_slice %335 {offsets = [0, 384], sizes = [8, 128], strides = [1, 1]} : vector<8x512xf32> to vector<8x128xf32>
    %351 = arith.negf %350 : vector<8x128xf32>
    %352 = math.exp %351 : vector<8x128xf32>
    %cst_74 = arith.constant 1.000000e+00 : f32
    %353 = vector.broadcast %cst_74 : f32 to vector<8x128xf32>
    %354 = arith.addf %353, %352 : vector<8x128xf32>
    %355 = arith.divf %353, %354 : vector<8x128xf32>
    %356 = arith.mulf %347, %301 : vector<8x128xf32>
    %357 = arith.mulf %341, %349 : vector<8x128xf32>
    %358 = arith.addf %356, %357 : vector<8x128xf32>
    %359 = math.tanh %358 : vector<8x128xf32>
    %360 = arith.mulf %355, %359 : vector<8x128xf32>
    %361 = arith.addf %304, %360 : vector<8x128xf32>
    %cst_75 = arith.constant 0.166666672 : f32
    %362 = vector.broadcast %cst_75 : f32 to vector<8x128xf32>
    %363 = arith.mulf %361, %362 : vector<8x128xf32>
    %c0_76 = arith.constant 0 : index
    %c0_77 = arith.constant 0 : index
    %364 = vector.load %arg9[%c0_76, %c0_77] : memref<128x128xf32, #tpu.memory_space<vmem>>, vector<128x128xf32>
    %cst_78 = arith.constant dense<0.000000e+00> : vector<8x128xf32>
    %365 = tpu.matmul %363, %364, %cst_78 {dimension_numbers = #tpu.dot_dimension_numbers<[1], [0], [0], [1], [0, 0, 1, 1], [], []>} : vector<8x128xf32>, vector<128x128xf32>, vector<8x128xf32> -> vector<8x128xf32>
    %c0_79 = arith.constant 0 : index
    %c0_80 = arith.constant 0 : index
    %366 = vector.load %arg10[%c0_79, %c0_80] : memref<1x128xf32, #tpu.memory_space<vmem>>, vector<1x128xf32>
    %367 = vector.broadcast %366 : vector<1x128xf32> to vector<8x128xf32>
    %368 = arith.addf %365, %367 : vector<8x128xf32>
    %c0_81 = arith.constant 0 : index
    %c0_82 = arith.constant 0 : index
    %369 = vector.load %arg11[%c0_81, %c0_82] : memref<8x128xf32, #tpu.memory_space<vmem>>, vector<8x128xf32>
    tpu.vector_store %arg11[%c0_81, %c0_82], %368 {strides = array<i32>} : memref<8x128xf32, #tpu.memory_space<vmem>>, vector<8x128xf32>,
    return
  }
  func.func @transform_0(%arg0: i32) -> (i32, i32) {
    %c0_i32 = arith.constant 0 : i32
    %c0_i32_0 = arith.constant 0 : i32
    return %arg0, %c0_i32 : i32, i32
  }
  func.func @transform_1(%arg0: i32) -> (i32, i32) {
    %c0_i32 = arith.constant 0 : i32
    %c0_i32_0 = arith.constant 0 : i32
    %c0_i32_1 = arith.constant 0 : i32
    return %c0_i32, %c0_i32_0 : i32, i32
  }
  func.func @transform_2(%arg0: i32) -> (i32, i32) {
    %c0_i32 = arith.constant 0 : i32
    %c0_i32_0 = arith.constant 0 : i32
    %c0_i32_1 = arith.constant 0 : i32
    return %c0_i32, %c0_i32_0 : i32, i32
  }
  func.func @transform_3(%arg0: i32) -> (i32, i32) {
    %c0_i32 = arith.constant 0 : i32
    %c0_i32_0 = arith.constant 0 : i32
    %c0_i32_1 = arith.constant 0 : i32
    return %c0_i32, %c0_i32_0 : i32, i32
  }
  func.func @transform_4(%arg0: i32) -> (i32, i32) {
    %c0_i32 = arith.constant 0 : i32
    %c0_i32_0 = arith.constant 0 : i32
    %c0_i32_1 = arith.constant 0 : i32
    return %c0_i32, %c0_i32_0 : i32, i32
  }
  func.func @transform_5(%arg0: i32) -> (i32, i32) {
    %c0_i32 = arith.constant 0 : i32
    %c0_i32_0 = arith.constant 0 : i32
    %c0_i32_1 = arith.constant 0 : i32
    return %c0_i32, %c0_i32_0 : i32, i32
  }
  func.func @transform_6(%arg0: i32) -> (i32, i32) {
    %c0_i32 = arith.constant 0 : i32
    %c0_i32_0 = arith.constant 0 : i32
    %c0_i32_1 = arith.constant 0 : i32
    return %c0_i32, %c0_i32_0 : i32, i32
  }
  func.func @transform_7(%arg0: i32) -> (i32, i32) {
    %c0_i32 = arith.constant 0 : i32
    %c0_i32_0 = arith.constant 0 : i32
    %c0_i32_1 = arith.constant 0 : i32
    return %c0_i32, %c0_i32_0 : i32, i32
  }
  func.func @transform_8(%arg0: i32) -> (i32, i32) {
    %c0_i32 = arith.constant 0 : i32
    %c0_i32_0 = arith.constant 0 : i32
    %c0_i32_1 = arith.constant 0 : i32
    return %c0_i32, %c0_i32_0 : i32, i32
  }
  func.func @transform_9(%arg0: i32) -> (i32, i32) {
    %c0_i32 = arith.constant 0 : i32
    %c0_i32_0 = arith.constant 0 : i32
    %c0_i32_1 = arith.constant 0 : i32
    return %c0_i32, %c0_i32_0 : i32, i32
  }
  func.func @transform_10(%arg0: i32) -> (i32, i32) {
    %c0_i32 = arith.constant 0 : i32
    %c0_i32_0 = arith.constant 0 : i32
    return %arg0, %c0_i32 : i32, i32
  }
}

</mosaic_0001>

<bundles_post_ra>
// kernel: speech_res_forward.1
= control target key start
LH: loop header
LB: loop body
LE: loop exit
PB: predicated region body
PF: predicated region fallthrough
CT: control target
= control target key end

     0   :  { %vm113_vm0 = vcmask 130048   ;;  %s8678_s1 = inlined_call_operand.vmem [shape: f32[400,128], index: 1, kind: input, shape index: {}]   ;;  %s8679_s0 = inlined_call_operand.vmem [shape: f32[48,400], index: 0, kind: input, shape index: {}]   ;;  %s8680_s2 = inlined_call_operand.vmem [shape: f32[1,128], index: 2, kind: input, shape index: {}]   ;;  %s8681_s3 = inlined_call_operand.vmem [shape: f32[128,512], index: 3, kind: input, shape index: {}]   ;;  %s8682_s5 = inlined_call_operand.vmem [shape: f32[128,512], index: 5, kind: input, shape index: {}]   ;;  %s8683_s6 = inlined_call_operand.vmem [shape: f32[256,512], index: 6, kind: input, shape index: {}]   ;;  %s8684_s4 = inlined_call_operand.vmem [shape: f32[1,512], index: 4, kind: input, shape index: {}]   ;;  %s8685_s7 = inlined_call_operand.vmem [shape: f32[1,512], index: 7, kind: input, shape index: {}]   ;;  %s8686_s9 = inlined_call_operand.vmem [shape: f32[1,128], index: 9, kind: input, shape index: {}]   ;;  %s8687_s8 = inlined_call_operand.vmem [shape: f32[128,128], index: 8, kind: input, shape index: {}]   ;;  %s8688_s10 = inlined_call_operand.vmem [shape: f32[8,128], index: 10, kind: output, shape index: {}]  }
   0x1   :  { %v106_v0 = vld [vmem:[%s8678_s1 + $0x178] sm:$0xff]  ;;  %v105_v2 = vld [vmem:[%s8678_s1 + $0x170] sm:$0xff]  ;;  %v104_v5 = vld [vmem:[%s8678_s1 + $0x168] sm:$0xff] }
   0x2   :  { %v74_v1 = vld [vmem:[%s8678_s1 + $0x78] sm:$0xff]  ;;  %202 = vmatpush.msra.mxu2 %v106_v0  ;;  %v73_v3 = vld [vmem:[%s8678_s1 + $0x70] sm:$0xff]  ;;  %v72_v6 = vld [vmem:[%s8678_s1 + $0x68] sm:$0xff] }
   0x3   :  { %132 = vmatpush.msra.mxu0 %v74_v1  ;;  %v90_v4 = vld [vmem:[%s8678_s1 + $0xf8] sm:$0xff]  ;;  %v89_v7 = vld [vmem:[%s8678_s1 + $0xf0] sm:$0xff]  ;;  %v88_v8 = vld [vmem:[%s8678_s1 + $0xe8] sm:$0xff] }
   0x4   :  { %167 = vmatpush.msra.mxu1 %v90_v4  ;;  %203 = vmatpush.msra.mxu2 %v105_v2  ;;  %v103_v9 = vld [vmem:[%s8678_s1 + $0x160] sm:$0xff]  ;;  %v102_v12 = vld [vmem:[%s8678_s1 + $0x158] sm:$0xff]  ;;  %v101_v15 = vld [vmem:[%s8678_s1 + $0x150] sm:$0xff] }
   0x5   :  { %133 = vmatpush.msra.mxu0 %v73_v3  ;;  %v71_v10 = vld [vmem:[%s8678_s1 + $0x60] sm:$0xff]  ;;  %v70_v13 = vld [vmem:[%s8678_s1 + $0x58] sm:$0xff]  ;;  %v69_v16 = vld [vmem:[%s8678_s1 + $0x50] sm:$0xff] }
   0x6   :  { %168 = vmatpush.msra.mxu1 %v89_v7  ;;  %204 = vmatpush.msra.mxu2 %v104_v5  ;;  %v87_v11 = vld [vmem:[%s8678_s1 + $0xe0] sm:$0xff]  ;;  %v86_v14 = vld [vmem:[%s8678_s1 + $0xd8] sm:$0xff]  ;;  %v85_v17 = vld [vmem:[%s8678_s1 + $0xd0] sm:$0xff] }
   0x7   :  { %134 = vmatpush.msra.mxu0 %v72_v6  ;;  %v100_v18 = vld [vmem:[%s8678_s1 + $0x148] sm:$0xff]  ;;  %v99_v21 = vld [vmem:[%s8678_s1 + $0x140] sm:$0xff]  ;;  %v98_v24 = vld [vmem:[%s8678_s1 + $0x138] sm:$0xff] }
   0x8   :  { %169 = vmatpush.msra.mxu1 %v88_v8  ;;  %205 = vmatpush.msra.mxu2 %v103_v9  ;;  %v68_v19 = vld [vmem:[%s8678_s1 + $0x48] sm:$0xff]  ;;  %v67_v22 = vld [vmem:[%s8678_s1 + $0x40] sm:$0xff]  ;;  %v66_v25 = vld [vmem:[%s8678_s1 + $0x38] sm:$0xff] }
   0x9   :  { %135 = vmatpush.msra.mxu0 %v71_v10  ;;  %v84_v20 = vld [vmem:[%s8678_s1 + $0xc8] sm:$0xff]  ;;  %v83_v23 = vld [vmem:[%s8678_s1 + $0xc0] sm:$0xff]  ;;  %v82_v26 = vld [vmem:[%s8678_s1 + $0xb8] sm:$0xff] }
   0xa   :  { %170 = vmatpush.msra.mxu1 %v87_v11  ;;  %206 = vmatpush.msra.mxu2 %v102_v12  ;;  %v108_v27 = vld [vmem:[%s8678_s1 + $0x188] sm:$0xff]  ;;  %v97_v28 = vld [vmem:[%s8678_s1 + $0x130] sm:$0xff]  ;;  %v107_v30 = vld [vmem:[%s8678_s1 + $0x180] sm:$0xff] }
   0xb   :  { %136 = vmatpush.msra.mxu0 %v70_v13  ;;  %v65_v29 = vld [vmem:[%s8678_s1 + $0x30] sm:$0xff]  ;;  %251 = vmatpush.msra.mxu3 %v108_v27  ;;  %v38_v32 = vld [vmem:[%s8679_s0 + $0x18] sm:$0xff]  ;;  %v96_v33 = vld [vmem:[%s8678_s1 + $0x128] sm:$0xff] }
   0xc   :  { %171 = vmatpush.msra.mxu1 %v86_v14  ;;  %207 = vmatpush.msra.mxu2 %v101_v15  ;;  %v81_v31 = vld [vmem:[%s8678_s1 + $0xb0] sm:$0xff]  ;;  %v64_v34 = vld [vmem:[%s8678_s1 + $0x28] sm:$0xff]  ;;  %v95_v36 = vld [vmem:[%s8678_s1 + $0x120] sm:$0xff] }
   0xd   :  { %137 = vmatpush.msra.mxu0 %v69_v16  ;;  %252 = vmatpush.msra.mxu3 %v107_v30  ;;  %v80_v35 = vld [vmem:[%s8678_s1 + $0xa8] sm:$0xff]  ;;  %v63_v37 = vld [vmem:[%s8678_s1 + $0x20] sm:$0xff]  ;;  %v94_v39 = vld [vmem:[%s8678_s1 + $0x118] sm:$0xff] }
   0xe   :  { %172 = vmatpush.msra.mxu1 %v85_v17  ;;  %208 = vmatpush.msra.mxu2 %v100_v18  ;;  %v79_v38 = vld [vmem:[%s8678_s1 + $0xa0] sm:$0xff]  ;;  %v62_v40 = vld [vmem:[%s8678_s1 + $0x18] sm:$0xff]  ;;  %v93_v42 = vld [vmem:[%s8678_s1 + $0x110] sm:$0xff] }
   0xf   :  { %138 = vmatpush.msra.mxu0 %v68_v19  ;;  %3014 = vmatmul.msk.f32.vlgmr.msra.gmra.mxu3 %vm113_vm0, %v38_v32  ;;  %v78_v41 = vld [vmem:[%s8678_s1 + $0x98] sm:$0xff]  ;;  %v61_v43 = vld [vmem:[%s8678_s1 + $0x10] sm:$0xff]  ;;  %v92_v46 = vld [vmem:[%s8678_s1 + $0x108] sm:$0xff] }
  0x10   :  { %173 = vmatpush.msra.mxu1 %v84_v20  ;;  %209 = vmatpush.msra.mxu2 %v99_v21  ;;  %v77_v44 = vld [vmem:[%s8678_s1 + $0x90] sm:$0xff]  ;;  %v42_v45 = vld [vmem:[%s8679_s0 + $0x38] sm:$0xff]  ;;  %v60_v47 = vld [vmem:[%s8678_s1 + $0x8] sm:$0xff] }
  0x11   :  { %139 = vmatpush.msra.mxu0 %v67_v22  ;;  %v76_v48 = vld [vmem:[%s8678_s1 + $0x88] sm:$0xff]  ;;  %v91_v49 = vld [vmem:[%s8678_s1 + $0x100] sm:$0xff]  ;;  %v37_v51 = vld [vmem:[%s8679_s0 + $0x10] sm:$0xff] }
  0x12   :  { %174 = vmatpush.msra.mxu1 %v83_v23  ;;  %210 = vmatpush.msra.mxu2 %v98_v24  ;;  %v59_v50 = vld [vmem:[%s8678_s1] sm:$0xff]  ;;  %v36_v54 = vld [vmem:[%s8679_s0 + $0x8] sm:$0xff]  ;;  %v46_v55 = vld [vmem:[%s8679_s0 + $0x58] sm:$0xff] }
  0x13   :  { %140 = vmatpush.msra.mxu0 %v66_v25  ;;  %v35_v52 = vld [vmem:[%s8679_s0] sm:$0xff]  ;;  %v41_v56 = vld [vmem:[%s8679_s0 + $0x30] sm:$0xff]  ;;  %v40_v58 = vld [vmem:[%s8679_s0 + $0x28] sm:$0xff] }
  0x14   :  { %175 = vmatpush.msra.mxu1 %v82_v26  ;;  %211 = vmatpush.msra.mxu2 %v97_v28  ;;  %v75_v53 = vld [vmem:[%s8678_s1 + $0x80] sm:$0xff]  ;;  %v50_v59 = vld [vmem:[%s8679_s0 + $0x78] sm:$0xff]  ;;  %v339_v62 = vld [vmem:[%s8681_s3 + $0x1e8] sm:$0xff] }
  0x15   :  { %141 = vmatpush.msra.mxu0 %v65_v29  ;;  %v39_v57 = vld [vmem:[%s8679_s0 + $0x20] sm:$0xff]  ;;  %v335_v63 = vld [vmem:[%s8681_s3 + $0x1c8] sm:$0xff]  ;;  %v341_v1 = vld [vmem:[%s8681_s3 + $0x1f8] sm:$0xff] }
  0x16   :  { %176 = vmatpush.msra.mxu1 %v81_v31  ;;  %212 = vmatpush.msra.mxu2 %v96_v33  ;;  %v338_v60 = vld [vmem:[%s8681_s3 + $0x1e0] sm:$0xff]  ;;  %v45_v2 = vld [vmem:[%s8679_s0 + $0x50] sm:$0xff]  ;;  %v337_v4 = vld [vmem:[%s8681_s3 + $0x1d8] sm:$0xff] }
  0x17   :  { %142 = vmatpush.msra.mxu0 %v64_v34  ;;  %3015 = vmatmul.msk.f32.gmra.mxu3 %vm113_vm0, %v42_v45  ;;  %v334_v61 = vld [vmem:[%s8681_s3 + $0x1c0] sm:$0xff]  ;;  %v331_v6 = vld [vmem:[%s8681_s3 + $0x1a8] sm:$0xff]  ;;  %v333_v8 = vld [vmem:[%s8681_s3 + $0x1b8] sm:$0xff] }
  0x18   :  { %177 = vmatpush.msra.mxu1 %v80_v35  ;;  %213 = vmatpush.msra.mxu2 %v95_v36  ;;  %v330_v0 = vld [vmem:[%s8681_s3 + $0x1a0] sm:$0xff]  ;;  %v44_v7 = vld [vmem:[%s8679_s0 + $0x48] sm:$0xff]  ;;  %v54_v11 = vld [vmem:[%s8679_s0 + $0x98] sm:$0xff] }
  0x19   :  { %143 = vmatpush.msra.mxu0 %v63_v37  ;;  %352 = vmatpush.msrb.mxu3 %v338_v60  ;;  %v43_v3 = vld [vmem:[%s8679_s0 + $0x40] sm:$0xff]  ;;  %v327_v10 = vld [vmem:[%s8681_s3 + $0x188] sm:$0xff]  ;;  %v340_v12 = vld [vmem:[%s8681_s3 + $0x1f0] sm:$0xff] }
  0x1a   :  { %178 = vmatpush.msra.mxu1 %v79_v38  ;;  %214 = vmatpush.msra.mxu2 %v94_v39  ;;  %v326_v5 = vld [vmem:[%s8681_s3 + $0x180] sm:$0xff]  ;;  %v323_v14 = vld [vmem:[%s8681_s3 + $0x168] sm:$0xff]  ;;  %v336_v15 = vld [vmem:[%s8681_s3 + $0x1d0] sm:$0xff] }
  0x1b   :  { %144 = vmatpush.msra.mxu0 %v62_v40  ;;  %353 = vmatpush.msrb.mxu3 %v334_v61  ;;  %v322_v9 = vld [vmem:[%s8681_s3 + $0x160] sm:$0xff]  ;;  %v329_v16 = vld [vmem:[%s8681_s3 + $0x198] sm:$0xff]  ;;  %v319_v18 = vld [vmem:[%s8681_s3 + $0x148] sm:$0xff] }
  0x1c   :  { %179 = vmatpush.msra.mxu1 %v78_v41  ;;  %215 = vmatpush.msra.mxu2 %v93_v42  ;;  %v318_v13 = vld [vmem:[%s8681_s3 + $0x140] sm:$0xff]  ;;  %v49_v19 = vld [vmem:[%s8679_s0 + $0x70] sm:$0xff]  ;;  %v48_v23 = vld [vmem:[%s8679_s0 + $0x68] sm:$0xff] }
  0x1d   :  { %145 = vmatpush.msra.mxu0 %v61_v43  ;;  %354 = vmatpush.msrb.mxu3 %v330_v0  ;;  %v314_v17 = vld [vmem:[%s8681_s3 + $0x120] sm:$0xff]  ;;  %v332_v22 = vld [vmem:[%s8681_s3 + $0x1b0] sm:$0xff]  ;;  %v325_v24 = vld [vmem:[%s8681_s3 + $0x178] sm:$0xff] }
  0x1e   :  { %180 = vmatpush.msra.mxu1 %v77_v44  ;;  %216 = vmatpush.msra.mxu2 %v92_v46  ;;  %v47_v20 = vld [vmem:[%s8679_s0 + $0x60] sm:$0xff]  ;;  %v328_v25 = vld [vmem:[%s8681_s3 + $0x190] sm:$0xff]  ;;  %v58_v27 = vld [vmem:[%s8679_s0 + $0xb8] sm:$0xff] }
  0x1f   :  { %146 = vmatpush.msra.mxu0 %v60_v47  ;;  %3016 = vmatmul.msk.f32.gmra.mxu3 %vm113_vm0, %v46_v55  ;;  %v310_v21 = vld [vmem:[%s8681_s3 + $0x100] sm:$0xff]  ;;  %v315_v28 = vld [vmem:[%s8681_s3 + $0x128] sm:$0xff]  ;;  %v324_v29 = vld [vmem:[%s8681_s3 + $0x170] sm:$0xff] }
  0x20   :  { %181 = vmatpush.msra.mxu1 %v76_v48  ;;  %217 = vmatpush.msra.mxu2 %v91_v49  ;;  %v306_v26 = vld [vmem:[%s8681_s3 + $0xe0] sm:$0xff]  ;;  %v321_v30 = vld [vmem:[%s8681_s3 + $0x158] sm:$0xff]  ;;  %v311_v32 = vld [vmem:[%s8681_s3 + $0x108] sm:$0xff] }
  0x21   :  { %147 = vmatpush.msra.mxu0 %v59_v50  ;;  %218 = vmatmul.f32.vlgmr.msra.gmra.mxu2 %v37_v51  ;;  %v302_v31 = vld [vmem:[%s8681_s3 + $0xc0] sm:$0xff]  ;;  %v320_v33 = vld [vmem:[%s8681_s3 + $0x150] sm:$0xff]  ;;  %v317_v34 = vld [vmem:[%s8681_s3 + $0x138] sm:$0xff] }
  0x22   :  { %148 = vmatmul.f32.vlgmr.msra.gmra.mxu0 %v35_v52  ;;  %182 = vmatpush.msra.mxu1 %v75_v53  ;;  %v53_v35 = vld [vmem:[%s8679_s0 + $0x90] sm:$0xff]  ;;  %v51_v36 = vld [vmem:[%s8679_s0 + $0x80] sm:$0xff]  ;;  %v52_v39 = vld [vmem:[%s8679_s0 + $0x88] sm:$0xff] }
  0x23   :  { %183 = vmatmul.f32.vlgmr.msra.gmra.mxu1 %v36_v54  ;;  %387 = vmatpush.msrb.mxu0 %v339_v62  ;;  %v316_v37 = vld [vmem:[%s8681_s3 + $0x130] sm:$0xff]  ;;  %v298_v38 = vld [vmem:[%s8681_s3 + $0xa0] sm:$0xff]  ;;  %v307_v40 = vld [vmem:[%s8681_s3 + $0xe8] sm:$0xff] }
  0x24   :  { %457 = vmatpush.msrb.mxu2 %v341_v1  ;;  %355 = vmatpush.msrb.mxu3 %v326_v5  ;;  %v312_v41 = vld [vmem:[%s8681_s3 + $0x110] sm:$0xff]  ;;  %v313_v42 = vld [vmem:[%s8681_s3 + $0x118] sm:$0xff]  ;;  %v294_v43 = vld [vmem:[%s8681_s3 + $0x80] sm:$0xff] }
  0x25   :  { %388 = vmatpush.msrb.mxu0 %v335_v63  ;;  %422 = vmatpush.msrb.mxu1 %v340_v12  ;;  %v303_v44 = vld [vmem:[%s8681_s3 + $0xc8] sm:$0xff]  ;;  %v308_v45 = vld [vmem:[%s8681_s3 + $0xf0] sm:$0xff]  ;;  %v309_v46 = vld [vmem:[%s8681_s3 + $0xf8] sm:$0xff] }
  0x26   :  { %458 = vmatpush.msrb.mxu2 %v337_v4  ;;  %356 = vmatpush.msrb.mxu3 %v322_v9  ;;  %v290_v47 = vld [vmem:[%s8681_s3 + $0x60] sm:$0xff]  ;;  %v299_v48 = vld [vmem:[%s8681_s3 + $0xa8] sm:$0xff]  ;;  %v304_v49 = vld [vmem:[%s8681_s3 + $0xd0] sm:$0xff] }
  0x27   :  { %3017 = vmatmul.msk.f32.gmra.mxu3 %vm113_vm0, %v50_v59  ;;  %389 = vmatpush.msrb.mxu0 %v331_v6  ;;  %v305_v50 = vld [vmem:[%s8681_s3 + $0xd8] sm:$0xff]  ;;  %v57_v51 = vld [vmem:[%s8679_s0 + $0xb0] sm:$0xff]  ;;  %v55_v52 = vld [vmem:[%s8679_s0 + $0xa0] sm:$0xff] }
  0x28   :  { %459 = vmatpush.msrb.mxu2 %v333_v8  ;;  %357 = vmatpush.msrb.mxu3 %v318_v13  ;;  %v56_v53 = vld [vmem:[%s8679_s0 + $0xa8] sm:$0xff]  ;;  %v300_v54 = vld [vmem:[%s8681_s3 + $0xb0] sm:$0xff]  ;;  %v301_v55 = vld [vmem:[%s8681_s3 + $0xb8] sm:$0xff] }
  0x29   :  { %221 = vmatmul.f32.gmra.mxu2 %v41_v56  ;;  %390 = vmatpush.msrb.mxu0 %v327_v10  ;;  %v286_v56 = vld [vmem:[%s8681_s3 + $0x40] sm:$0xff]  ;;  %v297_v59 = vld [vmem:[%s8681_s3 + $0x98] sm:$0xff]  ;;  %v291_v60 = vld [vmem:[%s8681_s3 + $0x68] sm:$0xff] }
  0x2a   :  { %151 = vmatmul.f32.gmra.mxu0 %v39_v57  ;;  %423 = vmatpush.msrb.mxu1 %v336_v15  ;;  %v295_v57 = vld [vmem:[%s8681_s3 + $0x88] sm:$0xff]  ;;  %v292_v61 = vld [vmem:[%s8681_s3 + $0x70] sm:$0xff]  ;;  %v293_v62 = vld [vmem:[%s8681_s3 + $0x78] sm:$0xff] }
  0x2b   :  { %186 = vmatmul.f32.gmra.mxu1 %v40_v58  ;;  %391 = vmatpush.msrb.mxu0 %v323_v14  ;;  %v296_v58 = vld [vmem:[%s8681_s3 + $0x90] sm:$0xff]  ;;  %v282_v63 = vld [vmem:[%s8681_s3 + $0x20] sm:$0xff]  ;;  %v287_v0 = vld [vmem:[%s8681_s3 + $0x48] sm:$0xff] }
  0x2c   :  { %460 = vmatpush.msrb.mxu2 %v329_v16  ;;  %358 = vmatpush.msrb.mxu3 %v314_v17  ;;  %v288_v1 = vld [vmem:[%s8681_s3 + $0x50] sm:$0xff]  ;;  %v285_v5 = vld [vmem:[%s8681_s3 + $0x38] sm:$0xff]  ;;  %v278_v6 = vld [vmem:[%s8681_s3] sm:$0xff] }
  0x2d   :  { %392 = vmatpush.msrb.mxu0 %v319_v18  ;;  %424 = vmatpush.msrb.mxu1 %v332_v22  ;;  %v284_v4 = vld [vmem:[%s8681_s3 + $0x30] sm:$0xff]  ;;  %v281_v9 = vld [vmem:[%s8681_s3 + $0x18] sm:$0xff]  ;;  %v576_v10 = vld [vmem:[%s8682_s5 + $0x1e0] sm:$0xff] }
  0x2e   :  { %359 = vmatpush.msrb.mxu3 %v310_v21  ;;  %461 = vmatpush.msrb.mxu2 %v325_v24  ;;  %v280_v8 = vld [vmem:[%s8681_s3 + $0x10] sm:$0xff]  ;;  %v568_v12 = vld [vmem:[%s8682_s5 + $0x1a0] sm:$0xff]  ;;  %v4155_v13 = vld [vmem:[%s8682_s5 + $0x1e8] sm:$0xff] }
  0x2f   :  { %3018 = vmatmul.msk.f32.gmra.mxu3 %vm113_vm0, %v54_v11  ;;  %425 = vmatpush.msrb.mxu1 %v328_v25  ;;  %v572_v11 = vld [vmem:[%s8682_s5 + $0x1c0] sm:$0xff]  ;;  %v4164_v15 = vld [vmem:[%s8682_s5 + $0x1c8] sm:$0xff]  ;;  %v4170_v16 = vld [vmem:[%s8682_s5 + $0x1f8] sm:$0xff] }
  0x30   :  { %360 = vmatpush.msrb.mxu3 %v306_v26  ;;  %393 = vmatpush.msrb.mxu0 %v315_v28  ;;  %v564_v14 = vld [vmem:[%s8682_s5 + $0x180] sm:$0xff]  ;;  %v4178_v18 = vld [vmem:[%s8682_s5 + $0x1a8] sm:$0xff]  ;;  %v578_v24 = vld [vmem:[%s8682_s5 + $0x1f0] sm:$0xff] }
  0x31   :  { %224 = vmatmul.f32.gmra.mxu2 %v45_v2  ;;  %426 = vmatpush.msrb.mxu1 %v324_v29  ;;  %v289_v2 = vld [vmem:[%s8681_s3 + $0x58] sm:$0xff]  ;;  %v560_v17 = vld [vmem:[%s8682_s5 + $0x160] sm:$0xff]  ;;  %v4192_v22 = vld [vmem:[%s8682_s5 + $0x188] sm:$0xff] }
  0x32   :  { %154 = vmatmul.f32.gmra.mxu0 %v43_v3  ;;  %462 = vmatpush.msrb.mxu2 %v321_v30  ;;  %v283_v3 = vld [vmem:[%s8681_s3 + $0x28] sm:$0xff]  ;;  %v556_v21 = vld [vmem:[%s8682_s5 + $0x140] sm:$0xff]  ;;  %v4208_v25 = vld [vmem:[%s8682_s5 + $0x1b8] sm:$0xff] }
  0x33   :  { %189 = vmatmul.f32.gmra.mxu1 %v44_v7  ;;  %361 = vmatpush.msrb.mxu3 %v302_v31  ;;  %v279_v7 = vld [vmem:[%s8681_s3 + $0x8] sm:$0xff]  ;;  %v552_v26 = vld [vmem:[%s8682_s5 + $0x120] sm:$0xff]  ;;  %v574_v29 = vld [vmem:[%s8682_s5 + $0x1d0] sm:$0xff] }
  0x34   :  { %394 = vmatpush.msrb.mxu0 %v311_v32  ;;  %427 = vmatpush.msrb.mxu1 %v320_v33  ;;  %v570_v32 = vld [vmem:[%s8682_s5 + $0x1b0] sm:$0xff] }
  0x35   :  { %463 = vmatpush.msrb.mxu2 %v317_v34  ;;  %362 = vmatpush.msrb.mxu3 %v298_v38  ;;  %v4230_v34 = vld [vmem:[%s8682_s5 + $0x198] sm:$0xff] }
  0x36   :  { %428 = vmatpush.msrb.mxu1 %v316_v37  ;;  %395 = vmatpush.msrb.mxu0 %v307_v40  ;;  %v566_v37 = vld [vmem:[%s8682_s5 + $0x190] sm:$0xff]  ;;  %v4247_v38 = vld [vmem:[%s8682_s5 + $0x178] sm:$0xff] }
  0x37   :  { %3019 = vmatmul.msk.f32.gmra.mxu3 %vm113_vm0, %v58_v27  ;;  %464 = vmatpush.msrb.mxu2 %v313_v42  ;;  %v4216_v27 = vld [vmem:[%s8682_s5 + $0x168] sm:$0xff] }
  0x38   :  { %429 = vmatpush.msrb.mxu1 %v312_v41  ;;  %363 = vmatpush.msrb.mxu3 %v294_v43  ;;  %v544_v41 = vld [vmem:[%s8682_s5 + $0xe0] sm:$0xff]  ;;  %v4257_v42 = vld [vmem:[%s8682_s5 + $0x128] sm:$0xff]  ;;  %v562_v43 = vld [vmem:[%s8682_s5 + $0x170] sm:$0xff] }
  0x39   :  { %227 = vmatmul.f32.gmra.mxu2 %v49_v19  ;;  %396 = vmatpush.msrb.mxu0 %v303_v44 }
  0x3a   :  { %157 = vmatmul.f32.gmra.mxu0 %v47_v20  ;;  %430 = vmatpush.msrb.mxu1 %v308_v45  ;;  %v4184_v20 = vld [vmem:[%s8682_s5 + $0x1d8] sm:$0xff] }
  0x3b   :  { %192 = vmatmul.f32.gmra.mxu1 %v48_v23  ;;  %465 = vmatpush.msrb.mxu2 %v309_v46  ;;  %v4197_v23 = vld [vmem:[%s8680_s2] ss:$0 sm:$0xff]  ;;  %v4266_v45 = vld [vmem:[%s8682_s5 + $0x158] sm:$0xff] }
  0x3c   :  { %364 = vmatpush.msrb.mxu3 %v290_v47  ;;  %397 = vmatpush.msrb.mxu0 %v299_v48  ;;  %v558_v47 = vld [vmem:[%s8682_s5 + $0x150] sm:$0xff] }
  0x3d   :  { %431 = vmatpush.msrb.mxu1 %v304_v49  ;;  %466 = vmatpush.msrb.mxu2 %v305_v50 }
  0x3e   :  { %365 = vmatpush.msrb.mxu3 %v286_v56  ;;  %398 = vmatpush.msrb.mxu0 %v295_v57  ;;  %v554_v56 = vld [vmem:[%s8682_s5 + $0x130] sm:$0xff]  ;;  %v536_v57 = vld [vmem:[%s8682_s5 + $0xa0] sm:$0xff] }
  0x3f   :  { %432 = vmatpush.msrb.mxu1 %v300_v54  ;;  %467 = vmatpush.msrb.mxu2 %v301_v55  ;;  %v540_v54 = vld [vmem:[%s8682_s5 + $0xc0] sm:$0xff]  ;;  %v4284_v55 = vld [vmem:[%s8682_s5 + $0x108] sm:$0xff] }
  0x40   :  { %399 = vmatpush.msrb.mxu0 %v291_v60  ;;  %366 = vmatpush.msrb.mxu3 %v282_v63  ;;  %v532_v63 = vld [vmem:[%s8682_s5 + $0x80] sm:$0xff] }
  0x41   :  { %230 = vmatmul.f32.gmra.mxu2 %v53_v35  ;;  %433 = vmatpush.msrb.mxu1 %v296_v58  ;;  %v548_v35 = vld [vmem:[%s8682_s5 + $0x100] sm:$0xff]  ;;  %v4297_v58 = vld [vmem:[%s8682_s5 + $0xe8] sm:$0xff] }
  0x42   :  { %160 = vmatmul.f32.gmra.mxu0 %v51_v36  ;;  %468 = vmatpush.msrb.mxu2 %v297_v59  ;;  %v4238_v36 = vld [vmem:[%s8682_s5 + $0x148] sm:$0xff]  ;;  %v4302_v59 = vld [vmem:[%s8682_s5 + $0x118] sm:$0xff] }
  0x43   :  { %195 = vmatmul.f32.gmra.mxu1 %v52_v39  ;;  %400 = vmatpush.msrb.mxu0 %v287_v0  ;;  %v4313_v0 = vld [vmem:[%s8682_s5 + $0xc8] sm:$0xff] }
  0x44   :  { %434 = vmatpush.msrb.mxu1 %v292_v61  ;;  %469 = vmatpush.msrb.mxu2 %v293_v62  ;;  %v550_v61 = vld [vmem:[%s8682_s5 + $0x110] sm:$0xff] }
  0x45   :  { %401 = vmatpush.msrb.mxu0 %v283_v3  ;;  %367 = vmatpush.msrb.mxu3 %v278_v6 }
  0x46   :  { %435 = vmatpush.msrb.mxu1 %v288_v1  ;;  %470 = vmatpush.msrb.mxu2 %v289_v2  ;;  %v4318_v1 = vld [vmem:[%s8682_s5 + $0xf8] sm:$0xff] }
  0x47   :  { %402 = vmatpush.msrb.mxu0 %v279_v7  ;;  %722 = vmatpush.msra.mxu3 %v576_v10  ;;  %v4329_v7 = vld [vmem:[%s8682_s5 + $0xd8] sm:$0xff] }
  0x48   :  { %436 = vmatpush.msrb.mxu1 %v284_v4  ;;  %471 = vmatpush.msrb.mxu2 %v285_v5  ;;  %v546_v4 = vld [vmem:[%s8682_s5 + $0xf0] sm:$0xff] }
  0x49   :  { %233 = vmatmul.f32.gmra.mxu2 %v57_v51  ;;  %723 = vmatpush.msra.mxu3 %v572_v11  ;;  %v4276_v51 = vld [vmem:[%s8682_s5 + $0x138] sm:$0xff]  ;;  %v528_v11 = vld [vmem:[%s8682_s5 + $0x60] sm:$0xff] }
  0x4a   :  { %163 = vmatmul.f32.gmra.mxu0 %v55_v52  ;;  %437 = vmatpush.msrb.mxu1 %v280_v8 }
  0x4b   :  { %198 = vmatmul.f32.gmra.mxu1 %v56_v53  ;;  %472 = vmatpush.msrb.mxu2 %v281_v9 }
  0x4c   :  { %742 = vmatpush.msra.mxu0 %v4155_v13  ;;  %724 = vmatpush.msra.mxu3 %v568_v12  ;;  %v542_v12 = vld [vmem:[%s8682_s5 + $0xd0] sm:$0xff] }
  0x4d   :  { %782 = vmatpush.msra.mxu2 %v4170_v16  ;;  %762 = vmatpush.msra.mxu1 %v578_v24  ;;  %v538_v24 = vld [vmem:[%s8682_s5 + $0xb0] sm:$0xff] }
  0x4e   :  { %725 = vmatpush.msra.mxu3 %v564_v14  ;;  %743 = vmatpush.msra.mxu0 %v4164_v15  ;;  %v4343_v14 = vld [vmem:[%s8682_s5 + $0xa8] sm:$0xff] }
  0x4f   :  { %783 = vmatpush.msra.mxu2 %v4184_v20  ;;  %763 = vmatpush.msra.mxu1 %v574_v29  ;;  %v4365_v29 = vld [vmem:[%s8682_s5 + $0x98] sm:$0xff] }
  0x50   :  { %726 = vmatpush.msra.mxu3 %v560_v17  ;;  %744 = vmatpush.msra.mxu0 %v4178_v18  ;;  %v4348_v17 = vld [vmem:[%s8682_s5 + $0xb8] sm:$0xff] }
  0x51   :  { %784 = vmatpush.msra.mxu2 %v4208_v25  ;;  %764 = vmatpush.msra.mxu1 %v570_v32  ;;  %v534_v32 = vld [vmem:[%s8682_s5 + $0x90] sm:$0xff] }
  0x52   :  { %727 = vmatpush.msra.mxu3 %v556_v21  ;;  %745 = vmatpush.msra.mxu0 %v4192_v22 }
  0x53   :  { %785 = vmatpush.msra.mxu2 %v4230_v34  ;;  %765 = vmatpush.msra.mxu1 %v566_v37 }
  0x54   :  { %728 = vmatpush.msra.mxu3 %v552_v26  ;;  %746 = vmatpush.msra.mxu0 %v4216_v27  ;;  %v4359_v26 = vld [vmem:[%s8682_s5 + $0x88] sm:$0xff] }
  0x55   :  { %786 = vmatpush.msra.mxu2 %v4247_v38  ;;  %766 = vmatpush.msra.mxu1 %v562_v43 }
  0x56   :  { %729 = vmatpush.msra.mxu3 %v548_v35  ;;  %747 = vmatpush.msra.mxu0 %v4238_v36 }
  0x57   :  { %787 = vmatpush.msra.mxu2 %v4266_v45  ;;  %767 = vmatpush.msra.mxu1 %v558_v47  ;;  %v530_v47 = vld [vmem:[%s8682_s5 + $0x70] sm:$0xff] }
  0x58   :  { %730 = vmatpush.msra.mxu3 %v544_v41  ;;  %748 = vmatpush.msra.mxu0 %v4257_v42 }
  0x59   :  { %788 = vmatpush.msra.mxu2 %v4276_v51  ;;  %768 = vmatpush.msra.mxu1 %v554_v56  ;;  %v4417_v56 = vld [vmem:[%s8682_s5 + $0x38] sm:$0xff] }
  0x5a   :  { %731 = vmatpush.msra.mxu3 %v540_v54  ;;  %749 = vmatpush.msra.mxu0 %v4284_v55 }
  0x5b   :  { %789 = vmatpush.msra.mxu2 %v4302_v59  ;;  %769 = vmatpush.msra.mxu1 %v550_v61  ;;  %v4426_v61 = vld [vmem:[%s8682_s5 + $0x8] sm:$0xff] }
  0x5c   :  { %732 = vmatpush.msra.mxu3 %v536_v57  ;;  %750 = vmatpush.msra.mxu0 %v4297_v58 }
  0x5d   :  { %790 = vmatpush.msra.mxu2 %v4318_v1  ;;  %770 = vmatpush.msra.mxu1 %v546_v4 }
  0x5e   :  { %733 = vmatpush.msra.mxu3 %v532_v63  ;;  %751 = vmatpush.msra.mxu0 %v4313_v0 }
  0x5f   :  { %791 = vmatpush.msra.mxu2 %v4329_v7  ;;  %771 = vmatpush.msra.mxu1 %v542_v12 }
  0x60   :  { %734 = vmatpush.msra.mxu3 %v528_v11  ;;  %752 = vmatpush.msra.mxu0 %v4343_v14 }
  0x61   :  { %792 = vmatpush.msra.mxu2 %v4348_v17  ;;  %772 = vmatpush.msra.mxu1 %v538_v24 }
  0x62   :  { %753 = vmatpush.msra.mxu0 %v4359_v26 }
  0x63   :  { %793 = vmatpush.msra.mxu2 %v4365_v29  ;;  %773 = vmatpush.msra.mxu1 %v534_v32 }
  0x65   :  { %774 = vmatpush.msra.mxu1 %v530_v47  ;;  %v4478_v47 = vld [vmem:[%s8683_s6 + $0x3a8] sm:$0xff] }
  0x92   :  { %v254_v19 = vpop.f32.mrf.mxu3 }
  0x9a   :  { %v257_v40 = vpop.f32.mrf.mxu3 }
  0x9f   :  { %v149_v28 = vpop.f32.mrf.mxu0 }
  0xa0   :  { %v150_v30 = vadd.f32 %v4197_v23, %v149_v28  ;;  %v184_v31 = vpop.f32.mrf.mxu1 }
  0xa2   :  { %v185_v33 = vadd.f32 %v184_v31, %v150_v30  ;;  %v260_v3 = vpop.f32.mrf.mxu3  ;;  %v520_v30 = vld [vmem:[%s8682_s5 + $0x20] sm:$0xff] }
  0xa4   :  { %v219_v39 = vpop.f32.mrf.mxu2 }
  0xa5   :  { %v220_v44 = vadd.f32 %v219_v39, %v185_v33  ;;  %v4377_v33 = vld [vmem:[%s8682_s5 + $0x68] sm:$0xff]  ;;  %v4384_v39 = vld [vmem:[%s8682_s5 + $0x78] sm:$0xff] }
  0xa6   :  { %754 = vmatpush.msra.mxu0 %v4377_v33  ;;  %794 = vmatpush.msra.mxu2 %v4384_v39 }
  0xa7   :  { %v152_v46 = vpop.f32.mrf.mxu0  ;;  %v255_v48 = vadd.f32 %v254_v19, %v220_v44  ;;  %v524_v19 = vld [vmem:[%s8682_s5 + $0x40] sm:$0xff] }
  0xa8   :  { %v153_v49 = vadd.f32 %v4197_v23, %v152_v46  ;;  %v187_v50 = vpop.f32.mrf.mxu1  ;;  %735 = vmatpush.msra.mxu3 %v524_v19 }
  0xa9   :  { %v272_v52 = vmax.f32 %v255_v48, 0.0  ;;  %v4398_v48 = vld [vmem:[%s8682_s5 + $0x48] sm:$0xff] }
  0xaa   :  { %v188_v53 = vadd.f32 %v187_v50, %v153_v49  ;;  %v263_v43 = vpop.f32.mrf.mxu3  ;;  %736 = vmatpush.msra.mxu3 %v520_v30  ;;  %v4403_v49 = vld [vmem:[%s8682_s5 + $0x58] sm:$0xff]  ;;  %755 = vmatpush.msra.mxu0 %v4398_v48 }
  0xab   :  { %368 = vmatmul.f32.vlgmr.msrb.gmra.mxu3 %v272_v52  ;;  %403 = vmatmul.f32.vlgmr.msrb.gmra.mxu0 %v272_v52 }
  0xac   :  { %438 = vmatmul.f32.vlgmr.msrb.gmra.mxu1 %v272_v52  ;;  %473 = vmatmul.f32.vlgmr.msrb.gmra.mxu2 %v272_v52  ;;  %v222_v60 = vpop.f32.mrf.mxu2  ;;  %v526_v52 = vld [vmem:[%s8682_s5 + $0x50] sm:$0xff] }
  0xad   :  { %v223_v62 = vadd.f32 %v222_v60, %v188_v53  ;;  %v4411_v53 = vld [vmem:[%s8682_s5 + $0x28] sm:$0xff]  ;;  %795 = vmatpush.msra.mxu2 %v4403_v49  ;;  %v522_v60 = vld [vmem:[%s8682_s5 + $0x30] sm:$0xff]  ;;  %775 = vmatpush.msra.mxu1 %v526_v52 }
  0xae   :  { %756 = vmatpush.msra.mxu0 %v4411_v53  ;;  %v4490_v52 = vld [vmem:[%s8683_s6 + $0x388] sm:$0xff] }
  0xaf   :  { %v155_v2 = vpop.f32.mrf.mxu0  ;;  %v258_v5 = vadd.f32 %v257_v40, %v223_v62  ;;  %v516_v40 = vld [vmem:[%s8682_s5] sm:$0xff]  ;;  %796 = vmatpush.msra.mxu2 %v4417_v56  ;;  %776 = vmatpush.msra.mxu1 %v522_v60 }
  0xb0   :  { %v156_v6 = vadd.f32 %v4197_v23, %v155_v2  ;;  %v190_v8 = vpop.f32.mrf.mxu1  ;;  %737 = vmatpush.msra.mxu3 %v516_v40  ;;  %v4433_v2 = vld [vmem:[%s8682_s5 + $0x18] sm:$0xff]  ;;  %757 = vmatpush.msra.mxu0 %v4426_v61  ;;  %v8689_v40 = vmov 0.0   ;;  %v4509_v60 = vld [vmem:[%s8683_s6 + $0x340] sm:$0xff] }
  0xb1   :  { %v273_v9 = vmax.f32 %v258_v5, 0.0  ;;  %797 = vmatpush.msra.mxu2 %v4433_v2 }
  0xb2   :  { %v191_v10 = vadd.f32 %v190_v8, %v156_v6  ;;  %v266_v6 = vpop.f32.mrf.mxu3  ;;  %v518_v8 = vld [vmem:[%s8682_s5 + $0x10] sm:$0xff] }
  0xb3   :  { %371 = vmatmul.f32.gmra.mxu3 %v273_v9  ;;  %406 = vmatmul.f32.gmra.mxu0 %v273_v9 }
  0xb4   :  { %441 = vmatmul.f32.gmra.mxu1 %v273_v9  ;;  %476 = vmatmul.f32.gmra.mxu2 %v273_v9  ;;  %v225_v21 = vpop.f32.mrf.mxu2 }
  0xb5   :  { %v226_v28 = vadd.f32 %v225_v21, %v191_v10  ;;  %777 = vmatpush.msra.mxu1 %v518_v8  ;;  %v4548_v8 = vld [vmem:[%s8683_s6 + $0x2e8] sm:$0xff] }
  0xb6   :  { %9049 = vst [vmem:[#allocation6_spill] sm:$0xff] %v4548_v8 }
  0xb7   :  { %v158_v31 = vpop.f32.mrf.mxu0  ;;  %v261_v35 = vadd.f32 %v260_v3, %v226_v28 }
  0xb8   :  { %v159_v37 = vadd.f32 %v4197_v23, %v158_v31  ;;  %v193_v41 = vpop.f32.mrf.mxu1 }
  0xb9   :  { %v274_v44 = vmax.f32 %v261_v35, 0.0 }
  0xba   :  { %v194_v46 = vadd.f32 %v193_v41, %v159_v37  ;;  %v269_v31 = vpop.f32.mrf.mxu3  ;;  %v4454_v41 = vld [vmem:[%s8683_s6 + $0x3e8] sm:$0xff] }
  0xbb   :  { %374 = vmatmul.f32.gmra.mxu3 %v274_v44  ;;  %409 = vmatmul.f32.gmra.mxu0 %v274_v44 }
  0xbc   :  { %444 = vmatmul.f32.gmra.mxu1 %v274_v44  ;;  %479 = vmatmul.f32.gmra.mxu2 %v274_v44  ;;  %v228_v50 = vpop.f32.mrf.mxu2  ;;  %v4466_v44 = vld [vmem:[%s8683_s6 + $0x3c8] sm:$0xff] }
  0xbd   :  { %v229_v54 = vadd.f32 %v228_v50, %v194_v46  ;;  %929 = vmatpush.msrb.mxu2 %v4454_v41  ;;  %v4473_v46 = vld [vmem:[%s8683_s6 + $0x3a0] sm:$0xff] }
  0xbe   :  { %v4485_v50 = vld [vmem:[%s8683_s6 + $0x380] sm:$0xff] }
  0xbf   :  { %v161_v57 = vpop.f32.mrf.mxu0  ;;  %v264_v62 = vadd.f32 %v263_v43, %v229_v54  ;;  %v4461_v43 = vld [vmem:[%s8683_s6 + $0x3c0] sm:$0xff]  ;;  %930 = vmatpush.msrb.mxu2 %v4466_v44 }
  0xc0   :  { %v162_v63 = vadd.f32 %v4197_v23, %v161_v57  ;;  %v196_v3 = vpop.f32.mrf.mxu1  ;;  %v4495_v54 = vld [vmem:[%s8683_s6 + $0x360] sm:$0xff]  ;;  %v4500_v57 = vld [vmem:[%s8683_s6 + $0x368] sm:$0xff] }
  0xc1   :  { %v275_v4 = vmax.f32 %v264_v62, 0.0  ;;  %931 = vmatpush.msrb.mxu2 %v4478_v47  ;;  %v4514_v62 = vld [vmem:[%s8683_s6 + $0x348] sm:$0xff] }
  0xc2   :  { %v197_v5 = vadd.f32 %v196_v3, %v162_v63  ;;  %v4521_v63 = vld [vmem:[%s8683_s6 + $0x320] sm:$0xff]  ;;  %v4526_v3 = vld [vmem:[%s8683_s6 + $0x328] sm:$0xff] }
  0xc3   :  { %377 = vmatmul.f32.gmra.mxu3 %v275_v4  ;;  %412 = vmatmul.f32.gmra.mxu0 %v275_v4 }
  0xc4   :  { %447 = vmatmul.f32.gmra.mxu1 %v275_v4  ;;  %482 = vmatmul.f32.gmra.mxu2 %v275_v4  ;;  %v231_v9 = vpop.f32.mrf.mxu2  ;;  %v4533_v4 = vld [vmem:[%s8683_s6 + $0x300] sm:$0xff] }
  0xc5   :  { %v232_v10 = vadd.f32 %v231_v9, %v197_v5  ;;  %932 = vmatpush.msrb.mxu2 %v4490_v52  ;;  %9046 = vst [vmem:[#allocation3_spill] sm:$0xff] %v4533_v4  ;;  %v4538_v5 = vld [vmem:[%s8683_s6 + $0x308] sm:$0xff]  ;;  %v4557_v9 = vld [vmem:[%s8683_s6 + $0x2c0] sm:$0xff] }
  0xc6   :  { %9047 = vst [vmem:[#allocation4_spill] sm:$0xff] %v4538_v5 }
  0xc7   :  { %v164_v11 = vpop.f32.mrf.mxu0  ;;  %v267_v12 = vadd.f32 %v266_v6, %v232_v10  ;;  %933 = vmatpush.msrb.mxu2 %v4500_v57  ;;  %v4543_v6 = vld [vmem:[%s8683_s6 + $0x2e0] sm:$0xff]  ;;  %9050 = vst [vmem:[#allocation7_spill] sm:$0xff] %v4557_v9  ;;  %v4562_v10 = vld [vmem:[%s8683_s6 + $0x2c8] sm:$0xff] }
  0xc8   :  { %v165_v19 = vadd.f32 %v4197_v23, %v164_v11  ;;  %v199_v21 = vpop.f32.mrf.mxu1  ;;  %v4449_v23 = vld [vmem:[%s8683_s6 + $0x3e0] sm:$0xff]  ;;  %9048 = vst [vmem:[#allocation5_spill] sm:$0xff] %v4543_v6 }
  0xc9   :  { %v276_v24 = vmax.f32 %v267_v12, 0.0  ;;  %889 = vmatpush.msrb.mxu0 %v4449_v23  ;;  %934 = vmatpush.msrb.mxu2 %v4514_v62  ;;  %9051 = vst [vmem:[#allocation8_spill] sm:$0xff] %v4562_v10  ;;  %v4569_v11 = vld [vmem:[%s8683_s6 + $0x2a0] sm:$0xff]  ;;  %v4574_v12 = vld [vmem:[%s8683_s6 + $0x2a8] sm:$0xff] }
  0xca   :  { %v200_v28 = vadd.f32 %v199_v21, %v165_v19  ;;  %9052 = vst [vmem:[#allocation9_spill] sm:$0xff] %v4569_v11  ;;  %v4581_v19 = vld [vmem:[%s8683_s6 + $0x280] sm:$0xff]  ;;  %v4586_v21 = vld [vmem:[%s8683_s6 + $0x288] sm:$0xff] }
  0xcb   :  { %380 = vmatmul.f32.gmra.mxu3 %v276_v24  ;;  %415 = vmatmul.f32.gmra.mxu0 %v276_v24  ;;  %9053 = vst [vmem:[#allocation10_spill] sm:$0xff] %v4574_v12 }
  0xcc   :  { %450 = vmatmul.f32.gmra.mxu1 %v276_v24  ;;  %485 = vmatmul.f32.gmra.mxu2 %v276_v24  ;;  %v234_v30 = vpop.f32.mrf.mxu2  ;;  %9054 = vst [vmem:[#allocation11_spill] sm:$0xff] %v4581_v19  ;;  %v4591_v24 = vld [vmem:[%s8683_s6 + $0x260] sm:$0xff] }
  0xcd   :  { %v235_v32 = vadd.f32 %v234_v30, %v200_v28  ;;  %890 = vmatpush.msrb.mxu0 %v4461_v43  ;;  %935 = vmatpush.msrb.mxu2 %v4526_v3  ;;  %9055 = vst [vmem:[#allocation12_spill] sm:$0xff] %v4586_v21  ;;  %v4596_v28 = vld [vmem:[%s8683_s6 + $0x268] sm:$0xff]  ;;  %v4605_v30 = vld [vmem:[%s8683_s6 + $0x240] sm:$0xff] }
  0xce   :  { %9056 = vst [vmem:[#allocation13_spill] sm:$0xff] %v4591_v24 }
  0xcf   :  { %v270_v35 = vadd.f32 %v269_v31, %v235_v32  ;;  %891 = vmatpush.msrb.mxu0 %v4473_v46  ;;  %936 = vmatpush.msrb.mxu2 %v4538_v5  ;;  %9057 = vst [vmem:[#allocation14_spill] sm:$0xff] %v4596_v28  ;;  %v4610_v31 = vld [vmem:[%s8683_s6 + $0x248] sm:$0xff] }
  0xd0   :  { %9058 = vst [vmem:[#allocation15_spill] sm:$0xff] %v4605_v30  ;;  %v4792_v5 = vld [vmem:[%s8683_s6 + $0x148] sm:$0xff] }
  0xd1   :  { %v277_v37 = vmax.f32 %v270_v35, 0.0  ;;  %892 = vmatpush.msrb.mxu0 %v4485_v50  ;;  %937 = vmatpush.msrb.mxu2 %v4548_v8  ;;  %9059 = vst [vmem:[#allocation16_spill] sm:$0xff] %v4610_v31 }
  0xd2   :  { %9088 = vst [vmem:[#allocation44_spill] sm:$0xff] %v4792_v5 }
  0xd3   :  { %383 = vmatmul.f32.gmra.mxu3 %v277_v37  ;;  %418 = vmatmul.f32.gmra.mxu0 %v277_v37 }
  0xd4   :  { %453 = vmatmul.f32.gmra.mxu1 %v277_v37  ;;  %488 = vmatmul.f32.gmra.mxu2 %v277_v37  ;;  %v4621_v37 = vld [vmem:[%s8683_s6 + $0x220] sm:$0xff] }
  0xd5   :  { %893 = vmatpush.msrb.mxu0 %v4495_v54  ;;  %938 = vmatpush.msrb.mxu2 %v4562_v10  ;;  %9060 = vst [vmem:[#allocation17_spill] sm:$0xff] %v4621_v37 }
  0xd7   :  { %894 = vmatpush.msrb.mxu0 %v4509_v60  ;;  %939 = vmatpush.msrb.mxu2 %v4574_v12  ;;  %v4679_v12 = vld [vmem:[%s8683_s6 + $0x1c8] sm:$0xff] }
  0xd8   :  { %9069 = vst [vmem:[#allocation26_spill] sm:$0xff] %v4679_v12 }
  0xd9   :  { %895 = vmatpush.msrb.mxu0 %v4521_v63  ;;  %940 = vmatpush.msrb.mxu2 %v4586_v21  ;;  %v342_v21 = vld [vmem:[%s8684_s4] sm:$0xf] }
  0xdb   :  { %738 = vmatmul.f32.vlgmr.msra.gmra.mxu3 %v8689_v40  ;;  %758 = vmatmul.f32.vlgmr.msra.gmra.mxu0 %v8689_v40 }
  0xdc   :  { %778 = vmatmul.f32.vlgmr.msra.gmra.mxu1 %v8689_v40  ;;  %798 = vmatmul.f32.vlgmr.msra.gmra.mxu2 %v8689_v40  ;;  %v4626_v40 = vld [vmem:[%s8683_s6 + $0x228] sm:$0xff] }
  0xdd   :  { %896 = vmatpush.msrb.mxu0 %v4533_v4  ;;  %941 = vmatpush.msrb.mxu2 %v4596_v28  ;;  %9061 = vst [vmem:[#allocation18_spill] sm:$0xff] %v4626_v40  ;;  %v4643_v28 = vld [vmem:[%s8683_s6 + $0x1e0] sm:$0xff] }
  0xde   :  { %9064 = vst [vmem:[#allocation21_spill] sm:$0xff] %v4643_v28  ;;  %869 = vmatpush.msrb.mxu3 %v4643_v28 }
  0xdf   :  { %897 = vmatpush.msrb.mxu0 %v4543_v6  ;;  %942 = vmatpush.msrb.mxu2 %v4610_v31  ;;  %v4633_v31 = vld [vmem:[%s8683_s6 + $0x200] sm:$0xff] }
  0xe0   :  { %9062 = vst [vmem:[#allocation19_spill] sm:$0xff] %v4633_v31 }
  0xe1   :  { %898 = vmatpush.msrb.mxu0 %v4557_v9  ;;  %943 = vmatpush.msrb.mxu2 %v4626_v40  ;;  %v4649_v40 = vld [vmem:[%s8683_s6 + $0x1e8] sm:$0xff]  ;;  %v4705_v9 = vld [vmem:[%s8683_s6 + $0x1a0] sm:$0xff] }
  0xe2   :  { %9065 = vst [vmem:[#allocation22_spill] sm:$0xff] %v4649_v40  ;;  %909 = vmatpush.msrb.mxu1 %v4649_v40  ;;  %v4684_v40 = vld [vmem:[%s8683_s6 + $0x3d0] sm:$0xff] }
  0xe3   :  { %899 = vmatpush.msrb.mxu0 %v4569_v11  ;;  %9070 = vst [vmem:[#allocation27_spill] sm:$0xff] %v4684_v40  ;;  %v4698_v11 = vperm.slane %v342_v21, 2 }
  0xe4   :  { %910 = vmatpush.msrb.mxu1 %v4679_v12  ;;  %9073 = vst [vmem:[#allocation29_spill] sm:$0xff] %v4705_v9  ;;  %v4710_v12 = vld [vmem:[%s8683_s6 + $0x1a8] sm:$0xff] }
  0xe5   :  { %900 = vmatpush.msrb.mxu0 %v4581_v19  ;;  %v4674_v19 = vld [vmem:[%s8683_s6 + $0x1c0] sm:$0xff]  ;;  %9074 = vst [vmem:[#allocation30_spill] sm:$0xff] %v4710_v12 }
  0xe6   :  { %9068 = vst [vmem:[#allocation25_spill] sm:$0xff] %v4674_v19  ;;  %870 = vmatpush.msrb.mxu3 %v4674_v19  ;;  %v4715_v19 = vld [vmem:[%s8683_s6 + $0x3b0] sm:$0xff]  ;;  %911 = vmatpush.msrb.mxu1 %v4710_v12 }
  0xe7   :  { %901 = vmatpush.msrb.mxu0 %v4591_v24  ;;  %v4659_v24 = vld [vmem:[%s8683_s6 + $0x3f8] sm:$0xff]  ;;  %9075 = vst [vmem:[#allocation31_spill] sm:$0xff] %v4715_v19  ;;  %v4745_v12 = vld [vmem:[%s8683_s6 + $0x390] sm:$0xff] }
  0xe8   :  { %9067 = vst [vmem:[#allocation24_spill] sm:$0xff] %v4659_v24  ;;  %871 = vmatpush.msrb.mxu3 %v4705_v9  ;;  %v4762_v9 = vld [vmem:[%s8683_s6 + $0x168] sm:$0xff] }
  0xe9   :  { %902 = vmatpush.msrb.mxu0 %v4605_v30  ;;  %v4638_v30 = vld [vmem:[%s8683_s6 + $0x208] sm:$0xff]  ;;  %9081 = vst [vmem:[#allocation37_spill] sm:$0xff] %v4745_v12 }
  0xea   :  { %9063 = vst [vmem:[#allocation20_spill] sm:$0xff] %v4638_v30  ;;  %944 = vmatpush.msrb.mxu2 %v4638_v30  ;;  %v4687_v30 = vperm.slane %v342_v21, 1 }
  0xeb   :  { %903 = vmatpush.msrb.mxu0 %v4621_v37  ;;  %v4654_v37 = vld [vmem:[%s8683_s6 + $0x3f0] sm:$0xff]  ;;  %9084 = vst [vmem:[#allocation40_spill] sm:$0xff] %v4762_v9 }
  0xec   :  { %9066 = vst [vmem:[#allocation23_spill] sm:$0xff] %v4654_v37  ;;  %1009 = vmatpush.msra.mxu2 %v4659_v24 }
  0xed   :  { %904 = vmatpush.msrb.mxu0 %v4633_v31  ;;  %v4696_v31 = vld [vmem:[%s8683_s6 + $0x3d8] sm:$0xff] }
  0xee   :  { %9072 = vst [vmem:[#allocation28_spill] sm:$0xff] %v4696_v31  ;;  %1010 = vmatpush.msra.mxu2 %v4696_v31  ;;  %v4725_v31 = vld [vmem:[%s8683_s6 + $0x3b8] sm:$0xff] }
  0xef   :  { %969 = vmatpush.msra.mxu0 %v4654_v37  ;;  %v9071_v37 = vmov 0.0   ;;  %9077 = vst [vmem:[#allocation33_spill] sm:$0xff] %v4725_v31 }
  0xf0   :  { %905 = vmatmul.f32.vlgmr.msrb.gmra.mxu0 %v9071_v37  ;;  %1011 = vmatpush.msra.mxu2 %v4725_v31  ;;  %v4776_v31 = vperm.slane %v342_v21, 0 }
  0xf1   :  { %970 = vmatpush.msra.mxu0 %v4684_v40  ;;  %945 = vmatmul.f32.vlgmr.msrb.gmra.mxu2 %v9071_v37 }
  0xf3   :  { %971 = vmatpush.msra.mxu0 %v4715_v19  ;;  %v4780_v19 = vperm.slane %v342_v21, 3  ;;  %v4797_v21 = vld [vmem:[%s8683_s6 + $0x350] sm:$0xff] }
  0xf4   :  { %9089 = vst [vmem:[#allocation45_spill] sm:$0xff] %v4797_v21 }
  0xf5   :  { %972 = vmatpush.msra.mxu0 %v4745_v12 }
 0x128   :  { %v4612_v32 = vpop.f32.mrf.mxu0 }
 0x129   :  { %v4616_v35 = vpop.f32.mrf.mxu1 }
 0x12e   :  { %v4668_v28 = vpop.f32.mrf.mxu3 }
 0x12f   :  { %v4689_v24 = vpop.f32.mrf.mxu2 }
 0x130   :  { %v407_v10 = vpop.f32.mrf.mxu0 }
 0x131   :  { %v4718_v8 = vadd.f32 %v407_v10, %v4687_v30  ;;  %v442_v40 = vpop.f32.mrf.mxu1  ;;  %v4735_v10 = vld [vmem:[%s8683_s6 + $0x180] sm:$0xff] }
 0x132   :  { %v4728_v6 = vadd.f32 %v442_v40, %v4698_v11  ;;  %9079 = vst [vmem:[#allocation35_spill] sm:$0xff] %v4735_v10  ;;  %872 = vmatpush.msrb.mxu3 %v4735_v10  ;;  %v4752_v40 = vld [vmem:[%s8683_s6 + $0x398] sm:$0xff] }
 0x133   :  { %9076 = vst [vmem:[#allocation32_spill] sm:$0xff] %v4718_v8  ;;  %v4740_v8 = vld [vmem:[%s8683_s6 + $0x188] sm:$0xff]  ;;  %1012 = vmatpush.msra.mxu2 %v4752_v40  ;;  %v4774_v10 = vld [vmem:[%s8683_s6 + $0x378] sm:$0xff] }
 0x134   :  { %9078 = vst [vmem:[#allocation34_spill] sm:$0xff] %v4728_v6  ;;  %912 = vmatpush.msrb.mxu1 %v4740_v8  ;;  %v4757_v6 = vld [vmem:[%s8683_s6 + $0x160] sm:$0xff] }
 0x135   :  { %9080 = vst [vmem:[#allocation36_spill] sm:$0xff] %v4740_v8  ;;  %v4769_v8 = vld [vmem:[%s8683_s6 + $0x370] sm:$0xff]  ;;  %873 = vmatpush.msrb.mxu3 %v4757_v6  ;;  %1013 = vmatpush.msra.mxu2 %v4774_v10 }
 0x136   :  { %9082 = vst [vmem:[#allocation38_spill] sm:$0xff] %v4752_v40  ;;  %913 = vmatpush.msrb.mxu1 %v4762_v9  ;;  %v372_v12 = vpop.f32.mrf.mxu3  ;;  %973 = vmatpush.msra.mxu0 %v4769_v8  ;;  %v4787_v40 = vld [vmem:[%s8683_s6 + $0x140] sm:$0xff] }
 0x137   :  { %9083 = vst [vmem:[#allocation39_spill] sm:$0xff] %v4757_v6  ;;  %v4800_v9 = vadd.f32 %v372_v12, %v4776_v31  ;;  %v477_v6 = vpop.f32.mrf.mxu2  ;;  %874 = vmatpush.msrb.mxu3 %v4787_v40  ;;  %v4817_v12 = vld [vmem:[%s8683_s6 + $0x120] sm:$0xff] }
 0x138   :  { %9085 = vst [vmem:[#allocation41_spill] sm:$0xff] %v4769_v8  ;;  %914 = vmatpush.msrb.mxu1 %v4792_v5  ;;  %v4810_v8 = vadd.f32 %v477_v6, %v4780_v19  ;;  %v410_v4 = vpop.f32.mrf.mxu0  ;;  %974 = vmatpush.msra.mxu0 %v4797_v21  ;;  %v4827_v6 = vld [vmem:[%s8683_s6 + $0x330] sm:$0xff] }
 0x139   :  { %9086 = vst [vmem:[#allocation42_spill] sm:$0xff] %v4774_v10  ;;  %v4807_v10 = vld [vmem:[%s8683_s6 + $0x358] sm:$0xff]  ;;  %v445_v5 = vpop.f32.mrf.mxu1  ;;  %875 = vmatpush.msrb.mxu3 %v4817_v12 }
 0x13a   :  { %9087 = vst [vmem:[#allocation43_spill] sm:$0xff] %v4787_v40  ;;  %1014 = vmatpush.msra.mxu2 %v4807_v10  ;;  %v4837_v40 = vld [vmem:[%s8683_s6 + $0x338] sm:$0xff]  ;;  %975 = vmatpush.msra.mxu0 %v4827_v6 }
 0x13b   :  { %9090 = vst [vmem:[#allocation46_spill] sm:$0xff] %v4800_v9  ;;  %v4822_v9 = vld [vmem:[%s8683_s6 + $0x128] sm:$0xff] }
 0x13c   :  { %9091 = vst [vmem:[#allocation47_spill] sm:$0xff] %v4807_v10  ;;  %915 = vmatpush.msrb.mxu1 %v4822_v9  ;;  %v4840_v10 = vadd.f32 %v445_v5, %v4698_v11  ;;  %1015 = vmatpush.msra.mxu2 %v4837_v40  ;;  %v4864_v5 = vld [vmem:[%s8683_s6 + $0x318] sm:$0xff] }
 0x13d   :  { %9092 = vst [vmem:[#allocation48_spill] sm:$0xff] %v4810_v8  ;;  %v4830_v8 = vadd.f32 %v410_v4, %v4687_v30  ;;  %v4847_v4 = vld [vmem:[%s8683_s6 + $0x100] sm:$0xff] }
 0x13e   :  { %9093 = vst [vmem:[#allocation49_spill] sm:$0xff] %v4817_v12  ;;  %876 = vmatpush.msrb.mxu3 %v4847_v4  ;;  %1016 = vmatpush.msra.mxu2 %v4864_v5  ;;  %v4888_v12 = vld [vmem:[%s8683_s6 + $0x2f8] sm:$0xff] }
 0x13f   :  { %9094 = vst [vmem:[#allocation50_spill] sm:$0xff] %v4822_v9  ;;  %v4857_v9 = vld [vmem:[%s8683_s6 + $0x310] sm:$0xff] }
 0x140   :  { %9095 = vst [vmem:[#allocation51_spill] sm:$0xff] %v4827_v6  ;;  %976 = vmatpush.msra.mxu0 %v4857_v9  ;;  %1017 = vmatpush.msra.mxu2 %v4888_v12 }
 0x141   :  { %9096 = vst [vmem:[#allocation52_spill] sm:$0xff] %v4830_v8  ;;  %v4852_v8 = vld [vmem:[%s8683_s6 + $0x108] sm:$0xff]  ;;  %v448_v21 = vpop.f32.mrf.mxu1 }
 0x142   :  { %9097 = vst [vmem:[#allocation53_spill] sm:$0xff] %v4837_v40  ;;  %916 = vmatpush.msrb.mxu1 %v4852_v8  ;;  %v480_v40 = vpop.f32.mrf.mxu2 }
 0x143   :  { %9098 = vst [vmem:[#allocation54_spill] sm:$0xff] %v4840_v10  ;;  %v4871_v10 = vld [vmem:[%s8683_s6 + $0xe0] sm:$0xff] }
 0x144   :  { %9099 = vst [vmem:[#allocation55_spill] sm:$0xff] %v4847_v4  ;;  %v4876_v4 = vld [vmem:[%s8683_s6 + $0xe8] sm:$0xff]  ;;  %877 = vmatpush.msrb.mxu3 %v4871_v10 }
 0x145   :  { %9100 = vst [vmem:[#allocation56_spill] sm:$0xff] %v4852_v8  ;;  %v4881_v8 = vld [vmem:[%s8683_s6 + $0x2f0] sm:$0xff]  ;;  %917 = vmatpush.msrb.mxu1 %v4876_v4 }
 0x146   :  { %9101 = vst [vmem:[#allocation57_spill] sm:$0xff] %v4857_v9  ;;  %977 = vmatpush.msra.mxu0 %v4881_v8 }
 0x147   :  { %9102 = vst [vmem:[#allocation58_spill] sm:$0xff] %v4864_v5  ;;  %v375_v5 = vpop.f32.mrf.mxu3 }
 0x148   :  { %9103 = vst [vmem:[#allocation59_spill] sm:$0xff] %v4871_v10  ;;  %v4893_v9 = vadd.f32 %v375_v5, %v4776_v31  ;;  %v4898_v10 = vld [vmem:[%s8683_s6 + $0xc0] sm:$0xff]  ;;  %v4912_v5 = vadd.f32 %v480_v40, %v4780_v19 }
 0x149   :  { %9104 = vst [vmem:[#allocation60_spill] sm:$0xff] %v4876_v4  ;;  %v4903_v4 = vld [vmem:[%s8683_s6 + $0xc8] sm:$0xff]  ;;  %878 = vmatpush.msrb.mxu3 %v4898_v10  ;;  %v4929_v40 = vld [vmem:[%s8683_s6 + $0xa0] sm:$0xff] }
 0x14a   :  { %9105 = vst [vmem:[#allocation61_spill] sm:$0xff] %v4881_v8  ;;  %v4908_v8 = vld [vmem:[%s8683_s6 + $0x2d0] sm:$0xff]  ;;  %918 = vmatpush.msrb.mxu1 %v4903_v4 }
 0x14b   :  { %9106 = vst [vmem:[#allocation62_spill] sm:$0xff] %v4888_v12  ;;  %v4919_v12 = vld [vmem:[%s8683_s6 + $0x2d8] sm:$0xff]  ;;  %978 = vmatpush.msra.mxu0 %v4908_v8  ;;  %879 = vmatpush.msrb.mxu3 %v4929_v40 }
 0x14c   :  { %9107 = vst [vmem:[#allocation63_spill] sm:$0xff] %v4893_v9  ;;  %v413_v9 = vpop.f32.mrf.mxu0  ;;  %1018 = vmatpush.msra.mxu2 %v4919_v12 }
 0x14d   :  { %9108 = vst [vmem:[#allocation64_spill] sm:$0xff] %v4898_v10  ;;  %v4922_v6 = vadd.f32 %v413_v9, %v4687_v30  ;;  %v4939_v9 = vld [vmem:[%s8683_s6 + $0x2b0] sm:$0xff]  ;;  %v4956_v10 = vld [vmem:[%s8683_s6 + $0x80] sm:$0xff] }
 0x14e   :  { %9109 = vst [vmem:[#allocation65_spill] sm:$0xff] %v4903_v4  ;;  %v4949_v4 = vld [vmem:[%s8683_s6 + $0x2b8] sm:$0xff]  ;;  %979 = vmatpush.msra.mxu0 %v4939_v9  ;;  %880 = vmatpush.msrb.mxu3 %v4956_v10 }
 0x14f   :  { %9110 = vst [vmem:[#allocation66_spill] sm:$0xff] %v4908_v8  ;;  %1019 = vmatpush.msra.mxu2 %v4949_v4  ;;  %v451_v8 = vpop.f32.mrf.mxu1 }
 0x150   :  { %9111 = vst [vmem:[#allocation67_spill] sm:$0xff] %v4912_v5  ;;  %v4934_v5 = vld [vmem:[%s8683_s6 + $0xa8] sm:$0xff] }
 0x151   :  { %9112 = vst [vmem:[#allocation68_spill] sm:$0xff] %v4919_v12  ;;  %919 = vmatpush.msrb.mxu1 %v4934_v5  ;;  %v5007_v12 = vld [vmem:[%s8683_s6 + $0x40] sm:$0xff] }
 0x152   :  { %9113 = vst [vmem:[#allocation69_spill] sm:$0xff] %v4922_v6  ;;  %v4942_v6 = vadd.f32 %v448_v21, %v4698_v11  ;;  %v4961_v21 = vld [vmem:[%s8683_s6 + $0x88] sm:$0xff] }
 0x153   :  { %9114 = vst [vmem:[#allocation70_spill] sm:$0xff] %v4929_v40  ;;  %920 = vmatpush.msrb.mxu1 %v4961_v21  ;;  %v4980_v40 = vld [vmem:[%s8683_s6 + $0x60] sm:$0xff] }
 0x154   :  { %9115 = vst [vmem:[#allocation71_spill] sm:$0xff] %v4934_v5  ;;  %v4973_v5 = vld [vmem:[%s8683_s6 + $0x298] sm:$0xff]  ;;  %881 = vmatpush.msrb.mxu3 %v4980_v40 }
 0x155   :  { %9116 = vst [vmem:[#allocation72_spill] sm:$0xff] %v4939_v9  ;;  %1020 = vmatpush.msra.mxu2 %v4973_v5  ;;  %v483_v9 = vpop.f32.mrf.mxu2 }
 0x156   :  { %9117 = vst [vmem:[#allocation73_spill] sm:$0xff] %v4942_v6  ;;  %v4966_v6 = vld [vmem:[%s8683_s6 + $0x290] sm:$0xff]  ;;  %882 = vmatpush.msrb.mxu3 %v5007_v12 }
 0x157   :  { %9118 = vst [vmem:[#allocation74_spill] sm:$0xff] %v4949_v4  ;;  %980 = vmatpush.msra.mxu0 %v4966_v6  ;;  %v378_v4 = vpop.f32.mrf.mxu3 }
 0x158   :  { %9119 = vst [vmem:[#allocation75_spill] sm:$0xff] %v4956_v10  ;;  %v4985_v10 = vld [vmem:[%s8683_s6 + $0x68] sm:$0xff] }
 0x159   :  { %9120 = vst [vmem:[#allocation76_spill] sm:$0xff] %v4961_v21  ;;  %v4990_v21 = vld [vmem:[%s8683_s6 + $0x270] sm:$0xff]  ;;  %921 = vmatpush.msrb.mxu1 %v4985_v10 }
 0x15a   :  { %9121 = vst [vmem:[#allocation77_spill] sm:$0xff] %v4966_v6  ;;  %v5000_v6 = vadd.f32 %v378_v4, %v4776_v31  ;;  %981 = vmatpush.msra.mxu0 %v4990_v21  ;;  %v5017_v4 = vld [vmem:[%s8683_s6 + $0x250] sm:$0xff] }
 0x15b   :  { %9122 = vst [vmem:[#allocation78_spill] sm:$0xff] %v4973_v5  ;;  %v4997_v5 = vld [vmem:[%s8683_s6 + $0x278] sm:$0xff] }
 0x15c   :  { %9123 = vst [vmem:[#allocation79_spill] sm:$0xff] %v4980_v40  ;;  %1021 = vmatpush.msra.mxu2 %v4997_v5  ;;  %v416_v40 = vpop.f32.mrf.mxu0  ;;  %982 = vmatpush.msra.mxu0 %v5017_v4 }
 0x15d   :  { %9124 = vst [vmem:[#allocation80_spill] sm:$0xff] %v4985_v10  ;;  %v5012_v10 = vld [vmem:[%s8683_s6 + $0x48] sm:$0xff] }
 0x15e   :  { %9125 = vst [vmem:[#allocation81_spill] sm:$0xff] %v4990_v21  ;;  %922 = vmatpush.msrb.mxu1 %v5012_v10  ;;  %v5030_v21 = vadd.f32 %v416_v40, %v4687_v30  ;;  %v5047_v40 = vld [vmem:[%s8683_s6 + $0x230] sm:$0xff] }
 0x15f   :  { %9126 = vst [vmem:[#allocation82_spill] sm:$0xff] %v4997_v5  ;;  %v5027_v5 = vld [vmem:[%s8683_s6 + $0x258] sm:$0xff]  ;;  %983 = vmatpush.msra.mxu0 %v5047_v40 }
 0x160   :  { %9127 = vst [vmem:[#allocation83_spill] sm:$0xff] %v5000_v6  ;;  %v5020_v6 = vadd.f32 %v483_v9, %v4780_v19  ;;  %1022 = vmatpush.msra.mxu2 %v5027_v5  ;;  %v5037_v9 = vld [vmem:[%s8683_s6 + $0x20] sm:$0xff] }
 0x161   :  { %9128 = vst [vmem:[#allocation84_spill] sm:$0xff] %v5007_v12  ;;  %883 = vmatpush.msrb.mxu3 %v5037_v9  ;;  %v5064_v12 = vld [vmem:[%s8683_s6] sm:$0xff] }
 0x162   :  { %9129 = vst [vmem:[#allocation85_spill] sm:$0xff] %v5012_v10  ;;  %v5057_v10 = vld [vmem:[%s8683_s6 + $0x238] sm:$0xff] }
 0x163   :  { %9130 = vst [vmem:[#allocation86_spill] sm:$0xff] %v5020_v6  ;;  %v5042_v6 = vld [vmem:[%s8683_s6 + $0x28] sm:$0xff]  ;;  %1023 = vmatpush.msra.mxu2 %v5057_v10  ;;  %884 = vmatpush.msrb.mxu3 %v5064_v12 }
 0x164   :  { %9131 = vst [vmem:[#allocation87_spill] sm:$0xff] %v5027_v5  ;;  %923 = vmatpush.msrb.mxu1 %v5042_v6 }
 0x165   :  { %9132 = vst [vmem:[#allocation88_spill] sm:$0xff] %v5030_v21  ;;  %v5050_v21 = vadd.f32 %v451_v8, %v4698_v11  ;;  %v5069_v8 = vld [vmem:[%s8683_s6 + $0x8] sm:$0xff] }
 0x166   :  { %9133 = vst [vmem:[#allocation89_spill] sm:$0xff] %v5037_v9  ;;  %924 = vmatpush.msrb.mxu1 %v5069_v8  ;;  %v5086_v9 = vld [vmem:[%s8683_s6 + $0x1f0] sm:$0xff] }
 0x167   :  { %9134 = vst [vmem:[#allocation90_spill] sm:$0xff] %v5042_v6  ;;  %v5081_v6 = vld [vmem:[%s8683_s6 + $0x218] sm:$0xff]  ;;  %949 = vmatpush.msra.mxu3 %v5086_v9 }
 0x168   :  { %9135 = vst [vmem:[#allocation91_spill] sm:$0xff] %v5047_v40  ;;  %1024 = vmatpush.msra.mxu2 %v5081_v6  ;;  %v5105_v40 = vld [vmem:[%s8683_s6 + $0x1d8] sm:$0xff] }
 0x169   :  { %9136 = vst [vmem:[#allocation92_spill] sm:$0xff] %v5050_v21  ;;  %v5074_v21 = vld [vmem:[%s8683_s6 + $0x210] sm:$0xff]  ;;  %1025 = vmatmul.f32.vlgmr.msra.gmra.mxu2 %v9071_v37 }
 0x16a   :  { %9137 = vst [vmem:[#allocation93_spill] sm:$0xff] %v5057_v10  ;;  %v5091_v10 = vld [vmem:[%s8683_s6 + $0x1f8] sm:$0xff]  ;;  %984 = vmatpush.msra.mxu0 %v5074_v21  ;;  %1157 = vmatpush.msrb.mxu2 %v4170_v16  ;;  %v454_v16 = vpop.f32.mrf.mxu1 }
 0x16b   :  { %9138 = vst [vmem:[#allocation94_spill] sm:$0xff] %v5064_v12  ;;  %989 = vmatpush.msra.mxu1 %v5091_v10  ;;  %v5100_v12 = vld [vmem:[%s8683_s6 + $0x1d0] sm:$0xff]  ;;  %985 = vmatmul.f32.vlgmr.msra.gmra.mxu0 %v9071_v37 }
 0x16c   :  { %9139 = vst [vmem:[#allocation95_spill] sm:$0xff] %v5069_v8  ;;  %v381_v8 = vpop.f32.mrf.mxu3  ;;  %1117 = vmatpush.msrb.mxu0 %v4155_v13  ;;  %950 = vmatpush.msra.mxu3 %v5100_v12 }
 0x16d   :  { %9140 = vst [vmem:[#allocation96_spill] sm:$0xff] %v5074_v21  ;;  %v5108_v5 = vadd.f32 %v381_v8, %v4776_v31  ;;  %v486_v21 = vpop.f32.mrf.mxu2  ;;  %990 = vmatpush.msra.mxu1 %v5105_v40  ;;  %v5125_v8 = vld [vmem:[%s8683_s6 + $0x1b8] sm:$0xff]  ;;  %1158 = vmatpush.msrb.mxu2 %v4184_v20 }
 0x16e   :  { %9141 = vst [vmem:[#allocation97_spill] sm:$0xff] %v5081_v6  ;;  %v5120_v6 = vld [vmem:[%s8683_s6 + $0x1b0] sm:$0xff]  ;;  %1118 = vmatpush.msrb.mxu0 %v4164_v15  ;;  %v5159_v20 = vld [vmem:[%s8683_s6 + $0x178] sm:$0xff] }
 0x16f   :  { %9142 = vst [vmem:[#allocation98_spill] sm:$0xff] %v5086_v9  ;;  %v419_v9 = vpop.f32.mrf.mxu0  ;;  %951 = vmatpush.msra.mxu3 %v5120_v6  ;;  %991 = vmatpush.msra.mxu1 %v5125_v8  ;;  %v5154_v15 = vld [vmem:[%s8683_s6 + $0x170] sm:$0xff] }
 0x170   :  { %9143 = vst [vmem:[#allocation99_spill] sm:$0xff] %v5091_v10  ;;  %v5113_v10 = vadd.f32 %v486_v21, %v4780_v19  ;;  %v5128_v13 = vadd.f32 %v419_v9, %v4687_v30  ;;  %v5133_v21 = vadd.f32 %v454_v16, %v4698_v11  ;;  %v5145_v9 = vld [vmem:[%s8683_s6 + $0x198] sm:$0xff]  ;;  %1119 = vmatpush.msrb.mxu0 %v4178_v18 }
 0x171   :  { %9144 = vst [vmem:[#allocation100_spill] sm:$0xff] %v5108_v5  ;;  %v5140_v5 = vld [vmem:[%s8683_s6 + $0x190] sm:$0xff]  ;;  %1159 = vmatpush.msrb.mxu2 %v4208_v25  ;;  %992 = vmatpush.msra.mxu1 %v5145_v9  ;;  %v5173_v16 = vld [vmem:[%s8683_s6 + $0x158] sm:$0xff] }
 0x172   :  { %9145 = vst [vmem:[#allocation101_spill] sm:$0xff] %v5113_v10  ;;  %952 = vmatpush.msra.mxu3 %v5140_v5  ;;  %1120 = vmatpush.msrb.mxu0 %v4192_v22  ;;  %v5168_v25 = vld [vmem:[%s8683_s6 + $0x150] sm:$0xff]  ;;  %v405_v22 = vadd.f32 %v4612_v32, %v4687_v30  ;;  %v5195_v32 = vld [vmem:[%s8683_s6 + $0x138] sm:$0xff] }
 0x173   :  { %9146 = vst [vmem:[#allocation102_spill] sm:$0xff] %v5128_v13  ;;  %1160 = vmatpush.msrb.mxu2 %v4230_v34  ;;  %993 = vmatpush.msra.mxu1 %v5159_v20  ;;  %v5190_v30 = vld [vmem:[%s8683_s6 + $0x130] sm:$0xff] }
 0x174   :  { %9147 = vst [vmem:[#allocation103_spill] sm:$0xff] %v5133_v21  ;;  %v384_v18 = vpop.f32.mrf.mxu3  ;;  %953 = vmatpush.msra.mxu3 %v5154_v15  ;;  %1121 = vmatpush.msrb.mxu0 %v4216_v27 }
 0x175   :  { %v5178_v34 = vadd.f32 %v384_v18, %v4776_v31  ;;  %v489_v21 = vpop.f32.mrf.mxu2  ;;  %1161 = vmatpush.msrb.mxu2 %v4247_v38  ;;  %994 = vmatpush.msra.mxu1 %v5173_v16  ;;  %v5204_v38 = vld [vmem:[%s8683_s6 + $0x110] sm:$0xff] }
 0x176   :  { %v5183_v13 = vadd.f32 %v489_v21, %v4780_v19  ;;  %954 = vmatpush.msra.mxu3 %v5168_v25  ;;  %1122 = vmatpush.msrb.mxu0 %v4238_v36  ;;  %v5209_v21 = vld [vmem:[%s8683_s6 + $0x118] sm:$0xff]  ;;  %v5218_v36 = vld [vmem:[%s8683_s6 + $0xf0] sm:$0xff] }
 0x177   :  { %9148 = vst [vmem:[#allocation104_spill] sm:$0xff] %v5178_v34  ;;  %v759_v10 = vpop.f32.mrf.mxu0  ;;  %1162 = vmatpush.msrb.mxu2 %v4266_v45  ;;  %995 = vmatpush.msra.mxu1 %v5195_v32  ;;  %v5223_v45 = vld [vmem:[%s8683_s6 + $0xf8] sm:$0xff] }
 0x178   :  { %9149 = vst [vmem:[#allocation105_spill] sm:$0xff] %v5183_v13  ;;  %v803_v27 = vadd.f32 %v759_v10, %v405_v22  ;;  %955 = vmatpush.msra.mxu3 %v5190_v30  ;;  %1123 = vmatpush.msrb.mxu0 %v4257_v42  ;;  %v370_v10 = vadd.f32 %v4668_v28, %v4776_v31  ;;  %v5236_v22 = vld [vmem:[%s8683_s6 + $0xd0] sm:$0xff]  ;;  %v5241_v28 = vld [vmem:[%s8683_s6 + $0xd8] sm:$0xff]  ;;  %v9195_v13 = vld [vmem:[#allocation68_spill] sm:$0xff] }
 0x179   :  { %1163 = vmatpush.msrb.mxu2 %v4276_v51  ;;  %996 = vmatpush.msra.mxu1 %v5209_v21  ;;  %v475_v42 = vadd.f32 %v4689_v24, %v4780_v19  ;;  %v5250_v24 = vld [vmem:[%s8683_s6 + $0xb0] sm:$0xff]  ;;  %v5255_v31 = vld [vmem:[%s8683_s6 + $0xb8] sm:$0xff] }
 0x17a   :  { %v3021_v18 = vmul.f32 -1.442695, %v803_v27  ;;  %956 = vmatpush.msra.mxu3 %v5204_v38  ;;  %1124 = vmatpush.msrb.mxu0 %v4284_v55  ;;  %v9193_v34 = vld [vmem:[#allocation66_spill] sm:$0xff] }
 0x17b   :  { %1164 = vmatpush.msrb.mxu2 %v4302_v59  ;;  %997 = vmatpush.msra.mxu1 %v5223_v45 }
 0x17c   :  { %3059 = vpow2.f32 %v3021_v18  ;;  %v739_v51 = vpop.f32.mrf.mxu3  ;;  %957 = vmatpush.msra.mxu3 %v5218_v36  ;;  %1125 = vmatpush.msrb.mxu0 %v4297_v58  ;;  %v5269_v18 = vld [vmem:[%s8683_s6 + $0x98] sm:$0xff] }
 0x17d   :  { %v802_v55 = vadd.f32 %v739_v51, %v370_v10  ;;  %v799_v59 = vpop.f32.mrf.mxu2  ;;  %1165 = vmatpush.msrb.mxu2 %v4318_v1  ;;  %998 = vmatpush.msra.mxu1 %v5241_v28  ;;  %v5264_v1 = vld [vmem:[%s8683_s6 + $0x90] sm:$0xff] }
 0x17e   :  { %v805_v19 = vadd.f32 %v799_v59, %v475_v42  ;;  %958 = vmatpush.msra.mxu3 %v5236_v22  ;;  %1126 = vmatpush.msrb.mxu0 %v4313_v0  ;;  %v5285_v42 = vld [vmem:[%s8683_s6 + $0x78] sm:$0xff] }
 0x17f   :  { %v3020_v27 = vmul.f32 -1.442695, %v802_v55  ;;  %1166 = vmatpush.msrb.mxu2 %v4329_v7  ;;  %999 = vmatpush.msra.mxu1 %v5255_v31  ;;  %v5280_v7 = vld [vmem:[%s8683_s6 + $0x70] sm:$0xff] }
 0x180   :  { %v3022_v58 = vmul.f32 -1.442695, %v805_v19  ;;  %959 = vmatpush.msra.mxu3 %v5250_v24  ;;  %1127 = vmatpush.msrb.mxu0 %v4343_v14  ;;  %v5295_v14 = vld [vmem:[%s8683_s6 + $0x50] sm:$0xff] }
 0x181   :  { %3061 = vpow2.f32 %v3020_v27  ;;  %1167 = vmatpush.msrb.mxu2 %v4348_v17  ;;  %1000 = vmatpush.msra.mxu1 %v5269_v18  ;;  %v5300_v17 = vld [vmem:[%s8683_s6 + $0x58] sm:$0xff]  ;;  %v779_v27 = vpop.f32.mrf.mxu1 }
 0x182   :  { %v3060_v10 = vpop.eup %3059  ;;  %3063 = vpow2.f32 %v3022_v58  ;;  %960 = vmatpush.msra.mxu3 %v5264_v1  ;;  %1128 = vmatpush.msrb.mxu0 %v4359_v26  ;;  %v5309_v26 = vld [vmem:[%s8683_s6 + $0x30] sm:$0xff] }
 0x183   :  { %v5273_v0 = vadd.f32 1.0, %v3060_v10  ;;  %1168 = vmatpush.msrb.mxu2 %v4365_v29  ;;  %1001 = vmatpush.msra.mxu1 %v5285_v42  ;;  %v5314_v29 = vld [vmem:[%s8683_s6 + $0x38] sm:$0xff] }
 0x184   :  { %961 = vmatpush.msra.mxu3 %v5280_v7  ;;  %1129 = vmatpush.msrb.mxu0 %v4377_v33  ;;  %v5323_v33 = vld [vmem:[%s8683_s6 + $0x10] sm:$0xff] }
 0x185   :  { %3065 = vrcp.f32 %v5273_v0  ;;  %1169 = vmatpush.msrb.mxu2 %v4384_v39  ;;  %1002 = vmatpush.msra.mxu1 %v5300_v17  ;;  %v5328_v39 = vld [vmem:[%s8683_s6 + $0x18] sm:$0xff]  ;;  %vm834_vm2 = vweird.f32 %v5273_v0 }
 0x186   :  { %962 = vmatpush.msra.mxu3 %v5295_v14  ;;  %1130 = vmatpush.msrb.mxu0 %v4398_v48 }
 0x187   :  { %v3062_v37 = vpop.eup %3061  ;;  %1170 = vmatpush.msrb.mxu2 %v4403_v49  ;;  %1003 = vmatpush.msra.mxu1 %v5314_v29 }
 0x188   :  { %v3064_v51 = vpop.eup %3063  ;;  %v809_v55 = vadd.f32 1.0, %v3062_v37  ;;  %963 = vmatpush.msra.mxu3 %v5309_v26  ;;  %1131 = vmatpush.msrb.mxu0 %v4411_v53  ;;  %v440_v53 = vadd.f32 %v4616_v35, %v4698_v11 }
 0x189   :  { %v5330_v59 = vadd.f32 1.0, %v3064_v51  ;;  %1171 = vmatpush.msrb.mxu2 %v4417_v56  ;;  %1004 = vmatpush.msra.mxu1 %v5328_v39 }
 0x18a   :  { %3067 = vrcp.f32 %v809_v55  ;;  %964 = vmatpush.msra.mxu3 %v5323_v33  ;;  %1132 = vmatpush.msrb.mxu0 %v4426_v61  ;;  %v804_v10 = vadd.f32 %v779_v27, %v440_v53  ;;  %v819_v51 = vand.u32 2147483647, %v809_v55  ;;  %vm815_vm6 = vweird.f32 %v809_v55 }
 0x18b   :  { %v3066_v19 = vpop.eup %3065  ;;  %3069 = vrcp.f32 %v5330_v59  ;;  %1172 = vmatpush.msrb.mxu2 %v4433_v2  ;;  %vm854_vm10 = vweird.f32 %v5330_v59 }
 0x18c   :  { %v830_v48 = vmul.f32 %v3066_v19, %v5273_v0  ;;  %1264 = vmatpush.msra.mxu0 %v4449_v23  ;;  %vm835_vm1 = vweird.f32 %v3066_v19  ;;  %v840_v23 = vand.u32 2147483648, %v5273_v0  ;;  %3071 = vtanh.f32 %v804_v10  ;;  %v9154_v10 = vld [vmem:[#allocation5_spill] sm:$0xff] }
 0x18d   :  { %1304 = vmatpush.msra.mxu2 %v4454_v41  ;;  %vm5359_vm3 = vmor %vm834_vm2, %vm835_vm1  ;;  %vm820_vm8 = vcmp.eq.f32.partialorder %v819_v51, 8.507059e+37 }
 0x18e   :  { %v831_v49 = vsub.f32 1.0, %v830_v48  ;;  %1265 = vmatpush.msra.mxu0 %v4461_v43  ;;  %v838_v43 = vand.u32 2147483647, %v5273_v0  ;;  %v841_v0 = vor.u32 1.1754944e-38, %v840_v23  ;;  %v858_v23 = vand.u32 2147483647, %v5330_v59 }
 0x18f   :  { %1305 = vmatpush.msra.mxu2 %v4466_v44 }
 0x190   :  { %v832_v56 = vmul.f32 %v3066_v19, %v831_v49  ;;  %v3068_v58 = vpop.eup %3067  ;;  %1266 = vmatpush.msra.mxu0 %v4473_v46  ;;  %v821_v46 = vand.u32 2147483648, %v809_v55  ;;  %vm839_vm5 = vcmp.eq.f32.partialorder %v838_v43, 8.507059e+37  ;;  %v9159_v43 = vld [vmem:[#allocation10_spill] sm:$0xff]  ;;  %vm859_vm12 = vcmp.eq.f32.partialorder %v858_v23, 8.507059e+37  ;;  %v5472_v23 = vld [vmem:[%s8682_s5 + $0x140] sm:$0xff] }
 0x191   :  { %v5348_v37 = vpop.eup %3069  ;;  %v811_v2 = vmul.f32 %v3068_v58, %v809_v55  ;;  %1306 = vmatpush.msra.mxu2 %v4478_v47  ;;  %vm816_vm4 = vweird.f32 %v3068_v58  ;;  %v9152_v55 = vld [vmem:[#allocation3_spill] sm:$0xff] }
 0x192   :  { %v833_v61 = vadd.f32 %v3066_v19, %v832_v56  ;;  %v850_v41 = vmul.f32 %v5348_v37, %v5330_v59  ;;  %1267 = vmatpush.msra.mxu0 %v4485_v50  ;;  %vm817_vm7 = vmor %vm815_vm6, %vm816_vm4  ;;  %v822_v49 = vor.u32 1.1754944e-38, %v821_v46  ;;  %vm855_vm9 = vweird.f32 %v5348_v37  ;;  %v9160_v46 = vld [vmem:[#allocation11_spill] sm:$0xff] }
 0x193   :  { %v812_v44 = vsub.f32 1.0, %v811_v2  ;;  %1307 = vmatpush.msra.mxu2 %v4490_v52  ;;  %v9157_v2 = vld [vmem:[#allocation8_spill] sm:$0xff]  ;;  %vm856_vm11 = vmor %vm854_vm10, %vm855_vm9 }
 0x194   :  { %v837_v47 = vsel %vm5359_vm3, %v3066_v19, %v833_v61  ;;  %1268 = vmatpush.msra.mxu0 %v4495_v54  ;;  %v851_v50 = vsub.f32 1.0, %v850_v41  ;;  %v3072_v54 = vpop.eup %3071  ;;  %v9156_v61 = vld [vmem:[#allocation7_spill] sm:$0xff]  ;;  %v9158_v41 = vld [vmem:[#allocation9_spill] sm:$0xff] }
 0x195   :  { %v813_v35 = vmul.f32 %v3068_v58, %v812_v44  ;;  %1308 = vmatpush.msra.mxu2 %v4500_v57  ;;  %v842_v48 = vsel %vm839_vm5, %v841_v0, %v837_v47  ;;  %v9161_v47 = vld [vmem:[#allocation12_spill] sm:$0xff]  ;;  %v9162_v0 = vld [vmem:[#allocation13_spill] sm:$0xff] }
 0x196   :  { %1269 = vmatpush.msra.mxu0 %v4509_v60  ;;  %v852_v27 = vmul.f32 %v5348_v37, %v851_v50  ;;  %v864_v53 = vmul.f32 0.0, %v842_v48  ;;  %v9153_v60 = vld [vmem:[#allocation4_spill] sm:$0xff]  ;;  %v9163_v50 = vld [vmem:[#allocation14_spill] sm:$0xff] }
 0x197   :  { %v814_v52 = vadd.f32 %v3068_v58, %v813_v35  ;;  %1309 = vmatpush.msra.mxu2 %v4514_v62  ;;  %v9165_v48 = vld [vmem:[#allocation16_spill] sm:$0xff] }
 0x198   :  { %1270 = vmatpush.msra.mxu0 %v4521_v63  ;;  %v853_v63 = vadd.f32 %v5348_v37, %v852_v27  ;;  %v9167_v27 = vld [vmem:[#allocation18_spill] sm:$0xff] }
 0x199   :  { %v818_v19 = vsel %vm817_vm7, %v3068_v58, %v814_v52  ;;  %1310 = vmatpush.msra.mxu2 %v4526_v3  ;;  %v9155_v58 = vld [vmem:[#allocation6_spill] sm:$0xff]  ;;  %v860_v3 = vand.u32 2147483648, %v5330_v59  ;;  %v9164_v52 = vld [vmem:[#allocation15_spill] sm:$0xff] }
 0x19a   :  { %v823_v57 = vsel %vm820_vm8, %v822_v49, %v818_v19  ;;  %1271 = vmatpush.msra.mxu0 %v9152_v55  ;;  %v857_v44 = vsel %vm856_vm11, %v5348_v37, %v853_v63  ;;  %v5402_v37 = vld [vmem:[%s8682_s5 + $0x1e0] sm:$0xff]  ;;  %v5409_v49 = vld [vmem:[%s8682_s5 + $0x1f0] sm:$0xff] }
 0x19b   :  { %v865_v56 = vmul.f32 %v3072_v54, %v823_v57  ;;  %1311 = vmatpush.msra.mxu2 %v9153_v60  ;;  %v861_v11 = vor.u32 1.1754944e-38, %v860_v3  ;;  %v5416_v19 = vld [vmem:[%s8682_s5 + $0x1c0] sm:$0xff]  ;;  %v9166_v54 = vld [vmem:[#allocation17_spill] sm:$0xff]  ;;  %v9169_v60 = vld [vmem:[#allocation20_spill] sm:$0xff] }
 0x19c   :  { %1272 = vmatpush.msra.mxu0 %v9154_v10  ;;  %v5423_v57 = vld [vmem:[%s8682_s5 + $0x1d0] sm:$0xff]  ;;  %v5444_v10 = vld [vmem:[%s8682_s5 + $0x180] sm:$0xff] }
 0x19d   :  { %v5374_v62 = vadd.f32 %v865_v56, %v864_v53  ;;  %1312 = vmatpush.msra.mxu2 %v9155_v58  ;;  %v862_v51 = vsel %vm859_vm12, %v861_v11, %v857_v44  ;;  %v5430_v53 = vld [vmem:[%s8682_s5 + $0x1a0] sm:$0xff]  ;;  %v5437_v55 = vld [vmem:[%s8682_s5 + $0x1b0] sm:$0xff]  ;;  %v9173_v44 = vld [vmem:[#allocation28_spill] sm:$0xff] }
 0x19e   :  { %1273 = vmatpush.msra.mxu0 %v9156_v61  ;;  %v9168_v56 = vld [vmem:[#allocation19_spill] sm:$0xff]  ;;  %v5451_v63 = vld [vmem:[%s8682_s5 + $0x190] sm:$0xff] }
 0x19f   :  { %3073 = vtanh.f32 %v5374_v62  ;;  %1313 = vmatpush.msra.mxu2 %v9157_v2  ;;  %v9170_v58 = vld [vmem:[#allocation23_spill] sm:$0xff]  ;;  %v5465_v61 = vld [vmem:[%s8682_s5 + $0x170] sm:$0xff]  ;;  %v9171_v2 = vld [vmem:[#allocation24_spill] sm:$0xff] }
 0x1a0   :  { %1274 = vmatpush.msra.mxu0 %v9158_v41  ;;  %v5459_v3 = vld [vmem:[%s8682_s5 + $0x160] sm:$0xff] }
 0x1a1   :  { %1314 = vmatpush.msra.mxu2 %v9159_v43  ;;  %v9172_v41 = vld [vmem:[#allocation27_spill] sm:$0xff]  ;;  %v5479_v43 = vld [vmem:[%s8682_s5 + $0x150] sm:$0xff] }
 0x1a2   :  { %1275 = vmatpush.msra.mxu0 %v9160_v46  ;;  %v5486_v11 = vld [vmem:[%s8682_s5 + $0x120] sm:$0xff] }
 0x1a3   :  { %1315 = vmatpush.msra.mxu2 %v9161_v47  ;;  %v9174_v46 = vld [vmem:[#allocation31_spill] sm:$0xff]  ;;  %v5493_v47 = vld [vmem:[%s8682_s5 + $0x130] sm:$0xff] }
 0x1a4   :  { %1276 = vmatpush.msra.mxu0 %v9162_v0  ;;  %v9176_v0 = vld [vmem:[#allocation37_spill] sm:$0xff] }
 0x1a5   :  { %v3074_v35 = vpop.eup %3073  ;;  %1316 = vmatpush.msra.mxu2 %v9163_v50  ;;  %v5507_v50 = vld [vmem:[%s8682_s5 + $0x110] sm:$0xff] }
 0x1a6   :  { %v5393_v59 = vmul.f32 %v3074_v35, %v862_v51  ;;  %1277 = vmatpush.msra.mxu0 %v9164_v52  ;;  %v9175_v35 = vld [vmem:[#allocation33_spill] sm:$0xff]  ;;  %v5500_v51 = vld [vmem:[%s8682_s5 + $0x100] sm:$0xff]  ;;  %v9177_v52 = vld [vmem:[#allocation38_spill] sm:$0xff] }
 0x1a7   :  { %1317 = vmatpush.msra.mxu2 %v9165_v48  ;;  %v5514_v48 = vld [vmem:[%s8682_s5 + $0xe0] sm:$0xff] }
 0x1a8   :  { %885 = vmatmul.f32.vlgmr.msrb.gmra.mxu3 %v5393_v59  ;;  %925 = vmatmul.f32.vlgmr.msrb.gmra.mxu1 %v5393_v59 }
 0x1a9   :  { %1097 = vmatpush.msrb.mxu3 %v5402_v37  ;;  %1133 = vmatmul.f32.vlgmr.msrb.gmra.mxu0 %v5393_v59 }
 0x1aa   :  { %1137 = vmatpush.msrb.mxu1 %v5409_v49  ;;  %1173 = vmatmul.f32.vlgmr.msrb.gmra.mxu2 %v5393_v59 }
 0x1ab   :  { %1098 = vmatpush.msrb.mxu3 %v5416_v19  ;;  %1278 = vmatpush.msra.mxu0 %v9166_v54  ;;  %v9178_v54 = vld [vmem:[#allocation41_spill] sm:$0xff] }
 0x1ac   :  { %1138 = vmatpush.msrb.mxu1 %v5423_v57  ;;  %1318 = vmatpush.msra.mxu2 %v9167_v27  ;;  %v5521_v27 = vld [vmem:[%s8682_s5 + $0xf0] sm:$0xff] }
 0x1ad   :  { %1099 = vmatpush.msrb.mxu3 %v5430_v53  ;;  %1279 = vmatpush.msra.mxu0 %v9168_v56  ;;  %v9179_v56 = vld [vmem:[#allocation42_spill] sm:$0xff] }
 0x1ae   :  { %1139 = vmatpush.msrb.mxu1 %v5437_v55  ;;  %1319 = vmatpush.msra.mxu2 %v9169_v60  ;;  %v5528_v60 = vld [vmem:[%s8682_s5 + $0xc0] sm:$0xff] }
 0x1af   :  { %1100 = vmatpush.msrb.mxu3 %v5444_v10  ;;  %1344 = vmatpush.msrb.mxu0 %v9170_v58  ;;  %v9180_v58 = vld [vmem:[#allocation45_spill] sm:$0xff] }
 0x1b0   :  { %1140 = vmatpush.msrb.mxu1 %v5451_v63  ;;  %965 = vmatmul.f32.vlgmr.msra.gmra.mxu3 %v5393_v59 }
 0x1b1   :  { %1005 = vmatmul.f32.vlgmr.msra.gmra.mxu1 %v5393_v59  ;;  %1101 = vmatpush.msrb.mxu3 %v5459_v3 }
 0x1b2   :  { %1141 = vmatpush.msrb.mxu1 %v5465_v61  ;;  %1384 = vmatpush.msrb.mxu2 %v9171_v2  ;;  %v5535_v2 = vld [vmem:[%s8682_s5 + $0xd0] sm:$0xff] }
 0x1b3   :  { %1102 = vmatpush.msrb.mxu3 %v5472_v23  ;;  %1345 = vmatpush.msrb.mxu0 %v9172_v41  ;;  %v9181_v41 = vld [vmem:[#allocation47_spill] sm:$0xff] }
 0x1b4   :  { %1142 = vmatpush.msrb.mxu1 %v5479_v43  ;;  %1385 = vmatpush.msrb.mxu2 %v9173_v44  ;;  %v5542_v44 = vld [vmem:[%s8682_s5 + $0xa0] sm:$0xff] }
 0x1b5   :  { %1103 = vmatpush.msrb.mxu3 %v5486_v11  ;;  %1346 = vmatpush.msrb.mxu0 %v9174_v46  ;;  %v9182_v46 = vld [vmem:[#allocation51_spill] sm:$0xff] }
 0x1b6   :  { %1143 = vmatpush.msrb.mxu1 %v5493_v47  ;;  %1386 = vmatpush.msrb.mxu2 %v9175_v35  ;;  %v5549_v35 = vld [vmem:[%s8682_s5 + $0xb0] sm:$0xff] }
 0x1b7   :  { %1104 = vmatpush.msrb.mxu3 %v5500_v51  ;;  %1347 = vmatpush.msrb.mxu0 %v9176_v0  ;;  %v9183_v0 = vld [vmem:[#allocation53_spill] sm:$0xff] }
 0x1b8   :  { %1144 = vmatpush.msrb.mxu1 %v5507_v50  ;;  %1387 = vmatpush.msrb.mxu2 %v9177_v52  ;;  %v5556_v52 = vld [vmem:[%s8682_s5 + $0x80] sm:$0xff] }
 0x1b9   :  { %1105 = vmatpush.msrb.mxu3 %v5514_v48  ;;  %1348 = vmatpush.msrb.mxu0 %v9178_v54  ;;  %9184 = vst [vmem:[#allocation3_spill] sm:$0xff] %v5556_v52  ;;  %v9185_v54 = vld [vmem:[#allocation57_spill] sm:$0xff] }
 0x1ba   :  { %1145 = vmatpush.msrb.mxu1 %v5521_v27  ;;  %1388 = vmatpush.msrb.mxu2 %v9179_v56  ;;  %v5563_v56 = vld [vmem:[%s8682_s5 + $0x90] sm:$0xff] }
 0x1bb   :  { %1106 = vmatpush.msrb.mxu3 %v5528_v60  ;;  %1349 = vmatpush.msrb.mxu0 %v9180_v58  ;;  %9186 = vst [vmem:[#allocation4_spill] sm:$0xff] %v5563_v56  ;;  %v9187_v58 = vld [vmem:[#allocation58_spill] sm:$0xff] }
 0x1bc   :  { %1146 = vmatpush.msrb.mxu1 %v5535_v2  ;;  %1389 = vmatpush.msrb.mxu2 %v9181_v41  ;;  %v5570_v41 = vld [vmem:[%s8682_s5 + $0x60] sm:$0xff] }
 0x1bd   :  { %1107 = vmatpush.msrb.mxu3 %v5542_v44  ;;  %1350 = vmatpush.msrb.mxu0 %v9182_v46  ;;  %9188 = vst [vmem:[#allocation5_spill] sm:$0xff] %v5570_v41  ;;  %v9189_v46 = vld [vmem:[#allocation61_spill] sm:$0xff] }
 0x1be   :  { %1147 = vmatpush.msrb.mxu1 %v5549_v35  ;;  %1390 = vmatpush.msrb.mxu2 %v9183_v0  ;;  %v5577_v0 = vld [vmem:[%s8682_s5 + $0x70] sm:$0xff] }
 0x1bf   :  { %1108 = vmatpush.msrb.mxu3 %v5556_v52  ;;  %1351 = vmatpush.msrb.mxu0 %v9185_v54  ;;  %9190 = vst [vmem:[#allocation6_spill] sm:$0xff] %v5577_v0  ;;  %v9191_v54 = vld [vmem:[#allocation62_spill] sm:$0xff]  ;;  %v9210_v52 = vld [vmem:[#allocation29_spill] sm:$0xff] }
 0x1c0   :  { %1148 = vmatpush.msrb.mxu1 %v5563_v56  ;;  %1391 = vmatpush.msrb.mxu2 %v9187_v58  ;;  %v5584_v58 = vld [vmem:[%s8682_s5 + $0x40] sm:$0xff]  ;;  %v9209_v56 = vld [vmem:[#allocation82_spill] sm:$0xff] }
 0x1c1   :  { %1109 = vmatpush.msrb.mxu3 %v5570_v41  ;;  %1352 = vmatpush.msrb.mxu0 %v9189_v46  ;;  %9192 = vst [vmem:[#allocation7_spill] sm:$0xff] %v5584_v58  ;;  %v5591_v46 = vld [vmem:[%s8682_s5 + $0x50] sm:$0xff]  ;;  %v9208_v41 = vld [vmem:[#allocation26_spill] sm:$0xff] }
 0x1c2   :  { %1149 = vmatpush.msrb.mxu1 %v5577_v0  ;;  %1392 = vmatpush.msrb.mxu2 %v9191_v54  ;;  %9194 = vst [vmem:[#allocation8_spill] sm:$0xff] %v5591_v46  ;;  %v5598_v54 = vld [vmem:[%s8682_s5 + $0x20] sm:$0xff]  ;;  %v9197_v0 = vld [vmem:[#allocation72_spill] sm:$0xff] }
 0x1c3   :  { %1110 = vmatpush.msrb.mxu3 %v5584_v58  ;;  %1353 = vmatpush.msrb.mxu0 %v9193_v34  ;;  %9196 = vst [vmem:[#allocation9_spill] sm:$0xff] %v5598_v54  ;;  %v5605_v34 = vld [vmem:[%s8682_s5 + $0x30] sm:$0xff]  ;;  %v9199_v58 = vld [vmem:[#allocation74_spill] sm:$0xff] }
 0x1c4   :  { %1150 = vmatpush.msrb.mxu1 %v5591_v46  ;;  %1393 = vmatpush.msrb.mxu2 %v9195_v13  ;;  %9198 = vst [vmem:[#allocation10_spill] sm:$0xff] %v5605_v34  ;;  %v5612_v13 = vld [vmem:[%s8682_s5] sm:$0xff]  ;;  %v9201_v46 = vld [vmem:[#allocation77_spill] sm:$0xff] }
 0x1c5   :  { %1111 = vmatpush.msrb.mxu3 %v5598_v54  ;;  %1354 = vmatpush.msrb.mxu0 %v9197_v0  ;;  %9200 = vst [vmem:[#allocation11_spill] sm:$0xff] %v5612_v13  ;;  %v5619_v0 = vld [vmem:[%s8682_s5 + $0x10] sm:$0xff]  ;;  %v9205_v54 = vld [vmem:[#allocation78_spill] sm:$0xff] }
 0x1c6   :  { %1151 = vmatpush.msrb.mxu1 %v5605_v34  ;;  %1394 = vmatpush.msrb.mxu2 %v9199_v58  ;;  %9202 = vst [vmem:[#allocation12_spill] sm:$0xff] %v5619_v0  ;;  %v9203_v58 = vld [vmem:[#allocation21_spill] sm:$0xff]  ;;  %v9204_v34 = vld [vmem:[#allocation22_spill] sm:$0xff] }
 0x1c7   :  { %1112 = vmatpush.msrb.mxu3 %v5612_v13  ;;  %1355 = vmatpush.msrb.mxu0 %v9201_v46  ;;  %v9206_v13 = vld [vmem:[#allocation25_spill] sm:$0xff] }
 0x1c8   :  { %1152 = vmatpush.msrb.mxu1 %v5619_v0  ;;  %1113 = vmatmul.f32.vlgmr.msrb.gmra.mxu3 %v5393_v59  ;;  %v9207_v46 = vld [vmem:[#allocation81_spill] sm:$0xff]  ;;  %v9211_v0 = vld [vmem:[#allocation30_spill] sm:$0xff] }
 0x1c9   :  { %1153 = vmatmul.f32.vlgmr.msrb.gmra.mxu1 %v5393_v59  ;;  %1244 = vmatpush.msra.mxu3 %v9203_v58  ;;  %v9212_v59 = vld [vmem:[#allocation87_spill] sm:$0xff] }
 0x1ca   :  { %1284 = vmatpush.msra.mxu1 %v9204_v34  ;;  %1395 = vmatpush.msrb.mxu2 %v9205_v54  ;;  %v9213_v58 = vld [vmem:[#allocation35_spill] sm:$0xff]  ;;  %v9215_v54 = vld [vmem:[#allocation36_spill] sm:$0xff] }
 0x1cb   :  { %1245 = vmatpush.msra.mxu3 %v9206_v13  ;;  %1356 = vmatpush.msrb.mxu0 %v9207_v46  ;;  %v9214_v34 = vld [vmem:[#allocation91_spill] sm:$0xff]  ;;  %v9216_v13 = vld [vmem:[#allocation93_spill] sm:$0xff] }
 0x1cc   :  { %1285 = vmatpush.msra.mxu1 %v9208_v41  ;;  %1396 = vmatpush.msrb.mxu2 %v9209_v56  ;;  %v9217_v46 = vld [vmem:[#allocation39_spill] sm:$0xff]  ;;  %v9218_v41 = vld [vmem:[#allocation96_spill] sm:$0xff] }
 0x1cd   :  { %1246 = vmatpush.msra.mxu3 %v9210_v52  ;;  %1357 = vmatpush.msrb.mxu0 %v5017_v4  ;;  %v9219_v56 = vld [vmem:[#allocation40_spill] sm:$0xff]  ;;  %v9220_v52 = vld [vmem:[#allocation97_spill] sm:$0xff]  ;;  %v9221_v4 = vld [vmem:[#allocation43_spill] sm:$0xff] }
 0x1ce   :  { %1286 = vmatpush.msra.mxu1 %v9211_v0  ;;  %1397 = vmatpush.msrb.mxu2 %v9212_v59  ;;  %v9222_v0 = vld [vmem:[#allocation44_spill] sm:$0xff]  ;;  %v9223_v59 = vld [vmem:[#allocation49_spill] sm:$0xff] }
 0x1cf   :  { %1247 = vmatpush.msra.mxu3 %v9213_v58  ;;  %1358 = vmatpush.msrb.mxu0 %v9214_v34  ;;  %v9224_v58 = vld [vmem:[#allocation50_spill] sm:$0xff]  ;;  %v9225_v34 = vld [vmem:[#allocation55_spill] sm:$0xff] }
 0x1d0   :  { %1287 = vmatpush.msra.mxu1 %v9215_v54  ;;  %1398 = vmatpush.msrb.mxu2 %v9216_v13  ;;  %v9226_v54 = vld [vmem:[#allocation56_spill] sm:$0xff]  ;;  %v9227_v13 = vld [vmem:[#allocation59_spill] sm:$0xff] }
 0x1d1   :  { %1248 = vmatpush.msra.mxu3 %v9217_v46  ;;  %1359 = vmatpush.msrb.mxu0 %v9218_v41  ;;  %v9228_v46 = vld [vmem:[#allocation60_spill] sm:$0xff] }
 0x1d2   :  { %1288 = vmatpush.msra.mxu1 %v9219_v56  ;;  %1399 = vmatpush.msrb.mxu2 %v9220_v52  ;;  %v9229_v41 = vld [vmem:[#allocation64_spill] sm:$0xff]  ;;  %v9230_v56 = vld [vmem:[#allocation65_spill] sm:$0xff]  ;;  %v9231_v52 = vld [vmem:[#allocation70_spill] sm:$0xff] }
 0x1d3   :  { %1249 = vmatpush.msra.mxu3 %v9221_v4  ;;  %v9232_v4 = vld [vmem:[#allocation71_spill] sm:$0xff] }
 0x1d4   :  { %1289 = vmatpush.msra.mxu1 %v9222_v0  ;;  %v9233_v0 = vld [vmem:[#allocation75_spill] sm:$0xff] }
 0x1d5   :  { %1250 = vmatpush.msra.mxu3 %v9223_v59  ;;  %v9234_v59 = vld [vmem:[#allocation76_spill] sm:$0xff] }
 0x1d6   :  { %1290 = vmatpush.msra.mxu1 %v9224_v58  ;;  %v9235_v58 = vld [vmem:[#allocation79_spill] sm:$0xff] }
 0x1d7   :  { %1251 = vmatpush.msra.mxu3 %v9225_v34  ;;  %v9236_v34 = vld [vmem:[#allocation80_spill] sm:$0xff] }
 0x1d8   :  { %1291 = vmatpush.msra.mxu1 %v9226_v54  ;;  %v9237_v54 = vld [vmem:[#allocation84_spill] sm:$0xff] }
 0x1d9   :  { %1252 = vmatpush.msra.mxu3 %v9227_v13  ;;  %v9238_v13 = vld [vmem:[#allocation85_spill] sm:$0xff] }
 0x1da   :  { %1292 = vmatpush.msra.mxu1 %v9228_v46  ;;  %v9239_v46 = vld [vmem:[#allocation89_spill] sm:$0xff] }
 0x1db   :  { %1253 = vmatpush.msra.mxu3 %v9229_v41  ;;  %v9240_v41 = vld [vmem:[#allocation90_spill] sm:$0xff] }
 0x1dc   :  { %1293 = vmatpush.msra.mxu1 %v9230_v56  ;;  %v9241_v56 = vld [vmem:[#allocation94_spill] sm:$0xff] }
 0x1dd   :  { %1254 = vmatpush.msra.mxu3 %v9231_v52  ;;  %v9242_v52 = vld [vmem:[#allocation95_spill] sm:$0xff] }
 0x1de   :  { %1294 = vmatpush.msra.mxu1 %v9232_v4  ;;  %v9243_v4 = vld [vmem:[#allocation98_spill] sm:$0xff] }
 0x1df   :  { %1255 = vmatpush.msra.mxu3 %v9233_v0  ;;  %v9244_v0 = vld [vmem:[#allocation99_spill] sm:$0xff] }
 0x1e0   :  { %1295 = vmatpush.msra.mxu1 %v9234_v59 }
 0x1e1   :  { %1256 = vmatpush.msra.mxu3 %v9235_v58 }
 0x1e2   :  { %1296 = vmatpush.msra.mxu1 %v9236_v34 }
 0x1e3   :  { %1257 = vmatpush.msra.mxu3 %v9237_v54 }
 0x1e4   :  { %1297 = vmatpush.msra.mxu1 %v9238_v13 }
 0x1e5   :  { %1258 = vmatpush.msra.mxu3 %v9239_v46 }
 0x1e6   :  { %1298 = vmatpush.msra.mxu1 %v9240_v41 }
 0x1e7   :  { %1259 = vmatpush.msra.mxu3 %v9241_v56 }
 0x1e8   :  { %1299 = vmatpush.msra.mxu1 %v9242_v52 }
 0x1e9   :  { %1324 = vmatpush.msrb.mxu3 %v9243_v4 }
 0x1ea   :  { %1364 = vmatpush.msrb.mxu1 %v9244_v0 }
 0x1eb   :  { %1325 = vmatpush.msrb.mxu3 %v5100_v12  ;;  %v906_v12 = vpop.f32.mrf.mxu0 }
 0x1ec   :  { %1365 = vmatpush.msrb.mxu1 %v5105_v40 }
 0x1ed   :  { %1326 = vmatpush.msrb.mxu3 %v5120_v6  ;;  %v580_v6 = vld [vmem:[%s8685_s7] sm:$0xf] }
 0x1ee   :  { %1366 = vmatpush.msrb.mxu1 %v5125_v8  ;;  %v946_v8 = vpop.f32.mrf.mxu2 }
 0x1ef   :  { %1327 = vmatpush.msrb.mxu3 %v5140_v5  ;;  %v5700_v5 = vperm.slane %v580_v6, 1 }
 0x1f0   :  { %1367 = vmatpush.msrb.mxu1 %v5145_v9 }
 0x1f1   :  { %1328 = vmatpush.msrb.mxu3 %v5154_v15  ;;  %9245 = vst [vmem:[#allocation13_spill] sm:$0xff] %v5700_v5 }
 0x1f2   :  { %1368 = vmatpush.msrb.mxu1 %v5159_v20  ;;  %v5703_v20 = vperm.slane %v580_v6, 0 }
 0x1f3   :  { %1329 = vmatpush.msrb.mxu3 %v5168_v25  ;;  %v986_v25 = vpop.f32.mrf.mxu0 }
 0x1f4   :  { %1369 = vmatpush.msrb.mxu1 %v5173_v16  ;;  %9246 = vst [vmem:[#allocation14_spill] sm:$0xff] %v5703_v20 }
 0x1f5   :  { %1330 = vmatpush.msrb.mxu3 %v5190_v30 }
 0x1f6   :  { %1370 = vmatpush.msrb.mxu1 %v5195_v32  ;;  %v5705_v32 = vperm.slane %v580_v6, 3 }
 0x1f7   :  { %1331 = vmatpush.msrb.mxu3 %v5204_v38 }
 0x1f8   :  { %1371 = vmatpush.msrb.mxu1 %v5209_v21  ;;  %9247 = vst [vmem:[#allocation15_spill] sm:$0xff] %v5705_v32 }
 0x1f9   :  { %1332 = vmatpush.msrb.mxu3 %v5218_v36 }
 0x1fa   :  { %1372 = vmatpush.msrb.mxu1 %v5223_v45 }
 0x1fb   :  { %1333 = vmatpush.msrb.mxu3 %v5236_v22  ;;  %v1026_v22 = vpop.f32.mrf.mxu2 }
 0x1fc   :  { %1373 = vmatpush.msrb.mxu1 %v5241_v28 }
 0x1fd   :  { %1334 = vmatpush.msrb.mxu3 %v5250_v24 }
 0x1fe   :  { %1374 = vmatpush.msrb.mxu1 %v5255_v31 }
 0x1ff   :  { %1335 = vmatpush.msrb.mxu3 %v5264_v1 }
 0x200   :  { %1375 = vmatpush.msrb.mxu1 %v5269_v18 }
 0x201   :  { %1336 = vmatpush.msrb.mxu3 %v5280_v7 }
 0x202   :  { %1376 = vmatpush.msrb.mxu1 %v5285_v42  ;;  %v9248_v42 = vld [vmem:[#allocation32_spill] sm:$0xff] }
 0x203   :  { %1337 = vmatpush.msrb.mxu3 %v5295_v14 }
 0x204   :  { %1377 = vmatpush.msrb.mxu1 %v5300_v17 }
 0x205   :  { %1338 = vmatpush.msrb.mxu3 %v5309_v26 }
 0x206   :  { %1378 = vmatpush.msrb.mxu1 %v5314_v29  ;;  %v5710_v29 = vperm.slane %v580_v6, 2 }
 0x207   :  { %1339 = vmatpush.msrb.mxu3 %v5323_v33 }
 0x208   :  { %1379 = vmatpush.msrb.mxu1 %v5328_v39  ;;  %9249 = vst [vmem:[#allocation16_spill] sm:$0xff] %v5710_v29 }
 0x225   :  { %v926_v40 = vpop.f32.mrf.mxu1 }
 0x226   :  { %v927_v9 = vadd.f32 %v926_v40, %v5700_v5  ;;  %v1134_v18 = vpop.f32.mrf.mxu0  ;;  %v9250_v40 = vld [vmem:[#allocation48_spill] sm:$0xff] }
 0x227   :  { %v1178_v14 = vadd.f32 %v1134_v18, %v9248_v42 }
 0x228   :  { %v947_v15 = vadd.f32 %v946_v8, %v927_v9 }
 0x229   :  { %v3027_v33 = vmul.f32 -1.442695, %v1178_v14 }
 0x22a   :  { %v3024_v16 = vmul.f32 -1.442695, %v947_v15 }
 0x22b   :  { %v886_v30 = vpop.f32.mrf.mxu3 }
 0x22c   :  { %3075 = vpow2.f32 %v3024_v16  ;;  %v887_v38 = vadd.f32 %v886_v30, %v5703_v20 }
 0x22d   :  { %v1174_v56 = vpop.f32.mrf.mxu2 }
 0x22e   :  { %v907_v21 = vadd.f32 %v906_v12, %v887_v38  ;;  %v1006_v36 = vpop.f32.mrf.mxu1  ;;  %v1180_v8 = vadd.f32 %v1174_v56, %v9250_v40 }
 0x22f   :  { %v1007_v45 = vadd.f32 %v1006_v36, %v5705_v32 }
 0x230   :  { %v3023_v28 = vmul.f32 -1.442695, %v907_v21 }
 0x231   :  { %v1027_v24 = vadd.f32 %v1026_v22, %v1007_v45 }
 0x232   :  { %v3076_v31 = vpop.eup %3075  ;;  %3077 = vpow2.f32 %v3023_v28 }
 0x233   :  { %v1051_v1 = vadd.f32 1.0, %v3076_v31  ;;  %v3025_v7 = vmul.f32 -1.442695, %v1027_v24  ;;  %v966_v39 = vpop.f32.mrf.mxu3  ;;  %v3028_v31 = vmul.f32 -1.442695, %v1180_v8 }
 0x234   :  { %v967_v13 = vadd.f32 %v966_v39, %v5710_v29 }
 0x235   :  { %3079 = vrcp.f32 %v1051_v1  ;;  %v1063_v6 = vand.u32 2147483648, %v1051_v1  ;;  %vm1057_vm14 = vweird.f32 %v1051_v1  ;;  %v1061_v16 = vand.u32 2147483647, %v1051_v1 }
 0x236   :  { %3081 = vpow2.f32 %v3025_v7  ;;  %v987_v4 = vadd.f32 %v986_v25, %v967_v13  ;;  %v9253_v13 = vld [vmem:[#allocation46_spill] sm:$0xff] }
 0x237   :  { %v1064_v28 = vor.u32 1.1754944e-38, %v1063_v6  ;;  %vm1062_vm2 = vcmp.eq.f32.partialorder %v1061_v16, 8.507059e+37 }
 0x238   :  { %v3078_v17 = vpop.eup %3077 }
 0x239   :  { %v1032_v26 = vadd.f32 1.0, %v3078_v17 }
 0x23b   :  { %v3080_v59 = vpop.eup %3079  ;;  %3083 = vrcp.f32 %v1032_v26  ;;  %v1042_v38 = vand.u32 2147483647, %v1032_v26  ;;  %v1044_v21 = vand.u32 2147483648, %v1032_v26  ;;  %vm1038_vm1 = vweird.f32 %v1032_v26 }
 0x23c   :  { %v3082_v58 = vpop.eup %3081  ;;  %v1053_v34 = vmul.f32 %v3080_v59, %v1051_v1  ;;  %3085 = vpow2.f32 %v3027_v33  ;;  %vm1058_vm13 = vweird.f32 %v3080_v59 }
 0x23d   :  { %v5712_v54 = vadd.f32 1.0, %v3082_v58  ;;  %vm5717_vm15 = vmor %vm1057_vm14, %vm1058_vm13  ;;  %v1045_v7 = vor.u32 1.1754944e-38, %v1044_v21  ;;  %vm1043_vm4 = vcmp.eq.f32.partialorder %v1042_v38, 8.507059e+37 }
 0x23e   :  { %v1054_v46 = vsub.f32 1.0, %v1053_v34 }
 0x23f   :  { %3087 = vrcp.f32 %v5712_v54  ;;  %vm1077_vm6 = vweird.f32 %v5712_v54 }
 0x240   :  { %v1055_v41 = vmul.f32 %v3080_v59, %v1054_v46  ;;  %3089 = vtanh.f32 %v987_v4  ;;  %v1083_v4 = vand.u32 2147483648, %v5712_v54 }
 0x241   :  { %v3084_v52 = vpop.eup %3083  ;;  %3091 = vpow2.f32 %v3028_v31 }
 0x242   :  { %v1034_v0 = vmul.f32 %v3084_v52, %v1032_v26  ;;  %v1056_v12 = vadd.f32 %v3080_v59, %v1055_v41  ;;  %v3086_v9 = vpop.eup %3085  ;;  %vm1039_vm0 = vweird.f32 %v3084_v52  ;;  %v1084_v40 = vor.u32 1.1754944e-38, %v1083_v4 }
 0x243   :  { %v5724_v24 = vadd.f32 1.0, %v3086_v9  ;;  %vm1040_vm3 = vmor %vm1038_vm1, %vm1039_vm0 }
 0x244   :  { %v1035_v15 = vsub.f32 1.0, %v1034_v0  ;;  %v1060_v22 = vsel %vm5717_vm15, %v3080_v59, %v1056_v12  ;;  %v1081_v0 = vand.u32 2147483647, %v5712_v54 }
 0x245   :  { %v3088_v30 = vpop.eup %3087  ;;  %v1065_v42 = vsel %vm1062_vm2, %v1064_v28, %v1060_v22  ;;  %3093 = vrcp.f32 %v5724_v24  ;;  %v5769_v22 = vld [vmem:[%s8682_s5 + $0x1d8] sm:$0xff]  ;;  %vm1209_vm10 = vweird.f32 %v5724_v24 }
 0x246   :  { %v1073_v25 = vmul.f32 %v3088_v30, %v5712_v54  ;;  %v1036_v45 = vmul.f32 %v3084_v52, %v1035_v15  ;;  %v3090_v17 = vpop.eup %3089  ;;  %v1087_v59 = vmul.f32 0.0, %v1065_v42  ;;  %vm1078_vm5 = vweird.f32 %v3088_v30  ;;  %v5751_v54 = vld [vmem:[%s8682_s5 + $0x1e8] sm:$0xff]  ;;  %v1154_v31 = vpop.f32.mrf.mxu1 }
 0x247   :  { %vm1079_vm7 = vmor %vm1077_vm6, %vm1078_vm5  ;;  %vm1082_vm8 = vcmp.eq.f32.partialorder %v1081_v0, 8.507059e+37 }
 0x248   :  { %v1074_v1 = vsub.f32 1.0, %v1073_v25  ;;  %v1037_v18 = vadd.f32 %v3084_v52, %v1036_v45  ;;  %v5763_v45 = vld [vmem:[%s8682_s5 + $0x1c8] sm:$0xff] }
 0x24a   :  { %v1041_v14 = vsel %vm1040_vm3, %v3084_v52, %v1037_v18  ;;  %v1075_v33 = vmul.f32 %v3088_v30, %v1074_v1  ;;  %v3092_v52 = vpop.eup %3091  ;;  %v5776_v1 = vld [vmem:[%s8682_s5 + $0x1a8] sm:$0xff]  ;;  %v5782_v18 = vld [vmem:[%s8682_s5 + $0x1b8] sm:$0xff] }
 0x24b   :  { %v1046_v39 = vsel %vm1043_vm4, %v1045_v7, %v1041_v14  ;;  %v1114_v58 = vpop.f32.mrf.mxu3  ;;  %v5734_v12 = vpop.eup %3093  ;;  %v5738_v9 = vadd.f32 1.0, %v3092_v52  ;;  %v9255_v14 = vld [vmem:[#allocation34_spill] sm:$0xff] }
 0x24c   :  { %v1088_v34 = vmul.f32 %v3090_v17, %v1046_v39  ;;  %v1177_v46 = vadd.f32 %v1114_v58, %v9253_v13  ;;  %v1076_v56 = vadd.f32 %v3088_v30, %v1075_v33  ;;  %v1205_v8 = vmul.f32 %v5734_v12, %v5724_v24  ;;  %v5791_v33 = vld [vmem:[%s8682_s5 + $0x188] sm:$0xff]  ;;  %v5797_v39 = vld [vmem:[%s8682_s5 + $0x198] sm:$0xff] }
 0x24d   :  { %v1179_v17 = vadd.f32 %v1154_v31, %v9255_v14  ;;  %vm1210_vm9 = vweird.f32 %v5734_v12  ;;  %vm1229_vm2 = vweird.f32 %v5738_v9 }
 0x24e   :  { %v5728_v41 = vadd.f32 %v1088_v34, %v1087_v59  ;;  %v3026_v26 = vmul.f32 -1.442695, %v1177_v46  ;;  %v1080_v6 = vsel %vm1079_vm7, %v3088_v30, %v1076_v56  ;;  %v1206_v25 = vsub.f32 1.0, %v1205_v8  ;;  %v5757_v30 = vld [vmem:[%s8682_s5 + $0x1f8] sm:$0xff]  ;;  %v5811_v46 = vld [vmem:[%s8682_s5 + $0x168] sm:$0xff]  ;;  %vm5822_vm11 = vmor %vm1209_vm10, %vm1210_vm9 }
 0x24f   :  { %v1085_v16 = vsel %vm1082_vm8, %v1084_v40, %v1080_v6  ;;  %v1215_v34 = vand.u32 2147483648, %v5724_v24  ;;  %v1213_v56 = vand.u32 2147483647, %v5724_v24  ;;  %v5830_v6 = vld [vmem:[%s8682_s5 + $0x148] sm:$0xff]  ;;  %v5836_v40 = vld [vmem:[%s8682_s5 + $0x158] sm:$0xff] }
 0x250   :  { %3095 = vtanh.f32 %v5728_v41  ;;  %v1207_v28 = vmul.f32 %v5734_v12, %v1206_v25  ;;  %v5846_v25 = vld [vmem:[%s8682_s5 + $0x128] sm:$0xff] }
 0x251   :  { %3097 = vpow2.f32 %v3026_v26  ;;  %v5817_v26 = vld [vmem:[%s8682_s5 + $0x178] sm:$0xff]  ;;  %vm1214_vm13 = vcmp.eq.f32.partialorder %v1213_v56, 8.507059e+37  ;;  %v5872_v56 = vld [vmem:[%s8682_s5 + $0xe8] sm:$0xff] }
 0x252   :  { %3099 = vrcp.f32 %v5738_v9  ;;  %v1208_v58 = vadd.f32 %v5734_v12, %v1207_v28  ;;  %v5852_v28 = vld [vmem:[%s8682_s5 + $0x138] sm:$0xff] }
 0x254   :  { %v1212_v24 = vsel %vm5822_vm11, %v5734_v12, %v1208_v58  ;;  %v5865_v58 = vld [vmem:[%s8682_s5 + $0x118] sm:$0xff] }
 0x256   :  { %v3096_v15 = vpop.eup %3095 }
 0x257   :  { %v3098_v38 = vpop.eup %3097  ;;  %v5740_v21 = vmul.f32 %v3096_v15, %v1085_v16  ;;  %v1216_v16 = vor.u32 1.1754944e-38, %v1215_v34 }
 0x258   :  { %v5742_v36 = vadd.f32 1.0, %v3098_v38  ;;  %v5785_v7 = vpop.eup %3099 }
 0x259   :  { %9254 = vst [vmem:[#allocation17_spill] sm:$0xff] %v5740_v21  ;;  %1280 = vmatmul.f32.vlgmr.msra.gmra.mxu0 %v5740_v21  ;;  %1320 = vmatmul.f32.vlgmr.msra.gmra.mxu2 %v5740_v21  ;;  %v1225_v13 = vmul.f32 %v5785_v7, %v5738_v9  ;;  %v1217_v31 = vsel %vm1214_vm13, %v1216_v16, %v1212_v24  ;;  %v5891_v24 = vld [vmem:[%s8682_s5 + $0xd8] sm:$0xff]  ;;  %vm1230_vm1 = vweird.f32 %v5785_v7 }
 0x25a   :  { %3101 = vrcp.f32 %v5742_v36  ;;  %1492 = vmatpush.msra.mxu0 %v5751_v54  ;;  %1532 = vmatpush.msra.mxu2 %v5757_v30  ;;  %v1196_v0 = vand.u32 2147483648, %v5742_v36  ;;  %v1194_v15 = vand.u32 2147483647, %v5742_v36  ;;  %vm1190_vm14 = vweird.f32 %v5742_v36  ;;  %v5907_v16 = vld [vmem:[%s8682_s5 + $0xb8] sm:$0xff]  ;;  %vm1231_vm3 = vmor %vm1229_vm2, %vm1230_vm1 }
 0x25b   :  { %3103 = vtanh.f32 %v1179_v17  ;;  %v1226_v38 = vsub.f32 1.0, %v1225_v13  ;;  %v5859_v17 = vld [vmem:[%s8682_s5 + $0x108] sm:$0xff] }
 0x25c   :  { %1493 = vmatpush.msra.mxu0 %v5763_v45  ;;  %1533 = vmatpush.msra.mxu2 %v5769_v22  ;;  %v1197_v14 = vor.u32 1.1754944e-38, %v1196_v0  ;;  %vm1195_vm0 = vcmp.eq.f32.partialorder %v1194_v15, 8.507059e+37  ;;  %v5885_v0 = vld [vmem:[%s8682_s5 + $0xc8] sm:$0xff] }
 0x25d   :  { %v1227_v34 = vmul.f32 %v5785_v7, %v1226_v38  ;;  %v1235_v38 = vand.u32 2147483648, %v5738_v9 }
 0x25e   :  { %1494 = vmatpush.msra.mxu0 %v5776_v1  ;;  %1534 = vmatpush.msra.mxu2 %v5782_v18 }
 0x25f   :  { %v1228_v15 = vadd.f32 %v5785_v7, %v1227_v34  ;;  %v1236_v34 = vor.u32 1.1754944e-38, %v1235_v38  ;;  %v5956_v38 = vld [vmem:[%s8682_s5 + $0x28] sm:$0xff] }
 0x260   :  { %v3102_v42 = vpop.eup %3101  ;;  %1495 = vmatpush.msra.mxu0 %v5791_v33  ;;  %1535 = vmatpush.msra.mxu2 %v5797_v39 }
 0x261   :  { %v1186_v59 = vmul.f32 %v3102_v42, %v5742_v36  ;;  %1360 = vmatmul.f32.vlgmr.msrb.gmra.mxu0 %v5740_v21  ;;  %1400 = vmatmul.f32.vlgmr.msrb.gmra.mxu2 %v5740_v21  ;;  %vm1191_vm12 = vweird.f32 %v3102_v42  ;;  %v3104_v36 = vpop.eup %3103  ;;  %v9283_v21 = vld [vmem:[#allocation9_spill] sm:$0xff] }
 0x262   :  { %1496 = vmatpush.msra.mxu0 %v5811_v46  ;;  %1536 = vmatpush.msra.mxu2 %v5817_v26  ;;  %vm1192_vm15 = vmor %vm1190_vm14, %vm1191_vm12 }
 0x263   :  { %v1187_v4 = vsub.f32 1.0, %v1186_v59 }
 0x264   :  { %1497 = vmatpush.msra.mxu0 %v5830_v6  ;;  %1537 = vmatpush.msra.mxu2 %v5836_v40 }
 0x265   :  { %v1188_v8 = vmul.f32 %v3102_v42, %v1187_v4  ;;  %v5878_v4 = vld [vmem:[%s8682_s5 + $0xf8] sm:$0xff] }
 0x266   :  { %1498 = vmatpush.msra.mxu0 %v5846_v25  ;;  %1538 = vmatpush.msra.mxu2 %v5852_v28 }
 0x267   :  { %v1189_v12 = vadd.f32 %v3102_v42, %v1188_v8 }
 0x268   :  { %1499 = vmatpush.msra.mxu0 %v5859_v17  ;;  %1539 = vmatpush.msra.mxu2 %v5865_v58 }
 0x269   :  { %v1193_v59 = vsel %vm1192_vm15, %v3102_v42, %v1189_v12  ;;  %v1239_v42 = vmul.f32 %v1217_v31, %v5374_v62  ;;  %v5901_v62 = vld [vmem:[%s8682_s5 + $0xa8] sm:$0xff]  ;;  %v1233_v12 = vand.u32 2147483647, %v5738_v9 }
 0x26a   :  { %v1198_v13 = vsel %vm1195_vm0, %v1197_v14, %v1193_v59  ;;  %1500 = vmatpush.msra.mxu0 %v5872_v56  ;;  %1540 = vmatpush.msra.mxu2 %v5878_v4  ;;  %v5917_v31 = vld [vmem:[%s8682_s5 + $0x88] sm:$0xff]  ;;  %v5923_v14 = vld [vmem:[%s8682_s5 + $0x98] sm:$0xff]  ;;  %v1232_v59 = vsel %vm1231_vm3, %v5785_v7, %v1228_v15 }
 0x26b   :  { %v1240_v52 = vmul.f32 %v3104_v36, %v1198_v13  ;;  %v5930_v9 = vld [vmem:[%s8682_s5 + $0x68] sm:$0xff]  ;;  %v5936_v36 = vld [vmem:[%s8682_s5 + $0x78] sm:$0xff]  ;;  %vm1234_vm4 = vcmp.eq.f32.partialorder %v1233_v12, 8.507059e+37 }
 0x26c   :  { %1501 = vmatpush.msra.mxu0 %v5885_v0  ;;  %1541 = vmatpush.msra.mxu2 %v5891_v24  ;;  %v5942_v7 = vld [vmem:[%s8682_s5 + $0x48] sm:$0xff]  ;;  %v5948_v13 = vld [vmem:[%s8682_s5 + $0x58] sm:$0xff] }
 0x26d   :  { %v5894_v8 = vadd.f32 %v1240_v52, %v1239_v42  ;;  %v1237_v52 = vsel %vm1234_vm4, %v1236_v34, %v1232_v59  ;;  %v5962_v12 = vld [vmem:[%s8682_s5 + $0x38] sm:$0xff]  ;;  %v5972_v59 = vld [vmem:[%s8682_s5 + $0x8] sm:$0xff] }
 0x26e   :  { %1502 = vmatpush.msra.mxu0 %v5901_v62  ;;  %1542 = vmatpush.msra.mxu2 %v5907_v16  ;;  %v5978_v34 = vld [vmem:[%s8682_s5 + $0x18] sm:$0xff] }
 0x26f   :  { %3105 = vtanh.f32 %v5894_v8 }
 0x270   :  { %1503 = vmatpush.msra.mxu0 %v5917_v31  ;;  %1543 = vmatpush.msra.mxu2 %v5923_v14 }
 0x272   :  { %1504 = vmatpush.msra.mxu0 %v5930_v9  ;;  %1544 = vmatpush.msra.mxu2 %v5936_v36 }
 0x274   :  { %1505 = vmatpush.msra.mxu0 %v5942_v7  ;;  %1545 = vmatpush.msra.mxu2 %v5948_v13 }
 0x275   :  { %v3106_v42 = vpop.eup %3105 }
 0x276   :  { %v5951_v15 = vmul.f32 %v3106_v42, %v1237_v52  ;;  %1506 = vmatpush.msra.mxu0 %v5956_v38  ;;  %1546 = vmatpush.msra.mxu2 %v5962_v12  ;;  %v9277_v42 = vld [vmem:[#allocation6_spill] sm:$0xff]  ;;  %v6126_v52 = vld [vmem:[%s8683_s6 + $0x2c8] sm:$0xff] }
 0x277   :  { %9278 = vst [vmem:[#allocation53_spill] sm:$0xff] %v6126_v52 }
 0x278   :  { %1260 = vmatmul.f32.vlgmr.msra.gmra.mxu3 %v5951_v15  ;;  %1300 = vmatmul.f32.vlgmr.msra.gmra.mxu1 %v5951_v15 }
 0x279   :  { %1472 = vmatpush.msra.mxu3 %v5402_v37  ;;  %1512 = vmatpush.msra.mxu1 %v5409_v49  ;;  %v5989_v37 = vld [vmem:[%s8683_s6 + $0x3e0] sm:$0xff]  ;;  %v5996_v49 = vld [vmem:[%s8683_s6 + $0x3e8] sm:$0xff] }
 0x27a   :  { %1507 = vmatpush.msra.mxu0 %v5972_v59  ;;  %1547 = vmatpush.msra.mxu2 %v5978_v34 }
 0x27b   :  { %1473 = vmatpush.msra.mxu3 %v5416_v19  ;;  %1508 = vmatmul.f32.vlgmr.msra.gmra.mxu0 %v5951_v15  ;;  %v6003_v19 = vld [vmem:[%s8683_s6 + $0x3c0] sm:$0xff] }
 0x27c   :  { %1513 = vmatpush.msra.mxu1 %v5423_v57  ;;  %1548 = vmatmul.f32.vlgmr.msra.gmra.mxu2 %v5951_v15  ;;  %v6014_v57 = vld [vmem:[%s8683_s6 + $0x3c8] sm:$0xff] }
 0x27d   :  { %1474 = vmatpush.msra.mxu3 %v5430_v53  ;;  %1639 = vmatpush.msrb.mxu0 %v5989_v37  ;;  %9258 = vst [vmem:[#allocation18_spill] sm:$0xff] %v6014_v57  ;;  %v6021_v53 = vld [vmem:[%s8683_s6 + $0x3a0] sm:$0xff] }
 0x27e   :  { %1514 = vmatpush.msra.mxu1 %v5437_v55  ;;  %1679 = vmatpush.msrb.mxu2 %v5996_v49  ;;  %9259 = vst [vmem:[#allocation19_spill] sm:$0xff] %v6021_v53  ;;  %v6028_v55 = vld [vmem:[%s8683_s6 + $0x3a8] sm:$0xff] }
 0x27f   :  { %1475 = vmatpush.msra.mxu3 %v5444_v10  ;;  %1640 = vmatpush.msrb.mxu0 %v6003_v19  ;;  %9260 = vst [vmem:[#allocation20_spill] sm:$0xff] %v6028_v55  ;;  %v6035_v10 = vld [vmem:[%s8683_s6 + $0x380] sm:$0xff] }
 0x280   :  { %1515 = vmatpush.msra.mxu1 %v5451_v63  ;;  %1340 = vmatmul.f32.vlgmr.msrb.gmra.mxu3 %v5951_v15  ;;  %9261 = vst [vmem:[#allocation23_spill] sm:$0xff] %v6035_v10  ;;  %v6042_v63 = vld [vmem:[%s8683_s6 + $0x388] sm:$0xff] }
 0x281   :  { %1380 = vmatmul.f32.vlgmr.msrb.gmra.mxu1 %v5951_v15  ;;  %1476 = vmatpush.msra.mxu3 %v5459_v3  ;;  %9262 = vst [vmem:[#allocation24_spill] sm:$0xff] %v6042_v63  ;;  %v6049_v3 = vld [vmem:[%s8683_s6 + $0x360] sm:$0xff] }
 0x282   :  { %1516 = vmatpush.msra.mxu1 %v5465_v61  ;;  %1680 = vmatpush.msrb.mxu2 %v6014_v57  ;;  %9263 = vst [vmem:[#allocation27_spill] sm:$0xff] %v6049_v3  ;;  %v6056_v61 = vld [vmem:[%s8683_s6 + $0x368] sm:$0xff] }
 0x283   :  { %1477 = vmatpush.msra.mxu3 %v5472_v23  ;;  %1641 = vmatpush.msrb.mxu0 %v6021_v53  ;;  %9264 = vst [vmem:[#allocation28_spill] sm:$0xff] %v6056_v61  ;;  %v6063_v23 = vld [vmem:[%s8683_s6 + $0x340] sm:$0xff] }
 0x284   :  { %1517 = vmatpush.msra.mxu1 %v5479_v43  ;;  %1681 = vmatpush.msrb.mxu2 %v6028_v55  ;;  %9265 = vst [vmem:[#allocation31_spill] sm:$0xff] %v6063_v23  ;;  %v6070_v43 = vld [vmem:[%s8683_s6 + $0x348] sm:$0xff] }
 0x285   :  { %1478 = vmatpush.msra.mxu3 %v5486_v11  ;;  %1642 = vmatpush.msrb.mxu0 %v6035_v10  ;;  %9266 = vst [vmem:[#allocation33_spill] sm:$0xff] %v6070_v43  ;;  %v6077_v11 = vld [vmem:[%s8683_s6 + $0x320] sm:$0xff] }
 0x286   :  { %1518 = vmatpush.msra.mxu1 %v5493_v47  ;;  %1682 = vmatpush.msrb.mxu2 %v6042_v63  ;;  %9267 = vst [vmem:[#allocation37_spill] sm:$0xff] %v6077_v11  ;;  %v6084_v47 = vld [vmem:[%s8683_s6 + $0x328] sm:$0xff] }
 0x287   :  { %1479 = vmatpush.msra.mxu3 %v5500_v51  ;;  %1643 = vmatpush.msrb.mxu0 %v6049_v3  ;;  %9268 = vst [vmem:[#allocation38_spill] sm:$0xff] %v6084_v47  ;;  %v6091_v51 = vld [vmem:[%s8683_s6 + $0x300] sm:$0xff] }
 0x288   :  { %1519 = vmatpush.msra.mxu1 %v5507_v50  ;;  %1683 = vmatpush.msrb.mxu2 %v6056_v61  ;;  %9269 = vst [vmem:[#allocation41_spill] sm:$0xff] %v6091_v51  ;;  %v6098_v50 = vld [vmem:[%s8683_s6 + $0x308] sm:$0xff] }
 0x289   :  { %1480 = vmatpush.msra.mxu3 %v5514_v48  ;;  %1644 = vmatpush.msrb.mxu0 %v6063_v23  ;;  %9270 = vst [vmem:[#allocation42_spill] sm:$0xff] %v6098_v50  ;;  %v9271_v48 = vld [vmem:[#allocation3_spill] sm:$0xff] }
 0x28a   :  { %1520 = vmatpush.msra.mxu1 %v5521_v27  ;;  %1684 = vmatpush.msrb.mxu2 %v6070_v43  ;;  %v6105_v27 = vld [vmem:[%s8683_s6 + $0x2e0] sm:$0xff] }
 0x28b   :  { %1481 = vmatpush.msra.mxu3 %v5528_v60  ;;  %1645 = vmatpush.msrb.mxu0 %v6077_v11  ;;  %9272 = vst [vmem:[#allocation45_spill] sm:$0xff] %v6105_v27  ;;  %v9273_v60 = vld [vmem:[#allocation4_spill] sm:$0xff] }
 0x28c   :  { %1521 = vmatpush.msra.mxu1 %v5535_v2  ;;  %1685 = vmatpush.msrb.mxu2 %v6084_v47  ;;  %v6112_v2 = vld [vmem:[%s8683_s6 + $0x2e8] sm:$0xff] }
 0x28d   :  { %1482 = vmatpush.msra.mxu3 %v5542_v44  ;;  %1646 = vmatpush.msrb.mxu0 %v6091_v51  ;;  %9274 = vst [vmem:[#allocation47_spill] sm:$0xff] %v6112_v2  ;;  %v9275_v44 = vld [vmem:[#allocation5_spill] sm:$0xff] }
 0x28e   :  { %1522 = vmatpush.msra.mxu1 %v5549_v35  ;;  %1686 = vmatpush.msrb.mxu2 %v6098_v50  ;;  %v6119_v35 = vld [vmem:[%s8683_s6 + $0x2c0] sm:$0xff] }
 0x28f   :  { %1483 = vmatpush.msra.mxu3 %v9271_v48  ;;  %1647 = vmatpush.msrb.mxu0 %v6105_v27  ;;  %9276 = vst [vmem:[#allocation51_spill] sm:$0xff] %v6119_v35  ;;  %v9279_v48 = vld [vmem:[#allocation7_spill] sm:$0xff] }
 0x290   :  { %1523 = vmatpush.msra.mxu1 %v9273_v60  ;;  %1687 = vmatpush.msrb.mxu2 %v6112_v2  ;;  %v6133_v60 = vld [vmem:[%s8683_s6 + $0x2a0] sm:$0xff] }
 0x291   :  { %1484 = vmatpush.msra.mxu3 %v9275_v44  ;;  %1648 = vmatpush.msrb.mxu0 %v6119_v35  ;;  %9280 = vst [vmem:[#allocation57_spill] sm:$0xff] %v6133_v60  ;;  %v9281_v44 = vld [vmem:[#allocation8_spill] sm:$0xff] }
 0x292   :  { %1524 = vmatpush.msra.mxu1 %v9277_v42  ;;  %1688 = vmatpush.msrb.mxu2 %v6126_v52  ;;  %v6140_v42 = vld [vmem:[%s8683_s6 + $0x2a8] sm:$0xff]  ;;  %v9285_v52 = vld [vmem:[#allocation10_spill] sm:$0xff] }
 0x293   :  { %1485 = vmatpush.msra.mxu3 %v9279_v48  ;;  %1649 = vmatpush.msrb.mxu0 %v6133_v60  ;;  %9282 = vst [vmem:[#allocation58_spill] sm:$0xff] %v6140_v42  ;;  %v6147_v48 = vld [vmem:[%s8683_s6 + $0x280] sm:$0xff] }
 0x294   :  { %1525 = vmatpush.msra.mxu1 %v9281_v44  ;;  %1689 = vmatpush.msrb.mxu2 %v6140_v42  ;;  %9284 = vst [vmem:[#allocation61_spill] sm:$0xff] %v6147_v48  ;;  %v6154_v44 = vld [vmem:[%s8683_s6 + $0x288] sm:$0xff]  ;;  %v9287_v60 = vld [vmem:[#allocation11_spill] sm:$0xff] }
 0x295   :  { %1486 = vmatpush.msra.mxu3 %v9283_v21  ;;  %1650 = vmatpush.msrb.mxu0 %v6147_v48  ;;  %9286 = vst [vmem:[#allocation62_spill] sm:$0xff] %v6154_v44  ;;  %v6161_v21 = vld [vmem:[%s8683_s6 + $0x260] sm:$0xff]  ;;  %v9289_v42 = vld [vmem:[#allocation12_spill] sm:$0xff] }
 0x296   :  { %1526 = vmatpush.msra.mxu1 %v9285_v52  ;;  %1690 = vmatpush.msrb.mxu2 %v6154_v44  ;;  %9288 = vst [vmem:[#allocation66_spill] sm:$0xff] %v6161_v21  ;;  %v6170_v52 = vld [vmem:[%s8683_s6 + $0x268] sm:$0xff] }
 0x297   :  { %1487 = vmatpush.msra.mxu3 %v9287_v60  ;;  %1651 = vmatpush.msrb.mxu0 %v6161_v21  ;;  %9290 = vst [vmem:[#allocation68_spill] sm:$0xff] %v6170_v52  ;;  %v6176_v60 = vld [vmem:[%s8683_s6 + $0x240] sm:$0xff] }
 0x298   :  { %1527 = vmatpush.msra.mxu1 %v9289_v42  ;;  %1488 = vmatmul.f32.vlgmr.msra.gmra.mxu3 %v5951_v15  ;;  %9291 = vst [vmem:[#allocation72_spill] sm:$0xff] %v6176_v60  ;;  %v6182_v42 = vld [vmem:[%s8683_s6 + $0x1e0] sm:$0xff] }
 0x299   :  { %1528 = vmatmul.f32.vlgmr.msra.gmra.mxu1 %v5951_v15  ;;  %1691 = vmatpush.msrb.mxu2 %v6170_v52  ;;  %9292 = vst [vmem:[#allocation74_spill] sm:$0xff] %v6182_v42  ;;  %v6188_v15 = vld [vmem:[%s8683_s6 + $0x248] sm:$0xff] }
 0x29a   :  { %1652 = vmatpush.msrb.mxu0 %v6176_v60  ;;  %1619 = vmatpush.msrb.mxu3 %v6182_v42  ;;  %9293 = vst [vmem:[#allocation77_spill] sm:$0xff] %v6188_v15  ;;  %v6194_v52 = vld [vmem:[%s8683_s6 + $0x1e8] sm:$0xff]  ;;  %v6200_v60 = vld [vmem:[%s8683_s6 + $0x220] sm:$0xff] }
 0x29b   :  { %1692 = vmatpush.msrb.mxu2 %v6188_v15  ;;  %9294 = vst [vmem:[#allocation21_spill] sm:$0xff] %v6194_v52  ;;  %1659 = vmatpush.msrb.mxu1 %v6194_v52  ;;  %v6206_v42 = vld [vmem:[%s8683_s6 + $0x1c0] sm:$0xff]  ;;  %v6212_v15 = vld [vmem:[%s8683_s6 + $0x228] sm:$0xff] }
 0x29c   :  { %9295 = vst [vmem:[#allocation22_spill] sm:$0xff] %v6200_v60  ;;  %1653 = vmatpush.msrb.mxu0 %v6200_v60  ;;  %1620 = vmatpush.msrb.mxu3 %v6206_v42  ;;  %v6218_v52 = vld [vmem:[%s8683_s6 + $0x1c8] sm:$0xff]  ;;  %v6224_v60 = vld [vmem:[%s8683_s6 + $0x200] sm:$0xff] }
 0x29d   :  { %9296 = vst [vmem:[#allocation78_spill] sm:$0xff] %v6206_v42  ;;  %1693 = vmatpush.msrb.mxu2 %v6212_v15  ;;  %1660 = vmatpush.msrb.mxu1 %v6218_v52  ;;  %v6230_v42 = vld [vmem:[%s8683_s6 + $0x1a0] sm:$0xff] }
 0x29e   :  { %9297 = vst [vmem:[#allocation25_spill] sm:$0xff] %v6212_v15  ;;  %1654 = vmatpush.msrb.mxu0 %v6224_v60  ;;  %1621 = vmatpush.msrb.mxu3 %v6230_v42  ;;  %v6236_v15 = vld [vmem:[%s8683_s6 + $0x208] sm:$0xff] }
 0x29f   :  { %9298 = vst [vmem:[#allocation81_spill] sm:$0xff] %v6218_v52  ;;  %1694 = vmatpush.msrb.mxu2 %v6236_v15  ;;  %v6242_v52 = vld [vmem:[%s8683_s6 + $0x3f0] sm:$0xff] }
 0x2a0   :  { %9299 = vst [vmem:[#allocation26_spill] sm:$0xff] %v6224_v60  ;;  %1719 = vmatpush.msra.mxu0 %v6242_v52  ;;  %v6248_v60 = vld [vmem:[%s8683_s6 + $0x3f8] sm:$0xff] }
 0x2a1   :  { %9300 = vst [vmem:[#allocation82_spill] sm:$0xff] %v6230_v42  ;;  %1759 = vmatpush.msra.mxu2 %v6248_v60  ;;  %v6254_v42 = vld [vmem:[%s8683_s6 + $0x1a8] sm:$0xff] }
 0x2a2   :  { %9301 = vst [vmem:[#allocation29_spill] sm:$0xff] %v6236_v15  ;;  %1661 = vmatpush.msrb.mxu1 %v6254_v42  ;;  %v6260_v15 = vld [vmem:[%s8683_s6 + $0x3d0] sm:$0xff] }
 0x2a3   :  { %9302 = vst [vmem:[#allocation30_spill] sm:$0xff] %v6242_v52  ;;  %1720 = vmatpush.msra.mxu0 %v6260_v15  ;;  %v6266_v52 = vld [vmem:[%s8683_s6 + $0x180] sm:$0xff] }
 0x2a4   :  { %9303 = vst [vmem:[#allocation87_spill] sm:$0xff] %v6248_v60  ;;  %1622 = vmatpush.msrb.mxu3 %v6266_v52  ;;  %v6272_v60 = vld [vmem:[%s8683_s6 + $0x3d8] sm:$0xff] }
 0x2a5   :  { %9304 = vst [vmem:[#allocation35_spill] sm:$0xff] %v6254_v42  ;;  %1760 = vmatpush.msra.mxu2 %v6272_v60  ;;  %v6278_v42 = vld [vmem:[%s8683_s6 + $0x188] sm:$0xff] }
 0x2a6   :  { %9305 = vst [vmem:[#allocation91_spill] sm:$0xff] %v6260_v15  ;;  %1662 = vmatpush.msrb.mxu1 %v6278_v42  ;;  %v6284_v15 = vld [vmem:[%s8683_s6 + $0x3b0] sm:$0xff] }
 0x2a7   :  { %9306 = vst [vmem:[#allocation36_spill] sm:$0xff] %v6266_v52  ;;  %1721 = vmatpush.msra.mxu0 %v6284_v15  ;;  %v6290_v52 = vld [vmem:[%s8683_s6 + $0x160] sm:$0xff] }
 0x2a8   :  { %9307 = vst [vmem:[#allocation93_spill] sm:$0xff] %v6272_v60  ;;  %1623 = vmatpush.msrb.mxu3 %v6290_v52  ;;  %v6296_v60 = vld [vmem:[%s8683_s6 + $0x3b8] sm:$0xff] }
 0x2a9   :  { %9308 = vst [vmem:[#allocation39_spill] sm:$0xff] %v6278_v42  ;;  %1761 = vmatpush.msra.mxu2 %v6296_v60  ;;  %v6302_v42 = vld [vmem:[%s8683_s6 + $0x168] sm:$0xff] }
 0x2aa   :  { %9309 = vst [vmem:[#allocation96_spill] sm:$0xff] %v6284_v15  ;;  %1663 = vmatpush.msrb.mxu1 %v6302_v42  ;;  %v6308_v15 = vld [vmem:[%s8683_s6 + $0x390] sm:$0xff] }
 0x2ab   :  { %9310 = vst [vmem:[#allocation40_spill] sm:$0xff] %v6290_v52  ;;  %1722 = vmatpush.msra.mxu0 %v6308_v15  ;;  %v6314_v52 = vld [vmem:[%s8683_s6 + $0x140] sm:$0xff] }
 0x2ac   :  { %9311 = vst [vmem:[#allocation97_spill] sm:$0xff] %v6296_v60  ;;  %1624 = vmatpush.msrb.mxu3 %v6314_v52  ;;  %v6320_v60 = vld [vmem:[%s8683_s6 + $0x398] sm:$0xff] }
 0x2ad   :  { %9312 = vst [vmem:[#allocation43_spill] sm:$0xff] %v6302_v42  ;;  %1762 = vmatpush.msra.mxu2 %v6320_v60  ;;  %v6326_v42 = vld [vmem:[%s8683_s6 + $0x148] sm:$0xff] }
 0x2ae   :  { %9313 = vst [vmem:[#allocation44_spill] sm:$0xff] %v6308_v15  ;;  %1664 = vmatpush.msrb.mxu1 %v6326_v42  ;;  %v6332_v15 = vld [vmem:[%s8683_s6 + $0x370] sm:$0xff] }
 0x2af   :  { %9314 = vst [vmem:[#allocation49_spill] sm:$0xff] %v6314_v52  ;;  %1723 = vmatpush.msra.mxu0 %v6332_v15  ;;  %v6338_v52 = vld [vmem:[%s8683_s6 + $0x120] sm:$0xff] }
 0x2b0   :  { %9315 = vst [vmem:[#allocation50_spill] sm:$0xff] %v6320_v60  ;;  %1625 = vmatpush.msrb.mxu3 %v6338_v52  ;;  %v6344_v60 = vld [vmem:[%s8683_s6 + $0x378] sm:$0xff] }
 0x2b1   :  { %9316 = vst [vmem:[#allocation55_spill] sm:$0xff] %v6326_v42  ;;  %1763 = vmatpush.msra.mxu2 %v6344_v60  ;;  %v6350_v42 = vld [vmem:[%s8683_s6 + $0x128] sm:$0xff] }
 0x2b2   :  { %9317 = vst [vmem:[#allocation56_spill] sm:$0xff] %v6332_v15  ;;  %1665 = vmatpush.msrb.mxu1 %v6350_v42  ;;  %v6356_v15 = vld [vmem:[%s8683_s6 + $0x350] sm:$0xff] }
 0x2b3   :  { %9318 = vst [vmem:[#allocation59_spill] sm:$0xff] %v6338_v52  ;;  %1724 = vmatpush.msra.mxu0 %v6356_v15  ;;  %v6362_v52 = vld [vmem:[%s8683_s6 + $0x100] sm:$0xff] }
 0x2b4   :  { %9319 = vst [vmem:[#allocation60_spill] sm:$0xff] %v6344_v60  ;;  %1626 = vmatpush.msrb.mxu3 %v6362_v52  ;;  %v6368_v60 = vld [vmem:[%s8683_s6 + $0x358] sm:$0xff] }
 0x2b5   :  { %9320 = vst [vmem:[#allocation64_spill] sm:$0xff] %v6350_v42  ;;  %1764 = vmatpush.msra.mxu2 %v6368_v60  ;;  %v6374_v42 = vld [vmem:[%s8683_s6 + $0x108] sm:$0xff] }
 0x2b6   :  { %9321 = vst [vmem:[#allocation65_spill] sm:$0xff] %v6356_v15  ;;  %1666 = vmatpush.msrb.mxu1 %v6374_v42  ;;  %v6380_v15 = vld [vmem:[%s8683_s6 + $0x330] sm:$0xff] }
 0x2b7   :  { %9322 = vst [vmem:[#allocation70_spill] sm:$0xff] %v6362_v52  ;;  %1725 = vmatpush.msra.mxu0 %v6380_v15  ;;  %v6386_v52 = vld [vmem:[%s8683_s6 + $0xe0] sm:$0xff] }
 0x2b8   :  { %9323 = vst [vmem:[#allocation71_spill] sm:$0xff] %v6368_v60  ;;  %1627 = vmatpush.msrb.mxu3 %v6386_v52  ;;  %v6392_v60 = vld [vmem:[%s8683_s6 + $0x338] sm:$0xff] }
 0x2b9   :  { %9324 = vst [vmem:[#allocation75_spill] sm:$0xff] %v6374_v42  ;;  %1765 = vmatpush.msra.mxu2 %v6392_v60  ;;  %v6398_v42 = vld [vmem:[%s8683_s6 + $0xe8] sm:$0xff] }
 0x2ba   :  { %9325 = vst [vmem:[#allocation76_spill] sm:$0xff] %v6380_v15  ;;  %1667 = vmatpush.msrb.mxu1 %v6398_v42  ;;  %v6404_v15 = vld [vmem:[%s8683_s6 + $0x310] sm:$0xff] }
 0x2bb   :  { %9326 = vst [vmem:[#allocation79_spill] sm:$0xff] %v6386_v52  ;;  %1726 = vmatpush.msra.mxu0 %v6404_v15  ;;  %v6410_v52 = vld [vmem:[%s8683_s6 + $0xc0] sm:$0xff] }
 0x2bc   :  { %9327 = vst [vmem:[#allocation80_spill] sm:$0xff] %v6392_v60  ;;  %1628 = vmatpush.msrb.mxu3 %v6410_v52  ;;  %v6416_v60 = vld [vmem:[%s8683_s6 + $0x318] sm:$0xff] }
 0x2bd   :  { %9328 = vst [vmem:[#allocation84_spill] sm:$0xff] %v6398_v42  ;;  %1766 = vmatpush.msra.mxu2 %v6416_v60  ;;  %v6422_v42 = vld [vmem:[%s8683_s6 + $0xc8] sm:$0xff] }
 0x2be   :  { %9329 = vst [vmem:[#allocation85_spill] sm:$0xff] %v6404_v15  ;;  %1668 = vmatpush.msrb.mxu1 %v6422_v42  ;;  %v6428_v15 = vld [vmem:[%s8683_s6 + $0x2f0] sm:$0xff] }
 0x2bf   :  { %9330 = vst [vmem:[#allocation89_spill] sm:$0xff] %v6410_v52  ;;  %1727 = vmatpush.msra.mxu0 %v6428_v15  ;;  %v6434_v52 = vld [vmem:[%s8683_s6 + $0xa0] sm:$0xff] }
 0x2c0   :  { %9331 = vst [vmem:[#allocation90_spill] sm:$0xff] %v6416_v60  ;;  %1629 = vmatpush.msrb.mxu3 %v6434_v52  ;;  %v6440_v60 = vld [vmem:[%s8683_s6 + $0x2f8] sm:$0xff] }
 0x2c1   :  { %9332 = vst [vmem:[#allocation94_spill] sm:$0xff] %v6422_v42  ;;  %1767 = vmatpush.msra.mxu2 %v6440_v60  ;;  %v6446_v42 = vld [vmem:[%s8683_s6 + $0xa8] sm:$0xff] }
 0x2c2   :  { %9333 = vst [vmem:[#allocation95_spill] sm:$0xff] %v6428_v15  ;;  %1669 = vmatpush.msrb.mxu1 %v6446_v42  ;;  %v6452_v15 = vld [vmem:[%s8683_s6 + $0x2d0] sm:$0xff] }
 0x2c3   :  { %9334 = vst [vmem:[#allocation98_spill] sm:$0xff] %v6434_v52  ;;  %1728 = vmatpush.msra.mxu0 %v6452_v15  ;;  %v6458_v52 = vld [vmem:[%s8683_s6 + $0x80] sm:$0xff] }
 0x2c4   :  { %9335 = vst [vmem:[#allocation99_spill] sm:$0xff] %v6440_v60  ;;  %1630 = vmatpush.msrb.mxu3 %v6458_v52  ;;  %v6464_v60 = vld [vmem:[%s8683_s6 + $0x2d8] sm:$0xff] }
 0x2c5   :  { %9336 = vst [vmem:[#allocation32_spill] sm:$0xff] %v6446_v42  ;;  %1768 = vmatpush.msra.mxu2 %v6464_v60  ;;  %v6470_v42 = vld [vmem:[%s8683_s6 + $0x88] sm:$0xff] }
 0x2c6   :  { %9337 = vst [vmem:[#allocation48_spill] sm:$0xff] %v6452_v15  ;;  %1670 = vmatpush.msrb.mxu1 %v6470_v42  ;;  %v6476_v15 = vld [vmem:[%s8683_s6 + $0x2b0] sm:$0xff] }
 0x2c7   :  { %9338 = vst [vmem:[#allocation46_spill] sm:$0xff] %v6458_v52  ;;  %1729 = vmatpush.msra.mxu0 %v6476_v15  ;;  %v6482_v52 = vld [vmem:[%s8683_s6 + $0x60] sm:$0xff] }
 0x2c8   :  { %9339 = vst [vmem:[#allocation34_spill] sm:$0xff] %v6464_v60  ;;  %1631 = vmatpush.msrb.mxu3 %v6482_v52  ;;  %v6488_v60 = vld [vmem:[%s8683_s6 + $0x2b8] sm:$0xff] }
 0x2c9   :  { %9340 = vst [vmem:[#allocation3_spill] sm:$0xff] %v6470_v42  ;;  %1769 = vmatpush.msra.mxu2 %v6488_v60  ;;  %v6494_v42 = vld [vmem:[%s8683_s6 + $0x68] sm:$0xff] }
 0x2ca   :  { %9341 = vst [vmem:[#allocation4_spill] sm:$0xff] %v6476_v15  ;;  %1671 = vmatpush.msrb.mxu1 %v6494_v42  ;;  %v6500_v15 = vld [vmem:[%s8683_s6 + $0x290] sm:$0xff] }
 0x2cb   :  { %9342 = vst [vmem:[#allocation5_spill] sm:$0xff] %v6482_v52  ;;  %1730 = vmatpush.msra.mxu0 %v6500_v15  ;;  %v6506_v52 = vld [vmem:[%s8683_s6 + $0x40] sm:$0xff] }
 0x2cc   :  { %9343 = vst [vmem:[#allocation6_spill] sm:$0xff] %v6488_v60  ;;  %1632 = vmatpush.msrb.mxu3 %v6506_v52  ;;  %v6512_v60 = vld [vmem:[%s8683_s6 + $0x298] sm:$0xff] }
 0x2cd   :  { %9344 = vst [vmem:[#allocation7_spill] sm:$0xff] %v6494_v42  ;;  %1770 = vmatpush.msra.mxu2 %v6512_v60  ;;  %v6518_v42 = vld [vmem:[%s8683_s6 + $0x48] sm:$0xff] }
 0x2ce   :  { %9345 = vst [vmem:[#allocation8_spill] sm:$0xff] %v6500_v15  ;;  %1672 = vmatpush.msrb.mxu1 %v6518_v42  ;;  %v6524_v15 = vld [vmem:[%s8683_s6 + $0x270] sm:$0xff] }
 0x2cf   :  { %9346 = vst [vmem:[#allocation9_spill] sm:$0xff] %v6506_v52  ;;  %1731 = vmatpush.msra.mxu0 %v6524_v15  ;;  %v6530_v52 = vld [vmem:[%s8683_s6 + $0x20] sm:$0xff] }
 0x2d0   :  { %9347 = vst [vmem:[#allocation10_spill] sm:$0xff] %v6512_v60  ;;  %1633 = vmatpush.msrb.mxu3 %v6530_v52  ;;  %v6536_v60 = vld [vmem:[%s8683_s6 + $0x278] sm:$0xff] }
 0x2d1   :  { %9348 = vst [vmem:[#allocation11_spill] sm:$0xff] %v6518_v42  ;;  %1771 = vmatpush.msra.mxu2 %v6536_v60  ;;  %v6542_v42 = vld [vmem:[%s8683_s6 + $0x28] sm:$0xff] }
 0x2d2   :  { %9349 = vst [vmem:[#allocation12_spill] sm:$0xff] %v6524_v15  ;;  %1673 = vmatpush.msrb.mxu1 %v6542_v42  ;;  %v6548_v15 = vld [vmem:[%s8683_s6 + $0x250] sm:$0xff] }
 0x2d3   :  { %9350 = vst [vmem:[#allocation106_spill] sm:$0xff] %v6530_v52  ;;  %1732 = vmatpush.msra.mxu0 %v6548_v15  ;;  %v6554_v52 = vld [vmem:[%s8683_s6] sm:$0xff] }
 0x2d4   :  { %9351 = vst [vmem:[#allocation107_spill] sm:$0xff] %v6536_v60  ;;  %1634 = vmatpush.msrb.mxu3 %v6554_v52  ;;  %v6560_v60 = vld [vmem:[%s8683_s6 + $0x258] sm:$0xff] }
 0x2d5   :  { %9352 = vst [vmem:[#allocation108_spill] sm:$0xff] %v6542_v42  ;;  %1772 = vmatpush.msra.mxu2 %v6560_v60  ;;  %v6566_v42 = vld [vmem:[%s8683_s6 + $0x8] sm:$0xff] }
 0x2d6   :  { %9353 = vst [vmem:[#allocation109_spill] sm:$0xff] %v6548_v15  ;;  %1674 = vmatpush.msrb.mxu1 %v6566_v42  ;;  %v6572_v15 = vld [vmem:[%s8683_s6 + $0x230] sm:$0xff] }
 0x2d7   :  { %9354 = vst [vmem:[#allocation110_spill] sm:$0xff] %v6554_v52  ;;  %1733 = vmatpush.msra.mxu0 %v6572_v15  ;;  %v6578_v52 = vld [vmem:[%s8683_s6 + $0x1f0] sm:$0xff] }
 0x2d8   :  { %9355 = vst [vmem:[#allocation111_spill] sm:$0xff] %v6560_v60  ;;  %1699 = vmatpush.msra.mxu3 %v6578_v52  ;;  %v6584_v60 = vld [vmem:[%s8683_s6 + $0x238] sm:$0xff] }
 0x2d9   :  { %9356 = vst [vmem:[#allocation112_spill] sm:$0xff] %v6566_v42  ;;  %1773 = vmatpush.msra.mxu2 %v6584_v60  ;;  %v6590_v42 = vld [vmem:[%s8683_s6 + $0x1f8] sm:$0xff] }
 0x2da   :  { %9357 = vst [vmem:[#allocation113_spill] sm:$0xff] %v6572_v15  ;;  %1739 = vmatpush.msra.mxu1 %v6590_v42  ;;  %v6596_v15 = vld [vmem:[%s8683_s6 + $0x210] sm:$0xff] }
 0x2db   :  { %9358 = vst [vmem:[#allocation114_spill] sm:$0xff] %v6578_v52  ;;  %1734 = vmatpush.msra.mxu0 %v6596_v15  ;;  %v6602_v52 = vld [vmem:[%s8683_s6 + $0x1d0] sm:$0xff] }
 0x2dc   :  { %9359 = vst [vmem:[#allocation115_spill] sm:$0xff] %v6584_v60  ;;  %1700 = vmatpush.msra.mxu3 %v6602_v52  ;;  %v6608_v60 = vld [vmem:[%s8683_s6 + $0x218] sm:$0xff]  ;;  %v1321_v44 = vpop.f32.mrf.mxu2 }
 0x2dd   :  { %9360 = vst [vmem:[#allocation116_spill] sm:$0xff] %v6590_v42  ;;  %1774 = vmatpush.msra.mxu2 %v6608_v60  ;;  %v6614_v42 = vld [vmem:[%s8683_s6 + $0x1d8] sm:$0xff] }
 0x2de   :  { %9361 = vst [vmem:[#allocation117_spill] sm:$0xff] %v6596_v15  ;;  %1740 = vmatpush.msra.mxu1 %v6614_v42  ;;  %v6620_v15 = vld [vmem:[%s8683_s6 + $0x1b0] sm:$0xff] }
 0x2df   :  { %9362 = vst [vmem:[#allocation118_spill] sm:$0xff] %v6602_v52  ;;  %1701 = vmatpush.msra.mxu3 %v6620_v15  ;;  %v6626_v52 = vld [vmem:[%s8683_s6 + $0x1b8] sm:$0xff] }
 0x2e0   :  { %9363 = vst [vmem:[#allocation119_spill] sm:$0xff] %v6608_v60  ;;  %1741 = vmatpush.msra.mxu1 %v6626_v52  ;;  %v6632_v60 = vld [vmem:[%s8683_s6 + $0x190] sm:$0xff] }
 0x2e1   :  { %9364 = vst [vmem:[#allocation120_spill] sm:$0xff] %v6614_v42  ;;  %1702 = vmatpush.msra.mxu3 %v6632_v60  ;;  %v6638_v42 = vld [vmem:[%s8683_s6 + $0x198] sm:$0xff] }
 0x2e2   :  { %9365 = vst [vmem:[#allocation121_spill] sm:$0xff] %v6620_v15  ;;  %1742 = vmatpush.msra.mxu1 %v6638_v42  ;;  %v6644_v15 = vld [vmem:[%s8683_s6 + $0x170] sm:$0xff] }
 0x2e3   :  { %9366 = vst [vmem:[#allocation122_spill] sm:$0xff] %v6626_v52  ;;  %1703 = vmatpush.msra.mxu3 %v6644_v15  ;;  %v6650_v52 = vld [vmem:[%s8683_s6 + $0x178] sm:$0xff] }
 0x2e4   :  { %9367 = vst [vmem:[#allocation123_spill] sm:$0xff] %v6632_v60  ;;  %1743 = vmatpush.msra.mxu1 %v6650_v52  ;;  %v6656_v60 = vld [vmem:[%s8683_s6 + $0x150] sm:$0xff]  ;;  %v1401_v11 = vpop.f32.mrf.mxu2 }
 0x2e5   :  { %9368 = vst [vmem:[#allocation124_spill] sm:$0xff] %v6638_v42  ;;  %1704 = vmatpush.msra.mxu3 %v6656_v60  ;;  %v6662_v42 = vld [vmem:[%s8683_s6 + $0x158] sm:$0xff] }
 0x2e6   :  { %9369 = vst [vmem:[#allocation125_spill] sm:$0xff] %v6644_v15  ;;  %1744 = vmatpush.msra.mxu1 %v6662_v42  ;;  %v6668_v15 = vld [vmem:[%s8683_s6 + $0x130] sm:$0xff] }
 0x2e7   :  { %9370 = vst [vmem:[#allocation126_spill] sm:$0xff] %v6650_v52  ;;  %1705 = vmatpush.msra.mxu3 %v6668_v15  ;;  %v6674_v52 = vld [vmem:[%s8683_s6 + $0x138] sm:$0xff] }
 0x2e8   :  { %9371 = vst [vmem:[#allocation127_spill] sm:$0xff] %v6656_v60  ;;  %1745 = vmatpush.msra.mxu1 %v6674_v52  ;;  %v6680_v60 = vld [vmem:[%s8683_s6 + $0x110] sm:$0xff] }
 0x2e9   :  { %9372 = vst [vmem:[#allocation128_spill] sm:$0xff] %v6662_v42  ;;  %1706 = vmatpush.msra.mxu3 %v6680_v60  ;;  %v6686_v42 = vld [vmem:[%s8683_s6 + $0x118] sm:$0xff] }
 0x2ea   :  { %9373 = vst [vmem:[#allocation129_spill] sm:$0xff] %v6668_v15  ;;  %1746 = vmatpush.msra.mxu1 %v6686_v42  ;;  %v6692_v15 = vld [vmem:[%s8683_s6 + $0xf0] sm:$0xff] }
 0x2eb   :  { %9374 = vst [vmem:[#allocation130_spill] sm:$0xff] %v6674_v52  ;;  %1707 = vmatpush.msra.mxu3 %v6692_v15  ;;  %v6698_v52 = vld [vmem:[%s8683_s6 + $0xf8] sm:$0xff] }
 0x2ec   :  { %9375 = vst [vmem:[#allocation131_spill] sm:$0xff] %v6680_v60  ;;  %1747 = vmatpush.msra.mxu1 %v6698_v52  ;;  %v6704_v60 = vld [vmem:[%s8683_s6 + $0xd0] sm:$0xff] }
 0x2ed   :  { %9376 = vst [vmem:[#allocation132_spill] sm:$0xff] %v6686_v42  ;;  %1708 = vmatpush.msra.mxu3 %v6704_v60  ;;  %v6710_v42 = vld [vmem:[%s8683_s6 + $0xd8] sm:$0xff] }
 0x2ee   :  { %9377 = vst [vmem:[#allocation133_spill] sm:$0xff] %v6692_v15  ;;  %1748 = vmatpush.msra.mxu1 %v6710_v42  ;;  %v6716_v15 = vld [vmem:[%s8683_s6 + $0xb0] sm:$0xff] }
 0x2ef   :  { %9378 = vst [vmem:[#allocation134_spill] sm:$0xff] %v6698_v52  ;;  %1709 = vmatpush.msra.mxu3 %v6716_v15  ;;  %v6722_v52 = vld [vmem:[%s8683_s6 + $0xb8] sm:$0xff] }
 0x2f0   :  { %9379 = vst [vmem:[#allocation135_spill] sm:$0xff] %v6704_v60  ;;  %1749 = vmatpush.msra.mxu1 %v6722_v52  ;;  %v6728_v60 = vld [vmem:[%s8683_s6 + $0x90] sm:$0xff] }
 0x2f1   :  { %9380 = vst [vmem:[#allocation136_spill] sm:$0xff] %v6710_v42  ;;  %1710 = vmatpush.msra.mxu3 %v6728_v60  ;;  %v6734_v42 = vld [vmem:[%s8683_s6 + $0x98] sm:$0xff] }
 0x2f2   :  { %9381 = vst [vmem:[#allocation137_spill] sm:$0xff] %v6716_v15  ;;  %1750 = vmatpush.msra.mxu1 %v6734_v42  ;;  %v6740_v15 = vld [vmem:[%s8683_s6 + $0x70] sm:$0xff] }
 0x2f3   :  { %9382 = vst [vmem:[#allocation138_spill] sm:$0xff] %v6722_v52  ;;  %1711 = vmatpush.msra.mxu3 %v6740_v15  ;;  %v6746_v52 = vld [vmem:[%s8683_s6 + $0x78] sm:$0xff] }
 0x2f4   :  { %9383 = vst [vmem:[#allocation139_spill] sm:$0xff] %v6728_v60  ;;  %1751 = vmatpush.msra.mxu1 %v6746_v52  ;;  %v6752_v60 = vld [vmem:[%s8683_s6 + $0x50] sm:$0xff] }
 0x2f5   :  { %9384 = vst [vmem:[#allocation140_spill] sm:$0xff] %v6734_v42  ;;  %1712 = vmatpush.msra.mxu3 %v6752_v60  ;;  %v6758_v42 = vld [vmem:[%s8683_s6 + $0x58] sm:$0xff]  ;;  %v1301_v21 = vpop.f32.mrf.mxu1 }
 0x2f6   :  { %9385 = vst [vmem:[#allocation141_spill] sm:$0xff] %v6740_v15  ;;  %1752 = vmatpush.msra.mxu1 %v6758_v42  ;;  %v6764_v15 = vld [vmem:[%s8683_s6 + $0x30] sm:$0xff]  ;;  %v1302_v48 = vadd.f32 %v1301_v21, %v5700_v5 }
 0x2f7   :  { %9386 = vst [vmem:[#allocation142_spill] sm:$0xff] %v6746_v52  ;;  %1713 = vmatpush.msra.mxu3 %v6764_v15  ;;  %v6770_v52 = vld [vmem:[%s8683_s6 + $0x38] sm:$0xff] }
 0x2f8   :  { %9387 = vst [vmem:[#allocation143_spill] sm:$0xff] %v6752_v60  ;;  %1753 = vmatpush.msra.mxu1 %v6770_v52  ;;  %v6776_v60 = vld [vmem:[%s8683_s6 + $0x10] sm:$0xff] }
 0x2f9   :  { %9388 = vst [vmem:[#allocation144_spill] sm:$0xff] %v6758_v42  ;;  %1714 = vmatpush.msra.mxu3 %v6776_v60  ;;  %v6782_v42 = vld [vmem:[%s8683_s6 + $0x18] sm:$0xff] }
 0x2fa   :  { %9389 = vst [vmem:[#allocation145_spill] sm:$0xff] %v6764_v15  ;;  %1754 = vmatpush.msra.mxu1 %v6782_v42  ;;  %v1281_v15 = vpop.f32.mrf.mxu0 }
 0x2fb   :  { %9390 = vst [vmem:[#allocation146_spill] sm:$0xff] %v6770_v52  ;;  %v1322_v52 = vadd.f32 %v1321_v44, %v1302_v48  ;;  %v1261_v2 = vpop.f32.mrf.mxu3  ;;  %v9393_v48 = vld [vmem:[#allocation52_spill] sm:$0xff] }
 0x2fc   :  { %9391 = vst [vmem:[#allocation147_spill] sm:$0xff] %v6776_v60  ;;  %v1262_v50 = vadd.f32 %v1261_v2, %v5703_v20 }
 0x2fd   :  { %9392 = vst [vmem:[#allocation148_spill] sm:$0xff] %v6782_v42  ;;  %v3030_v35 = vmul.f32 -1.442695, %v1322_v52 }
 0x2fe   :  { %v1282_v60 = vadd.f32 %v1281_v15, %v1262_v50  ;;  %v1381_v51 = vpop.f32.mrf.mxu1 }
 0x2ff   :  { %3107 = vpow2.f32 %v3030_v35  ;;  %v1382_v47 = vadd.f32 %v1381_v51, %v5705_v32 }
 0x300   :  { %v3029_v43 = vmul.f32 -1.442695, %v1282_v60 }
 0x301   :  { %v1402_v23 = vadd.f32 %v1401_v11, %v1382_v47 }
 0x302   :  { %v1361_v27 = vpop.f32.mrf.mxu0  ;;  %3109 = vpow2.f32 %v3029_v43 }
 0x303   :  { %v3031_v3 = vmul.f32 -1.442695, %v1402_v23  ;;  %v1341_v52 = vpop.f32.mrf.mxu3  ;;  %v1549_v23 = vpop.f32.mrf.mxu2 }
 0x304   :  { %v1342_v60 = vadd.f32 %v1341_v52, %v5710_v29 }
 0x305   :  { %v3108_v42 = vpop.eup %3107 }
 0x306   :  { %v1426_v61 = vadd.f32 1.0, %v3108_v42  ;;  %v1362_v32 = vadd.f32 %v1361_v27, %v1342_v60 }
 0x308   :  { %3111 = vrcp.f32 %v1426_v61  ;;  %v3110_v21 = vpop.eup %3109  ;;  %vm1432_vm6 = vweird.f32 %v1426_v61  ;;  %v1436_v5 = vand.u32 2147483647, %v1426_v61 }
 0x309   :  { %3113 = vpow2.f32 %v3031_v3  ;;  %v1407_v35 = vadd.f32 1.0, %v3110_v21  ;;  %v9394_v21 = vld [vmem:[#allocation67_spill] sm:$0xff] }
 0x30a   :  { %v1509_v63 = vpop.f32.mrf.mxu0  ;;  %v1555_v20 = vadd.f32 %v1549_v23, %v9394_v21  ;;  %vm1437_vm10 = vcmp.eq.f32.partialorder %v1436_v5, 8.507059e+37 }
 0x30b   :  { %v1553_v44 = vadd.f32 %v1509_v63, %v9393_v48  ;;  %3115 = vrcp.f32 %v1407_v35  ;;  %v1438_v48 = vand.u32 2147483648, %v1426_v61  ;;  %v1417_v27 = vand.u32 2147483647, %v1407_v35 }
 0x30c   :  { %v3034_v23 = vmul.f32 -1.442695, %v1555_v20  ;;  %vm1413_vm9 = vweird.f32 %v1407_v35 }
 0x30d   :  { %v3033_v50 = vmul.f32 -1.442695, %v1553_v44  ;;  %vm1418_vm12 = vcmp.eq.f32.partialorder %v1417_v27, 8.507059e+37 }
 0x30e   :  { %v3112_v2 = vpop.eup %3111 }
 0x30f   :  { %v1428_v15 = vmul.f32 %v3112_v2, %v1426_v61  ;;  %v3114_v51 = vpop.eup %3113  ;;  %3117 = vpow2.f32 %v3033_v50  ;;  %vm1433_vm5 = vweird.f32 %v3112_v2  ;;  %v1419_v50 = vand.u32 2147483648, %v1407_v35 }
 0x310   :  { %v1446_v47 = vadd.f32 1.0, %v3114_v51  ;;  %vm6791_vm7 = vmor %vm1432_vm6, %vm1433_vm5 }
 0x311   :  { %v1429_v11 = vsub.f32 1.0, %v1428_v15  ;;  %v3116_v42 = vpop.eup %3115  ;;  %v1420_v29 = vor.u32 1.1754944e-38, %v1419_v50 }
 0x312   :  { %3119 = vrcp.f32 %v1446_v47  ;;  %v1409_v63 = vmul.f32 %v3116_v42, %v1407_v35  ;;  %vm1414_vm8 = vweird.f32 %v3116_v42  ;;  %v1458_v50 = vand.u32 2147483648, %v1446_v47 }
 0x313   :  { %v1430_v43 = vmul.f32 %v3112_v2, %v1429_v11  ;;  %3121 = vtanh.f32 %v1362_v32  ;;  %v1439_v11 = vor.u32 1.1754944e-38, %v1438_v48  ;;  %vm1415_vm11 = vmor %vm1413_vm9, %vm1414_vm8  ;;  %vm1452_vm14 = vweird.f32 %v1446_v47 }
 0x314   :  { %v1410_v44 = vsub.f32 1.0, %v1409_v63  ;;  %3123 = vpow2.f32 %v3034_v23 }
 0x315   :  { %v1431_v3 = vadd.f32 %v3112_v2, %v1430_v43  ;;  %v3118_v10 = vpop.eup %3117 }
 0x316   :  { %v1411_v51 = vmul.f32 %v3116_v42, %v1410_v44  ;;  %v6797_v21 = vadd.f32 1.0, %v3118_v10 }
 0x317   :  { %v1435_v60 = vsel %vm6791_vm7, %v3112_v2, %v1431_v3  ;;  %v9397_v2 = vld [vmem:[#allocation63_spill] sm:$0xff] }
 0x318   :  { %v3120_v15 = vpop.eup %3119  ;;  %v1412_v61 = vadd.f32 %v3116_v42, %v1411_v51  ;;  %v1440_v55 = vsel %vm1437_vm10, %v1439_v11, %v1435_v60  ;;  %3125 = vrcp.f32 %v6797_v21  ;;  %v1459_v60 = vor.u32 1.1754944e-38, %v1458_v50 }
 0x319   :  { %v1448_v43 = vmul.f32 %v3120_v15, %v1446_v47  ;;  %v3122_v44 = vpop.eup %3121  ;;  %v1462_v20 = vmul.f32 %v1440_v55, %v5728_v41  ;;  %vm1453_vm13 = vweird.f32 %v3120_v15  ;;  %vm1584_vm2 = vweird.f32 %v6797_v21 }
 0x31a   :  { %v1416_v32 = vsel %vm1415_vm11, %v3116_v42, %v1412_v61  ;;  %v3124_v42 = vpop.eup %3123  ;;  %vm1454_vm15 = vmor %vm1452_vm14, %vm1453_vm13 }
 0x31b   :  { %v1449_v63 = vsub.f32 1.0, %v1448_v43  ;;  %v1421_v57 = vsel %vm1418_vm12, %v1420_v29, %v1416_v32  ;;  %v1489_v52 = vpop.f32.mrf.mxu3  ;;  %v1456_v29 = vand.u32 2147483647, %v1446_v47 }
 0x31c   :  { %v1463_v10 = vmul.f32 %v3122_v44, %v1421_v57  ;;  %v1552_v3 = vadd.f32 %v1489_v52, %v9397_v2  ;;  %v6806_v57 = vadd.f32 1.0, %v3124_v42  ;;  %v9398_v44 = vld [vmem:[#allocation54_spill] sm:$0xff]  ;;  %v6954_v42 = vld [vmem:[%s8682_s5 + $0x150] sm:$0xff] }
 0x31d   :  { %v1450_v53 = vmul.f32 %v3120_v15, %v1449_v63  ;;  %vm1457_vm0 = vcmp.eq.f32.partialorder %v1456_v29, 8.507059e+37  ;;  %v9403_v29 = vld [vmem:[#allocation20_spill] sm:$0xff] }
 0x31e   :  { %v6802_v35 = vadd.f32 %v1463_v10, %v1462_v20  ;;  %v3032_v5 = vmul.f32 -1.442695, %v1552_v3  ;;  %v3126_v51 = vpop.eup %3125  ;;  %vm1604_vm10 = vweird.f32 %v6806_v57 }
 0x31f   :  { %v1451_v48 = vadd.f32 %v3120_v15, %v1450_v53  ;;  %v1580_v41 = vmul.f32 %v3126_v51, %v6797_v21  ;;  %vm1585_vm1 = vweird.f32 %v3126_v51 }
 0x320   :  { %3127 = vtanh.f32 %v6802_v35  ;;  %vm6833_vm3 = vmor %vm1584_vm2, %vm1585_vm1 }
 0x321   :  { %3129 = vpow2.f32 %v3032_v5  ;;  %v1455_v27 = vsel %vm1454_vm15, %v3120_v15, %v1451_v48  ;;  %v1581_v61 = vsub.f32 1.0, %v1580_v41  ;;  %v1529_v15 = vpop.f32.mrf.mxu1  ;;  %v9405_v41 = vld [vmem:[#allocation24_spill] sm:$0xff] }
 0x322   :  { %v1460_v11 = vsel %vm1457_vm0, %v1459_v60, %v1455_v27  ;;  %3131 = vrcp.f32 %v6806_v57  ;;  %v1554_v52 = vadd.f32 %v1529_v15, %v9398_v44  ;;  %v9404_v27 = vld [vmem:[#allocation23_spill] sm:$0xff]  ;;  %v6968_v60 = vld [vmem:[%s8682_s5 + $0x130] sm:$0xff] }
 0x323   :  { %v1582_v47 = vmul.f32 %v3126_v51, %v1581_v61  ;;  %v9408_v61 = vld [vmem:[#allocation31_spill] sm:$0xff]  ;;  %v9409_v15 = vld [vmem:[#allocation33_spill] sm:$0xff] }
 0x324   :  { %v7010_v44 = vld [vmem:[%s8682_s5 + $0xd0] sm:$0xff] }
 0x326   :  { %v3128_v55 = vpop.eup %3127 }
 0x327   :  { %v3130_v53 = vpop.eup %3129  ;;  %v6808_v43 = vmul.f32 %v3128_v55, %v1460_v11  ;;  %v9406_v55 = vld [vmem:[#allocation27_spill] sm:$0xff]  ;;  %v6982_v11 = vld [vmem:[%s8682_s5 + $0x110] sm:$0xff] }
 0x328   :  { %v1559_v23 = vadd.f32 1.0, %v3130_v53  ;;  %v6819_v63 = vpop.eup %3131  ;;  %v9407_v53 = vld [vmem:[#allocation28_spill] sm:$0xff] }
 0x329   :  { %1655 = vmatmul.f32.vlgmr.msrb.gmra.mxu0 %v6808_v43  ;;  %1695 = vmatmul.f32.vlgmr.msrb.gmra.mxu2 %v6808_v43  ;;  %vm1605_vm9 = vweird.f32 %v6819_v63 }
 0x32a   :  { %3133 = vrcp.f32 %v1559_v23  ;;  %1867 = vmatpush.msrb.mxu0 %v5751_v54  ;;  %1907 = vmatpush.msrb.mxu2 %v5757_v30  ;;  %v1583_v54 = vadd.f32 %v3126_v51, %v1582_v47  ;;  %vm1565_vm6 = vweird.f32 %v1559_v23  ;;  %vm1606_vm11 = vmor %vm1604_vm10, %vm1605_vm9  ;;  %v6996_v47 = vld [vmem:[%s8682_s5 + $0xf0] sm:$0xff] }
 0x32b   :  { %3135 = vtanh.f32 %v1554_v52  ;;  %v9411_v52 = vld [vmem:[#allocation38_spill] sm:$0xff] }
 0x32c   :  { %1868 = vmatpush.msrb.mxu0 %v5763_v45  ;;  %1908 = vmatpush.msrb.mxu2 %v5769_v22  ;;  %v1590_v45 = vand.u32 2147483648, %v6797_v21  ;;  %v1600_v22 = vmul.f32 %v6819_v63, %v6806_v57 }
 0x32e   :  { %1869 = vmatpush.msrb.mxu0 %v5776_v1  ;;  %1909 = vmatpush.msrb.mxu2 %v5782_v18  ;;  %v1588_v1 = vand.u32 2147483647, %v6797_v21  ;;  %v1591_v10 = vor.u32 1.1754944e-38, %v1590_v45  ;;  %v1601_v2 = vsub.f32 1.0, %v1600_v22  ;;  %v7024_v45 = vld [vmem:[%s8682_s5 + $0xb0] sm:$0xff]  ;;  %v9413_v22 = vld [vmem:[#allocation42_spill] sm:$0xff] }
 0x330   :  { %v3134_v32 = vpop.eup %3133  ;;  %1870 = vmatpush.msrb.mxu0 %v5791_v33  ;;  %1910 = vmatpush.msrb.mxu2 %v5797_v39  ;;  %v1571_v39 = vand.u32 2147483648, %v1559_v23  ;;  %vm1589_vm5 = vcmp.eq.f32.partialorder %v1588_v1, 8.507059e+37  ;;  %v1602_v48 = vmul.f32 %v6819_v63, %v1601_v2  ;;  %v7031_v1 = vld [vmem:[%s8682_s5 + $0x80] sm:$0xff]  ;;  %v7038_v33 = vld [vmem:[%s8682_s5 + $0x90] sm:$0xff] }
 0x331   :  { %v1561_v30 = vmul.f32 %v3134_v32, %v1559_v23  ;;  %1735 = vmatmul.f32.vlgmr.msra.gmra.mxu0 %v6808_v43  ;;  %1775 = vmatmul.f32.vlgmr.msra.gmra.mxu2 %v6808_v43  ;;  %vm1566_vm4 = vweird.f32 %v3134_v32  ;;  %v3136_v5 = vpop.eup %3135  ;;  %v7059_v2 = vld [vmem:[%s8682_s5 + $0x40] sm:$0xff] }
 0x332   :  { %1871 = vmatpush.msrb.mxu0 %v5811_v46  ;;  %1911 = vmatpush.msrb.mxu2 %v5817_v26  ;;  %v1587_v46 = vsel %vm6833_vm3, %v3126_v51, %v1583_v54  ;;  %v1569_v26 = vand.u32 2147483647, %v1559_v23  ;;  %vm1567_vm7 = vmor %vm1565_vm6, %vm1566_vm4  ;;  %v6961_v51 = vld [vmem:[%s8682_s5 + $0x120] sm:$0xff] }
 0x333   :  { %v1562_v18 = vsub.f32 1.0, %v1561_v30  ;;  %v1592_v3 = vsel %vm1589_vm5, %v1591_v10, %v1587_v46  ;;  %v6989_v23 = vld [vmem:[%s8682_s5 + $0xe0] sm:$0xff]  ;;  %v9412_v30 = vld [vmem:[#allocation41_spill] sm:$0xff] }
 0x334   :  { %1872 = vmatpush.msrb.mxu0 %v5830_v6  ;;  %1912 = vmatpush.msrb.mxu2 %v5836_v40  ;;  %v1572_v6 = vor.u32 1.1754944e-38, %v1571_v39  ;;  %vm1570_vm8 = vcmp.eq.f32.partialorder %v1569_v26, 8.507059e+37  ;;  %v7017_v54 = vld [vmem:[%s8682_s5 + $0xa0] sm:$0xff]  ;;  %v7052_v26 = vld [vmem:[%s8682_s5 + $0x70] sm:$0xff] }
 0x335   :  { %v1563_v20 = vmul.f32 %v3134_v32, %v1562_v18  ;;  %v9414_v18 = vld [vmem:[#allocation45_spill] sm:$0xff]  ;;  %v9415_v39 = vld [vmem:[#allocation47_spill] sm:$0xff] }
 0x336   :  { %1873 = vmatpush.msrb.mxu0 %v5846_v25  ;;  %1913 = vmatpush.msrb.mxu2 %v5852_v28  ;;  %v1614_v25 = vmul.f32 %v1592_v3, %v5894_v8  ;;  %v7045_v46 = vld [vmem:[%s8682_s5 + $0x60] sm:$0xff]  ;;  %v9417_v10 = vld [vmem:[#allocation53_spill] sm:$0xff] }
 0x337   :  { %v1564_v21 = vadd.f32 %v3134_v32, %v1563_v20  ;;  %v9416_v20 = vld [vmem:[#allocation51_spill] sm:$0xff]  ;;  %v7066_v3 = vld [vmem:[%s8682_s5 + $0x50] sm:$0xff] }
 0x338   :  { %1874 = vmatpush.msrb.mxu0 %v5859_v17  ;;  %1914 = vmatpush.msrb.mxu2 %v5865_v58  ;;  %v1603_v58 = vadd.f32 %v6819_v63, %v1602_v48  ;;  %v7080_v48 = vld [vmem:[%s8682_s5 + $0x30] sm:$0xff] }
 0x339   :  { %v1568_v40 = vsel %vm1567_vm7, %v3134_v32, %v1564_v21  ;;  %v9410_v32 = vld [vmem:[#allocation37_spill] sm:$0xff] }
 0x33a   :  { %v1573_v50 = vsel %vm1570_vm8, %v1572_v6, %v1568_v40  ;;  %1875 = vmatpush.msrb.mxu0 %v5872_v56  ;;  %1915 = vmatpush.msrb.mxu2 %v5878_v4  ;;  %v1610_v56 = vand.u32 2147483648, %v6806_v57  ;;  %v1608_v4 = vand.u32 2147483647, %v6806_v57  ;;  %v6975_v57 = vld [vmem:[%s8682_s5 + $0x100] sm:$0xff]  ;;  %v9418_v21 = vld [vmem:[#allocation57_spill] sm:$0xff]  ;;  %v9419_v6 = vld [vmem:[#allocation58_spill] sm:$0xff] }
 0x33b   :  { %v1615_v28 = vmul.f32 %v3136_v5, %v1573_v50  ;;  %v7073_v40 = vld [vmem:[%s8682_s5 + $0x20] sm:$0xff]  ;;  %v9420_v5 = vld [vmem:[#allocation61_spill] sm:$0xff]  ;;  %v9421_v50 = vld [vmem:[#allocation62_spill] sm:$0xff] }
 0x33c   :  { %1876 = vmatpush.msrb.mxu0 %v5885_v0  ;;  %1916 = vmatpush.msrb.mxu2 %v5891_v24  ;;  %v1607_v0 = vsel %vm1606_vm11, %v6819_v63, %v1603_v58  ;;  %v1611_v24 = vor.u32 1.1754944e-38, %v1610_v56  ;;  %vm1609_vm12 = vcmp.eq.f32.partialorder %v1608_v4, 8.507059e+37  ;;  %v7003_v63 = vld [vmem:[%s8682_s5 + $0xc0] sm:$0xff]  ;;  %v7094_v58 = vld [vmem:[%s8682_s5 + $0x10] sm:$0xff]  ;;  %v9423_v56 = vld [vmem:[#allocation68_spill] sm:$0xff] }
 0x33d   :  { %v6851_v17 = vadd.f32 %v1615_v28, %v1614_v25  ;;  %v7087_v25 = vld [vmem:[%s8682_s5] sm:$0xff]  ;;  %v9422_v28 = vld [vmem:[#allocation66_spill] sm:$0xff]  ;;  %v9424_v4 = vld [vmem:[#allocation72_spill] sm:$0xff] }
 0x33e   :  { %1877 = vmatpush.msrb.mxu0 %v5901_v62  ;;  %1917 = vmatpush.msrb.mxu2 %v5907_v16  ;;  %v1612_v62 = vsel %vm1609_vm12, %v1611_v24, %v1607_v0  ;;  %v9425_v0 = vld [vmem:[#allocation74_spill] sm:$0xff]  ;;  %v9426_v24 = vld [vmem:[#allocation77_spill] sm:$0xff] }
 0x33f   :  { %3137 = vtanh.f32 %v6851_v17 }
 0x340   :  { %1878 = vmatpush.msrb.mxu0 %v5917_v31  ;;  %1918 = vmatpush.msrb.mxu2 %v5923_v14  ;;  %v6877_v31 = vld [vmem:[%s8682_s5 + $0x1e0] sm:$0xff]  ;;  %v6883_v14 = vld [vmem:[%s8682_s5 + $0x1f0] sm:$0xff] }
 0x342   :  { %1879 = vmatpush.msrb.mxu0 %v5930_v9  ;;  %1919 = vmatpush.msrb.mxu2 %v5936_v36  ;;  %v6891_v9 = vld [vmem:[%s8682_s5 + $0x1c0] sm:$0xff]  ;;  %v6898_v36 = vld [vmem:[%s8682_s5 + $0x1d0] sm:$0xff] }
 0x344   :  { %1880 = vmatpush.msrb.mxu0 %v5942_v7  ;;  %1920 = vmatpush.msrb.mxu2 %v5948_v13  ;;  %v6905_v7 = vld [vmem:[%s8682_s5 + $0x1a0] sm:$0xff]  ;;  %v6912_v13 = vld [vmem:[%s8682_s5 + $0x1b0] sm:$0xff] }
 0x345   :  { %v3138_v8 = vpop.eup %3137 }
 0x346   :  { %v6868_v16 = vmul.f32 %v3138_v8, %v1612_v62  ;;  %1881 = vmatpush.msrb.mxu0 %v5956_v38  ;;  %1921 = vmatpush.msrb.mxu2 %v5962_v12  ;;  %v6919_v38 = vld [vmem:[%s8682_s5 + $0x180] sm:$0xff]  ;;  %v6926_v12 = vld [vmem:[%s8682_s5 + $0x190] sm:$0xff]  ;;  %v9428_v62 = vld [vmem:[#allocation22_spill] sm:$0xff] }
 0x347   :  { %v9427_v8 = vld [vmem:[#allocation21_spill] sm:$0xff] }
 0x348   :  { %1635 = vmatmul.f32.vlgmr.msrb.gmra.mxu3 %v6868_v16  ;;  %1675 = vmatmul.f32.vlgmr.msrb.gmra.mxu1 %v6868_v16 }
 0x349   :  { %1847 = vmatpush.msrb.mxu3 %v6877_v31  ;;  %1887 = vmatpush.msrb.mxu1 %v6883_v14 }
 0x34a   :  { %1882 = vmatpush.msrb.mxu0 %v5972_v59  ;;  %1922 = vmatpush.msrb.mxu2 %v5978_v34  ;;  %v6934_v59 = vld [vmem:[%s8682_s5 + $0x160] sm:$0xff]  ;;  %v6940_v34 = vld [vmem:[%s8682_s5 + $0x170] sm:$0xff] }
 0x34b   :  { %1848 = vmatpush.msrb.mxu3 %v6891_v9  ;;  %1883 = vmatmul.f32.vlgmr.msrb.gmra.mxu0 %v6868_v16 }
 0x34c   :  { %1888 = vmatpush.msrb.mxu1 %v6898_v36  ;;  %1923 = vmatmul.f32.vlgmr.msrb.gmra.mxu2 %v6868_v16 }
 0x34d   :  { %1849 = vmatpush.msrb.mxu3 %v6905_v7  ;;  %2014 = vmatpush.msra.mxu0 %v5989_v37  ;;  %v9401_v37 = vld [vmem:[#allocation18_spill] sm:$0xff] }
 0x34e   :  { %1889 = vmatpush.msrb.mxu1 %v6912_v13  ;;  %2054 = vmatpush.msra.mxu2 %v5996_v49  ;;  %v6947_v49 = vld [vmem:[%s8682_s5 + $0x140] sm:$0xff] }
 0x34f   :  { %1850 = vmatpush.msrb.mxu3 %v6919_v38  ;;  %2015 = vmatpush.msra.mxu0 %v6003_v19  ;;  %v9402_v19 = vld [vmem:[#allocation19_spill] sm:$0xff] }
 0x350   :  { %1890 = vmatpush.msrb.mxu1 %v6926_v12  ;;  %1715 = vmatmul.f32.vlgmr.msra.gmra.mxu3 %v6868_v16 }
 0x351   :  { %1755 = vmatmul.f32.vlgmr.msra.gmra.mxu1 %v6868_v16  ;;  %1851 = vmatpush.msrb.mxu3 %v6934_v59 }
 0x352   :  { %1891 = vmatpush.msrb.mxu1 %v6940_v34  ;;  %2055 = vmatpush.msra.mxu2 %v9401_v37  ;;  %v9429_v37 = vld [vmem:[#allocation78_spill] sm:$0xff] }
 0x353   :  { %1852 = vmatpush.msrb.mxu3 %v6947_v49  ;;  %2016 = vmatpush.msra.mxu0 %v9402_v19  ;;  %v9430_v19 = vld [vmem:[#allocation25_spill] sm:$0xff] }
 0x354   :  { %1892 = vmatpush.msrb.mxu1 %v6954_v42  ;;  %2056 = vmatpush.msra.mxu2 %v9403_v29  ;;  %v9431_v29 = vld [vmem:[#allocation81_spill] sm:$0xff] }
 0x355   :  { %1853 = vmatpush.msrb.mxu3 %v6961_v51  ;;  %2017 = vmatpush.msra.mxu0 %v9404_v27  ;;  %v9432_v27 = vld [vmem:[#allocation26_spill] sm:$0xff] }
 0x356   :  { %1893 = vmatpush.msrb.mxu1 %v6968_v60  ;;  %2057 = vmatpush.msra.mxu2 %v9405_v41  ;;  %v9434_v41 = vld [vmem:[#allocation29_spill] sm:$0xff] }
 0x357   :  { %1854 = vmatpush.msrb.mxu3 %v6975_v57  ;;  %2018 = vmatpush.msra.mxu0 %v9406_v55  ;;  %v9435_v55 = vld [vmem:[#allocation30_spill] sm:$0xff] }
 0x358   :  { %1894 = vmatpush.msrb.mxu1 %v6982_v11  ;;  %2058 = vmatpush.msra.mxu2 %v9407_v53  ;;  %v9436_v53 = vld [vmem:[#allocation87_spill] sm:$0xff] }
 0x359   :  { %1855 = vmatpush.msrb.mxu3 %v6989_v23  ;;  %2019 = vmatpush.msra.mxu0 %v9408_v61  ;;  %v9437_v61 = vld [vmem:[#allocation35_spill] sm:$0xff] }
 0x35a   :  { %1895 = vmatpush.msrb.mxu1 %v6996_v47  ;;  %2059 = vmatpush.msra.mxu2 %v9409_v15  ;;  %v9438_v15 = vld [vmem:[#allocation91_spill] sm:$0xff] }
 0x35b   :  { %1856 = vmatpush.msrb.mxu3 %v7003_v63  ;;  %2020 = vmatpush.msra.mxu0 %v9410_v32  ;;  %v9439_v32 = vld [vmem:[#allocation36_spill] sm:$0xff] }
 0x35c   :  { %1896 = vmatpush.msrb.mxu1 %v7010_v44  ;;  %2060 = vmatpush.msra.mxu2 %v9411_v52  ;;  %v9440_v52 = vld [vmem:[#allocation93_spill] sm:$0xff] }
 0x35d   :  { %1857 = vmatpush.msrb.mxu3 %v7017_v54  ;;  %2021 = vmatpush.msra.mxu0 %v9412_v30  ;;  %v9441_v30 = vld [vmem:[#allocation39_spill] sm:$0xff] }
 0x35e   :  { %1897 = vmatpush.msrb.mxu1 %v7024_v45  ;;  %2061 = vmatpush.msra.mxu2 %v9413_v22  ;;  %v9442_v22 = vld [vmem:[#allocation96_spill] sm:$0xff] }
 0x35f   :  { %1858 = vmatpush.msrb.mxu3 %v7031_v1  ;;  %2022 = vmatpush.msra.mxu0 %v9414_v18  ;;  %v9443_v18 = vld [vmem:[#allocation40_spill] sm:$0xff] }
 0x360   :  { %1898 = vmatpush.msrb.mxu1 %v7038_v33  ;;  %2062 = vmatpush.msra.mxu2 %v9415_v39  ;;  %v9444_v39 = vld [vmem:[#allocation97_spill] sm:$0xff] }
 0x361   :  { %1859 = vmatpush.msrb.mxu3 %v7045_v46  ;;  %2023 = vmatpush.msra.mxu0 %v9416_v20  ;;  %v9445_v20 = vld [vmem:[#allocation43_spill] sm:$0xff] }
 0x362   :  { %1899 = vmatpush.msrb.mxu1 %v7052_v26  ;;  %2063 = vmatpush.msra.mxu2 %v9417_v10  ;;  %v9446_v10 = vld [vmem:[#allocation44_spill] sm:$0xff] }
 0x363   :  { %1860 = vmatpush.msrb.mxu3 %v7059_v2  ;;  %2024 = vmatpush.msra.mxu0 %v9418_v21  ;;  %v9447_v21 = vld [vmem:[#allocation49_spill] sm:$0xff] }
 0x364   :  { %1900 = vmatpush.msrb.mxu1 %v7066_v3  ;;  %2064 = vmatpush.msra.mxu2 %v9419_v6  ;;  %v9448_v6 = vld [vmem:[#allocation50_spill] sm:$0xff] }
 0x365   :  { %1861 = vmatpush.msrb.mxu3 %v7073_v40  ;;  %2025 = vmatpush.msra.mxu0 %v9420_v5  ;;  %v9449_v5 = vld [vmem:[#allocation55_spill] sm:$0xff] }
 0x366   :  { %1901 = vmatpush.msrb.mxu1 %v7080_v48  ;;  %2065 = vmatpush.msra.mxu2 %v9421_v50  ;;  %v9450_v50 = vld [vmem:[#allocation56_spill] sm:$0xff] }
 0x367   :  { %1862 = vmatpush.msrb.mxu3 %v7087_v25  ;;  %2026 = vmatpush.msra.mxu0 %v9422_v28  ;;  %v9451_v28 = vld [vmem:[#allocation59_spill] sm:$0xff] }
 0x368   :  { %1902 = vmatpush.msrb.mxu1 %v7094_v58  ;;  %1863 = vmatmul.f32.vlgmr.msrb.gmra.mxu3 %v6868_v16 }
 0x369   :  { %1903 = vmatmul.f32.vlgmr.msrb.gmra.mxu1 %v6868_v16  ;;  %2066 = vmatpush.msra.mxu2 %v9423_v56  ;;  %v9433_v16 = vld [vmem:[#allocation82_spill] sm:$0xff]  ;;  %v9452_v56 = vld [vmem:[#allocation60_spill] sm:$0xff] }
 0x36a   :  { %2027 = vmatpush.msra.mxu0 %v9424_v4  ;;  %1994 = vmatpush.msra.mxu3 %v9425_v0  ;;  %v9453_v4 = vld [vmem:[#allocation64_spill] sm:$0xff]  ;;  %v9454_v0 = vld [vmem:[#allocation65_spill] sm:$0xff] }
 0x36b   :  { %2067 = vmatpush.msra.mxu2 %v9426_v24  ;;  %2034 = vmatpush.msra.mxu1 %v9427_v8  ;;  %v9455_v24 = vld [vmem:[#allocation70_spill] sm:$0xff]  ;;  %v9456_v8 = vld [vmem:[#allocation71_spill] sm:$0xff] }
 0x36c   :  { %2028 = vmatpush.msra.mxu0 %v9428_v62  ;;  %1995 = vmatpush.msra.mxu3 %v9429_v37  ;;  %v9457_v62 = vld [vmem:[#allocation75_spill] sm:$0xff]  ;;  %v9458_v37 = vld [vmem:[#allocation76_spill] sm:$0xff] }
 0x36d   :  { %2068 = vmatpush.msra.mxu2 %v9430_v19  ;;  %2035 = vmatpush.msra.mxu1 %v9431_v29  ;;  %v9459_v19 = vld [vmem:[#allocation79_spill] sm:$0xff]  ;;  %v9460_v29 = vld [vmem:[#allocation80_spill] sm:$0xff] }
 0x36e   :  { %2029 = vmatpush.msra.mxu0 %v9432_v27  ;;  %1996 = vmatpush.msra.mxu3 %v9433_v16  ;;  %v9461_v27 = vld [vmem:[#allocation84_spill] sm:$0xff]  ;;  %v9462_v16 = vld [vmem:[#allocation85_spill] sm:$0xff] }
 0x36f   :  { %2069 = vmatpush.msra.mxu2 %v9434_v41  ;;  %2036 = vmatpush.msra.mxu1 %v9437_v61  ;;  %v9463_v41 = vld [vmem:[#allocation89_spill] sm:$0xff]  ;;  %v9466_v61 = vld [vmem:[#allocation95_spill] sm:$0xff] }
 0x370   :  { %2094 = vmatpush.msrb.mxu0 %v9435_v55  ;;  %1997 = vmatpush.msra.mxu3 %v9439_v32  ;;  %v9464_v55 = vld [vmem:[#allocation90_spill] sm:$0xff]  ;;  %v9468_v32 = vld [vmem:[#allocation99_spill] sm:$0xff] }
 0x371   :  { %2134 = vmatpush.msrb.mxu2 %v9436_v53  ;;  %2037 = vmatpush.msra.mxu1 %v9441_v30  ;;  %v9465_v53 = vld [vmem:[#allocation94_spill] sm:$0xff]  ;;  %v9470_v30 = vld [vmem:[#allocation48_spill] sm:$0xff] }
 0x372   :  { %2095 = vmatpush.msrb.mxu0 %v9438_v15  ;;  %1998 = vmatpush.msra.mxu3 %v9443_v18  ;;  %v9467_v15 = vld [vmem:[#allocation98_spill] sm:$0xff] }
 0x373   :  { %2135 = vmatpush.msrb.mxu2 %v9440_v52  ;;  %2038 = vmatpush.msra.mxu1 %v9445_v20  ;;  %v9469_v52 = vld [vmem:[#allocation32_spill] sm:$0xff]  ;;  %v9472_v18 = vld [vmem:[#allocation34_spill] sm:$0xff] }
 0x374   :  { %2096 = vmatpush.msrb.mxu0 %v9442_v22  ;;  %1999 = vmatpush.msra.mxu3 %v9447_v21  ;;  %v9471_v22 = vld [vmem:[#allocation46_spill] sm:$0xff]  ;;  %v9474_v20 = vld [vmem:[#allocation4_spill] sm:$0xff] }
 0x375   :  { %2136 = vmatpush.msrb.mxu2 %v9444_v39  ;;  %2039 = vmatpush.msra.mxu1 %v9449_v5  ;;  %v9473_v39 = vld [vmem:[#allocation3_spill] sm:$0xff]  ;;  %v9476_v21 = vld [vmem:[#allocation6_spill] sm:$0xff]  ;;  %v9478_v5 = vld [vmem:[#allocation8_spill] sm:$0xff] }
 0x376   :  { %2097 = vmatpush.msrb.mxu0 %v9446_v10  ;;  %2000 = vmatpush.msra.mxu3 %v9451_v28  ;;  %v9475_v10 = vld [vmem:[#allocation5_spill] sm:$0xff]  ;;  %v9480_v28 = vld [vmem:[#allocation10_spill] sm:$0xff] }
 0x377   :  { %2137 = vmatpush.msrb.mxu2 %v9448_v6  ;;  %2040 = vmatpush.msra.mxu1 %v9453_v4  ;;  %v9477_v6 = vld [vmem:[#allocation7_spill] sm:$0xff]  ;;  %v9482_v4 = vld [vmem:[#allocation12_spill] sm:$0xff] }
 0x378   :  { %2098 = vmatpush.msrb.mxu0 %v9450_v50  ;;  %2001 = vmatpush.msra.mxu3 %v9455_v24  ;;  %v9479_v50 = vld [vmem:[#allocation9_spill] sm:$0xff]  ;;  %v9484_v24 = vld [vmem:[#allocation107_spill] sm:$0xff] }
 0x379   :  { %2138 = vmatpush.msrb.mxu2 %v9452_v56  ;;  %2041 = vmatpush.msra.mxu1 %v9457_v62  ;;  %v9481_v56 = vld [vmem:[#allocation11_spill] sm:$0xff]  ;;  %v9486_v62 = vld [vmem:[#allocation109_spill] sm:$0xff] }
 0x37a   :  { %2099 = vmatpush.msrb.mxu0 %v9454_v0  ;;  %2002 = vmatpush.msra.mxu3 %v9459_v19  ;;  %v9483_v0 = vld [vmem:[#allocation106_spill] sm:$0xff]  ;;  %v9488_v19 = vld [vmem:[#allocation111_spill] sm:$0xff] }
 0x37b   :  { %2139 = vmatpush.msrb.mxu2 %v9456_v8  ;;  %2042 = vmatpush.msra.mxu1 %v9461_v27  ;;  %v9485_v8 = vld [vmem:[#allocation108_spill] sm:$0xff]  ;;  %v9490_v27 = vld [vmem:[#allocation113_spill] sm:$0xff] }
 0x37c   :  { %2100 = vmatpush.msrb.mxu0 %v9458_v37  ;;  %2003 = vmatpush.msra.mxu3 %v9463_v41  ;;  %v9487_v37 = vld [vmem:[#allocation110_spill] sm:$0xff]  ;;  %v9492_v41 = vld [vmem:[#allocation115_spill] sm:$0xff] }
 0x37d   :  { %2140 = vmatpush.msrb.mxu2 %v9460_v29  ;;  %2043 = vmatpush.msra.mxu1 %v9465_v53  ;;  %v9489_v29 = vld [vmem:[#allocation112_spill] sm:$0xff]  ;;  %v9494_v53 = vld [vmem:[#allocation117_spill] sm:$0xff] }
 0x37e   :  { %2101 = vmatpush.msrb.mxu0 %v9462_v16  ;;  %2004 = vmatpush.msra.mxu3 %v9467_v15  ;;  %v9491_v16 = vld [vmem:[#allocation114_spill] sm:$0xff]  ;;  %v9496_v15 = vld [vmem:[#allocation119_spill] sm:$0xff] }
 0x37f   :  { %2141 = vmatpush.msrb.mxu2 %v9464_v55  ;;  %2044 = vmatpush.msra.mxu1 %v9469_v52  ;;  %v9493_v55 = vld [vmem:[#allocation116_spill] sm:$0xff]  ;;  %v9498_v52 = vld [vmem:[#allocation121_spill] sm:$0xff] }
 0x380   :  { %2102 = vmatpush.msrb.mxu0 %v9466_v61  ;;  %2005 = vmatpush.msra.mxu3 %v9471_v22  ;;  %v9495_v61 = vld [vmem:[#allocation118_spill] sm:$0xff]  ;;  %v9500_v22 = vld [vmem:[#allocation123_spill] sm:$0xff] }
 0x381   :  { %2142 = vmatpush.msrb.mxu2 %v9468_v32  ;;  %2045 = vmatpush.msra.mxu1 %v9473_v39  ;;  %v9497_v32 = vld [vmem:[#allocation120_spill] sm:$0xff]  ;;  %v9502_v39 = vld [vmem:[#allocation125_spill] sm:$0xff] }
 0x382   :  { %2103 = vmatpush.msrb.mxu0 %v9470_v30  ;;  %2006 = vmatpush.msra.mxu3 %v9475_v10  ;;  %v9499_v30 = vld [vmem:[#allocation122_spill] sm:$0xff]  ;;  %v9504_v10 = vld [vmem:[#allocation127_spill] sm:$0xff] }
 0x383   :  { %2143 = vmatpush.msrb.mxu2 %v9472_v18  ;;  %2046 = vmatpush.msra.mxu1 %v9477_v6  ;;  %v9501_v18 = vld [vmem:[#allocation124_spill] sm:$0xff]  ;;  %v9506_v6 = vld [vmem:[#allocation129_spill] sm:$0xff] }
 0x384   :  { %2104 = vmatpush.msrb.mxu0 %v9474_v20  ;;  %2007 = vmatpush.msra.mxu3 %v9479_v50  ;;  %v9503_v20 = vld [vmem:[#allocation126_spill] sm:$0xff]  ;;  %v9508_v50 = vld [vmem:[#allocation131_spill] sm:$0xff] }
 0x385   :  { %2144 = vmatpush.msrb.mxu2 %v9476_v21  ;;  %2047 = vmatpush.msra.mxu1 %v9481_v56  ;;  %v9505_v21 = vld [vmem:[#allocation128_spill] sm:$0xff]  ;;  %v9510_v56 = vld [vmem:[#allocation133_spill] sm:$0xff] }
 0x386   :  { %2105 = vmatpush.msrb.mxu0 %v9478_v5  ;;  %2008 = vmatpush.msra.mxu3 %v9483_v0  ;;  %v9507_v5 = vld [vmem:[#allocation130_spill] sm:$0xff]  ;;  %v9512_v0 = vld [vmem:[#allocation135_spill] sm:$0xff] }
 0x387   :  { %2145 = vmatpush.msrb.mxu2 %v9480_v28  ;;  %2048 = vmatpush.msra.mxu1 %v9485_v8  ;;  %v9509_v28 = vld [vmem:[#allocation132_spill] sm:$0xff]  ;;  %v9514_v8 = vld [vmem:[#allocation137_spill] sm:$0xff] }
 0x388   :  { %2106 = vmatpush.msrb.mxu0 %v9482_v4  ;;  %2009 = vmatpush.msra.mxu3 %v9487_v37  ;;  %v9511_v4 = vld [vmem:[#allocation134_spill] sm:$0xff]  ;;  %v9516_v37 = vld [vmem:[#allocation139_spill] sm:$0xff] }
 0x389   :  { %2146 = vmatpush.msrb.mxu2 %v9484_v24  ;;  %2049 = vmatpush.msra.mxu1 %v9489_v29  ;;  %v9513_v24 = vld [vmem:[#allocation136_spill] sm:$0xff]  ;;  %v9518_v29 = vld [vmem:[#allocation141_spill] sm:$0xff] }
 0x38a   :  { %2107 = vmatpush.msrb.mxu0 %v9486_v62  ;;  %2074 = vmatpush.msrb.mxu3 %v9491_v16  ;;  %v9515_v62 = vld [vmem:[#allocation138_spill] sm:$0xff]  ;;  %v9520_v16 = vld [vmem:[#allocation143_spill] sm:$0xff] }
 0x38b   :  { %2147 = vmatpush.msrb.mxu2 %v9488_v19  ;;  %2114 = vmatpush.msrb.mxu1 %v9493_v55  ;;  %v9517_v19 = vld [vmem:[#allocation140_spill] sm:$0xff]  ;;  %v9522_v55 = vld [vmem:[#allocation145_spill] sm:$0xff] }
 0x38c   :  { %2108 = vmatpush.msrb.mxu0 %v9490_v27  ;;  %2075 = vmatpush.msrb.mxu3 %v9495_v61  ;;  %v9519_v27 = vld [vmem:[#allocation142_spill] sm:$0xff]  ;;  %v9524_v61 = vld [vmem:[#allocation147_spill] sm:$0xff] }
 0x38d   :  { %2148 = vmatpush.msrb.mxu2 %v9492_v41  ;;  %2115 = vmatpush.msrb.mxu1 %v9497_v32  ;;  %v9521_v41 = vld [vmem:[#allocation144_spill] sm:$0xff] }
 0x38e   :  { %2109 = vmatpush.msrb.mxu0 %v9494_v53  ;;  %2076 = vmatpush.msrb.mxu3 %v9498_v52  ;;  %v9523_v53 = vld [vmem:[#allocation146_spill] sm:$0xff] }
 0x38f   :  { %2149 = vmatpush.msrb.mxu2 %v9496_v15  ;;  %2116 = vmatpush.msrb.mxu1 %v9499_v30  ;;  %v9525_v15 = vld [vmem:[#allocation148_spill] sm:$0xff] }
 0x390   :  { %2077 = vmatpush.msrb.mxu3 %v9500_v22  ;;  %v9526_v22 = vld [vmem:[#allocation13_spill] sm:$0xff] }
 0x391   :  { %2117 = vmatpush.msrb.mxu1 %v9501_v18 }
 0x392   :  { %2078 = vmatpush.msrb.mxu3 %v9502_v39 }
 0x393   :  { %2118 = vmatpush.msrb.mxu1 %v9503_v20 }
 0x394   :  { %2079 = vmatpush.msrb.mxu3 %v9504_v10 }
 0x395   :  { %2119 = vmatpush.msrb.mxu1 %v9505_v21 }
 0x396   :  { %2080 = vmatpush.msrb.mxu3 %v9506_v6  ;;  %v9527_v6 = vld [vmem:[#allocation14_spill] sm:$0xff] }
 0x397   :  { %2120 = vmatpush.msrb.mxu1 %v9507_v5 }
 0x398   :  { %2081 = vmatpush.msrb.mxu3 %v9508_v50 }
 0x399   :  { %2121 = vmatpush.msrb.mxu1 %v9509_v28 }
 0x39a   :  { %2082 = vmatpush.msrb.mxu3 %v9510_v56  ;;  %v9528_v56 = vld [vmem:[#allocation15_spill] sm:$0xff] }
 0x39b   :  { %2122 = vmatpush.msrb.mxu1 %v9511_v4 }
 0x39c   :  { %2083 = vmatpush.msrb.mxu3 %v9512_v0 }
 0x39d   :  { %2123 = vmatpush.msrb.mxu1 %v9513_v24 }
 0x39e   :  { %2084 = vmatpush.msrb.mxu3 %v9514_v8 }
 0x39f   :  { %2124 = vmatpush.msrb.mxu1 %v9515_v62 }
 0x3a0   :  { %2085 = vmatpush.msrb.mxu3 %v9516_v37 }
 0x3a1   :  { %2125 = vmatpush.msrb.mxu1 %v9517_v19 }
 0x3a2   :  { %2086 = vmatpush.msrb.mxu3 %v9518_v29 }
 0x3a3   :  { %2126 = vmatpush.msrb.mxu1 %v9519_v27  ;;  %v9529_v27 = vld [vmem:[#allocation69_spill] sm:$0xff] }
 0x3a4   :  { %2087 = vmatpush.msrb.mxu3 %v9520_v16 }
 0x3a5   :  { %2127 = vmatpush.msrb.mxu1 %v9521_v41 }
 0x3a6   :  { %2088 = vmatpush.msrb.mxu3 %v9522_v55  ;;  %v1656_v32 = vpop.f32.mrf.mxu0 }
 0x3a7   :  { %2128 = vmatpush.msrb.mxu1 %v9523_v53 }
 0x3a8   :  { %2089 = vmatpush.msrb.mxu3 %v9524_v61 }
 0x3a9   :  { %2129 = vmatpush.msrb.mxu1 %v9525_v15 }
 0x3ac   :  { %v1696_v30 = vpop.f32.mrf.mxu2 }
 0x3ae   :  { %v1736_v21 = vpop.f32.mrf.mxu0 }
 0x3b4   :  { %v1776_v0 = vpop.f32.mrf.mxu2 }
 0x3c5   :  { %v1676_v52 = vpop.f32.mrf.mxu1 }
 0x3c6   :  { %v1677_v18 = vadd.f32 %v1676_v52, %v9526_v22 }
 0x3c8   :  { %v1697_v39 = vadd.f32 %v1696_v30, %v1677_v18  ;;  %v1884_v29 = vpop.f32.mrf.mxu0  ;;  %v9530_v30 = vld [vmem:[#allocation16_spill] sm:$0xff] }
 0x3c9   :  { %v1928_v16 = vadd.f32 %v1884_v29, %v9529_v27 }
 0x3ca   :  { %v3036_v20 = vmul.f32 -1.442695, %v1697_v39 }
 0x3cb   :  { %v1636_v10 = vpop.f32.mrf.mxu3  ;;  %v3039_v15 = vmul.f32 -1.442695, %v1928_v16 }
 0x3cc   :  { %3139 = vpow2.f32 %v3036_v20  ;;  %v1637_v5 = vadd.f32 %v1636_v10, %v9527_v6 }
 0x3ce   :  { %v1657_v50 = vadd.f32 %v1656_v32, %v1637_v5  ;;  %v1756_v28 = vpop.f32.mrf.mxu1 }
 0x3cf   :  { %v1757_v4 = vadd.f32 %v1756_v28, %v9528_v56  ;;  %v1924_v5 = vpop.f32.mrf.mxu2 }
 0x3d0   :  { %v3035_v24 = vmul.f32 -1.442695, %v1657_v50 }
 0x3d1   :  { %v1777_v8 = vadd.f32 %v1776_v0, %v1757_v4 }
 0x3d2   :  { %v3140_v62 = vpop.eup %3139  ;;  %3141 = vpow2.f32 %v3035_v24 }
 0x3d3   :  { %v1801_v37 = vadd.f32 1.0, %v3140_v62  ;;  %v3037_v19 = vmul.f32 -1.442695, %v1777_v8  ;;  %v1716_v53 = vpop.f32.mrf.mxu3  ;;  %v9531_v8 = vld [vmem:[#allocation86_spill] sm:$0xff] }
 0x3d4   :  { %v1717_v18 = vadd.f32 %v1716_v53, %v9530_v30  ;;  %v1930_v62 = vadd.f32 %v1924_v5, %v9531_v8 }
 0x3d5   :  { %3143 = vrcp.f32 %v1801_v37  ;;  %v1813_v24 = vand.u32 2147483648, %v1801_v37  ;;  %vm1807_vm14 = vweird.f32 %v1801_v37  ;;  %v1811_v29 = vand.u32 2147483647, %v1801_v37 }
 0x3d6   :  { %3145 = vpow2.f32 %v3037_v19  ;;  %v1737_v28 = vadd.f32 %v1736_v21, %v1717_v18 }
 0x3d7   :  { %vm1812_vm2 = vcmp.eq.f32.partialorder %v1811_v29, 8.507059e+37 }
 0x3d8   :  { %v3142_v41 = vpop.eup %3141 }
 0x3d9   :  { %v1782_v55 = vadd.f32 1.0, %v3142_v41 }
 0x3db   :  { %v3144_v61 = vpop.eup %3143  ;;  %3147 = vrcp.f32 %v1782_v55  ;;  %v1794_v41 = vand.u32 2147483648, %v1782_v55  ;;  %v1792_v21 = vand.u32 2147483647, %v1782_v55  ;;  %vm1788_vm1 = vweird.f32 %v1782_v55 }
 0x3dc   :  { %v1803_v32 = vmul.f32 %v3144_v61, %v1801_v37  ;;  %v3146_v52 = vpop.eup %3145  ;;  %3149 = vpow2.f32 %v3039_v15  ;;  %vm1808_vm13 = vweird.f32 %v3144_v61 }
 0x3dd   :  { %v1821_v20 = vadd.f32 1.0, %v3146_v52  ;;  %vm7208_vm15 = vmor %vm1807_vm14, %vm1808_vm13  ;;  %v1814_v52 = vor.u32 1.1754944e-38, %v1813_v24  ;;  %vm1793_vm4 = vcmp.eq.f32.partialorder %v1792_v21, 8.507059e+37  ;;  %v9534_v24 = vld [vmem:[#allocation83_spill] sm:$0xff] }
 0x3de   :  { %v1804_v39 = vsub.f32 1.0, %v1803_v32 }
 0x3df   :  { %3151 = vrcp.f32 %v1821_v20  ;;  %vm1827_vm6 = vweird.f32 %v1821_v20 }
 0x3e0   :  { %v1805_v10 = vmul.f32 %v3144_v61, %v1804_v39  ;;  %3153 = vtanh.f32 %v1737_v28  ;;  %v3040_v39 = vmul.f32 -1.442695, %v1930_v62 }
 0x3e1   :  { %v3148_v50 = vpop.eup %3147 }
 0x3e2   :  { %v1784_v4 = vmul.f32 %v3148_v50, %v1782_v55  ;;  %v1806_v0 = vadd.f32 %v3144_v61, %v1805_v10  ;;  %v3150_v27 = vpop.eup %3149  ;;  %vm1789_vm0 = vweird.f32 %v3148_v50  ;;  %3155 = vpow2.f32 %v3040_v39 }
 0x3e3   :  { %v7214_v10 = vadd.f32 1.0, %v3150_v27  ;;  %vm1790_vm3 = vmor %vm1788_vm1, %vm1789_vm0 }
 0x3e4   :  { %v1785_v19 = vsub.f32 1.0, %v1784_v4  ;;  %v1810_v32 = vsel %vm7208_vm15, %v3144_v61, %v1806_v0  ;;  %v1795_v4 = vor.u32 1.1754944e-38, %v1794_v41  ;;  %v1833_v41 = vand.u32 2147483648, %v1821_v20 }
 0x3e5   :  { %v3152_v53 = vpop.eup %3151  ;;  %v1815_v8 = vsel %vm1812_vm2, %v1814_v52, %v1810_v32  ;;  %3157 = vrcp.f32 %v7214_v10  ;;  %vm1959_vm10 = vweird.f32 %v7214_v10 }
 0x3e6   :  { %v1786_v15 = vmul.f32 %v3148_v50, %v1785_v19  ;;  %v1823_v18 = vmul.f32 %v3152_v53, %v1821_v20  ;;  %v3154_v19 = vpop.eup %3153  ;;  %v1837_v61 = vmul.f32 %v1815_v8, %v6802_v35  ;;  %vm1828_vm5 = vweird.f32 %v3152_v53 }
 0x3e7   :  { %vm1829_vm7 = vmor %vm1827_vm6, %vm1828_vm5  ;;  %v1834_v35 = vor.u32 1.1754944e-38, %v1833_v41  ;;  %v9536_v41 = vld [vmem:[#allocation73_spill] sm:$0xff] }
 0x3e8   :  { %v1787_v37 = vadd.f32 %v3148_v50, %v1786_v15  ;;  %v1824_v5 = vsub.f32 1.0, %v1823_v18  ;;  %v1831_v15 = vand.u32 2147483647, %v1821_v20 }
 0x3ea   :  { %v1791_v28 = vsel %vm1790_vm3, %v3148_v50, %v1787_v37  ;;  %v1825_v30 = vmul.f32 %v3152_v53, %v1824_v5  ;;  %v3156_v50 = vpop.eup %3155  ;;  %vm1832_vm8 = vcmp.eq.f32.partialorder %v1831_v15, 8.507059e+37  ;;  %v9535_v5 = vld [vmem:[#allocation17_spill] sm:$0xff]  ;;  %v7279_v15 = vld [vmem:[%s8682_s5 + $0x188] sm:$0xff] }
 0x3eb   :  { %v1796_v56 = vsel %vm1793_vm4, %v1795_v4, %v1791_v28  ;;  %v1864_v16 = vpop.f32.mrf.mxu3  ;;  %v7222_v21 = vpop.eup %3157  ;;  %v7226_v52 = vadd.f32 1.0, %v3156_v50  ;;  %v1467_v4 = vadd.f32 %v6808_v43, %v9535_v5  ;;  %v7239_v28 = vld [vmem:[%s8682_s5 + $0x1e8] sm:$0xff]  ;;  %v7245_v43 = vld [vmem:[%s8682_s5 + $0x1f8] sm:$0xff] }
 0x3ec   :  { %v1838_v0 = vmul.f32 %v3154_v19, %v1796_v56  ;;  %v1927_v62 = vadd.f32 %v1864_v16, %v9534_v24  ;;  %v1826_v27 = vadd.f32 %v3152_v53, %v1825_v30  ;;  %v1955_v56 = vmul.f32 %v7222_v21, %v7214_v10  ;;  %v7251_v19 = vld [vmem:[%s8682_s5 + $0x1c8] sm:$0xff]  ;;  %v7257_v16 = vld [vmem:[%s8682_s5 + $0x1d8] sm:$0xff] }
 0x3ed   :  { %v7264_v24 = vld [vmem:[%s8682_s5 + $0x1a8] sm:$0xff]  ;;  %vm1960_vm9 = vweird.f32 %v7222_v21  ;;  %v7303_v5 = vld [vmem:[%s8682_s5 + $0x178] sm:$0xff]  ;;  %vm1979_vm2 = vweird.f32 %v7226_v52 }
 0x3ee   :  { %v7219_v55 = vadd.f32 %v1838_v0, %v1837_v61  ;;  %v3038_v29 = vmul.f32 -1.442695, %v1927_v62  ;;  %v1830_v32 = vsel %vm1829_vm7, %v3152_v53, %v1826_v27  ;;  %v1956_v20 = vsub.f32 1.0, %v1955_v56  ;;  %v1904_v0 = vpop.f32.mrf.mxu1  ;;  %v7270_v62 = vld [vmem:[%s8682_s5 + $0x1b8] sm:$0xff]  ;;  %9538 = vst [vmem:[#allocation67_spill] sm:$0xff] %v7303_v5  ;;  %vm7308_vm11 = vmor %vm1959_vm10, %vm1960_vm9 }
 0x3ef   :  { %v1835_v18 = vsel %vm1832_vm8, %v1834_v35, %v1830_v32  ;;  %v1929_v50 = vadd.f32 %v1904_v0, %v9536_v41  ;;  %v7285_v32 = vld [vmem:[%s8682_s5 + $0x198] sm:$0xff]  ;;  %v7316_v0 = vld [vmem:[%s8682_s5 + $0x148] sm:$0xff] }
 0x3f0   :  { %3159 = vtanh.f32 %v7219_v55  ;;  %v1957_v61 = vmul.f32 %v7222_v21, %v1956_v20  ;;  %9541 = vst [vmem:[#allocation63_spill] sm:$0xff] %v7316_v0  ;;  %v7322_v41 = vld [vmem:[%s8682_s5 + $0x158] sm:$0xff] }
 0x3f1   :  { %3161 = vpow2.f32 %v3038_v29  ;;  %9542 = vst [vmem:[#allocation54_spill] sm:$0xff] %v7322_v41 }
 0x3f2   :  { %3163 = vrcp.f32 %v7226_v52  ;;  %v1958_v35 = vadd.f32 %v7222_v21, %v1957_v61 }
 0x3f6   :  { %v3160_v30 = vpop.eup %3159 }
 0x3f7   :  { %v3162_v39 = vpop.eup %3161  ;;  %v1841_v37 = vmul.f32 %v3160_v30, %v1835_v18  ;;  %v1965_v30 = vand.u32 2147483648, %v7214_v10 }
 0x3f8   :  { %v7230_v8 = vadd.f32 1.0, %v3162_v39  ;;  %v7273_v29 = vpop.eup %3163  ;;  %v7297_v39 = vld [vmem:[%s8682_s5 + $0x168] sm:$0xff] }
 0x3f9   :  { %2030 = vmatmul.f32.vlgmr.msra.gmra.mxu0 %v1841_v37  ;;  %2070 = vmatmul.f32.vlgmr.msra.gmra.mxu2 %v1841_v37  ;;  %v7233_v53 = vadd.f32 %v1841_v37, %v1467_v4  ;;  %v1975_v18 = vmul.f32 %v7273_v29, %v7226_v52  ;;  %9537 = vst [vmem:[#allocation52_spill] sm:$0xff] %v7297_v39  ;;  %vm1980_vm1 = vweird.f32 %v7273_v29 }
 0x3fa   :  { %3165 = vrcp.f32 %v7230_v8  ;;  %2242 = vmatpush.msra.mxu0 %v7239_v28  ;;  %2282 = vmatpush.msra.mxu2 %v7245_v43  ;;  %v1946_v61 = vand.u32 2147483648, %v7230_v8  ;;  %vm1940_vm14 = vweird.f32 %v7230_v8  ;;  %vm1981_vm3 = vmor %vm1979_vm2, %vm1980_vm1 }
 0x3fb   :  { %3167 = vtanh.f32 %v1929_v50 }
 0x3fc   :  { %2243 = vmatpush.msra.mxu0 %v7251_v19  ;;  %2283 = vmatpush.msra.mxu2 %v7257_v16 }
 0x3fe   :  { %2244 = vmatpush.msra.mxu0 %v7264_v24  ;;  %2284 = vmatpush.msra.mxu2 %v7270_v62 }
 0x400   :  { %v3166_v27 = vpop.eup %3165  ;;  %2245 = vmatpush.msra.mxu0 %v7279_v15  ;;  %2285 = vmatpush.msra.mxu2 %v7285_v32 }
 0x401   :  { %v1936_v56 = vmul.f32 %v3166_v27, %v7230_v8  ;;  %2110 = vmatmul.f32.vlgmr.msrb.gmra.mxu0 %v1841_v37  ;;  %2150 = vmatmul.f32.vlgmr.msrb.gmra.mxu2 %v1841_v37  ;;  %v1963_v37 = vand.u32 2147483647, %v7214_v10  ;;  %v1962_v10 = vsel %vm7308_vm11, %v7222_v21, %v1958_v35  ;;  %vm1941_vm12 = vweird.f32 %v3166_v27 }
 0x402   :  { %2246 = vmatpush.msra.mxu0 %v7297_v39  ;;  %2286 = vmatpush.msra.mxu2 %v7303_v5  ;;  %v1966_v5 = vor.u32 1.1754944e-38, %v1965_v30  ;;  %v1976_v39 = vsub.f32 1.0, %v1975_v18  ;;  %vm1942_vm15 = vmor %vm1940_vm14, %vm1941_vm12  ;;  %v1947_v30 = vor.u32 1.1754944e-38, %v1946_v61  ;;  %v7345_v18 = vld [vmem:[%s8682_s5 + $0x108] sm:$0xff] }
 0x403   :  { %v1937_v4 = vsub.f32 1.0, %v1936_v56  ;;  %v1944_v56 = vand.u32 2147483647, %v7230_v8  ;;  %vm1964_vm13 = vcmp.eq.f32.partialorder %v1963_v37, 8.507059e+37  ;;  %v3168_v8 = vpop.eup %3167  ;;  %v7358_v61 = vld [vmem:[%s8682_s5 + $0xe8] sm:$0xff] }
 0x404   :  { %2247 = vmatpush.msra.mxu0 %v7316_v0  ;;  %2287 = vmatpush.msra.mxu2 %v7322_v41  ;;  %v7332_v0 = vld [vmem:[%s8682_s5 + $0x128] sm:$0xff]  ;;  %v7338_v41 = vld [vmem:[%s8682_s5 + $0x138] sm:$0xff]  ;;  %v1967_v35 = vsel %vm1964_vm13, %v1966_v5, %v1962_v10  ;;  %v1977_v5 = vmul.f32 %v7273_v29, %v1976_v39 }
 0x405   :  { %v1938_v50 = vmul.f32 %v3166_v27, %v1937_v4  ;;  %v7351_v4 = vld [vmem:[%s8682_s5 + $0x118] sm:$0xff]  ;;  %vm1945_vm0 = vcmp.eq.f32.partialorder %v1944_v56, 8.507059e+37  ;;  %v7371_v39 = vld [vmem:[%s8682_s5 + $0xc8] sm:$0xff] }
 0x406   :  { %2248 = vmatpush.msra.mxu0 %v7332_v0  ;;  %2288 = vmatpush.msra.mxu2 %v7338_v41  ;;  %v7364_v10 = vld [vmem:[%s8682_s5 + $0xf8] sm:$0xff] }
 0x407   :  { %v1939_v21 = vadd.f32 %v3166_v27, %v1938_v50  ;;  %v7377_v56 = vld [vmem:[%s8682_s5 + $0xd8] sm:$0xff] }
 0x408   :  { %2249 = vmatpush.msra.mxu0 %v7345_v18  ;;  %2289 = vmatpush.msra.mxu2 %v7351_v4 }
 0x409   :  { %v1943_v37 = vsel %vm1942_vm15, %v3166_v27, %v1939_v21  ;;  %v1989_v27 = vmul.f32 %v1967_v35, %v6851_v17  ;;  %v7387_v17 = vld [vmem:[%s8682_s5 + $0xa8] sm:$0xff]  ;;  %v7393_v35 = vld [vmem:[%s8682_s5 + $0xb8] sm:$0xff] }
 0x40a   :  { %v1948_v20 = vsel %vm1945_vm0, %v1947_v30, %v1943_v37  ;;  %2250 = vmatpush.msra.mxu0 %v7358_v61  ;;  %2290 = vmatpush.msra.mxu2 %v7364_v10  ;;  %v1978_v30 = vadd.f32 %v7273_v29, %v1977_v5  ;;  %9543 = vst [vmem:[#allocation18_spill] sm:$0xff] %v7393_v35  ;;  %v1985_v37 = vand.u32 2147483648, %v7226_v52  ;;  %v7403_v5 = vld [vmem:[%s8682_s5 + $0x88] sm:$0xff] }
 0x40b   :  { %v1990_v50 = vmul.f32 %v3168_v8, %v1948_v20  ;;  %v1983_v8 = vand.u32 2147483647, %v7226_v52  ;;  %9544 = vst [vmem:[#allocation19_spill] sm:$0xff] %v7403_v5  ;;  %v7409_v20 = vld [vmem:[%s8682_s5 + $0x98] sm:$0xff]  ;;  %v7416_v52 = vld [vmem:[%s8682_s5 + $0x68] sm:$0xff] }
 0x40c   :  { %2251 = vmatpush.msra.mxu0 %v7371_v39  ;;  %2291 = vmatpush.msra.mxu2 %v7377_v56  ;;  %9545 = vst [vmem:[#allocation20_spill] sm:$0xff] %v7409_v20 }
 0x40d   :  { %v7380_v21 = vadd.f32 %v1990_v50, %v1989_v27  ;;  %v1982_v27 = vsel %vm1981_vm3, %v7273_v29, %v1978_v30  ;;  %9546 = vst [vmem:[#allocation23_spill] sm:$0xff] %v7416_v52  ;;  %v7422_v50 = vld [vmem:[%s8682_s5 + $0x78] sm:$0xff]  ;;  %vm1984_vm4 = vcmp.eq.f32.partialorder %v1983_v8, 8.507059e+37  ;;  %v7428_v29 = vld [vmem:[%s8682_s5 + $0x48] sm:$0xff] }
 0x40e   :  { %2252 = vmatpush.msra.mxu0 %v7387_v17  ;;  %2292 = vmatpush.msra.mxu2 %v7393_v35  ;;  %v7434_v30 = vld [vmem:[%s8682_s5 + $0x58] sm:$0xff] }
 0x40f   :  { %3169 = vtanh.f32 %v7380_v21  ;;  %v7448_v8 = vld [vmem:[%s8682_s5 + $0x38] sm:$0xff] }
 0x410   :  { %2253 = vmatpush.msra.mxu0 %v7403_v5  ;;  %2293 = vmatpush.msra.mxu2 %v7409_v20  ;;  %v1986_v5 = vor.u32 1.1754944e-38, %v1985_v37  ;;  %v7442_v37 = vld [vmem:[%s8682_s5 + $0x28] sm:$0xff] }
 0x412   :  { %2254 = vmatpush.msra.mxu0 %v7416_v52  ;;  %2294 = vmatpush.msra.mxu2 %v7422_v50  ;;  %v1987_v20 = vsel %vm1984_vm4, %v1986_v5, %v1982_v27  ;;  %v7458_v5 = vld [vmem:[%s8682_s5 + $0x8] sm:$0xff] }
 0x413   :  { %v7704_v27 = vld [vmem:[%s8683_s6 + $0x1c8] sm:$0xff] }
 0x414   :  { %2255 = vmatpush.msra.mxu0 %v7428_v29  ;;  %2295 = vmatpush.msra.mxu2 %v7434_v30  ;;  %9570 = vst [vmem:[#allocation22_spill] sm:$0xff] %v7704_v27 }
 0x415   :  { %v3170_v52 = vpop.eup %3169 }
 0x416   :  { %v7437_v35 = vmul.f32 %v3170_v52, %v1987_v20  ;;  %2256 = vmatpush.msra.mxu0 %v7442_v37  ;;  %2296 = vmatpush.msra.mxu2 %v7448_v8  ;;  %v7464_v20 = vld [vmem:[%s8682_s5 + $0x18] sm:$0xff]  ;;  %v7710_v52 = vld [vmem:[%s8683_s6 + $0x200] sm:$0xff] }
 0x417   :  { %9571 = vst [vmem:[#allocation78_spill] sm:$0xff] %v7710_v52 }
 0x418   :  { %2010 = vmatmul.f32.vlgmr.msra.gmra.mxu3 %v7437_v35  ;;  %2050 = vmatmul.f32.vlgmr.msra.gmra.mxu1 %v7437_v35 }
 0x419   :  { %2222 = vmatpush.msra.mxu3 %v6877_v31  ;;  %2262 = vmatpush.msra.mxu1 %v6883_v14  ;;  %v7475_v31 = vld [vmem:[%s8683_s6 + $0x3e0] sm:$0xff]  ;;  %v7482_v14 = vld [vmem:[%s8683_s6 + $0x3e8] sm:$0xff] }
 0x41a   :  { %2257 = vmatpush.msra.mxu0 %v7458_v5  ;;  %2297 = vmatpush.msra.mxu2 %v7464_v20 }
 0x41b   :  { %2223 = vmatpush.msra.mxu3 %v6891_v9  ;;  %2258 = vmatmul.f32.vlgmr.msra.gmra.mxu0 %v7437_v35  ;;  %v7489_v9 = vld [vmem:[%s8683_s6 + $0x3c0] sm:$0xff] }
 0x41c   :  { %2263 = vmatpush.msra.mxu1 %v6898_v36  ;;  %2298 = vmatmul.f32.vlgmr.msra.gmra.mxu2 %v7437_v35  ;;  %v7500_v36 = vld [vmem:[%s8683_s6 + $0x3c8] sm:$0xff] }
 0x41d   :  { %2224 = vmatpush.msra.mxu3 %v6905_v7  ;;  %2389 = vmatpush.msrb.mxu0 %v7475_v31  ;;  %v7507_v7 = vld [vmem:[%s8683_s6 + $0x3a0] sm:$0xff] }
 0x41e   :  { %2264 = vmatpush.msra.mxu1 %v6912_v13  ;;  %2429 = vmatpush.msrb.mxu2 %v7482_v14  ;;  %v7514_v13 = vld [vmem:[%s8683_s6 + $0x3a8] sm:$0xff] }
 0x41f   :  { %2225 = vmatpush.msra.mxu3 %v6919_v38  ;;  %2390 = vmatpush.msrb.mxu0 %v7489_v9  ;;  %v7521_v38 = vld [vmem:[%s8683_s6 + $0x380] sm:$0xff] }
 0x420   :  { %2265 = vmatpush.msra.mxu1 %v6926_v12  ;;  %2090 = vmatmul.f32.vlgmr.msrb.gmra.mxu3 %v7437_v35  ;;  %v7528_v12 = vld [vmem:[%s8683_s6 + $0x388] sm:$0xff] }
 0x421   :  { %2130 = vmatmul.f32.vlgmr.msrb.gmra.mxu1 %v7437_v35  ;;  %2226 = vmatpush.msra.mxu3 %v6934_v59  ;;  %v7535_v59 = vld [vmem:[%s8683_s6 + $0x360] sm:$0xff] }
 0x422   :  { %2266 = vmatpush.msra.mxu1 %v6940_v34  ;;  %2430 = vmatpush.msrb.mxu2 %v7500_v36  ;;  %v7542_v34 = vld [vmem:[%s8683_s6 + $0x368] sm:$0xff] }
 0x423   :  { %2227 = vmatpush.msra.mxu3 %v6947_v49  ;;  %2391 = vmatpush.msrb.mxu0 %v7507_v7  ;;  %v7549_v49 = vld [vmem:[%s8683_s6 + $0x340] sm:$0xff] }
 0x424   :  { %2267 = vmatpush.msra.mxu1 %v6954_v42  ;;  %2431 = vmatpush.msrb.mxu2 %v7514_v13  ;;  %9547 = vst [vmem:[#allocation24_spill] sm:$0xff] %v7549_v49  ;;  %v7556_v42 = vld [vmem:[%s8683_s6 + $0x348] sm:$0xff] }
 0x425   :  { %2228 = vmatpush.msra.mxu3 %v6961_v51  ;;  %2392 = vmatpush.msrb.mxu0 %v7521_v38  ;;  %9548 = vst [vmem:[#allocation27_spill] sm:$0xff] %v7556_v42  ;;  %v7563_v51 = vld [vmem:[%s8683_s6 + $0x320] sm:$0xff] }
 0x426   :  { %2268 = vmatpush.msra.mxu1 %v6968_v60  ;;  %2432 = vmatpush.msrb.mxu2 %v7528_v12  ;;  %9549 = vst [vmem:[#allocation28_spill] sm:$0xff] %v7563_v51  ;;  %v7570_v60 = vld [vmem:[%s8683_s6 + $0x328] sm:$0xff] }
 0x427   :  { %2229 = vmatpush.msra.mxu3 %v6975_v57  ;;  %2393 = vmatpush.msrb.mxu0 %v7535_v59  ;;  %9550 = vst [vmem:[#allocation31_spill] sm:$0xff] %v7570_v60  ;;  %v7577_v57 = vld [vmem:[%s8683_s6 + $0x300] sm:$0xff] }
 0x428   :  { %2269 = vmatpush.msra.mxu1 %v6982_v11  ;;  %2433 = vmatpush.msrb.mxu2 %v7542_v34  ;;  %9551 = vst [vmem:[#allocation33_spill] sm:$0xff] %v7577_v57  ;;  %v7584_v11 = vld [vmem:[%s8683_s6 + $0x308] sm:$0xff] }
 0x429   :  { %2230 = vmatpush.msra.mxu3 %v6989_v23  ;;  %2394 = vmatpush.msrb.mxu0 %v7549_v49  ;;  %9552 = vst [vmem:[#allocation37_spill] sm:$0xff] %v7584_v11  ;;  %v7591_v23 = vld [vmem:[%s8683_s6 + $0x2e0] sm:$0xff] }
 0x42a   :  { %2270 = vmatpush.msra.mxu1 %v6996_v47  ;;  %2434 = vmatpush.msrb.mxu2 %v7556_v42  ;;  %9553 = vst [vmem:[#allocation38_spill] sm:$0xff] %v7591_v23  ;;  %v7598_v47 = vld [vmem:[%s8683_s6 + $0x2e8] sm:$0xff] }
 0x42b   :  { %2231 = vmatpush.msra.mxu3 %v7003_v63  ;;  %2395 = vmatpush.msrb.mxu0 %v7563_v51  ;;  %9554 = vst [vmem:[#allocation41_spill] sm:$0xff] %v7598_v47  ;;  %v7605_v63 = vld [vmem:[%s8683_s6 + $0x2c0] sm:$0xff] }
 0x42c   :  { %2271 = vmatpush.msra.mxu1 %v7010_v44  ;;  %2435 = vmatpush.msrb.mxu2 %v7570_v60  ;;  %9555 = vst [vmem:[#allocation42_spill] sm:$0xff] %v7605_v63  ;;  %v7612_v44 = vld [vmem:[%s8683_s6 + $0x2c8] sm:$0xff] }
 0x42d   :  { %2232 = vmatpush.msra.mxu3 %v7017_v54  ;;  %2396 = vmatpush.msrb.mxu0 %v7577_v57  ;;  %9556 = vst [vmem:[#allocation45_spill] sm:$0xff] %v7612_v44  ;;  %v7619_v54 = vld [vmem:[%s8683_s6 + $0x2a0] sm:$0xff] }
 0x42e   :  { %2272 = vmatpush.msra.mxu1 %v7024_v45  ;;  %2436 = vmatpush.msrb.mxu2 %v7584_v11  ;;  %9557 = vst [vmem:[#allocation47_spill] sm:$0xff] %v7619_v54  ;;  %v7626_v45 = vld [vmem:[%s8683_s6 + $0x2a8] sm:$0xff] }
 0x42f   :  { %2233 = vmatpush.msra.mxu3 %v7031_v1  ;;  %2397 = vmatpush.msrb.mxu0 %v7591_v23  ;;  %9558 = vst [vmem:[#allocation51_spill] sm:$0xff] %v7626_v45  ;;  %v7633_v1 = vld [vmem:[%s8683_s6 + $0x280] sm:$0xff] }
 0x430   :  { %2273 = vmatpush.msra.mxu1 %v7038_v33  ;;  %2437 = vmatpush.msrb.mxu2 %v7598_v47  ;;  %9559 = vst [vmem:[#allocation53_spill] sm:$0xff] %v7633_v1  ;;  %v7640_v33 = vld [vmem:[%s8683_s6 + $0x288] sm:$0xff] }
 0x431   :  { %2234 = vmatpush.msra.mxu3 %v7045_v46  ;;  %2398 = vmatpush.msrb.mxu0 %v7605_v63  ;;  %9560 = vst [vmem:[#allocation57_spill] sm:$0xff] %v7640_v33  ;;  %v7647_v46 = vld [vmem:[%s8683_s6 + $0x260] sm:$0xff] }
 0x432   :  { %2274 = vmatpush.msra.mxu1 %v7052_v26  ;;  %2438 = vmatpush.msrb.mxu2 %v7612_v44  ;;  %9561 = vst [vmem:[#allocation58_spill] sm:$0xff] %v7647_v46  ;;  %v7656_v26 = vld [vmem:[%s8683_s6 + $0x268] sm:$0xff] }
 0x433   :  { %2235 = vmatpush.msra.mxu3 %v7059_v2  ;;  %2399 = vmatpush.msrb.mxu0 %v7619_v54  ;;  %9562 = vst [vmem:[#allocation61_spill] sm:$0xff] %v7656_v26  ;;  %v7662_v2 = vld [vmem:[%s8683_s6 + $0x240] sm:$0xff] }
 0x434   :  { %2275 = vmatpush.msra.mxu1 %v7066_v3  ;;  %2439 = vmatpush.msrb.mxu2 %v7626_v45  ;;  %9563 = vst [vmem:[#allocation62_spill] sm:$0xff] %v7662_v2  ;;  %v7668_v3 = vld [vmem:[%s8683_s6 + $0x1e0] sm:$0xff] }
 0x435   :  { %2236 = vmatpush.msra.mxu3 %v7073_v40  ;;  %2400 = vmatpush.msrb.mxu0 %v7633_v1  ;;  %9564 = vst [vmem:[#allocation66_spill] sm:$0xff] %v7668_v3  ;;  %v7674_v40 = vld [vmem:[%s8683_s6 + $0x248] sm:$0xff]  ;;  %v9665_v1 = vld [vmem:[#allocation15_spill] sm:$0xff] }
 0x436   :  { %2276 = vmatpush.msra.mxu1 %v7080_v48  ;;  %2440 = vmatpush.msrb.mxu2 %v7640_v33  ;;  %9565 = vst [vmem:[#allocation68_spill] sm:$0xff] %v7674_v40  ;;  %v7680_v48 = vld [vmem:[%s8683_s6 + $0x1e8] sm:$0xff] }
 0x437   :  { %2237 = vmatpush.msra.mxu3 %v7087_v25  ;;  %2401 = vmatpush.msrb.mxu0 %v7647_v46  ;;  %9566 = vst [vmem:[#allocation72_spill] sm:$0xff] %v7680_v48  ;;  %v7686_v25 = vld [vmem:[%s8683_s6 + $0x220] sm:$0xff] }
 0x438   :  { %2277 = vmatpush.msra.mxu1 %v7094_v58  ;;  %2238 = vmatmul.f32.vlgmr.msra.gmra.mxu3 %v7437_v35  ;;  %9567 = vst [vmem:[#allocation74_spill] sm:$0xff] %v7686_v25  ;;  %v7692_v58 = vld [vmem:[%s8683_s6 + $0x1c0] sm:$0xff] }
 0x439   :  { %2278 = vmatmul.f32.vlgmr.msra.gmra.mxu1 %v7437_v35  ;;  %2441 = vmatpush.msrb.mxu2 %v7656_v26  ;;  %9568 = vst [vmem:[#allocation77_spill] sm:$0xff] %v7692_v58  ;;  %v7698_v35 = vld [vmem:[%s8683_s6 + $0x228] sm:$0xff] }
 0x43a   :  { %2402 = vmatpush.msrb.mxu0 %v7662_v2  ;;  %2369 = vmatpush.msrb.mxu3 %v7668_v3  ;;  %9569 = vst [vmem:[#allocation21_spill] sm:$0xff] %v7698_v35 }
 0x43b   :  { %2442 = vmatpush.msrb.mxu2 %v7674_v40  ;;  %2409 = vmatpush.msrb.mxu1 %v7680_v48 }
 0x43c   :  { %2403 = vmatpush.msrb.mxu0 %v7686_v25  ;;  %2370 = vmatpush.msrb.mxu3 %v7692_v58  ;;  %v7716_v58 = vld [vmem:[%s8683_s6 + $0x1a0] sm:$0xff] }
 0x43d   :  { %2443 = vmatpush.msrb.mxu2 %v7698_v35  ;;  %2410 = vmatpush.msrb.mxu1 %v7704_v27  ;;  %9572 = vst [vmem:[#allocation25_spill] sm:$0xff] %v7716_v58  ;;  %v7722_v35 = vld [vmem:[%s8683_s6 + $0x208] sm:$0xff]  ;;  %v7728_v27 = vld [vmem:[%s8683_s6 + $0x3f0] sm:$0xff] }
 0x43e   :  { %2404 = vmatpush.msrb.mxu0 %v7710_v52  ;;  %2371 = vmatpush.msrb.mxu3 %v7716_v58  ;;  %9573 = vst [vmem:[#allocation81_spill] sm:$0xff] %v7722_v35  ;;  %v7734_v52 = vld [vmem:[%s8683_s6 + $0x3f8] sm:$0xff]  ;;  %v7740_v58 = vld [vmem:[%s8683_s6 + $0x1a8] sm:$0xff] }
 0x43f   :  { %2444 = vmatpush.msrb.mxu2 %v7722_v35  ;;  %9574 = vst [vmem:[#allocation26_spill] sm:$0xff] %v7728_v27  ;;  %2411 = vmatpush.msrb.mxu1 %v7740_v58  ;;  %v7746_v35 = vld [vmem:[%s8683_s6 + $0x3d0] sm:$0xff] }
 0x440   :  { %2469 = vmatpush.msra.mxu0 %v7728_v27  ;;  %9575 = vst [vmem:[#allocation82_spill] sm:$0xff] %v7734_v52  ;;  %v7752_v27 = vld [vmem:[%s8683_s6 + $0x180] sm:$0xff] }
 0x441   :  { %2509 = vmatpush.msra.mxu2 %v7734_v52  ;;  %9576 = vst [vmem:[#allocation29_spill] sm:$0xff] %v7740_v58  ;;  %2372 = vmatpush.msrb.mxu3 %v7752_v27  ;;  %v7758_v52 = vld [vmem:[%s8683_s6 + $0x3d8] sm:$0xff]  ;;  %v7764_v58 = vld [vmem:[%s8683_s6 + $0x188] sm:$0xff] }
 0x442   :  { %9577 = vst [vmem:[#allocation30_spill] sm:$0xff] %v7746_v35  ;;  %2470 = vmatpush.msra.mxu0 %v7746_v35  ;;  %2412 = vmatpush.msrb.mxu1 %v7764_v58  ;;  %v7770_v35 = vld [vmem:[%s8683_s6 + $0x3b0] sm:$0xff] }
 0x443   :  { %9578 = vst [vmem:[#allocation87_spill] sm:$0xff] %v7752_v27  ;;  %2510 = vmatpush.msra.mxu2 %v7758_v52  ;;  %v7776_v27 = vld [vmem:[%s8683_s6 + $0x160] sm:$0xff] }
 0x444   :  { %9579 = vst [vmem:[#allocation35_spill] sm:$0xff] %v7758_v52  ;;  %2471 = vmatpush.msra.mxu0 %v7770_v35  ;;  %2373 = vmatpush.msrb.mxu3 %v7776_v27  ;;  %v7782_v52 = vld [vmem:[%s8683_s6 + $0x3b8] sm:$0xff] }
 0x445   :  { %9580 = vst [vmem:[#allocation91_spill] sm:$0xff] %v7764_v58  ;;  %2511 = vmatpush.msra.mxu2 %v7782_v52  ;;  %v7788_v58 = vld [vmem:[%s8683_s6 + $0x168] sm:$0xff] }
 0x446   :  { %9581 = vst [vmem:[#allocation36_spill] sm:$0xff] %v7770_v35  ;;  %2413 = vmatpush.msrb.mxu1 %v7788_v58  ;;  %v7794_v35 = vld [vmem:[%s8683_s6 + $0x390] sm:$0xff] }
 0x447   :  { %9582 = vst [vmem:[#allocation93_spill] sm:$0xff] %v7776_v27  ;;  %2472 = vmatpush.msra.mxu0 %v7794_v35  ;;  %v7800_v27 = vld [vmem:[%s8683_s6 + $0x140] sm:$0xff] }
 0x448   :  { %9583 = vst [vmem:[#allocation39_spill] sm:$0xff] %v7782_v52  ;;  %2374 = vmatpush.msrb.mxu3 %v7800_v27  ;;  %v7806_v52 = vld [vmem:[%s8683_s6 + $0x398] sm:$0xff] }
 0x449   :  { %9584 = vst [vmem:[#allocation96_spill] sm:$0xff] %v7788_v58  ;;  %2512 = vmatpush.msra.mxu2 %v7806_v52  ;;  %v7812_v58 = vld [vmem:[%s8683_s6 + $0x148] sm:$0xff] }
 0x44a   :  { %9585 = vst [vmem:[#allocation40_spill] sm:$0xff] %v7794_v35  ;;  %2414 = vmatpush.msrb.mxu1 %v7812_v58  ;;  %v7818_v35 = vld [vmem:[%s8683_s6 + $0x370] sm:$0xff] }
 0x44b   :  { %9586 = vst [vmem:[#allocation97_spill] sm:$0xff] %v7800_v27  ;;  %2473 = vmatpush.msra.mxu0 %v7818_v35  ;;  %v7824_v27 = vld [vmem:[%s8683_s6 + $0x120] sm:$0xff] }
 0x44c   :  { %9587 = vst [vmem:[#allocation43_spill] sm:$0xff] %v7806_v52  ;;  %2375 = vmatpush.msrb.mxu3 %v7824_v27  ;;  %v7830_v52 = vld [vmem:[%s8683_s6 + $0x378] sm:$0xff] }
 0x44d   :  { %9588 = vst [vmem:[#allocation44_spill] sm:$0xff] %v7812_v58  ;;  %2513 = vmatpush.msra.mxu2 %v7830_v52  ;;  %v7836_v58 = vld [vmem:[%s8683_s6 + $0x128] sm:$0xff] }
 0x44e   :  { %9589 = vst [vmem:[#allocation49_spill] sm:$0xff] %v7818_v35  ;;  %2415 = vmatpush.msrb.mxu1 %v7836_v58  ;;  %v7842_v35 = vld [vmem:[%s8683_s6 + $0x350] sm:$0xff] }
 0x44f   :  { %9590 = vst [vmem:[#allocation50_spill] sm:$0xff] %v7824_v27  ;;  %2474 = vmatpush.msra.mxu0 %v7842_v35  ;;  %v7848_v27 = vld [vmem:[%s8683_s6 + $0x100] sm:$0xff] }
 0x450   :  { %9591 = vst [vmem:[#allocation55_spill] sm:$0xff] %v7830_v52  ;;  %2376 = vmatpush.msrb.mxu3 %v7848_v27  ;;  %v7854_v52 = vld [vmem:[%s8683_s6 + $0x358] sm:$0xff] }
 0x451   :  { %9592 = vst [vmem:[#allocation56_spill] sm:$0xff] %v7836_v58  ;;  %2514 = vmatpush.msra.mxu2 %v7854_v52  ;;  %v7860_v58 = vld [vmem:[%s8683_s6 + $0x108] sm:$0xff] }
 0x452   :  { %9593 = vst [vmem:[#allocation59_spill] sm:$0xff] %v7842_v35  ;;  %2416 = vmatpush.msrb.mxu1 %v7860_v58  ;;  %v7866_v35 = vld [vmem:[%s8683_s6 + $0x330] sm:$0xff] }
 0x453   :  { %9594 = vst [vmem:[#allocation60_spill] sm:$0xff] %v7848_v27  ;;  %2475 = vmatpush.msra.mxu0 %v7866_v35  ;;  %v7872_v27 = vld [vmem:[%s8683_s6 + $0xe0] sm:$0xff] }
 0x454   :  { %9595 = vst [vmem:[#allocation64_spill] sm:$0xff] %v7854_v52  ;;  %2377 = vmatpush.msrb.mxu3 %v7872_v27  ;;  %v7878_v52 = vld [vmem:[%s8683_s6 + $0x338] sm:$0xff] }
 0x455   :  { %9596 = vst [vmem:[#allocation65_spill] sm:$0xff] %v7860_v58  ;;  %2515 = vmatpush.msra.mxu2 %v7878_v52  ;;  %v7884_v58 = vld [vmem:[%s8683_s6 + $0xe8] sm:$0xff] }
 0x456   :  { %9597 = vst [vmem:[#allocation70_spill] sm:$0xff] %v7866_v35  ;;  %2417 = vmatpush.msrb.mxu1 %v7884_v58  ;;  %v7890_v35 = vld [vmem:[%s8683_s6 + $0x310] sm:$0xff] }
 0x457   :  { %9598 = vst [vmem:[#allocation71_spill] sm:$0xff] %v7872_v27  ;;  %2476 = vmatpush.msra.mxu0 %v7890_v35  ;;  %v7896_v27 = vld [vmem:[%s8683_s6 + $0xc0] sm:$0xff] }
 0x458   :  { %9599 = vst [vmem:[#allocation75_spill] sm:$0xff] %v7878_v52  ;;  %2378 = vmatpush.msrb.mxu3 %v7896_v27  ;;  %v7902_v52 = vld [vmem:[%s8683_s6 + $0x318] sm:$0xff] }
 0x459   :  { %9600 = vst [vmem:[#allocation76_spill] sm:$0xff] %v7884_v58  ;;  %2516 = vmatpush.msra.mxu2 %v7902_v52  ;;  %v7908_v58 = vld [vmem:[%s8683_s6 + $0xc8] sm:$0xff] }
 0x45a   :  { %9601 = vst [vmem:[#allocation79_spill] sm:$0xff] %v7890_v35  ;;  %2418 = vmatpush.msrb.mxu1 %v7908_v58  ;;  %v7914_v35 = vld [vmem:[%s8683_s6 + $0x2f0] sm:$0xff] }
 0x45b   :  { %9602 = vst [vmem:[#allocation80_spill] sm:$0xff] %v7896_v27  ;;  %2477 = vmatpush.msra.mxu0 %v7914_v35  ;;  %v7920_v27 = vld [vmem:[%s8683_s6 + $0xa0] sm:$0xff] }
 0x45c   :  { %9603 = vst [vmem:[#allocation84_spill] sm:$0xff] %v7902_v52  ;;  %2379 = vmatpush.msrb.mxu3 %v7920_v27  ;;  %v7926_v52 = vld [vmem:[%s8683_s6 + $0x2f8] sm:$0xff] }
 0x45d   :  { %9604 = vst [vmem:[#allocation85_spill] sm:$0xff] %v7908_v58  ;;  %2517 = vmatpush.msra.mxu2 %v7926_v52  ;;  %v7932_v58 = vld [vmem:[%s8683_s6 + $0xa8] sm:$0xff] }
 0x45e   :  { %9605 = vst [vmem:[#allocation89_spill] sm:$0xff] %v7914_v35  ;;  %2419 = vmatpush.msrb.mxu1 %v7932_v58  ;;  %v7938_v35 = vld [vmem:[%s8683_s6 + $0x2d0] sm:$0xff] }
 0x45f   :  { %9606 = vst [vmem:[#allocation90_spill] sm:$0xff] %v7920_v27  ;;  %2478 = vmatpush.msra.mxu0 %v7938_v35  ;;  %v7944_v27 = vld [vmem:[%s8683_s6 + $0x80] sm:$0xff] }
 0x460   :  { %9607 = vst [vmem:[#allocation94_spill] sm:$0xff] %v7926_v52  ;;  %2380 = vmatpush.msrb.mxu3 %v7944_v27  ;;  %v7950_v52 = vld [vmem:[%s8683_s6 + $0x2d8] sm:$0xff] }
 0x461   :  { %9608 = vst [vmem:[#allocation95_spill] sm:$0xff] %v7932_v58  ;;  %2518 = vmatpush.msra.mxu2 %v7950_v52  ;;  %v7956_v58 = vld [vmem:[%s8683_s6 + $0x88] sm:$0xff] }
 0x462   :  { %9609 = vst [vmem:[#allocation98_spill] sm:$0xff] %v7938_v35  ;;  %2420 = vmatpush.msrb.mxu1 %v7956_v58  ;;  %v7962_v35 = vld [vmem:[%s8683_s6 + $0x2b0] sm:$0xff] }
 0x463   :  { %9610 = vst [vmem:[#allocation99_spill] sm:$0xff] %v7944_v27  ;;  %2479 = vmatpush.msra.mxu0 %v7962_v35  ;;  %v7968_v27 = vld [vmem:[%s8683_s6 + $0x60] sm:$0xff] }
 0x464   :  { %9611 = vst [vmem:[#allocation32_spill] sm:$0xff] %v7950_v52  ;;  %2381 = vmatpush.msrb.mxu3 %v7968_v27  ;;  %v7974_v52 = vld [vmem:[%s8683_s6 + $0x2b8] sm:$0xff] }
 0x465   :  { %9612 = vst [vmem:[#allocation48_spill] sm:$0xff] %v7956_v58  ;;  %2519 = vmatpush.msra.mxu2 %v7974_v52  ;;  %v7980_v58 = vld [vmem:[%s8683_s6 + $0x68] sm:$0xff] }
 0x466   :  { %9613 = vst [vmem:[#allocation46_spill] sm:$0xff] %v7962_v35  ;;  %2421 = vmatpush.msrb.mxu1 %v7980_v58  ;;  %v7986_v35 = vld [vmem:[%s8683_s6 + $0x290] sm:$0xff] }
 0x467   :  { %9614 = vst [vmem:[#allocation34_spill] sm:$0xff] %v7968_v27  ;;  %2480 = vmatpush.msra.mxu0 %v7986_v35  ;;  %v7992_v27 = vld [vmem:[%s8683_s6 + $0x40] sm:$0xff] }
 0x468   :  { %9615 = vst [vmem:[#allocation3_spill] sm:$0xff] %v7974_v52  ;;  %2382 = vmatpush.msrb.mxu3 %v7992_v27  ;;  %v7998_v52 = vld [vmem:[%s8683_s6 + $0x298] sm:$0xff] }
 0x469   :  { %9616 = vst [vmem:[#allocation4_spill] sm:$0xff] %v7980_v58  ;;  %2520 = vmatpush.msra.mxu2 %v7998_v52  ;;  %v8004_v58 = vld [vmem:[%s8683_s6 + $0x48] sm:$0xff] }
 0x46a   :  { %9617 = vst [vmem:[#allocation5_spill] sm:$0xff] %v7986_v35  ;;  %2422 = vmatpush.msrb.mxu1 %v8004_v58  ;;  %v8010_v35 = vld [vmem:[%s8683_s6 + $0x270] sm:$0xff] }
 0x46b   :  { %9618 = vst [vmem:[#allocation6_spill] sm:$0xff] %v7992_v27  ;;  %2481 = vmatpush.msra.mxu0 %v8010_v35  ;;  %v8016_v27 = vld [vmem:[%s8683_s6 + $0x20] sm:$0xff] }
 0x46c   :  { %9619 = vst [vmem:[#allocation7_spill] sm:$0xff] %v7998_v52  ;;  %2383 = vmatpush.msrb.mxu3 %v8016_v27  ;;  %v8022_v52 = vld [vmem:[%s8683_s6 + $0x278] sm:$0xff] }
 0x46d   :  { %9620 = vst [vmem:[#allocation8_spill] sm:$0xff] %v8004_v58  ;;  %2521 = vmatpush.msra.mxu2 %v8022_v52  ;;  %v8028_v58 = vld [vmem:[%s8683_s6 + $0x28] sm:$0xff] }
 0x46e   :  { %9621 = vst [vmem:[#allocation9_spill] sm:$0xff] %v8010_v35  ;;  %2423 = vmatpush.msrb.mxu1 %v8028_v58  ;;  %v8034_v35 = vld [vmem:[%s8683_s6 + $0x250] sm:$0xff] }
 0x46f   :  { %9622 = vst [vmem:[#allocation10_spill] sm:$0xff] %v8016_v27  ;;  %2482 = vmatpush.msra.mxu0 %v8034_v35  ;;  %v8040_v27 = vld [vmem:[%s8683_s6] sm:$0xff] }
 0x470   :  { %9623 = vst [vmem:[#allocation11_spill] sm:$0xff] %v8022_v52  ;;  %2384 = vmatpush.msrb.mxu3 %v8040_v27  ;;  %v8046_v52 = vld [vmem:[%s8683_s6 + $0x258] sm:$0xff] }
 0x471   :  { %9624 = vst [vmem:[#allocation12_spill] sm:$0xff] %v8028_v58  ;;  %2522 = vmatpush.msra.mxu2 %v8046_v52  ;;  %v8052_v58 = vld [vmem:[%s8683_s6 + $0x8] sm:$0xff] }
 0x472   :  { %9625 = vst [vmem:[#allocation106_spill] sm:$0xff] %v8034_v35  ;;  %2424 = vmatpush.msrb.mxu1 %v8052_v58  ;;  %v8058_v35 = vld [vmem:[%s8683_s6 + $0x230] sm:$0xff] }
 0x473   :  { %9626 = vst [vmem:[#allocation107_spill] sm:$0xff] %v8040_v27  ;;  %2483 = vmatpush.msra.mxu0 %v8058_v35  ;;  %v8064_v27 = vld [vmem:[%s8683_s6 + $0x1f0] sm:$0xff] }
 0x474   :  { %9627 = vst [vmem:[#allocation108_spill] sm:$0xff] %v8046_v52  ;;  %2449 = vmatpush.msra.mxu3 %v8064_v27  ;;  %v8070_v52 = vld [vmem:[%s8683_s6 + $0x238] sm:$0xff] }
 0x475   :  { %9628 = vst [vmem:[#allocation109_spill] sm:$0xff] %v8052_v58  ;;  %2523 = vmatpush.msra.mxu2 %v8070_v52  ;;  %v8076_v58 = vld [vmem:[%s8683_s6 + $0x1f8] sm:$0xff] }
 0x476   :  { %9629 = vst [vmem:[#allocation110_spill] sm:$0xff] %v8058_v35  ;;  %2489 = vmatpush.msra.mxu1 %v8076_v58  ;;  %v8082_v35 = vld [vmem:[%s8683_s6 + $0x210] sm:$0xff] }
 0x477   :  { %9630 = vst [vmem:[#allocation111_spill] sm:$0xff] %v8064_v27  ;;  %2484 = vmatpush.msra.mxu0 %v8082_v35  ;;  %v8088_v27 = vld [vmem:[%s8683_s6 + $0x1d0] sm:$0xff] }
 0x478   :  { %9631 = vst [vmem:[#allocation112_spill] sm:$0xff] %v8070_v52  ;;  %2450 = vmatpush.msra.mxu3 %v8088_v27  ;;  %v8094_v52 = vld [vmem:[%s8683_s6 + $0x218] sm:$0xff] }
 0x479   :  { %9632 = vst [vmem:[#allocation113_spill] sm:$0xff] %v8076_v58  ;;  %2524 = vmatpush.msra.mxu2 %v8094_v52  ;;  %v8100_v58 = vld [vmem:[%s8683_s6 + $0x1d8] sm:$0xff] }
 0x47a   :  { %9633 = vst [vmem:[#allocation114_spill] sm:$0xff] %v8082_v35  ;;  %2490 = vmatpush.msra.mxu1 %v8100_v58  ;;  %v8106_v35 = vld [vmem:[%s8683_s6 + $0x1b0] sm:$0xff] }
 0x47b   :  { %9634 = vst [vmem:[#allocation115_spill] sm:$0xff] %v8088_v27  ;;  %2451 = vmatpush.msra.mxu3 %v8106_v35  ;;  %v8112_v27 = vld [vmem:[%s8683_s6 + $0x1b8] sm:$0xff] }
 0x47c   :  { %9635 = vst [vmem:[#allocation116_spill] sm:$0xff] %v8094_v52  ;;  %2491 = vmatpush.msra.mxu1 %v8112_v27  ;;  %v8118_v52 = vld [vmem:[%s8683_s6 + $0x190] sm:$0xff]  ;;  %v2071_v48 = vpop.f32.mrf.mxu2 }
 0x47d   :  { %9636 = vst [vmem:[#allocation117_spill] sm:$0xff] %v8100_v58  ;;  %2452 = vmatpush.msra.mxu3 %v8118_v52  ;;  %v8124_v58 = vld [vmem:[%s8683_s6 + $0x198] sm:$0xff] }
 0x47e   :  { %9637 = vst [vmem:[#allocation118_spill] sm:$0xff] %v8106_v35  ;;  %2492 = vmatpush.msra.mxu1 %v8124_v58  ;;  %v8130_v35 = vld [vmem:[%s8683_s6 + $0x170] sm:$0xff] }
 0x47f   :  { %9638 = vst [vmem:[#allocation119_spill] sm:$0xff] %v8112_v27  ;;  %2453 = vmatpush.msra.mxu3 %v8130_v35  ;;  %v8136_v27 = vld [vmem:[%s8683_s6 + $0x178] sm:$0xff] }
 0x480   :  { %9639 = vst [vmem:[#allocation120_spill] sm:$0xff] %v8118_v52  ;;  %2493 = vmatpush.msra.mxu1 %v8136_v27  ;;  %v8142_v52 = vld [vmem:[%s8683_s6 + $0x150] sm:$0xff] }
 0x481   :  { %9640 = vst [vmem:[#allocation121_spill] sm:$0xff] %v8124_v58  ;;  %2454 = vmatpush.msra.mxu3 %v8142_v52  ;;  %v8148_v58 = vld [vmem:[%s8683_s6 + $0x158] sm:$0xff] }
 0x482   :  { %9641 = vst [vmem:[#allocation122_spill] sm:$0xff] %v8130_v35  ;;  %2494 = vmatpush.msra.mxu1 %v8148_v58  ;;  %v8154_v35 = vld [vmem:[%s8683_s6 + $0x130] sm:$0xff] }
 0x483   :  { %9642 = vst [vmem:[#allocation123_spill] sm:$0xff] %v8136_v27  ;;  %2455 = vmatpush.msra.mxu3 %v8154_v35  ;;  %v8160_v27 = vld [vmem:[%s8683_s6 + $0x138] sm:$0xff] }
 0x484   :  { %9643 = vst [vmem:[#allocation124_spill] sm:$0xff] %v8142_v52  ;;  %2495 = vmatpush.msra.mxu1 %v8160_v27  ;;  %v8166_v52 = vld [vmem:[%s8683_s6 + $0x110] sm:$0xff]  ;;  %v2151_v54 = vpop.f32.mrf.mxu2 }
 0x485   :  { %9644 = vst [vmem:[#allocation125_spill] sm:$0xff] %v8148_v58  ;;  %2456 = vmatpush.msra.mxu3 %v8166_v52  ;;  %v8172_v58 = vld [vmem:[%s8683_s6 + $0x118] sm:$0xff] }
 0x486   :  { %9645 = vst [vmem:[#allocation126_spill] sm:$0xff] %v8154_v35  ;;  %2496 = vmatpush.msra.mxu1 %v8172_v58  ;;  %v8178_v35 = vld [vmem:[%s8683_s6 + $0xf0] sm:$0xff] }
 0x487   :  { %9646 = vst [vmem:[#allocation127_spill] sm:$0xff] %v8160_v27  ;;  %2457 = vmatpush.msra.mxu3 %v8178_v35  ;;  %v8184_v27 = vld [vmem:[%s8683_s6 + $0xf8] sm:$0xff] }
 0x488   :  { %9647 = vst [vmem:[#allocation128_spill] sm:$0xff] %v8166_v52  ;;  %2497 = vmatpush.msra.mxu1 %v8184_v27  ;;  %v8190_v52 = vld [vmem:[%s8683_s6 + $0xd0] sm:$0xff] }
 0x489   :  { %9648 = vst [vmem:[#allocation129_spill] sm:$0xff] %v8172_v58  ;;  %2458 = vmatpush.msra.mxu3 %v8190_v52  ;;  %v8196_v58 = vld [vmem:[%s8683_s6 + $0xd8] sm:$0xff] }
 0x48a   :  { %9649 = vst [vmem:[#allocation130_spill] sm:$0xff] %v8178_v35  ;;  %2498 = vmatpush.msra.mxu1 %v8196_v58  ;;  %v8202_v35 = vld [vmem:[%s8683_s6 + $0xb0] sm:$0xff] }
 0x48b   :  { %9650 = vst [vmem:[#allocation131_spill] sm:$0xff] %v8184_v27  ;;  %2459 = vmatpush.msra.mxu3 %v8202_v35  ;;  %v8208_v27 = vld [vmem:[%s8683_s6 + $0xb8] sm:$0xff] }
 0x48c   :  { %9651 = vst [vmem:[#allocation132_spill] sm:$0xff] %v8190_v52  ;;  %2499 = vmatpush.msra.mxu1 %v8208_v27  ;;  %v8214_v52 = vld [vmem:[%s8683_s6 + $0x90] sm:$0xff] }
 0x48d   :  { %9652 = vst [vmem:[#allocation133_spill] sm:$0xff] %v8196_v58  ;;  %2460 = vmatpush.msra.mxu3 %v8214_v52  ;;  %v8220_v58 = vld [vmem:[%s8683_s6 + $0x98] sm:$0xff] }
 0x48e   :  { %9653 = vst [vmem:[#allocation134_spill] sm:$0xff] %v8202_v35  ;;  %2500 = vmatpush.msra.mxu1 %v8220_v58  ;;  %v8226_v35 = vld [vmem:[%s8683_s6 + $0x70] sm:$0xff] }
 0x48f   :  { %9654 = vst [vmem:[#allocation135_spill] sm:$0xff] %v8208_v27  ;;  %2461 = vmatpush.msra.mxu3 %v8226_v35  ;;  %v8232_v27 = vld [vmem:[%s8683_s6 + $0x78] sm:$0xff] }
 0x490   :  { %9655 = vst [vmem:[#allocation136_spill] sm:$0xff] %v8214_v52  ;;  %2501 = vmatpush.msra.mxu1 %v8232_v27  ;;  %v8238_v52 = vld [vmem:[%s8683_s6 + $0x50] sm:$0xff] }
 0x491   :  { %9656 = vst [vmem:[#allocation137_spill] sm:$0xff] %v8220_v58  ;;  %2462 = vmatpush.msra.mxu3 %v8238_v52  ;;  %v8244_v58 = vld [vmem:[%s8683_s6 + $0x58] sm:$0xff] }
 0x492   :  { %9657 = vst [vmem:[#allocation138_spill] sm:$0xff] %v8226_v35  ;;  %2502 = vmatpush.msra.mxu1 %v8244_v58  ;;  %v8250_v35 = vld [vmem:[%s8683_s6 + $0x30] sm:$0xff] }
 0x493   :  { %9658 = vst [vmem:[#allocation139_spill] sm:$0xff] %v8232_v27  ;;  %2463 = vmatpush.msra.mxu3 %v8250_v35  ;;  %v8256_v27 = vld [vmem:[%s8683_s6 + $0x38] sm:$0xff] }
 0x494   :  { %9659 = vst [vmem:[#allocation140_spill] sm:$0xff] %v8238_v52  ;;  %2503 = vmatpush.msra.mxu1 %v8256_v27  ;;  %v8262_v52 = vld [vmem:[%s8683_s6 + $0x10] sm:$0xff] }
 0x495   :  { %9660 = vst [vmem:[#allocation141_spill] sm:$0xff] %v8244_v58  ;;  %2464 = vmatpush.msra.mxu3 %v8262_v52  ;;  %v8268_v58 = vld [vmem:[%s8683_s6 + $0x18] sm:$0xff]  ;;  %v2051_v25 = vpop.f32.mrf.mxu1 }
 0x496   :  { %9661 = vst [vmem:[#allocation142_spill] sm:$0xff] %v8250_v35  ;;  %2504 = vmatpush.msra.mxu1 %v8268_v58  ;;  %v2031_v35 = vpop.f32.mrf.mxu0  ;;  %v2052_v40 = vadd.f32 %v2051_v25, %v9526_v22 }
 0x497   :  { %9662 = vst [vmem:[#allocation143_spill] sm:$0xff] %v8256_v27 }
 0x498   :  { %9663 = vst [vmem:[#allocation144_spill] sm:$0xff] %v8262_v52  ;;  %v2072_v27 = vadd.f32 %v2071_v48, %v2052_v40  ;;  %v9666_v40 = vld [vmem:[#allocation88_spill] sm:$0xff] }
 0x499   :  { %9664 = vst [vmem:[#allocation145_spill] sm:$0xff] %v8268_v58 }
 0x49a   :  { %v3042_v3 = vmul.f32 -1.442695, %v2072_v27 }
 0x49b   :  { %v2011_v2 = vpop.f32.mrf.mxu3 }
 0x49c   :  { %3171 = vpow2.f32 %v3042_v3  ;;  %v2012_v46 = vadd.f32 %v2011_v2, %v9527_v6 }
 0x49e   :  { %v2111_v26 = vpop.f32.mrf.mxu0  ;;  %v2032_v52 = vadd.f32 %v2031_v35, %v2012_v46  ;;  %v2131_v33 = vpop.f32.mrf.mxu1 }
 0x49f   :  { %v2132_v45 = vadd.f32 %v2131_v33, %v9665_v1  ;;  %v9667_v1 = vld [vmem:[#allocation16_spill] sm:$0xff] }
 0x4a0   :  { %v3041_v44 = vmul.f32 -1.442695, %v2032_v52 }
 0x4a1   :  { %v2152_v63 = vadd.f32 %v2151_v54, %v2132_v45 }
 0x4a2   :  { %v3172_v58 = vpop.eup %3171  ;;  %3173 = vpow2.f32 %v3041_v44 }
 0x4a3   :  { %v2176_v47 = vadd.f32 1.0, %v3172_v58  ;;  %v3043_v23 = vmul.f32 -1.442695, %v2152_v63  ;;  %v2091_v27 = vpop.f32.mrf.mxu3  ;;  %v2299_v63 = vpop.f32.mrf.mxu2 }
 0x4a4   :  { %v2092_v52 = vadd.f32 %v2091_v27, %v9667_v1 }
 0x4a5   :  { %3175 = vrcp.f32 %v2176_v47  ;;  %vm2182_vm6 = vweird.f32 %v2176_v47  ;;  %v2186_v57 = vand.u32 2147483647, %v2176_v47 }
 0x4a6   :  { %v2259_v11 = vpop.f32.mrf.mxu0  ;;  %3177 = vpow2.f32 %v3043_v23  ;;  %v2112_v6 = vadd.f32 %v2111_v26, %v2092_v52 }
 0x4a7   :  { %v2303_v48 = vadd.f32 %v2259_v11, %v9666_v40  ;;  %v2188_v40 = vand.u32 2147483648, %v2176_v47  ;;  %vm2187_vm10 = vcmp.eq.f32.partialorder %v2186_v57, 8.507059e+37 }
 0x4a8   :  { %v3174_v25 = vpop.eup %3173 }
 0x4a9   :  { %v2157_v3 = vadd.f32 1.0, %v3174_v25  ;;  %v3045_v46 = vmul.f32 -1.442695, %v2303_v48  ;;  %v9668_v25 = vld [vmem:[#allocation101_spill] sm:$0xff] }
 0x4aa   :  { %v2305_v22 = vadd.f32 %v2299_v63, %v9668_v25 }
 0x4ab   :  { %v3176_v2 = vpop.eup %3175  ;;  %3179 = vrcp.f32 %v2157_v3  ;;  %v2167_v26 = vand.u32 2147483647, %v2157_v3  ;;  %vm2163_vm9 = vweird.f32 %v2157_v3 }
 0x4ac   :  { %v2178_v35 = vmul.f32 %v3176_v2, %v2176_v47  ;;  %v3178_v33 = vpop.eup %3177  ;;  %3181 = vpow2.f32 %v3045_v46  ;;  %vm2183_vm5 = vweird.f32 %v3176_v2  ;;  %v2169_v46 = vand.u32 2147483648, %v2157_v3 }
 0x4ad   :  { %v2196_v45 = vadd.f32 1.0, %v3178_v33  ;;  %vm8277_vm7 = vmor %vm2182_vm6, %vm2183_vm5  ;;  %v3046_v63 = vmul.f32 -1.442695, %v2305_v22  ;;  %vm2168_vm12 = vcmp.eq.f32.partialorder %v2167_v26, 8.507059e+37 }
 0x4ae   :  { %v2179_v54 = vsub.f32 1.0, %v2178_v35  ;;  %v2170_v1 = vor.u32 1.1754944e-38, %v2169_v46 }
 0x4af   :  { %3183 = vrcp.f32 %v2196_v45  ;;  %v2208_v46 = vand.u32 2147483648, %v2196_v45  ;;  %vm2202_vm14 = vweird.f32 %v2196_v45 }
 0x4b0   :  { %v2180_v44 = vmul.f32 %v3176_v2, %v2179_v54  ;;  %3185 = vtanh.f32 %v2112_v6  ;;  %v2189_v54 = vor.u32 1.1754944e-38, %v2188_v40 }
 0x4b1   :  { %v3180_v58 = vpop.eup %3179  ;;  %3187 = vpow2.f32 %v3046_v63 }
 0x4b2   :  { %v2159_v11 = vmul.f32 %v3180_v58, %v2157_v3  ;;  %v2181_v23 = vadd.f32 %v3176_v2, %v2180_v44  ;;  %v3182_v60 = vpop.eup %3181  ;;  %vm2164_vm8 = vweird.f32 %v3180_v58 }
 0x4b3   :  { %v8283_v25 = vadd.f32 1.0, %v3182_v60  ;;  %vm2165_vm11 = vmor %vm2163_vm9, %vm2164_vm8 }
 0x4b4   :  { %v2160_v48 = vsub.f32 1.0, %v2159_v11  ;;  %v2185_v52 = vsel %vm8277_vm7, %v3176_v2, %v2181_v23  ;;  %v9671_v2 = vld [vmem:[#allocation100_spill] sm:$0xff] }
 0x4b5   :  { %v3184_v35 = vpop.eup %3183  ;;  %v2190_v51 = vsel %vm2187_vm10, %v2189_v54, %v2185_v52  ;;  %3189 = vrcp.f32 %v8283_v25  ;;  %v2209_v52 = vor.u32 1.1754944e-38, %v2208_v46  ;;  %vm2334_vm2 = vweird.f32 %v8283_v25 }
 0x4b6   :  { %v2161_v33 = vmul.f32 %v3180_v58, %v2160_v48  ;;  %v2198_v44 = vmul.f32 %v3184_v35, %v2196_v45  ;;  %v3186_v48 = vpop.eup %3185  ;;  %v2212_v22 = vmul.f32 %v2190_v51, %v7219_v55  ;;  %vm2203_vm13 = vweird.f32 %v3184_v35 }
 0x4b7   :  { %vm2204_vm15 = vmor %vm2202_vm14, %vm2203_vm13 }
 0x4b8   :  { %v2162_v47 = vadd.f32 %v3180_v58, %v2161_v33  ;;  %v2199_v11 = vsub.f32 1.0, %v2198_v44 }
 0x4ba   :  { %v2166_v6 = vsel %vm2165_vm11, %v3180_v58, %v2162_v47  ;;  %v2200_v42 = vmul.f32 %v3184_v35, %v2199_v11  ;;  %v3188_v58 = vpop.eup %3187  ;;  %v2279_v11 = vpop.f32.mrf.mxu1 }
 0x4bb   :  { %v2171_v49 = vsel %vm2168_vm12, %v2170_v1, %v2166_v6  ;;  %v2239_v27 = vpop.f32.mrf.mxu3  ;;  %v2206_v1 = vand.u32 2147483647, %v2196_v45  ;;  %v3190_v33 = vpop.eup %3189 }
 0x4bc   :  { %v2213_v60 = vmul.f32 %v3186_v48, %v2171_v49  ;;  %v2302_v23 = vadd.f32 %v2239_v27, %v9671_v2  ;;  %v2201_v40 = vadd.f32 %v3184_v35, %v2200_v42  ;;  %v2330_v55 = vmul.f32 %v3190_v33, %v8283_v25  ;;  %v9677_v2 = vld [vmem:[#allocation63_spill] sm:$0xff] }
 0x4bd   :  { %v8292_v49 = vadd.f32 1.0, %v3188_v58  ;;  %vm2207_vm0 = vcmp.eq.f32.partialorder %v2206_v1, 8.507059e+37  ;;  %vm2335_vm1 = vweird.f32 %v3190_v33 }
 0x4be   :  { %v8288_v3 = vadd.f32 %v2213_v60, %v2212_v22  ;;  %v3044_v57 = vmul.f32 -1.442695, %v2302_v23  ;;  %v2205_v26 = vsel %vm2204_vm15, %v3184_v35, %v2201_v40  ;;  %v2331_v47 = vsub.f32 1.0, %v2330_v55  ;;  %vm8316_vm3 = vmor %vm2334_vm2, %vm2335_vm1  ;;  %v9678_v23 = vld [vmem:[#allocation54_spill] sm:$0xff] }
 0x4bf   :  { %v2210_v54 = vsel %vm2207_vm0, %v2209_v52, %v2205_v26  ;;  %vm2354_vm10 = vweird.f32 %v8292_v49 }
 0x4c0   :  { %3191 = vtanh.f32 %v8288_v3  ;;  %v2332_v35 = vmul.f32 %v3190_v33, %v2331_v47 }
 0x4c1   :  { %3193 = vpow2.f32 %v3044_v57 }
 0x4c2   :  { %3195 = vrcp.f32 %v8292_v49 }
 0x4c6   :  { %v3192_v51 = vpop.eup %3191 }
 0x4c7   :  { %v3194_v42 = vpop.eup %3193  ;;  %v2216_v44 = vmul.f32 %v3192_v51, %v2210_v54 }
 0x4c8   :  { %v2309_v63 = vadd.f32 1.0, %v3194_v42  ;;  %v8304_v6 = vpop.eup %3195  ;;  %v9679_v42 = vld [vmem:[#allocation18_spill] sm:$0xff] }
 0x4c9   :  { %2405 = vmatmul.f32.vlgmr.msrb.gmra.mxu0 %v2216_v44  ;;  %2445 = vmatmul.f32.vlgmr.msrb.gmra.mxu2 %v2216_v44  ;;  %v8296_v45 = vadd.f32 %v2216_v44, %v7233_v53  ;;  %v9672_v53 = vld [vmem:[#allocation92_spill] sm:$0xff]  ;;  %vm2355_vm9 = vweird.f32 %v8304_v6 }
 0x4ca   :  { %3197 = vrcp.f32 %v2309_v63  ;;  %2617 = vmatpush.msrb.mxu0 %v7239_v28  ;;  %2657 = vmatpush.msrb.mxu2 %v7245_v43  ;;  %v2304_v27 = vadd.f32 %v2279_v11, %v9672_v53  ;;  %v2333_v28 = vadd.f32 %v3190_v33, %v2332_v35  ;;  %v2321_v60 = vand.u32 2147483648, %v2309_v63  ;;  %vm2356_vm11 = vmor %vm2354_vm10, %vm2355_vm9  ;;  %v3642_v35 = vld [vmem:[%s8682_s5 + $0x190] sm:$0xff]  ;;  %v3653_v53 = vld [vmem:[%s8682_s5 + $0xc0] sm:$0xff] }
 0x4cb   :  { %v2319_v46 = vand.u32 2147483647, %v2309_v63  ;;  %vm2315_vm6 = vweird.f32 %v2309_v63  ;;  %v3646_v11 = vld [vmem:[%s8682_s5 + $0x150] sm:$0xff] }
 0x4cc   :  { %2618 = vmatpush.msrb.mxu0 %v7251_v19  ;;  %2658 = vmatpush.msrb.mxu2 %v7257_v16  ;;  %v2340_v19 = vand.u32 2147483648, %v8283_v25  ;;  %v2350_v16 = vmul.f32 %v8304_v6, %v8292_v49  ;;  %3199 = vtanh.f32 %v2304_v27  ;;  %v2337_v57 = vsel %vm8316_vm3, %v3190_v33, %v2333_v28  ;;  %v3654_v27 = vld [vmem:[%s8682_s5 + $0xd0] sm:$0xff]  ;;  %v9686_v28 = vld [vmem:[#allocation31_spill] sm:$0xff] }
 0x4cd   :  { %v2322_v52 = vor.u32 1.1754944e-38, %v2321_v60  ;;  %vm2320_vm8 = vcmp.eq.f32.partialorder %v2319_v46, 8.507059e+37  ;;  %v3659_v60 = vld [vmem:[%s8682_s5 + $0x60] sm:$0xff] }
 0x4ce   :  { %2619 = vmatpush.msrb.mxu0 %v7264_v24  ;;  %2659 = vmatpush.msrb.mxu2 %v7270_v62  ;;  %v9673_v24 = vld [vmem:[#allocation52_spill] sm:$0xff]  ;;  %v9674_v62 = vld [vmem:[#allocation67_spill] sm:$0xff]  ;;  %v2341_v58 = vor.u32 1.1754944e-38, %v2340_v19  ;;  %v2351_v1 = vsub.f32 1.0, %v2350_v16  ;;  %v9687_v19 = vld [vmem:[#allocation33_spill] sm:$0xff] }
 0x4cf   :  { %v3656_v16 = vld [vmem:[%s8682_s5 + $0xb0] sm:$0xff]  ;;  %v9693_v46 = vld [vmem:[#allocation47_spill] sm:$0xff] }
 0x4d0   :  { %v3198_v48 = vpop.eup %3197  ;;  %2620 = vmatpush.msrb.mxu0 %v7279_v15  ;;  %2660 = vmatpush.msrb.mxu2 %v7285_v32  ;;  %v2338_v15 = vand.u32 2147483647, %v8283_v25  ;;  %v2352_v51 = vmul.f32 %v8304_v6, %v2351_v1  ;;  %v9690_v32 = vld [vmem:[#allocation41_spill] sm:$0xff]  ;;  %v9694_v1 = vld [vmem:[#allocation51_spill] sm:$0xff] }
 0x4d1   :  { %v2311_v43 = vmul.f32 %v3198_v48, %v2309_v63  ;;  %2485 = vmatmul.f32.vlgmr.msra.gmra.mxu0 %v2216_v44  ;;  %2525 = vmatmul.f32.vlgmr.msra.gmra.mxu2 %v2216_v44  ;;  %vm2316_vm4 = vweird.f32 %v3198_v48  ;;  %v9682_v44 = vld [vmem:[#allocation23_spill] sm:$0xff] }
 0x4d2   :  { %2621 = vmatpush.msrb.mxu0 %v9673_v24  ;;  %2661 = vmatpush.msrb.mxu2 %v9674_v62  ;;  %vm2339_vm5 = vcmp.eq.f32.partialorder %v2338_v15, 8.507059e+37  ;;  %vm2317_vm7 = vmor %vm2315_vm6, %vm2316_vm4  ;;  %v3200_v55 = vpop.eup %3199  ;;  %v9688_v24 = vld [vmem:[#allocation37_spill] sm:$0xff]  ;;  %v3657_v62 = vld [vmem:[%s8682_s5 + $0x80] sm:$0xff] }
 0x4d3   :  { %v2312_v22 = vsub.f32 1.0, %v2311_v43  ;;  %v2342_v26 = vsel %vm2339_vm5, %v2341_v58, %v2337_v57  ;;  %v3655_v43 = vld [vmem:[%s8682_s5 + $0xa0] sm:$0xff]  ;;  %v9689_v15 = vld [vmem:[#allocation38_spill] sm:$0xff]  ;;  %v9692_v57 = vld [vmem:[#allocation45_spill] sm:$0xff] }
 0x4d4   :  { %2622 = vmatpush.msrb.mxu0 %v9677_v2  ;;  %2662 = vmatpush.msrb.mxu2 %v9678_v23  ;;  %v9691_v2 = vld [vmem:[#allocation42_spill] sm:$0xff]  ;;  %v3660_v23 = vld [vmem:[%s8682_s5 + $0x70] sm:$0xff] }
 0x4d5   :  { %v2313_v40 = vmul.f32 %v3198_v48, %v2312_v22  ;;  %v3658_v22 = vld [vmem:[%s8682_s5 + $0x90] sm:$0xff] }
 0x4d6   :  { %2623 = vmatpush.msrb.mxu0 %v7332_v0  ;;  %2663 = vmatpush.msrb.mxu2 %v7338_v41  ;;  %v2364_v0 = vmul.f32 %v2342_v26, %v7380_v21  ;;  %v3662_v58 = vld [vmem:[%s8682_s5 + $0x50] sm:$0xff] }
 0x4d7   :  { %v2314_v25 = vadd.f32 %v3198_v48, %v2313_v40  ;;  %v3661_v40 = vld [vmem:[%s8682_s5 + $0x40] sm:$0xff]  ;;  %v9695_v26 = vld [vmem:[#allocation53_spill] sm:$0xff] }
 0x4d8   :  { %2624 = vmatpush.msrb.mxu0 %v7345_v18  ;;  %2664 = vmatpush.msrb.mxu2 %v7351_v4  ;;  %v2353_v4 = vadd.f32 %v8304_v6, %v2352_v51  ;;  %v9697_v51 = vld [vmem:[#allocation58_spill] sm:$0xff] }
 0x4d9   :  { %v2318_v33 = vsel %vm2317_vm7, %v3198_v48, %v2314_v25  ;;  %v3652_v48 = vld [vmem:[%s8682_s5 + $0xf0] sm:$0xff]  ;;  %v3663_v25 = vld [vmem:[%s8682_s5 + $0x20] sm:$0xff] }
 0x4da   :  { %v2323_v54 = vsel %vm2320_vm8, %v2322_v52, %v2318_v33  ;;  %2625 = vmatpush.msrb.mxu0 %v7358_v61  ;;  %2665 = vmatpush.msrb.mxu2 %v7364_v10  ;;  %v2360_v61 = vand.u32 2147483648, %v8292_v49  ;;  %v2358_v10 = vand.u32 2147483647, %v8292_v49  ;;  %v2357_v21 = vsel %vm2356_vm11, %v8304_v6, %v2353_v4  ;;  %v3647_v6 = vld [vmem:[%s8682_s5 + $0x120] sm:$0xff]  ;;  %v3664_v52 = vld [vmem:[%s8682_s5 + $0x30] sm:$0xff]  ;;  %v9700_v4 = vld [vmem:[#allocation66_spill] sm:$0xff] }
 0x4db   :  { %v2365_v41 = vmul.f32 %v3200_v55, %v2323_v54  ;;  %v9696_v33 = vld [vmem:[#allocation57_spill] sm:$0xff]  ;;  %v3665_v55 = vld [vmem:[%s8682_s5] sm:$0xff] }
 0x4dc   :  { %2626 = vmatpush.msrb.mxu0 %v7371_v39  ;;  %2666 = vmatpush.msrb.mxu2 %v7377_v56  ;;  %v9680_v39 = vld [vmem:[#allocation19_spill] sm:$0xff]  ;;  %v9681_v56 = vld [vmem:[#allocation20_spill] sm:$0xff]  ;;  %vm2359_vm12 = vcmp.eq.f32.partialorder %v2358_v10, 8.507059e+37  ;;  %v3666_v54 = vld [vmem:[%s8682_s5 + $0x10] sm:$0xff] }
 0x4dd   :  { %v8334_v18 = vadd.f32 %v2365_v41, %v2364_v0  ;;  %v9698_v0 = vld [vmem:[#allocation61_spill] sm:$0xff]  ;;  %v9699_v41 = vld [vmem:[#allocation62_spill] sm:$0xff] }
 0x4de   :  { %2627 = vmatpush.msrb.mxu0 %v7387_v17  ;;  %2667 = vmatpush.msrb.mxu2 %v9679_v42  ;;  %v2361_v17 = vor.u32 1.1754944e-38, %v2360_v61  ;;  %v9701_v42 = vld [vmem:[#allocation68_spill] sm:$0xff]  ;;  %v9703_v10 = vld [vmem:[#allocation74_spill] sm:$0xff] }
 0x4df   :  { %3201 = vtanh.f32 %v8334_v18  ;;  %v9702_v61 = vld [vmem:[#allocation72_spill] sm:$0xff] }
 0x4e0   :  { %2628 = vmatpush.msrb.mxu0 %v9680_v39  ;;  %2668 = vmatpush.msrb.mxu2 %v9681_v56  ;;  %v2362_v47 = vsel %vm2359_vm12, %v2361_v17, %v2357_v21  ;;  %v9704_v39 = vld [vmem:[#allocation77_spill] sm:$0xff]  ;;  %v9706_v21 = vld [vmem:[#allocation22_spill] sm:$0xff] }
 0x4e1   :  { %v9705_v56 = vld [vmem:[#allocation21_spill] sm:$0xff] }
 0x4e2   :  { %2629 = vmatpush.msrb.mxu0 %v9682_v44  ;;  %2669 = vmatpush.msrb.mxu2 %v7422_v50  ;;  %v3635_v50 = vld [vmem:[%s8682_s5 + $0x1e0] sm:$0xff]  ;;  %v9707_v44 = vld [vmem:[#allocation78_spill] sm:$0xff]  ;;  %v9708_v17 = vld [vmem:[#allocation25_spill] sm:$0xff] }
 0x4e4   :  { %2630 = vmatpush.msrb.mxu0 %v7428_v29  ;;  %2670 = vmatpush.msrb.mxu2 %v7434_v30  ;;  %v3636_v29 = vld [vmem:[%s8682_s5 + $0x1f0] sm:$0xff]  ;;  %v3637_v30 = vld [vmem:[%s8682_s5 + $0x1c0] sm:$0xff] }
 0x4e5   :  { %v3202_v63 = vpop.eup %3201 }
 0x4e6   :  { %v8351_v49 = vmul.f32 %v3202_v63, %v2362_v47  ;;  %2631 = vmatpush.msrb.mxu0 %v7442_v37  ;;  %2671 = vmatpush.msrb.mxu2 %v7448_v8  ;;  %v3638_v37 = vld [vmem:[%s8682_s5 + $0x1d0] sm:$0xff]  ;;  %v3639_v8 = vld [vmem:[%s8682_s5 + $0x1a0] sm:$0xff]  ;;  %v9710_v47 = vld [vmem:[#allocation26_spill] sm:$0xff] }
 0x4e7   :  { %v9709_v63 = vld [vmem:[#allocation81_spill] sm:$0xff] }
 0x4e8   :  { %2385 = vmatmul.f32.vlgmr.msrb.gmra.mxu3 %v8351_v49  ;;  %2425 = vmatmul.f32.vlgmr.msrb.gmra.mxu1 %v8351_v49 }
 0x4e9   :  { %2597 = vmatpush.msrb.mxu3 %v3635_v50  ;;  %2637 = vmatpush.msrb.mxu1 %v3636_v29  ;;  %v9712_v50 = vld [vmem:[#allocation29_spill] sm:$0xff]  ;;  %v9713_v29 = vld [vmem:[#allocation30_spill] sm:$0xff] }
 0x4ea   :  { %2632 = vmatpush.msrb.mxu0 %v7458_v5  ;;  %2672 = vmatpush.msrb.mxu2 %v7464_v20  ;;  %v3640_v5 = vld [vmem:[%s8682_s5 + $0x1b0] sm:$0xff]  ;;  %v3641_v20 = vld [vmem:[%s8682_s5 + $0x180] sm:$0xff] }
 0x4eb   :  { %2598 = vmatpush.msrb.mxu3 %v3637_v30  ;;  %2633 = vmatmul.f32.vlgmr.msrb.gmra.mxu0 %v8351_v49  ;;  %v9714_v30 = vld [vmem:[#allocation87_spill] sm:$0xff] }
 0x4ec   :  { %2638 = vmatpush.msrb.mxu1 %v3638_v37  ;;  %2673 = vmatmul.f32.vlgmr.msrb.gmra.mxu2 %v8351_v49  ;;  %v9715_v37 = vld [vmem:[#allocation35_spill] sm:$0xff] }
 0x4ed   :  { %2599 = vmatpush.msrb.mxu3 %v3639_v8  ;;  %2764 = vmatpush.msra.mxu0 %v7475_v31  ;;  %v3643_v31 = vld [vmem:[%s8682_s5 + $0x160] sm:$0xff] }
 0x4ee   :  { %2639 = vmatpush.msrb.mxu1 %v3640_v5  ;;  %2804 = vmatpush.msra.mxu2 %v7482_v14  ;;  %v3644_v14 = vld [vmem:[%s8682_s5 + $0x170] sm:$0xff]  ;;  %v9716_v8 = vld [vmem:[#allocation91_spill] sm:$0xff]  ;;  %v9717_v5 = vld [vmem:[#allocation36_spill] sm:$0xff] }
 0x4ef   :  { %2600 = vmatpush.msrb.mxu3 %v3641_v20  ;;  %2765 = vmatpush.msra.mxu0 %v7489_v9  ;;  %v3645_v9 = vld [vmem:[%s8682_s5 + $0x140] sm:$0xff]  ;;  %v9718_v20 = vld [vmem:[#allocation93_spill] sm:$0xff] }
 0x4f0   :  { %2640 = vmatpush.msrb.mxu1 %v3642_v35  ;;  %2465 = vmatmul.f32.vlgmr.msra.gmra.mxu3 %v8351_v49  ;;  %v9719_v35 = vld [vmem:[#allocation39_spill] sm:$0xff] }
 0x4f1   :  { %2505 = vmatmul.f32.vlgmr.msra.gmra.mxu1 %v8351_v49  ;;  %2601 = vmatpush.msrb.mxu3 %v3643_v31  ;;  %v9720_v31 = vld [vmem:[#allocation96_spill] sm:$0xff] }
 0x4f2   :  { %2641 = vmatpush.msrb.mxu1 %v3644_v14  ;;  %2805 = vmatpush.msra.mxu2 %v7500_v36  ;;  %v3648_v36 = vld [vmem:[%s8682_s5 + $0x130] sm:$0xff]  ;;  %v9721_v14 = vld [vmem:[#allocation40_spill] sm:$0xff] }
 0x4f3   :  { %2602 = vmatpush.msrb.mxu3 %v3645_v9  ;;  %2766 = vmatpush.msra.mxu0 %v7507_v7  ;;  %v3649_v7 = vld [vmem:[%s8682_s5 + $0x100] sm:$0xff]  ;;  %v9722_v9 = vld [vmem:[#allocation97_spill] sm:$0xff] }
 0x4f4   :  { %2642 = vmatpush.msrb.mxu1 %v3646_v11  ;;  %2806 = vmatpush.msra.mxu2 %v7514_v13  ;;  %v3650_v13 = vld [vmem:[%s8682_s5 + $0x110] sm:$0xff]  ;;  %v9723_v11 = vld [vmem:[#allocation43_spill] sm:$0xff] }
 0x4f5   :  { %2603 = vmatpush.msrb.mxu3 %v3647_v6  ;;  %2767 = vmatpush.msra.mxu0 %v7521_v38  ;;  %v3651_v38 = vld [vmem:[%s8682_s5 + $0xe0] sm:$0xff]  ;;  %v9724_v6 = vld [vmem:[#allocation44_spill] sm:$0xff] }
 0x4f6   :  { %2643 = vmatpush.msrb.mxu1 %v3648_v36  ;;  %2807 = vmatpush.msra.mxu2 %v7528_v12  ;;  %v9683_v12 = vld [vmem:[#allocation24_spill] sm:$0xff]  ;;  %v9725_v36 = vld [vmem:[#allocation49_spill] sm:$0xff] }
 0x4f7   :  { %2604 = vmatpush.msrb.mxu3 %v3649_v7  ;;  %2768 = vmatpush.msra.mxu0 %v7535_v59  ;;  %v9684_v59 = vld [vmem:[#allocation27_spill] sm:$0xff]  ;;  %v9726_v7 = vld [vmem:[#allocation50_spill] sm:$0xff] }
 0x4f8   :  { %2644 = vmatpush.msrb.mxu1 %v3650_v13  ;;  %2808 = vmatpush.msra.mxu2 %v7542_v34  ;;  %v9685_v34 = vld [vmem:[#allocation28_spill] sm:$0xff]  ;;  %v9727_v13 = vld [vmem:[#allocation55_spill] sm:$0xff] }
 0x4f9   :  { %2605 = vmatpush.msrb.mxu3 %v3651_v38  ;;  %2769 = vmatpush.msra.mxu0 %v9683_v12  ;;  %v9728_v38 = vld [vmem:[#allocation56_spill] sm:$0xff]  ;;  %v9729_v12 = vld [vmem:[#allocation59_spill] sm:$0xff] }
 0x4fa   :  { %2645 = vmatpush.msrb.mxu1 %v3652_v48  ;;  %2809 = vmatpush.msra.mxu2 %v9684_v59  ;;  %v9730_v48 = vld [vmem:[#allocation60_spill] sm:$0xff] }
 0x4fb   :  { %2606 = vmatpush.msrb.mxu3 %v3653_v53  ;;  %2770 = vmatpush.msra.mxu0 %v9685_v34  ;;  %v9731_v59 = vld [vmem:[#allocation64_spill] sm:$0xff]  ;;  %v9732_v53 = vld [vmem:[#allocation65_spill] sm:$0xff]  ;;  %v9733_v34 = vld [vmem:[#allocation70_spill] sm:$0xff] }
 0x4fc   :  { %2646 = vmatpush.msrb.mxu1 %v3654_v27  ;;  %2810 = vmatpush.msra.mxu2 %v9686_v28  ;;  %v9734_v27 = vld [vmem:[#allocation71_spill] sm:$0xff] }
 0x4fd   :  { %2607 = vmatpush.msrb.mxu3 %v3655_v43  ;;  %2771 = vmatpush.msra.mxu0 %v9687_v19  ;;  %v9735_v28 = vld [vmem:[#allocation75_spill] sm:$0xff]  ;;  %v9736_v43 = vld [vmem:[#allocation76_spill] sm:$0xff] }
 0x4fe   :  { %2647 = vmatpush.msrb.mxu1 %v3656_v16  ;;  %2811 = vmatpush.msra.mxu2 %v9688_v24  ;;  %v9737_v19 = vld [vmem:[#allocation79_spill] sm:$0xff]  ;;  %v9738_v16 = vld [vmem:[#allocation80_spill] sm:$0xff] }
 0x4ff   :  { %2608 = vmatpush.msrb.mxu3 %v3657_v62  ;;  %2772 = vmatpush.msra.mxu0 %v9689_v15  ;;  %v9739_v24 = vld [vmem:[#allocation84_spill] sm:$0xff]  ;;  %v9740_v62 = vld [vmem:[#allocation85_spill] sm:$0xff] }
 0x500   :  { %2648 = vmatpush.msrb.mxu1 %v3658_v22  ;;  %2812 = vmatpush.msra.mxu2 %v9690_v32  ;;  %v9741_v15 = vld [vmem:[#allocation89_spill] sm:$0xff]  ;;  %v9742_v22 = vld [vmem:[#allocation90_spill] sm:$0xff] }
 0x501   :  { %2609 = vmatpush.msrb.mxu3 %v3659_v60  ;;  %2773 = vmatpush.msra.mxu0 %v9691_v2  ;;  %v9743_v32 = vld [vmem:[#allocation94_spill] sm:$0xff]  ;;  %v9744_v60 = vld [vmem:[#allocation95_spill] sm:$0xff] }
 0x502   :  { %2649 = vmatpush.msrb.mxu1 %v3660_v23  ;;  %2813 = vmatpush.msra.mxu2 %v9692_v57  ;;  %v9745_v2 = vld [vmem:[#allocation98_spill] sm:$0xff]  ;;  %v9746_v23 = vld [vmem:[#allocation99_spill] sm:$0xff]  ;;  %v9747_v57 = vld [vmem:[#allocation32_spill] sm:$0xff] }
 0x503   :  { %2610 = vmatpush.msrb.mxu3 %v3661_v40  ;;  %2774 = vmatpush.msra.mxu0 %v9693_v46  ;;  %v9748_v40 = vld [vmem:[#allocation48_spill] sm:$0xff]  ;;  %v9749_v46 = vld [vmem:[#allocation46_spill] sm:$0xff] }
 0x504   :  { %2650 = vmatpush.msrb.mxu1 %v3662_v58  ;;  %2814 = vmatpush.msra.mxu2 %v9694_v1  ;;  %v9750_v58 = vld [vmem:[#allocation34_spill] sm:$0xff]  ;;  %v9751_v1 = vld [vmem:[#allocation3_spill] sm:$0xff] }
 0x505   :  { %2611 = vmatpush.msrb.mxu3 %v3663_v25  ;;  %2775 = vmatpush.msra.mxu0 %v9695_v26  ;;  %v9752_v25 = vld [vmem:[#allocation4_spill] sm:$0xff]  ;;  %v9753_v26 = vld [vmem:[#allocation5_spill] sm:$0xff] }
 0x506   :  { %2651 = vmatpush.msrb.mxu1 %v3664_v52  ;;  %2815 = vmatpush.msra.mxu2 %v9696_v33  ;;  %v9754_v52 = vld [vmem:[#allocation6_spill] sm:$0xff]  ;;  %v9755_v33 = vld [vmem:[#allocation7_spill] sm:$0xff] }
 0x507   :  { %2612 = vmatpush.msrb.mxu3 %v3665_v55  ;;  %2776 = vmatpush.msra.mxu0 %v9697_v51  ;;  %v9756_v55 = vld [vmem:[#allocation8_spill] sm:$0xff]  ;;  %v9757_v51 = vld [vmem:[#allocation9_spill] sm:$0xff] }
 0x508   :  { %2652 = vmatpush.msrb.mxu1 %v3666_v54  ;;  %2613 = vmatmul.f32.vlgmr.msrb.gmra.mxu3 %v8351_v49  ;;  %v9758_v54 = vld [vmem:[#allocation10_spill] sm:$0xff] }
 0x509   :  { %2653 = vmatmul.f32.vlgmr.msrb.gmra.mxu1 %v8351_v49  ;;  %2816 = vmatpush.msra.mxu2 %v9698_v0  ;;  %v9711_v49 = vld [vmem:[#allocation82_spill] sm:$0xff]  ;;  %v9759_v0 = vld [vmem:[#allocation11_spill] sm:$0xff] }
 0x50a   :  { %2777 = vmatpush.msra.mxu0 %v9699_v41  ;;  %2744 = vmatpush.msra.mxu3 %v9700_v4  ;;  %v9760_v41 = vld [vmem:[#allocation12_spill] sm:$0xff]  ;;  %v9761_v4 = vld [vmem:[#allocation106_spill] sm:$0xff] }
 0x50b   :  { %2817 = vmatpush.msra.mxu2 %v9701_v42  ;;  %2784 = vmatpush.msra.mxu1 %v9702_v61  ;;  %v9762_v42 = vld [vmem:[#allocation107_spill] sm:$0xff]  ;;  %v9763_v61 = vld [vmem:[#allocation108_spill] sm:$0xff] }
 0x50c   :  { %2778 = vmatpush.msra.mxu0 %v9703_v10  ;;  %2745 = vmatpush.msra.mxu3 %v9704_v39  ;;  %v9764_v10 = vld [vmem:[#allocation109_spill] sm:$0xff]  ;;  %v9765_v39 = vld [vmem:[#allocation110_spill] sm:$0xff] }
 0x50d   :  { %2818 = vmatpush.msra.mxu2 %v9705_v56  ;;  %2785 = vmatpush.msra.mxu1 %v9706_v21  ;;  %v9766_v56 = vld [vmem:[#allocation111_spill] sm:$0xff]  ;;  %v9767_v21 = vld [vmem:[#allocation112_spill] sm:$0xff] }
 0x50e   :  { %2779 = vmatpush.msra.mxu0 %v9707_v44  ;;  %2746 = vmatpush.msra.mxu3 %v9708_v17  ;;  %v9768_v44 = vld [vmem:[#allocation113_spill] sm:$0xff]  ;;  %v9769_v17 = vld [vmem:[#allocation114_spill] sm:$0xff] }
 0x50f   :  { %2819 = vmatpush.msra.mxu2 %v9709_v63  ;;  %2786 = vmatpush.msra.mxu1 %v9712_v50  ;;  %v9770_v63 = vld [vmem:[#allocation115_spill] sm:$0xff]  ;;  %v9773_v50 = vld [vmem:[#allocation118_spill] sm:$0xff] }
 0x510   :  { %2844 = vmatpush.msrb.mxu0 %v9710_v47  ;;  %2747 = vmatpush.msra.mxu3 %v9714_v30  ;;  %v9771_v47 = vld [vmem:[#allocation116_spill] sm:$0xff] }
 0x511   :  { %2884 = vmatpush.msrb.mxu2 %v9711_v49  ;;  %2787 = vmatpush.msra.mxu1 %v9716_v8  ;;  %v9772_v49 = vld [vmem:[#allocation117_spill] sm:$0xff]  ;;  %v9775_v30 = vld [vmem:[#allocation120_spill] sm:$0xff]  ;;  %v9777_v8 = vld [vmem:[#allocation122_spill] sm:$0xff] }
 0x512   :  { %2845 = vmatpush.msrb.mxu0 %v9713_v29  ;;  %2748 = vmatpush.msra.mxu3 %v9718_v20  ;;  %v9774_v29 = vld [vmem:[#allocation119_spill] sm:$0xff]  ;;  %v9779_v20 = vld [vmem:[#allocation124_spill] sm:$0xff] }
 0x513   :  { %2885 = vmatpush.msrb.mxu2 %v9715_v37  ;;  %2788 = vmatpush.msra.mxu1 %v9720_v31  ;;  %v9776_v37 = vld [vmem:[#allocation121_spill] sm:$0xff]  ;;  %v9781_v31 = vld [vmem:[#allocation126_spill] sm:$0xff] }
 0x514   :  { %2846 = vmatpush.msrb.mxu0 %v9717_v5  ;;  %2749 = vmatpush.msra.mxu3 %v9722_v9  ;;  %v9778_v5 = vld [vmem:[#allocation123_spill] sm:$0xff]  ;;  %v9783_v9 = vld [vmem:[#allocation128_spill] sm:$0xff] }
 0x515   :  { %2886 = vmatpush.msrb.mxu2 %v9719_v35  ;;  %2789 = vmatpush.msra.mxu1 %v9724_v6  ;;  %v9780_v35 = vld [vmem:[#allocation125_spill] sm:$0xff]  ;;  %v9785_v6 = vld [vmem:[#allocation130_spill] sm:$0xff] }
 0x516   :  { %2847 = vmatpush.msrb.mxu0 %v9721_v14  ;;  %2750 = vmatpush.msra.mxu3 %v9726_v7  ;;  %v9782_v14 = vld [vmem:[#allocation127_spill] sm:$0xff]  ;;  %v9787_v7 = vld [vmem:[#allocation132_spill] sm:$0xff] }
 0x517   :  { %2887 = vmatpush.msrb.mxu2 %v9723_v11  ;;  %2790 = vmatpush.msra.mxu1 %v9728_v38  ;;  %v9784_v11 = vld [vmem:[#allocation129_spill] sm:$0xff]  ;;  %v9789_v38 = vld [vmem:[#allocation134_spill] sm:$0xff] }
 0x518   :  { %2848 = vmatpush.msrb.mxu0 %v9725_v36  ;;  %2751 = vmatpush.msra.mxu3 %v9730_v48  ;;  %v9786_v36 = vld [vmem:[#allocation131_spill] sm:$0xff]  ;;  %v9791_v48 = vld [vmem:[#allocation136_spill] sm:$0xff] }
 0x519   :  { %2888 = vmatpush.msrb.mxu2 %v9727_v13  ;;  %2791 = vmatpush.msra.mxu1 %v9732_v53  ;;  %v9788_v13 = vld [vmem:[#allocation133_spill] sm:$0xff]  ;;  %v9793_v53 = vld [vmem:[#allocation138_spill] sm:$0xff] }
 0x51a   :  { %2849 = vmatpush.msrb.mxu0 %v9729_v12  ;;  %2752 = vmatpush.msra.mxu3 %v9734_v27  ;;  %v9790_v12 = vld [vmem:[#allocation135_spill] sm:$0xff]  ;;  %v9795_v27 = vld [vmem:[#allocation140_spill] sm:$0xff] }
 0x51b   :  { %2889 = vmatpush.msrb.mxu2 %v9731_v59  ;;  %2792 = vmatpush.msra.mxu1 %v9736_v43  ;;  %v9792_v59 = vld [vmem:[#allocation137_spill] sm:$0xff]  ;;  %v9797_v43 = vld [vmem:[#allocation142_spill] sm:$0xff] }
 0x51c   :  { %2850 = vmatpush.msrb.mxu0 %v9733_v34  ;;  %2753 = vmatpush.msra.mxu3 %v9738_v16  ;;  %v9794_v34 = vld [vmem:[#allocation139_spill] sm:$0xff]  ;;  %v9799_v16 = vld [vmem:[#allocation144_spill] sm:$0xff] }
 0x51d   :  { %2890 = vmatpush.msrb.mxu2 %v9735_v28  ;;  %2793 = vmatpush.msra.mxu1 %v9740_v62  ;;  %v9796_v28 = vld [vmem:[#allocation141_spill] sm:$0xff] }
 0x51e   :  { %2851 = vmatpush.msrb.mxu0 %v9737_v19  ;;  %2754 = vmatpush.msra.mxu3 %v9742_v22  ;;  %v9798_v19 = vld [vmem:[#allocation143_spill] sm:$0xff] }
 0x51f   :  { %2891 = vmatpush.msrb.mxu2 %v9739_v24  ;;  %2794 = vmatpush.msra.mxu1 %v9744_v60  ;;  %v9800_v24 = vld [vmem:[#allocation145_spill] sm:$0xff] }
 0x520   :  { %2852 = vmatpush.msrb.mxu0 %v9741_v15  ;;  %2755 = vmatpush.msra.mxu3 %v9746_v23 }
 0x521   :  { %2892 = vmatpush.msrb.mxu2 %v9743_v32  ;;  %2795 = vmatpush.msra.mxu1 %v9748_v40  ;;  %v9801_v32 = vld [vmem:[#allocation13_spill] sm:$0xff] }
 0x522   :  { %2853 = vmatpush.msrb.mxu0 %v9745_v2  ;;  %2756 = vmatpush.msra.mxu3 %v9750_v58 }
 0x523   :  { %2893 = vmatpush.msrb.mxu2 %v9747_v57  ;;  %2796 = vmatpush.msra.mxu1 %v9752_v25 }
 0x524   :  { %2854 = vmatpush.msrb.mxu0 %v9749_v46  ;;  %2757 = vmatpush.msra.mxu3 %v9754_v52  ;;  %v9802_v46 = vld [vmem:[#allocation14_spill] sm:$0xff] }
 0x525   :  { %2894 = vmatpush.msrb.mxu2 %v9751_v1  ;;  %2797 = vmatpush.msra.mxu1 %v9756_v55 }
 0x526   :  { %2855 = vmatpush.msrb.mxu0 %v9753_v26  ;;  %2758 = vmatpush.msra.mxu3 %v9758_v54  ;;  %v9803_v26 = vld [vmem:[#allocation15_spill] sm:$0xff] }
 0x527   :  { %2895 = vmatpush.msrb.mxu2 %v9755_v33  ;;  %2798 = vmatpush.msra.mxu1 %v9760_v41 }
 0x528   :  { %2856 = vmatpush.msrb.mxu0 %v9757_v51  ;;  %2759 = vmatpush.msra.mxu3 %v9762_v42  ;;  %v9804_v42 = vld [vmem:[#allocation102_spill] sm:$0xff] }
 0x529   :  { %2896 = vmatpush.msrb.mxu2 %v9759_v0  ;;  %2799 = vmatpush.msra.mxu1 %v9764_v10 }
 0x52a   :  { %2857 = vmatpush.msrb.mxu0 %v9761_v4  ;;  %2824 = vmatpush.msrb.mxu3 %v9766_v56 }
 0x52b   :  { %2897 = vmatpush.msrb.mxu2 %v9763_v61  ;;  %2864 = vmatpush.msrb.mxu1 %v9768_v44 }
 0x52c   :  { %2858 = vmatpush.msrb.mxu0 %v9765_v39  ;;  %2825 = vmatpush.msrb.mxu3 %v9770_v63 }
 0x52d   :  { %2898 = vmatpush.msrb.mxu2 %v9767_v21  ;;  %2865 = vmatpush.msrb.mxu1 %v9772_v49 }
 0x52e   :  { %2859 = vmatpush.msrb.mxu0 %v9769_v17  ;;  %2826 = vmatpush.msrb.mxu3 %v9773_v50 }
 0x52f   :  { %2899 = vmatpush.msrb.mxu2 %v9771_v47  ;;  %2866 = vmatpush.msrb.mxu1 %v9774_v29  ;;  %v9805_v47 = vld [vmem:[#allocation16_spill] sm:$0xff] }
 0x530   :  { %2827 = vmatpush.msrb.mxu3 %v9775_v30 }
 0x531   :  { %2867 = vmatpush.msrb.mxu1 %v9776_v37 }
 0x532   :  { %2828 = vmatpush.msrb.mxu3 %v9777_v8 }
 0x533   :  { %2868 = vmatpush.msrb.mxu1 %v9778_v5 }
 0x534   :  { %2829 = vmatpush.msrb.mxu3 %v9779_v20 }
 0x535   :  { %2869 = vmatpush.msrb.mxu1 %v9780_v35 }
 0x536   :  { %2830 = vmatpush.msrb.mxu3 %v9781_v31 }
 0x537   :  { %2870 = vmatpush.msrb.mxu1 %v9782_v14  ;;  %v9806_v14 = vld [vmem:[#allocation105_spill] sm:$0xff] }
 0x538   :  { %2831 = vmatpush.msrb.mxu3 %v9783_v9 }
 0x539   :  { %2871 = vmatpush.msrb.mxu1 %v9784_v11 }
 0x53a   :  { %2832 = vmatpush.msrb.mxu3 %v9785_v6 }
 0x53b   :  { %2872 = vmatpush.msrb.mxu1 %v9786_v36 }
 0x53c   :  { %2833 = vmatpush.msrb.mxu3 %v9787_v7 }
 0x53d   :  { %2873 = vmatpush.msrb.mxu1 %v9788_v13 }
 0x53e   :  { %2834 = vmatpush.msrb.mxu3 %v9789_v38 }
 0x53f   :  { %2874 = vmatpush.msrb.mxu1 %v9790_v12 }
 0x540   :  { %2835 = vmatpush.msrb.mxu3 %v9791_v48 }
 0x541   :  { %2875 = vmatpush.msrb.mxu1 %v9792_v59 }
 0x542   :  { %2836 = vmatpush.msrb.mxu3 %v9793_v53 }
 0x543   :  { %2876 = vmatpush.msrb.mxu1 %v9794_v34 }
 0x544   :  { %2837 = vmatpush.msrb.mxu3 %v9795_v27 }
 0x545   :  { %2877 = vmatpush.msrb.mxu1 %v9796_v28 }
 0x546   :  { %2838 = vmatpush.msrb.mxu3 %v9797_v43  ;;  %v2406_v62 = vpop.f32.mrf.mxu0 }
 0x547   :  { %2878 = vmatpush.msrb.mxu1 %v9798_v19 }
 0x548   :  { %2839 = vmatpush.msrb.mxu3 %v9799_v16 }
 0x549   :  { %2879 = vmatpush.msrb.mxu1 %v9800_v24 }
 0x54c   :  { %v2446_v22 = vpop.f32.mrf.mxu2 }
 0x54e   :  { %v2486_v40 = vpop.f32.mrf.mxu0 }
 0x554   :  { %v2526_v33 = vpop.f32.mrf.mxu2 }
 0x565   :  { %v2426_v15 = vpop.f32.mrf.mxu1 }
 0x566   :  { %v2427_v60 = vadd.f32 %v2426_v15, %v9801_v32 }
 0x568   :  { %v2447_v2 = vadd.f32 %v2446_v22, %v2427_v60  ;;  %v2634_v4 = vpop.f32.mrf.mxu0 }
 0x569   :  { %v2678_v61 = vadd.f32 %v2634_v4, %v9804_v42 }
 0x56a   :  { %v3048_v23 = vmul.f32 -1.442695, %v2447_v2 }
 0x56b   :  { %v2386_v57 = vpop.f32.mrf.mxu3  ;;  %v3051_v44 = vmul.f32 -1.442695, %v2678_v61 }
 0x56c   :  { %3203 = vpow2.f32 %v3048_v23  ;;  %v2387_v58 = vadd.f32 %v2386_v57, %v9802_v46 }
 0x56e   :  { %v2407_v1 = vadd.f32 %v2406_v62, %v2387_v58  ;;  %v2506_v25 = vpop.f32.mrf.mxu1 }
 0x56f   :  { %v2507_v52 = vadd.f32 %v2506_v25, %v9803_v26  ;;  %v2674_v37 = vpop.f32.mrf.mxu2 }
 0x570   :  { %v3047_v55 = vmul.f32 -1.442695, %v2407_v1  ;;  %v2680_v9 = vadd.f32 %v2674_v37, %v9806_v14 }
 0x571   :  { %v2527_v51 = vadd.f32 %v2526_v33, %v2507_v52 }
 0x572   :  { %v3204_v54 = vpop.eup %3203  ;;  %3205 = vpow2.f32 %v3047_v55  ;;  %v3052_v27 = vmul.f32 -1.442695, %v2680_v9 }
 0x573   :  { %v2551_v0 = vadd.f32 1.0, %v3204_v54  ;;  %v3049_v41 = vmul.f32 -1.442695, %v2527_v51  ;;  %v2466_v56 = vpop.f32.mrf.mxu3 }
 0x574   :  { %v2467_v49 = vadd.f32 %v2466_v56, %v9805_v47 }
 0x575   :  { %3207 = vrcp.f32 %v2551_v0  ;;  %v2563_v31 = vand.u32 2147483648, %v2551_v0  ;;  %vm2557_vm14 = vweird.f32 %v2551_v0  ;;  %v2561_v6 = vand.u32 2147483647, %v2551_v0 }
 0x576   :  { %3209 = vpow2.f32 %v3049_v41  ;;  %v2487_v5 = vadd.f32 %v2486_v40, %v2467_v49  ;;  %v9809_v40 = vld [vmem:[#allocation104_spill] sm:$0xff] }
 0x577   :  { %v2564_v53 = vor.u32 1.1754944e-38, %v2563_v31  ;;  %vm2562_vm2 = vcmp.eq.f32.partialorder %v2561_v6, 8.507059e+37 }
 0x578   :  { %v3206_v10 = vpop.eup %3205 }
 0x579   :  { %v2532_v39 = vadd.f32 1.0, %v3206_v10 }
 0x57b   :  { %v3208_v21 = vpop.eup %3207  ;;  %3211 = vrcp.f32 %v2532_v39  ;;  %v2544_v13 = vand.u32 2147483648, %v2532_v39  ;;  %v2542_v48 = vand.u32 2147483647, %v2532_v39  ;;  %vm2538_vm1 = vweird.f32 %v2532_v39 }
 0x57c   :  { %v2553_v17 = vmul.f32 %v3208_v21, %v2551_v0  ;;  %v3210_v63 = vpop.eup %3209  ;;  %3213 = vpow2.f32 %v3051_v44  ;;  %vm2558_vm13 = vweird.f32 %v3208_v21 }
 0x57d   :  { %v2571_v29 = vadd.f32 1.0, %v3210_v63  ;;  %vm8595_vm15 = vmor %vm2557_vm14, %vm2558_vm13  ;;  %v2545_v16 = vor.u32 1.1754944e-38, %v2544_v13  ;;  %vm2543_vm4 = vcmp.eq.f32.partialorder %v2542_v48, 8.507059e+37 }
 0x57e   :  { %v2554_v50 = vsub.f32 1.0, %v2553_v17 }
 0x57f   :  { %3215 = vrcp.f32 %v2571_v29  ;;  %v2583_v33 = vand.u32 2147483648, %v2571_v29  ;;  %vm2577_vm6 = vweird.f32 %v2571_v29  ;;  %v2581_v51 = vand.u32 2147483647, %v2571_v29 }
 0x580   :  { %v2555_v30 = vmul.f32 %v3208_v21, %v2554_v50  ;;  %3217 = vtanh.f32 %v2487_v5 }
 0x581   :  { %v3212_v8 = vpop.eup %3211  ;;  %3219 = vpow2.f32 %v3052_v27  ;;  %v2584_v41 = vor.u32 1.1754944e-38, %v2583_v33  ;;  %vm2582_vm8 = vcmp.eq.f32.partialorder %v2581_v51, 8.507059e+37 }
 0x582   :  { %v2534_v20 = vmul.f32 %v3212_v8, %v2532_v39  ;;  %v2556_v35 = vadd.f32 %v3208_v21, %v2555_v30  ;;  %v3214_v36 = vpop.eup %3213  ;;  %vm2539_vm0 = vweird.f32 %v3212_v8 }
 0x583   :  { %v8601_v28 = vadd.f32 1.0, %v3214_v36  ;;  %vm2540_vm3 = vmor %vm2538_vm1, %vm2539_vm0 }
 0x584   :  { %v2535_v11 = vsub.f32 1.0, %v2534_v20  ;;  %v2560_v59 = vsel %vm8595_vm15, %v3208_v21, %v2556_v35 }
 0x585   :  { %v3216_v38 = vpop.eup %3215  ;;  %v2565_v24 = vsel %vm2562_vm2, %v2564_v53, %v2560_v59  ;;  %3221 = vrcp.f32 %v8601_v28  ;;  %v2715_v5 = vand.u32 2147483648, %v8601_v28  ;;  %vm2709_vm10 = vweird.f32 %v8601_v28 }
 0x586   :  { %v2536_v12 = vmul.f32 %v3212_v8, %v2535_v11  ;;  %v2573_v34 = vmul.f32 %v3216_v38, %v2571_v29  ;;  %v3218_v15 = vpop.eup %3217  ;;  %v2587_v23 = vmul.f32 %v2565_v24, %v8288_v3  ;;  %vm2578_vm5 = vweird.f32 %v3216_v38  ;;  %v2654_v63 = vpop.f32.mrf.mxu1  ;;  %v9810_v29 = vld [vmem:[#allocation103_spill] sm:$0xff] }
 0x587   :  { %v3220_v55 = vpop.eup %3219  ;;  %vm2579_vm7 = vmor %vm2577_vm6, %vm2578_vm5  ;;  %v2679_v30 = vadd.f32 %v2654_v63, %v9810_v29  ;;  %v2716_v6 = vor.u32 1.1754944e-38, %v2715_v5  ;;  %v2972_v29 = vld [vmem:[%s8687_s8 + $0x18] sm:$0xff]  ;;  %v2970_v5 = vld [vmem:[%s8687_s8 + $0x8] sm:$0xff] }
 0x588   :  { %v2537_v43 = vadd.f32 %v3212_v8, %v2536_v12  ;;  %v2574_v19 = vsub.f32 1.0, %v2573_v34  ;;  %v2723_v4 = vadd.f32 1.0, %v3220_v55  ;;  %v2979_v55 = vld [vmem:[%s8687_s8 + $0x50] sm:$0xff] }
 0x58a   :  { %v2541_v62 = vsel %vm2540_vm3, %v3212_v8, %v2537_v43  ;;  %v2575_v22 = vmul.f32 %v3216_v38, %v2574_v19  ;;  %v2735_v19 = vand.u32 2147483648, %v2723_v4  ;;  %vm2729_vm2 = vweird.f32 %v2723_v4 }
 0x58b   :  { %v2546_v60 = vsel %vm2543_vm4, %v2545_v16, %v2541_v62  ;;  %v2614_v2 = vpop.f32.mrf.mxu3  ;;  %v3222_v54 = vpop.eup %3221  ;;  %v2733_v16 = vand.u32 2147483647, %v2723_v4 }
 0x58c   :  { %v2588_v57 = vmul.f32 %v3218_v15, %v2546_v60  ;;  %v2677_v58 = vadd.f32 %v2614_v2, %v9809_v40  ;;  %v2576_v52 = vadd.f32 %v3216_v38, %v2575_v22  ;;  %v2705_v3 = vmul.f32 %v3222_v54, %v8601_v28  ;;  %v2983_v2 = vld [vmem:[%s8687_s8 + $0x70] sm:$0xff] }
 0x58d   :  { %vm2710_vm9 = vweird.f32 %v3222_v54  ;;  %v2736_v62 = vor.u32 1.1754944e-38, %v2735_v19  ;;  %vm2734_vm4 = vcmp.eq.f32.partialorder %v2733_v16, 8.507059e+37 }
 0x58e   :  { %v8606_v1 = vadd.f32 %v2588_v57, %v2587_v23  ;;  %v3050_v25 = vmul.f32 -1.442695, %v2677_v58  ;;  %v2580_v0 = vsel %vm2579_vm7, %v3216_v38, %v2576_v52  ;;  %v2706_v21 = vsub.f32 1.0, %v2705_v3  ;;  %vm2711_vm11 = vmor %vm2709_vm10, %vm2710_vm9  ;;  %v2982_v23 = vld [vmem:[%s8687_s8 + $0x68] sm:$0xff]  ;;  %v2981_v58 = vld [vmem:[%s8687_s8 + $0x60] sm:$0xff] }
 0x58f   :  { %v2585_v61 = vsel %vm2582_vm8, %v2584_v41, %v2580_v0  ;;  %v2980_v52 = vld [vmem:[%s8687_s8 + $0x58] sm:$0xff]  ;;  %v2978_v0 = vld [vmem:[%s8687_s8 + $0x48] sm:$0xff] }
 0x590   :  { %3223 = vtanh.f32 %v8606_v1  ;;  %v2707_v17 = vmul.f32 %v3222_v54, %v2706_v21 }
 0x591   :  { %3225 = vpow2.f32 %v3050_v25 }
 0x592   :  { %3227 = vrcp.f32 %v2723_v4  ;;  %v2708_v37 = vadd.f32 %v3222_v54, %v2707_v17  ;;  %v2974_v17 = vld [vmem:[%s8687_s8 + $0x28] sm:$0xff] }
 0x594   :  { %v2712_v14 = vsel %vm2711_vm11, %v3222_v54, %v2708_v37 }
 0x596   :  { %v3224_v42 = vpop.eup %3223 }
 0x597   :  { %v3226_v10 = vpop.eup %3225  ;;  %v2591_v39 = vmul.f32 %v3224_v42, %v2585_v61 }
 0x598   :  { %v2684_v56 = vadd.f32 1.0, %v3226_v10  ;;  %v3228_v49 = vpop.eup %3227 }
 0x599   :  { %2780 = vmatmul.f32.vlgmr.msra.gmra.mxu0 %v2591_v39  ;;  %2820 = vmatmul.f32.vlgmr.msra.gmra.mxu2 %v2591_v39  ;;  %v8611_v44 = vadd.f32 %v2591_v39, %v8296_v45  ;;  %v2725_v20 = vmul.f32 %v3228_v49, %v2723_v4  ;;  %v2713_v45 = vand.u32 2147483647, %v8601_v28  ;;  %vm2730_vm1 = vweird.f32 %v3228_v49  ;;  %v2977_v4 = vld [vmem:[%s8687_s8 + $0x40] sm:$0xff] }
 0x59a   :  { %3229 = vrcp.f32 %v2684_v56  ;;  %v2696_v31 = vand.u32 2147483648, %v2684_v56  ;;  %v2694_v11 = vand.u32 2147483647, %v2684_v56  ;;  %vm2690_vm14 = vweird.f32 %v2684_v56  ;;  %vm2731_vm3 = vmor %vm2729_vm2, %vm2730_vm1 }
 0x59b   :  { %3231 = vtanh.f32 %v2679_v30  ;;  %v2726_v36 = vsub.f32 1.0, %v2725_v20  ;;  %vm2714_vm13 = vcmp.eq.f32.partialorder %v2713_v45, 8.507059e+37  ;;  %v2971_v30 = vld [vmem:[%s8687_s8 + $0x10] sm:$0xff] }
 0x59c   :  { %v2717_v13 = vsel %vm2714_vm13, %v2716_v6, %v2712_v14  ;;  %v2697_v38 = vor.u32 1.1754944e-38, %v2696_v31  ;;  %vm2695_vm0 = vcmp.eq.f32.partialorder %v2694_v11, 8.507059e+37  ;;  %v2969_v14 = vld [vmem:[%s8687_s8] sm:$0xff] }
 0x59d   :  { %v2727_v59 = vmul.f32 %v3228_v49, %v2726_v36  ;;  %v2739_v34 = vmul.f32 %v2717_v13, %v8334_v18  ;;  %v2984_v18 = vld [vmem:[%s8687_s8 + $0x78] sm:$0xff] }
 0x59f   :  { %v2728_v43 = vadd.f32 %v3228_v49, %v2727_v59 }
 0x5a0   :  { %v3230_v50 = vpop.eup %3229 }
 0x5a1   :  { %v2686_v8 = vmul.f32 %v3230_v50, %v2684_v56  ;;  %2860 = vmatmul.f32.vlgmr.msrb.gmra.mxu0 %v2591_v39  ;;  %2900 = vmatmul.f32.vlgmr.msrb.gmra.mxu2 %v2591_v39  ;;  %vm2691_vm12 = vweird.f32 %v3230_v50  ;;  %v3232_v48 = vpop.eup %3231  ;;  %v2732_v24 = vsel %vm2731_vm3, %v3228_v49, %v2728_v43  ;;  %v2976_v39 = vld [vmem:[%s8687_s8 + $0x38] sm:$0xff] }
 0x5a2   :  { %vm2692_vm15 = vmor %vm2690_vm14, %vm2691_vm12  ;;  %v2737_v22 = vsel %vm2734_vm4, %v2736_v62, %v2732_v24 }
 0x5a3   :  { %v2687_v35 = vsub.f32 1.0, %v2686_v8 }
 0x5a5   :  { %v2688_v9 = vmul.f32 %v3230_v50, %v2687_v35 }
 0x5a7   :  { %v2689_v7 = vadd.f32 %v3230_v50, %v2688_v9 }
 0x5a9   :  { %v2693_v12 = vsel %vm2692_vm15, %v3230_v50, %v2689_v7  ;;  %v2973_v50 = vld [vmem:[%s8687_s8 + $0x20] sm:$0xff] }
 0x5aa   :  { %v2698_v53 = vsel %vm2695_vm0, %v2697_v38, %v2693_v12 }
 0x5ab   :  { %v2740_v27 = vmul.f32 %v3232_v48, %v2698_v53 }
 0x5ad   :  { %v2741_v28 = vadd.f32 %v2740_v27, %v2739_v34 }
 0x5af   :  { %3233 = vtanh.f32 %v2741_v28 }
 0x5b5   :  { %v3234_v15 = vpop.eup %3233 }
 0x5b6   :  { %v2743_v60 = vmul.f32 %v3234_v15, %v2737_v22 }
 0x5b8   :  { %2760 = vmatmul.f32.vlgmr.msra.gmra.mxu3 %v2743_v60  ;;  %2800 = vmatmul.f32.vlgmr.msra.gmra.mxu1 %v2743_v60 }
 0x5b9   :  { %2989 = vmatpush.msra.mxu3 %v2984_v18 }
 0x5bb   :  { %2990 = vmatpush.msra.mxu3 %v2983_v2 }
 0x5bd   :  { %2991 = vmatpush.msra.mxu3 %v2982_v23 }
 0x5bf   :  { %2992 = vmatpush.msra.mxu3 %v2981_v58 }
 0x5c0   :  { %2840 = vmatmul.f32.vlgmr.msrb.gmra.mxu3 %v2743_v60  ;;  %2880 = vmatmul.f32.vlgmr.msrb.gmra.mxu1 %v2743_v60 }
 0x5c1   :  { %2993 = vmatpush.msra.mxu3 %v2980_v52 }
 0x5c3   :  { %2994 = vmatpush.msra.mxu3 %v2979_v55 }
 0x5c5   :  { %2995 = vmatpush.msra.mxu3 %v2978_v0 }
 0x5c7   :  { %2996 = vmatpush.msra.mxu3 %v2977_v4 }
 0x5c9   :  { %2997 = vmatpush.msra.mxu3 %v2976_v39 }
 0x616   :  { %v2781_v41 = vpop.f32.mrf.mxu0 }
 0x61c   :  { %v2821_v57 = vpop.f32.mrf.mxu2 }
 0x61e   :  { %v2861_v36 = vpop.f32.mrf.mxu0 }
 0x624   :  { %v2901_v10 = vpop.f32.mrf.mxu2 }
 0x635   :  { %v2801_v40 = vpop.f32.mrf.mxu1 }
 0x636   :  { %v2802_v25 = vadd.f32 %v2801_v40, %v9801_v32 }
 0x638   :  { %v2822_v33 = vadd.f32 %v2821_v57, %v2802_v25 }
 0x63a   :  { %v3054_v51 = vmul.f32 -1.442695, %v2822_v33 }
 0x63b   :  { %v2761_v54 = vpop.f32.mrf.mxu3 }
 0x63c   :  { %3235 = vpow2.f32 %v3054_v51  ;;  %v2762_v32 = vadd.f32 %v2761_v54, %v9802_v46  ;;  %v2975_v46 = vld [vmem:[%s8687_s8 + $0x30] sm:$0xff] }
 0x63d   :  { %v2881_v3 = vpop.f32.mrf.mxu1  ;;  %2998 = vmatpush.msra.mxu3 %v2975_v46 }
 0x63e   :  { %v2782_v42 = vadd.f32 %v2781_v41, %v2762_v32  ;;  %v2882_v61 = vadd.f32 %v2881_v3, %v9803_v26 }
 0x63f   :  { %2999 = vmatpush.msra.mxu3 %v2974_v17 }
 0x640   :  { %v3053_v56 = vmul.f32 -1.442695, %v2782_v42  ;;  %v2902_v21 = vadd.f32 %v2901_v10, %v2882_v61 }
 0x641   :  { %3000 = vmatpush.msra.mxu3 %v2973_v50 }
 0x642   :  { %v3236_v63 = vpop.eup %3235  ;;  %3237 = vpow2.f32 %v3053_v56  ;;  %v3055_v26 = vmul.f32 -1.442695, %v2902_v21 }
 0x643   :  { %v2926_v49 = vadd.f32 1.0, %v3236_v63  ;;  %3001 = vmatpush.msra.mxu3 %v2972_v29  ;;  %v2841_v45 = vpop.f32.mrf.mxu3 }
 0x644   :  { %3239 = vpow2.f32 %v3055_v26  ;;  %v2842_v11 = vadd.f32 %v2841_v45, %v9805_v47 }
 0x645   :  { %3241 = vrcp.f32 %v2926_v49  ;;  %3002 = vmatpush.msra.mxu3 %v2971_v30  ;;  %v2938_v53 = vand.u32 2147483648, %v2926_v49  ;;  %vm2932_vm6 = vweird.f32 %v2926_v49  ;;  %v2936_v28 = vand.u32 2147483647, %v2926_v49 }
 0x646   :  { %v2862_v38 = vadd.f32 %v2861_v36, %v2842_v11 }
 0x647   :  { %3003 = vmatpush.msra.mxu3 %v2970_v5  ;;  %v2939_v24 = vor.u32 1.1754944e-38, %v2938_v53  ;;  %vm2937_vm10 = vcmp.eq.f32.partialorder %v2936_v28, 8.507059e+37 }
 0x648   :  { %v3238_v37 = vpop.eup %3237 }
 0x649   :  { %v2907_v8 = vadd.f32 1.0, %v3238_v37  ;;  %3004 = vmatpush.msra.mxu3 %v2969_v14 }
 0x64a   :  { %v3240_v20 = vpop.eup %3239 }
 0x64b   :  { %v3242_v35 = vpop.eup %3241  ;;  %3243 = vrcp.f32 %v2907_v8  ;;  %v2946_v31 = vadd.f32 1.0, %v3240_v20  ;;  %v2919_v43 = vand.u32 2147483648, %v2907_v8  ;;  %v2917_v47 = vand.u32 2147483647, %v2907_v8 }
 0x64c   :  { %v2928_v9 = vmul.f32 %v3242_v35, %v2926_v49  ;;  %vm2933_vm5 = vweird.f32 %v3242_v35  ;;  %vm2913_vm9 = vweird.f32 %v2907_v8 }
 0x64d   :  { %3245 = vrcp.f32 %v2946_v31  ;;  %vm2934_vm7 = vmor %vm2932_vm6, %vm2933_vm5  ;;  %v2920_v22 = vor.u32 1.1754944e-38, %v2919_v43  ;;  %vm2918_vm12 = vcmp.eq.f32.partialorder %v2917_v47, 8.507059e+37  ;;  %v2958_v33 = vand.u32 2147483648, %v2946_v31 }
 0x64e   :  { %v2929_v6 = vsub.f32 1.0, %v2928_v9  ;;  %3247 = vtanh.f32 %v2862_v38  ;;  %vm2952_vm14 = vweird.f32 %v2946_v31  ;;  %v2956_v55 = vand.u32 2147483647, %v2946_v31 }
 0x64f   :  { %v2959_v54 = vor.u32 1.1754944e-38, %v2958_v33 }
 0x650   :  { %v2930_v7 = vmul.f32 %v3242_v35, %v2929_v6  ;;  %vm2957_vm0 = vcmp.eq.f32.partialorder %v2956_v55, 8.507059e+37 }
 0x651   :  { %v3244_v13 = vpop.eup %3243 }
 0x652   :  { %v2909_v12 = vmul.f32 %v3244_v13, %v2907_v8  ;;  %v2931_v48 = vadd.f32 %v3242_v35, %v2930_v7  ;;  %vm2914_vm8 = vweird.f32 %v3244_v13 }
 0x653   :  { %v3246_v59 = vpop.eup %3245  ;;  %vm2915_vm11 = vmor %vm2913_vm9, %vm2914_vm8 }
 0x654   :  { %v2910_v34 = vsub.f32 1.0, %v2909_v12  ;;  %v2948_v27 = vmul.f32 %v3246_v59, %v2946_v31  ;;  %v2935_v16 = vsel %vm2934_vm7, %v3242_v35, %v2931_v48  ;;  %v3248_v2 = vpop.eup %3247  ;;  %vm2953_vm13 = vweird.f32 %v3246_v59 }
 0x655   :  { %v2940_v60 = vsel %vm2937_vm10, %v2939_v24, %v2935_v16  ;;  %vm2954_vm15 = vmor %vm2952_vm14, %vm2953_vm13 }
 0x656   :  { %v2911_v19 = vmul.f32 %v3244_v13, %v2910_v34  ;;  %v2949_v62 = vsub.f32 1.0, %v2948_v27  ;;  %v2962_v40 = vmul.f32 %v2940_v60, %v8606_v1  ;;  %v3058_v1 = vld [vmem:[%s8686_s9] ss:$0 sm:$0xff] }
 0x658   :  { %v2912_v15 = vadd.f32 %v3244_v13, %v2911_v19  ;;  %v2950_v23 = vmul.f32 %v3246_v59, %v2949_v62 }
 0x65a   :  { %v2916_v18 = vsel %vm2915_vm11, %v3244_v13, %v2912_v15  ;;  %v2951_v52 = vadd.f32 %v3246_v59, %v2950_v23 }
 0x65b   :  { %v2921_v57 = vsel %vm2918_vm12, %v2920_v22, %v2916_v18 }
 0x65c   :  { %v2963_v58 = vmul.f32 %v3248_v2, %v2921_v57  ;;  %v2955_v51 = vsel %vm2954_vm15, %v3246_v59, %v2951_v52 }
 0x65d   :  { %v2960_v32 = vsel %vm2957_vm0, %v2959_v54, %v2955_v51 }
 0x65e   :  { %v2964_v25 = vadd.f32 %v2963_v58, %v2962_v40 }
 0x660   :  { %3249 = vtanh.f32 %v2964_v25 }
 0x666   :  { %v3250_v0 = vpop.eup %3249 }
 0x667   :  { %v2966_v41 = vmul.f32 %v3250_v0, %v2960_v32 }
 0x669   :  { %v2967_v3 = vadd.f32 %v2966_v41, %v8611_v44 }
 0x66b   :  { %v2968_v4 = vmul.f32 0.16666667, %v2967_v3 }
 0x66d   :  { %3005 = vmatmul.f32.vlgmr.msra.gmra.mxu3 %v2968_v4 }
 0x6f0   :  { %v3006_v42 = vpop.f32.mrf.mxu3 }
 0x6f1   :  { %v3007_v61 = vadd.f32 %v3058_v1, %v3006_v42 }
 0x6f3   :  { %3009 = vst [vmem:[%s8688_s10] sm:$0xff] %v3007_v61 }

</bundles_post_ra>
